<compile_context>
chip_gen: v7x
topology: tpu7x:2x2x1
jax: 0.10.0
libtpu: 0.0.40
codegen_flags: <defaults>
</compile_context>

<pallas_src>
import functools

import jax
import jax.numpy as jnp
from jax.experimental import pallas as pl
from jax.experimental.pallas import tpu as pltpu


# ----------------------------------------------------------------------------
# Helpers
# ----------------------------------------------------------------------------
def _ru(x, m=128):
    """Round up to a multiple of m (lane width)."""
    return ((x + m - 1) // m) * m


def _pad_linear(w, b):
    """Zero-pad a (fin,fout) weight / (fout,) bias to 128-multiples."""
    fi, fo = w.shape
    fip, fop = _ru(fi), _ru(fo)
    w_p = jnp.pad(w, ((0, fip - fi), (0, fop - fo)))
    b_p = jnp.pad(b, (0, fop - fo)).reshape(1, fop)
    return w_p, b_p


# ----------------------------------------------------------------------------
# Fused Pallas kernel: GCN x3 -> gmp -> fc_g1/fc_g2 | dense x3 -> fc1/fc2/out
# ----------------------------------------------------------------------------
def _msf_dta_fused_kernel(
    a_ref, x_ref, batch_ref, target_ref,
    w1, b1, w2, b2, w3, b3,
    wfg1, bfg1, wfg2, bfg2,
    wd, bd, wd2, bd2, wd3, bd3,
    wfc1g, wfc1t, bfc1, wfc2, bfc2,
    wout, bout,
    o_ref, pooled_sc,
    *, num_graphs,
):
    f32 = jnp.float32

    def mm(a, b):
        return jnp.dot(a, b, preferred_element_type=f32)

    a_hat = a_ref[...]                                   # [Np, Np] stays in VMEM

    # --- drug graph branch: three fused GCN layers ---------------------------
    h = x_ref[...]                                       # [Np, 128]
    h = jnp.maximum(mm(a_hat, mm(h, w1[...])) + b1[...], 0.0)   # conv1 + relu
    h = jnp.maximum(mm(a_hat, mm(h, w2[...])) + b2[...], 0.0)   # conv2 + relu
    h = jnp.maximum(mm(a_hat, mm(h, w3[...])) + b3[...], 0.0)   # conv3 + relu

    # --- global max pool per graph (num_graphs is a static Python int) -------
    node_gid = batch_ref[...]                            # [Np, 1] int32, -1 = pad
    neg = jnp.float32(-3.0e38)
    for g in range(num_graphs):
        gmask = node_gid == g                            # [Np, 1] bool
        row = jnp.max(jnp.where(gmask, h, neg), axis=0, keepdims=True)  # [1, C3]
        pooled_sc[g:g + 1, :] = row
    pooled = pooled_sc[...]                              # [B, C3]

    g_feat = jnp.maximum(mm(pooled, wfg1[...]) + bfg1[...], 0.0)   # fc_g1 + relu
    g_feat = mm(g_feat, wfg2[...]) + bfg2[...]                     # fc_g2
    # dropout: identity (inference)

    # --- protein branch -------------------------------------------------------
    xt = jnp.maximum(mm(target_ref[...], wd[...]) + bd[...], 0.0)  # dense + relu
    xt = jnp.maximum(mm(xt, wd2[...]) + bd2[...], 0.0)             # dense_ + relu
    xt = mm(xt, wd3[...]) + bd3[...]                               # dense__

    # --- head: fc1 on cat(g, xt) realized as two summed matmuls ---------------
    xc = jnp.maximum(mm(g_feat, wfc1g[...]) + mm(xt, wfc1t[...]) + bfc1[...],
                     0.0)                                          # fc1 + relu
    xc = jnp.maximum(mm(xc, wfc2[...]) + bfc2[...], 0.0)           # fc2 + relu
    # out: [B,512] @ [512,1] as VPU multiply + lane reduce (no N=1 MXU tile)
    out = jnp.sum(xc * wout[...], axis=-1, keepdims=True) + bout[...]
    o_ref[...] = out.astype(o_ref.dtype)


# ----------------------------------------------------------------------------
# Glue: normalized adjacency (GCNConv's sparse propagate, done densely)
# ----------------------------------------------------------------------------
def normalized_adjacency(edge_index, num_nodes):
    src = edge_index[0]
    dst = edge_index[1]
    a = jnp.zeros((num_nodes, num_nodes), jnp.float32)
    a = a.at[dst, src].set(1.0)                         # message j -> i at A[i, j]
    a = a + jnp.eye(num_nodes, dtype=jnp.float32)       # add self-loops
    deg = jnp.sum(a, axis=1)
    d_inv_sqrt = 1.0 / jnp.sqrt(deg)
    return a * d_inv_sqrt[:, None] * d_inv_sqrt[None, :]


# ----------------------------------------------------------------------------
# Parameters (deterministic, synthetic) + one-time padding / re-layout
# ----------------------------------------------------------------------------
def init_params(key, num_features_xd=78, output_dim=128, n_output=1):
    dims = {
        "gcn1": (num_features_xd, num_features_xd),
        "gcn2": (num_features_xd, num_features_xd * 2),
        "gcn3": (num_features_xd * 2, num_features_xd * 4),
        "fc_g1": (num_features_xd * 4, 1024),
        "fc_g2": (1024, output_dim),
        "dense": (800, 512),
        "dense_": (512, 256),
        "dense__": (256, 128),
        "dense1": (167, 128),
        "fc1": (2 * output_dim, 1024),
        "fc2": (1024, 512),
        "out": (512, n_output),
    }
    params = {}
    keys = jax.random.split(key, len(dims))
    for k, (name, (fin, fout)) in zip(keys, dims.items()):
        kw, kb = jax.random.split(k)
        scale = 1.0 / jnp.sqrt(jnp.float32(fin))
        params[name] = (
            jax.random.normal(kw, (fin, fout), jnp.float32) * scale,
            jax.random.normal(kb, (fout,), jnp.float32) * scale,
        )
    return params


def pad_params(params):
    """One-time pad / split / transpose of weights into lane-dense layout."""
    pp = {}
    for name in ("gcn1", "gcn2", "gcn3", "fc_g1", "fc_g2",
                 "dense", "dense_", "dense__", "fc2"):
        pp[name] = _pad_linear(*params[name])
    # fc1 acts on torch.cat((g, xt), 1): split the weight so the concat never
    # materializes (rows [:output_dim] multiply g, the rest multiply xt).
    w_fc1, b_fc1 = params["fc1"]
    d_g = params["fc_g2"][0].shape[1]                    # output_dim
    w_g, _ = _pad_linear(w_fc1[:d_g, :], b_fc1)
    w_t, b_p = _pad_linear(w_fc1[d_g:, :], b_fc1)
    pp["fc1"] = (w_g, w_t, b_p)
    # 'out' ([512,1]) is applied as a VPU multiply + lane-reduce in-kernel.
    w_out, b_out = params["out"]
    pp["out"] = (w_out.reshape(1, -1), b_out.reshape(1, 1))
    # dense1 (fingerprint branch) is dead code in the reference forward; omitted.
    return pp


# ----------------------------------------------------------------------------
# Forward pass (mirrors MSF_DTA.forward), one fused pallas_call
# ----------------------------------------------------------------------------
@functools.partial(jax.jit, static_argnames=("num_graphs",))
def msf_dta_forward(pp, x, edge_index, batch, fingerprint, target, *,
                    num_graphs):
    del fingerprint  # dense1(fingerprint) result is discarded by the reference

    n, fx = x.shape
    n_pad = _ru(n)
    a_hat = normalized_adjacency(edge_index, n)
    a_hat = jnp.pad(a_hat, ((0, n_pad - n), (0, n_pad - n)))
    x_p = jnp.pad(x, ((0, n_pad - n), (0, _ru(fx) - fx)))
    batch_p = jnp.pad(batch.astype(jnp.int32), (0, n_pad - n),
                      constant_values=-1).reshape(n_pad, 1)
    t_f = target.shape[1]
    target_p = jnp.pad(target, ((0, 0), (0, _ru(t_f) - t_f)))

    w1, b1 = pp["gcn1"]
    w2, b2 = pp["gcn2"]
    w3, b3 = pp["gcn3"]
    wfg1, bfg1 = pp["fc_g1"]
    wfg2, bfg2 = pp["fc_g2"]
    wd, bd = pp["dense"]
    wd2, bd2 = pp["dense_"]
    wd3, bd3 = pp["dense__"]
    wfc1g, wfc1t, bfc1 = pp["fc1"]
    wfc2, bfc2 = pp["fc2"]
    wout, bout = pp["out"]

    args = (a_hat, x_p, batch_p, target_p,
            w1, b1, w2, b2, w3, b3,
            wfg1, bfg1, wfg2, bfg2,
            wd, bd, wd2, bd2, wd3, bd3,
            wfc1g, wfc1t, bfc1, wfc2, bfc2,
            wout, bout)
    c3p = wfg1.shape[0]                                  # padded gcn3 width (384)

    return pl.pallas_call(
        functools.partial(_msf_dta_fused_kernel, num_graphs=num_graphs),
        out_shape=jax.ShapeDtypeStruct((num_graphs, 1), jnp.float32),
        in_specs=[pl.BlockSpec(a.shape, lambda: (0, 0)) for a in args],
        out_specs=pl.BlockSpec((num_graphs, 1), lambda: (0, 0)),
        scratch_shapes=[pltpu.VMEM((num_graphs, c3p), jnp.float32)],
        compiler_params=pltpu.CompilerParams(
            vmem_limit_bytes=48 * 1024 * 1024),
    )(*args)


# ----------------------------------------------------------------------------
if __name__ == "__main__":
    key = jax.random.PRNGKey(0)
    k_param, k_x, k_t, k_f = jax.random.split(key, 4)

    num_graphs = 2
    nodes_per_graph = 5
    n_nodes = num_graphs * nodes_per_graph
    num_features_xd = 78

    # node features
    x = jax.random.normal(k_x, (n_nodes, num_features_xd), jnp.float32)

    # simple bidirectional chain inside each graph
    src, dst = [], []
    for g in range(num_graphs):
        base = g * nodes_per_graph
        for i in range(nodes_per_graph - 1):
            src += [base + i, base + i + 1]
            dst += [base + i + 1, base + i]
    edge_index = jnp.array([src, dst], dtype=jnp.int32)      # [2, E]

    batch = jnp.repeat(jnp.arange(num_graphs, dtype=jnp.int32), nodes_per_graph)

    target = jax.random.normal(k_t, (num_graphs, 800), jnp.float32)
    fingerprint = jax.random.normal(k_f, (num_graphs, 167), jnp.float32)

    params = init_params(k_param, num_features_xd=num_features_xd)
    padded = pad_params(params)

    out = msf_dta_forward(padded, x, edge_index, batch, fingerprint, target,
                          num_graphs=num_graphs)
    out = jax.block_until_ready(out)
    assert out.shape == (num_graphs, 1)
    print("KERNEL_OK")
</pallas_src>

<mosaic_0001>
module attributes {stable_mosaic.version = 11 : i64} {
  func.func @_msf_dta_fused_kernel(%arg0: memref<128x128xf32, #tpu.memory_space<vmem>>, %arg1: memref<128x128xf32, #tpu.memory_space<vmem>>, %arg2: memref<128x1xi32, #tpu.memory_space<vmem>>, %arg3: memref<2x896xf32, #tpu.memory_space<vmem>>, %arg4: memref<128x128xf32, #tpu.memory_space<vmem>>, %arg5: memref<1x128xf32, #tpu.memory_space<vmem>>, %arg6: memref<128x256xf32, #tpu.memory_space<vmem>>, %arg7: memref<1x256xf32, #tpu.memory_space<vmem>>, %arg8: memref<256x384xf32, #tpu.memory_space<vmem>>, %arg9: memref<1x384xf32, #tpu.memory_space<vmem>>, %arg10: memref<384x1024xf32, #tpu.memory_space<vmem>>, %arg11: memref<1x1024xf32, #tpu.memory_space<vmem>>, %arg12: memref<1024x128xf32, #tpu.memory_space<vmem>>, %arg13: memref<1x128xf32, #tpu.memory_space<vmem>>, %arg14: memref<896x512xf32, #tpu.memory_space<vmem>>, %arg15: memref<1x512xf32, #tpu.memory_space<vmem>>, %arg16: memref<512x256xf32, #tpu.memory_space<vmem>>, %arg17: memref<1x256xf32, #tpu.memory_space<vmem>>, %arg18: memref<256x128xf32, #tpu.memory_space<vmem>>, %arg19: memref<1x128xf32, #tpu.memory_space<vmem>>, %arg20: memref<128x1024xf32, #tpu.memory_space<vmem>>, %arg21: memref<128x1024xf32, #tpu.memory_space<vmem>>, %arg22: memref<1x1024xf32, #tpu.memory_space<vmem>>, %arg23: memref<1024x512xf32, #tpu.memory_space<vmem>>, %arg24: memref<1x512xf32, #tpu.memory_space<vmem>>, %arg25: memref<1x512xf32, #tpu.memory_space<vmem>>, %arg26: memref<1x1xf32, #tpu.memory_space<vmem>>, %arg27: memref<2x1xf32, #tpu.memory_space<vmem>>, %arg28: memref<2x384xf32, #tpu.memory_space<vmem>>) attributes {dimension_semantics = [], scalar_prefetch = 0 : i64, scratch_operands = 1 : i64, tpu.core_type = #tpu.core_type<tc>} {
    %c0 = arith.constant 0 : index
    %c0_0 = arith.constant 0 : index
    %0 = vector.load %arg0[%c0, %c0_0] : memref<128x128xf32, #tpu.memory_space<vmem>>, vector<128x128xf32>
    %c0_1 = arith.constant 0 : index
    %c0_2 = arith.constant 0 : index
    %1 = vector.load %arg1[%c0_1, %c0_2] : memref<128x128xf32, #tpu.memory_space<vmem>>, vector<128x128xf32>
    %c0_3 = arith.constant 0 : index
    %c0_4 = arith.constant 0 : index
    %2 = vector.load %arg4[%c0_3, %c0_4] : memref<128x128xf32, #tpu.memory_space<vmem>>, vector<128x128xf32>
    %cst = arith.constant dense<0.000000e+00> : vector<128x128xf32>
    %3 = tpu.matmul %1, %2, %cst {dimension_numbers = #tpu.dot_dimension_numbers<[1], [0], [0], [1], [0, 0, 1, 1], [], []>} : vector<128x128xf32>, vector<128x128xf32>, vector<128x128xf32> -> vector<128x128xf32>
    %cst_5 = arith.constant dense<0.000000e+00> : vector<128x128xf32>
    %4 = tpu.matmul %0, %3, %cst_5 {dimension_numbers = #tpu.dot_dimension_numbers<[1], [0], [0], [1], [0, 0, 1, 1], [], []>} : vector<128x128xf32>, vector<128x128xf32>, vector<128x128xf32> -> vector<128x128xf32>
    %c0_6 = arith.constant 0 : index
    %c0_7 = arith.constant 0 : index
    %5 = vector.load %arg5[%c0_6, %c0_7] : memref<1x128xf32, #tpu.memory_space<vmem>>, vector<1x128xf32>
    %6 = vector.broadcast %5 : vector<1x128xf32> to vector<128x128xf32>
    %7 = arith.addf %4, %6 : vector<128x128xf32>
    %cst_8 = arith.constant 0.000000e+00 : f32
    %8 = vector.broadcast %cst_8 : f32 to vector<128x128xf32>
    %9 = arith.maximumf %7, %8 : vector<128x128xf32>
    %c0_9 = arith.constant 0 : index
    %c0_10 = arith.constant 0 : index
    %10 = vector.load %arg6[%c0_9, %c0_10] : memref<128x256xf32, #tpu.memory_space<vmem>>, vector<128x256xf32>
    %cst_11 = arith.constant dense<0.000000e+00> : vector<128x256xf32>
    %11 = tpu.matmul %9, %10, %cst_11 {dimension_numbers = #tpu.dot_dimension_numbers<[1], [0], [0], [1], [0, 0, 1, 1], [], []>} : vector<128x128xf32>, vector<128x256xf32>, vector<128x256xf32> -> vector<128x256xf32>
    %cst_12 = arith.constant dense<0.000000e+00> : vector<128x256xf32>
    %12 = tpu.matmul %0, %11, %cst_12 {dimension_numbers = #tpu.dot_dimension_numbers<[1], [0], [0], [1], [0, 0, 1, 1], [], []>} : vector<128x128xf32>, vector<128x256xf32>, vector<128x256xf32> -> vector<128x256xf32>
    %c0_13 = arith.constant 0 : index
    %c0_14 = arith.constant 0 : index
    %13 = vector.load %arg7[%c0_13, %c0_14] : memref<1x256xf32, #tpu.memory_space<vmem>>, vector<1x256xf32>
    %14 = vector.broadcast %13 : vector<1x256xf32> to vector<128x256xf32>
    %15 = arith.addf %12, %14 : vector<128x256xf32>
    %cst_15 = arith.constant 0.000000e+00 : f32
    %16 = vector.broadcast %cst_15 : f32 to vector<128x256xf32>
    %17 = arith.maximumf %15, %16 : vector<128x256xf32>
    %c0_16 = arith.constant 0 : index
    %c0_17 = arith.constant 0 : index
    %18 = vector.load %arg8[%c0_16, %c0_17] : memref<256x384xf32, #tpu.memory_space<vmem>>, vector<256x384xf32>
    %cst_18 = arith.constant dense<0.000000e+00> : vector<128x384xf32>
    %19 = tpu.matmul %17, %18, %cst_18 {dimension_numbers = #tpu.dot_dimension_numbers<[1], [0], [0], [1], [0, 0, 1, 1], [], []>} : vector<128x256xf32>, vector<256x384xf32>, vector<128x384xf32> -> vector<128x384xf32>
    %cst_19 = arith.constant dense<0.000000e+00> : vector<128x384xf32>
    %20 = tpu.matmul %0, %19, %cst_19 {dimension_numbers = #tpu.dot_dimension_numbers<[1], [0], [0], [1], [0, 0, 1, 1], [], []>} : vector<128x128xf32>, vector<128x384xf32>, vector<128x384xf32> -> vector<128x384xf32>
    %c0_20 = arith.constant 0 : index
    %c0_21 = arith.constant 0 : index
    %21 = vector.load %arg9[%c0_20, %c0_21] : memref<1x384xf32, #tpu.memory_space<vmem>>, vector<1x384xf32>
    %22 = vector.broadcast %21 : vector<1x384xf32> to vector<128x384xf32>
    %23 = arith.addf %20, %22 : vector<128x384xf32>
    %cst_22 = arith.constant 0.000000e+00 : f32
    %24 = vector.broadcast %cst_22 : f32 to vector<128x384xf32>
    %25 = arith.maximumf %23, %24 : vector<128x384xf32>
    %c0_23 = arith.constant 0 : index
    %c0_24 = arith.constant 0 : index
    %26 = vector.load %arg2[%c0_23, %c0_24] : memref<128x1xi32, #tpu.memory_space<vmem>>, vector<128x1xi32>
    %c0_i32 = arith.constant 0 : i32
    %27 = vector.broadcast %c0_i32 : i32 to vector<128x1xi32>
    %28 = arith.cmpi eq, %26, %27 : vector<128x1xi32>
    %cst_25 = arith.constant -3.000000e+38 : f32
    %29 = vector.shape_cast %28 : vector<128x1xi1> to vector<128x1xi1>
    %30 = vector.broadcast %29 : vector<128x1xi1> to vector<128x384xi1>
    %31 = vector.broadcast %cst_25 : f32 to vector<128x384xf32>
    %32 = arith.select %30, %25, %31 : vector<128x384xi1>, vector<128x384xf32>
    %cst_26 = arith.constant dense<0xFF800000> : vector<384xf32>
    %33 = vector.multi_reduction <maximumf>, %32, %cst_26 [0] : vector<128x384xf32> to vector<384xf32>
    %34 = vector.shape_cast %33 : vector<384xf32> to vector<1x384xf32>
    %c0_27 = arith.constant 0 : index
    %c0_28 = arith.constant 0 : index
    %35 = vector.load %arg28[%c0_27, %c0_28] : memref<2x384xf32, #tpu.memory_space<vmem>>, vector<1x384xf32>
    tpu.vector_store %arg28[%c0_27, %c0_28], %34 {strides = array<i32>} : memref<2x384xf32, #tpu.memory_space<vmem>>, vector<1x384xf32>,
    %c1_i32 = arith.constant 1 : i32
    %36 = vector.broadcast %c1_i32 : i32 to vector<128x1xi32>
    %37 = arith.cmpi eq, %26, %36 : vector<128x1xi32>
    %cst_29 = arith.constant -3.000000e+38 : f32
    %38 = vector.shape_cast %37 : vector<128x1xi1> to vector<128x1xi1>
    %39 = vector.broadcast %38 : vector<128x1xi1> to vector<128x384xi1>
    %40 = vector.broadcast %cst_29 : f32 to vector<128x384xf32>
    %41 = arith.select %39, %25, %40 : vector<128x384xi1>, vector<128x384xf32>
    %cst_30 = arith.constant dense<0xFF800000> : vector<384xf32>
    %42 = vector.multi_reduction <maximumf>, %41, %cst_30 [0] : vector<128x384xf32> to vector<384xf32>
    %43 = vector.shape_cast %42 : vector<384xf32> to vector<1x384xf32>
    %c1 = arith.constant 1 : index
    %c0_31 = arith.constant 0 : index
    %44 = vector.load %arg28[%c1, %c0_31] : memref<2x384xf32, #tpu.memory_space<vmem>>, vector<1x384xf32>
    tpu.vector_store %arg28[%c1, %c0_31], %43 {strides = array<i32>} : memref<2x384xf32, #tpu.memory_space<vmem>>, vector<1x384xf32>,
    %c0_32 = arith.constant 0 : index
    %c0_33 = arith.constant 0 : index
    %45 = vector.load %arg28[%c0_32, %c0_33] : memref<2x384xf32, #tpu.memory_space<vmem>>, vector<2x384xf32>
    %c0_34 = arith.constant 0 : index
    %c0_35 = arith.constant 0 : index
    %46 = vector.load %arg10[%c0_34, %c0_35] : memref<384x1024xf32, #tpu.memory_space<vmem>>, vector<384x1024xf32>
    %cst_36 = arith.constant dense<0.000000e+00> : vector<2x1024xf32>
    %47 = tpu.matmul %45, %46, %cst_36 {dimension_numbers = #tpu.dot_dimension_numbers<[1], [0], [0], [1], [0, 0, 1, 1], [], []>} : vector<2x384xf32>, vector<384x1024xf32>, vector<2x1024xf32> -> vector<2x1024xf32>
    %c0_37 = arith.constant 0 : index
    %c0_38 = arith.constant 0 : index
    %48 = vector.load %arg11[%c0_37, %c0_38] : memref<1x1024xf32, #tpu.memory_space<vmem>>, vector<1x1024xf32>
    %49 = vector.broadcast %48 : vector<1x1024xf32> to vector<2x1024xf32>
    %50 = arith.addf %47, %49 : vector<2x1024xf32>
    %cst_39 = arith.constant 0.000000e+00 : f32
    %51 = vector.broadcast %cst_39 : f32 to vector<2x1024xf32>
    %52 = arith.maximumf %50, %51 : vector<2x1024xf32>
    %c0_40 = arith.constant 0 : index
    %c0_41 = arith.constant 0 : index
    %53 = vector.load %arg12[%c0_40, %c0_41] : memref<1024x128xf32, #tpu.memory_space<vmem>>, vector<1024x128xf32>
    %cst_42 = arith.constant dense<0.000000e+00> : vector<2x128xf32>
    %54 = tpu.matmul %52, %53, %cst_42 {dimension_numbers = #tpu.dot_dimension_numbers<[1], [0], [0], [1], [0, 0, 1, 1], [], []>} : vector<2x1024xf32>, vector<1024x128xf32>, vector<2x128xf32> -> vector<2x128xf32>
    %c0_43 = arith.constant 0 : index
    %c0_44 = arith.constant 0 : index
    %55 = vector.load %arg13[%c0_43, %c0_44] : memref<1x128xf32, #tpu.memory_space<vmem>>, vector<1x128xf32>
    %56 = vector.broadcast %55 : vector<1x128xf32> to vector<2x128xf32>
    %57 = arith.addf %54, %56 : vector<2x128xf32>
    %c0_45 = arith.constant 0 : index
    %c0_46 = arith.constant 0 : index
    %58 = vector.load %arg3[%c0_45, %c0_46] : memref<2x896xf32, #tpu.memory_space<vmem>>, vector<2x896xf32>
    %c0_47 = arith.constant 0 : index
    %c0_48 = arith.constant 0 : index
    %59 = vector.load %arg14[%c0_47, %c0_48] : memref<896x512xf32, #tpu.memory_space<vmem>>, vector<896x512xf32>
    %cst_49 = arith.constant dense<0.000000e+00> : vector<2x512xf32>
    %60 = tpu.matmul %58, %59, %cst_49 {dimension_numbers = #tpu.dot_dimension_numbers<[1], [0], [0], [1], [0, 0, 1, 1], [], []>} : vector<2x896xf32>, vector<896x512xf32>, vector<2x512xf32> -> vector<2x512xf32>
    %c0_50 = arith.constant 0 : index
    %c0_51 = arith.constant 0 : index
    %61 = vector.load %arg15[%c0_50, %c0_51] : memref<1x512xf32, #tpu.memory_space<vmem>>, vector<1x512xf32>
    %62 = vector.broadcast %61 : vector<1x512xf32> to vector<2x512xf32>
    %63 = arith.addf %60, %62 : vector<2x512xf32>
    %cst_52 = arith.constant 0.000000e+00 : f32
    %64 = vector.broadcast %cst_52 : f32 to vector<2x512xf32>
    %65 = arith.maximumf %63, %64 : vector<2x512xf32>
    %c0_53 = arith.constant 0 : index
    %c0_54 = arith.constant 0 : index
    %66 = vector.load %arg16[%c0_53, %c0_54] : memref<512x256xf32, #tpu.memory_space<vmem>>, vector<512x256xf32>
    %cst_55 = arith.constant dense<0.000000e+00> : vector<2x256xf32>
    %67 = tpu.matmul %65, %66, %cst_55 {dimension_numbers = #tpu.dot_dimension_numbers<[1], [0], [0], [1], [0, 0, 1, 1], [], []>} : vector<2x512xf32>, vector<512x256xf32>, vector<2x256xf32> -> vector<2x256xf32>
    %c0_56 = arith.constant 0 : index
    %c0_57 = arith.constant 0 : index
    %68 = vector.load %arg17[%c0_56, %c0_57] : memref<1x256xf32, #tpu.memory_space<vmem>>, vector<1x256xf32>
    %69 = vector.broadcast %68 : vector<1x256xf32> to vector<2x256xf32>
    %70 = arith.addf %67, %69 : vector<2x256xf32>
    %cst_58 = arith.constant 0.000000e+00 : f32
    %71 = vector.broadcast %cst_58 : f32 to vector<2x256xf32>
    %72 = arith.maximumf %70, %71 : vector<2x256xf32>
    %c0_59 = arith.constant 0 : index
    %c0_60 = arith.constant 0 : index
    %73 = vector.load %arg18[%c0_59, %c0_60] : memref<256x128xf32, #tpu.memory_space<vmem>>, vector<256x128xf32>
    %cst_61 = arith.constant dense<0.000000e+00> : vector<2x128xf32>
    %74 = tpu.matmul %72, %73, %cst_61 {dimension_numbers = #tpu.dot_dimension_numbers<[1], [0], [0], [1], [0, 0, 1, 1], [], []>} : vector<2x256xf32>, vector<256x128xf32>, vector<2x128xf32> -> vector<2x128xf32>
    %c0_62 = arith.constant 0 : index
    %c0_63 = arith.constant 0 : index
    %75 = vector.load %arg19[%c0_62, %c0_63] : memref<1x128xf32, #tpu.memory_space<vmem>>, vector<1x128xf32>
    %76 = vector.broadcast %75 : vector<1x128xf32> to vector<2x128xf32>
    %77 = arith.addf %74, %76 : vector<2x128xf32>
    %c0_64 = arith.constant 0 : index
    %c0_65 = arith.constant 0 : index
    %78 = vector.load %arg20[%c0_64, %c0_65] : memref<128x1024xf32, #tpu.memory_space<vmem>>, vector<128x1024xf32>
    %cst_66 = arith.constant dense<0.000000e+00> : vector<2x1024xf32>
    %79 = tpu.matmul %57, %78, %cst_66 {dimension_numbers = #tpu.dot_dimension_numbers<[1], [0], [0], [1], [0, 0, 1, 1], [], []>} : vector<2x128xf32>, vector<128x1024xf32>, vector<2x1024xf32> -> vector<2x1024xf32>
    %c0_67 = arith.constant 0 : index
    %c0_68 = arith.constant 0 : index
    %80 = vector.load %arg21[%c0_67, %c0_68] : memref<128x1024xf32, #tpu.memory_space<vmem>>, vector<128x1024xf32>
    %cst_69 = arith.constant dense<0.000000e+00> : vector<2x1024xf32>
    %81 = tpu.matmul %77, %80, %cst_69 {dimension_numbers = #tpu.dot_dimension_numbers<[1], [0], [0], [1], [0, 0, 1, 1], [], []>} : vector<2x128xf32>, vector<128x1024xf32>, vector<2x1024xf32> -> vector<2x1024xf32>
    %82 = arith.addf %79, %81 : vector<2x1024xf32>
    %c0_70 = arith.constant 0 : index
    %c0_71 = arith.constant 0 : index
    %83 = vector.load %arg22[%c0_70, %c0_71] : memref<1x1024xf32, #tpu.memory_space<vmem>>, vector<1x1024xf32>
    %84 = vector.broadcast %83 : vector<1x1024xf32> to vector<2x1024xf32>
    %85 = arith.addf %82, %84 : vector<2x1024xf32>
    %cst_72 = arith.constant 0.000000e+00 : f32
    %86 = vector.broadcast %cst_72 : f32 to vector<2x1024xf32>
    %87 = arith.maximumf %85, %86 : vector<2x1024xf32>
    %c0_73 = arith.constant 0 : index
    %c0_74 = arith.constant 0 : index
    %88 = vector.load %arg23[%c0_73, %c0_74] : memref<1024x512xf32, #tpu.memory_space<vmem>>, vector<1024x512xf32>
    %cst_75 = arith.constant dense<0.000000e+00> : vector<2x512xf32>
    %89 = tpu.matmul %87, %88, %cst_75 {dimension_numbers = #tpu.dot_dimension_numbers<[1], [0], [0], [1], [0, 0, 1, 1], [], []>} : vector<2x1024xf32>, vector<1024x512xf32>, vector<2x512xf32> -> vector<2x512xf32>
    %c0_76 = arith.constant 0 : index
    %c0_77 = arith.constant 0 : index
    %90 = vector.load %arg24[%c0_76, %c0_77] : memref<1x512xf32, #tpu.memory_space<vmem>>, vector<1x512xf32>
    %91 = vector.broadcast %90 : vector<1x512xf32> to vector<2x512xf32>
    %92 = arith.addf %89, %91 : vector<2x512xf32>
    %cst_78 = arith.constant 0.000000e+00 : f32
    %93 = vector.broadcast %cst_78 : f32 to vector<2x512xf32>
    %94 = arith.maximumf %92, %93 : vector<2x512xf32>
    %c0_79 = arith.constant 0 : index
    %c0_80 = arith.constant 0 : index
    %95 = vector.load %arg25[%c0_79, %c0_80] : memref<1x512xf32, #tpu.memory_space<vmem>>, vector<1x512xf32>
    %96 = vector.broadcast %95 : vector<1x512xf32> to vector<2x512xf32>
    %97 = arith.mulf %94, %96 : vector<2x512xf32>
    %cst_81 = arith.constant dense<0.000000e+00> : vector<2xf32>
    %98 = vector.multi_reduction <add>, %97, %cst_81 [1] : vector<2x512xf32> to vector<2xf32>
    %99 = vector.shape_cast %98 : vector<2xf32> to vector<2x1xf32>
    %c0_82 = arith.constant 0 : index
    %c0_83 = arith.constant 0 : index
    %100 = vector.load %arg26[%c0_82, %c0_83] : memref<1x1xf32, #tpu.memory_space<vmem>>, vector<1x1xf32>
    %101 = vector.broadcast %100 : vector<1x1xf32> to vector<2x1xf32>
    %102 = arith.addf %99, %101 : vector<2x1xf32>
    %c0_84 = arith.constant 0 : index
    %c0_85 = arith.constant 0 : index
    %103 = vector.load %arg27[%c0_84, %c0_85] : memref<2x1xf32, #tpu.memory_space<vmem>>, vector<2x1xf32>
    tpu.vector_store %arg27[%c0_84, %c0_85], %102 {strides = array<i32>} : memref<2x1xf32, #tpu.memory_space<vmem>>, vector<2x1xf32>,
    return
  }
}

</mosaic_0001>

<bundles_post_ra>
// kernel: msf_dta_forward.1
= control target key start
LH: loop header
LB: loop body
LE: loop exit
PB: predicated region body
PF: predicated region fallthrough
CT: control target
= control target key end

     0   :  { %s12249_s0 = inlined_call_operand.vmem [shape: f32[128,128], index: 0, kind: input, shape index: {}]   ;;  %s12250_s1 = inlined_call_operand.vmem [shape: f32[128,128], index: 1, kind: input, shape index: {}]   ;;  %s12251_s2 = inlined_call_operand.vmem [shape: s32[128,1], index: 2, kind: input, shape index: {}]   ;;  %s12252_s3 = inlined_call_operand.vmem [shape: f32[2,896], index: 3, kind: input, shape index: {}]   ;;  %s12253_s4 = inlined_call_operand.hbm [shape: f32[128,128], index: 4, kind: input, shape index: {}]   ;;  %s12254_s5 = inlined_call_operand.hbm [shape: f32[1,128], index: 5, kind: input, shape index: {}]   ;;  %s12255_s6 = inlined_call_operand.hbm [shape: f32[128,256], index: 6, kind: input, shape index: {}]   ;;  %s12256_s7 = inlined_call_operand.hbm [shape: f32[1,256], index: 7, kind: input, shape index: {}]   ;;  %s12257_s8 = inlined_call_operand.hbm [shape: f32[256,384], index: 8, kind: input, shape index: {}]   ;;  %s12258_s9 = inlined_call_operand.hbm [shape: f32[1,384], index: 9, kind: input, shape index: {}]   ;;  %s12259_s10 = inlined_call_operand.hbm [shape: f32[384,1024], index: 10, kind: input, shape index: {}]   ;;  %s12260_s11 = inlined_call_operand.hbm [shape: f32[1,1024], index: 11, kind: input, shape index: {}]   ;;  %s12261_s12 = inlined_call_operand.hbm [shape: f32[1024,128], index: 12, kind: input, shape index: {}]   ;;  %s12262_s13 = inlined_call_operand.hbm [shape: f32[1,128], index: 13, kind: input, shape index: {}]   ;;  %s12263_s14 = inlined_call_operand.hbm [shape: f32[896,512], index: 14, kind: input, shape index: {}]   ;;  %s12264_s15 = inlined_call_operand.hbm [shape: f32[1,512], index: 15, kind: input, shape index: {}]   ;;  %s12265_s16 = inlined_call_operand.hbm [shape: f32[512,256], index: 16, kind: input, shape index: {}]   ;;  %s12266_s17 = inlined_call_operand.hbm [shape: f32[1,256], index: 17, kind: input, shape index: {}]   ;;  %s12267_s18 = inlined_call_operand.hbm [shape: f32[256,128], index: 18, kind: input, shape index: {}]   ;;  %s12268_s19 = inlined_call_operand.hbm [shape: f32[1,128], index: 19, kind: input, shape index: {}]   ;;  %s12269_s20 = inlined_call_operand.hbm [shape: f32[128,1024], index: 20, kind: input, shape index: {}]   ;;  %s12270_s21 = inlined_call_operand.hbm [shape: f32[128,1024], index: 21, kind: input, shape index: {}]   ;;  %s12271_s22 = inlined_call_operand.hbm [shape: f32[1,1024], index: 22, kind: input, shape index: {}]   ;;  %s12272_s23 = inlined_call_operand.hbm [shape: f32[1024,512], index: 23, kind: input, shape index: {}]   ;;  %s12273_s24 = inlined_call_operand.hbm [shape: f32[1,512], index: 24, kind: input, shape index: {}]   ;;  %s12274_s25 = inlined_call_operand.hbm [shape: f32[1,512], index: 25, kind: input, shape index: {}]   ;;  %s12275_s26 = inlined_call_operand.<no memory space> [shape: f32[1,1], index: 26, kind: input, shape index: {}]   ;;  %s12276_s27 = inlined_call_operand.vmem [shape: f32[2,1], index: 27, kind: output, shape index: {}]  }
   0x1   :  { %12308 = sst [smem:[#allocation54_spill]] %s12249_s0  ;;  %v32_v0 = vstv %s12275_s26 }
   0x2   :  { %12309 = sst [smem:[#allocation55_spill]] %s12250_s1  ;;  %33 = vst [vmem:[#allocation3] sm:$0x1] %v32_v0 }
   0x3   :  { %12310 = sst [smem:[#allocation56_spill]] %s12251_s2 }
   0x4   :  { %12311 = sst [smem:[#allocation57_spill]] %s12252_s3 }
   0x5   :  { %12312 = sst [smem:[#allocation58_spill]] %s12253_s4 }
   0x6   :  { %12313 = sst [smem:[#allocation59_spill]] %s12254_s5 }
   0x7   :  { %12314 = sst [smem:[#allocation60_spill]] %s12255_s6 }
   0x8   :  { %12315 = sst [smem:[#allocation61_spill]] %s12256_s7 }
   0x9   :  { %12316 = sst [smem:[#allocation62_spill]] %s12257_s8 }
   0xa   :  { %12317 = sst [smem:[#allocation63_spill]] %s12258_s9 }
   0xb   :  { %12318 = sst [smem:[#allocation64_spill]] %s12259_s10 }
   0xc   :  { %12319 = sst [smem:[#allocation65_spill]] %s12260_s11 }
   0xd   :  { %34 = vsyncpa [#allocation5], 0 }
   0xe   :  { %35 = vsyncpa [#allocation7], 0 }
   0xf   :  { %36 = vsyncpa [#allocation10], 0 }
  0x10   :  { %37 = vsyncpa [#allocation13], 0 }
  0x11   :  { %38 = vsyncpa [#allocation16], 0 }
  0x12   :  { %39 = vsyncpa [#allocation19], 0 }
  0x13   :  { %40 = vsyncpa [#allocation22], 0 }
  0x14   :  { %41 = vsyncpa [#allocation25], 0 }
  0x15   :  { %42 = vsyncpa [#allocation28], 0 }
  0x16   :  { %43 = vsyncpa [#allocation31], 0 }
  0x17   :  { %44 = vsyncpa [#allocation34], 0 }
  0x18   :  { %45 = vsyncpa [#allocation37], 0  ;;  %s10679_s8 = smov [#allocation6]   ;;  %s10680_s9 = smov [#allocation9]  }
  0x19   :  { %s72_s30 = sshll.u32 %s10679_s8, 4  ;;  %s94_s5 = sshll.u32 %s10680_s9, 4  ;;  %s73_s30 = int_to_ptr.vmem [resolvable:$true] %s72_s30  ;;  %s95_s5 = int_to_ptr.vmem [resolvable:$true] %s94_s5 }
  0x1a   :  { %s12320_s0 = sld [smem:[#allocation59_spill]] }
  0x20   :  { %s10171_s10 = scalar_lea.hbm %s12320_s0, 16 }
  0x21   :  { %p10172_p0 = scmp.ne.s32.totalorder %s12320_s0, %s10171_s10  ;;  %p10175_p1 = scmp.lt.u32.totalorder %s10171_s10, %s12320_s0 }
  0x23   :  { %p10177_p2 = pnand %p10175_p1, %p10172_p0 }
  0x25   :  { %10180 = shalt.err (!%p10177_p2)
}
  0x26   :  { %s10181_s2 = scalar_lea.vmem %s73_s30, 16  ;;  %s10185_s3 = scalar_lea.vmem %s73_s30, 32 }
  0x27   :  { %p10182_p3 = scmp.ne.s32.totalorder %s73_s30, %s10181_s2  ;;  %p10186_p4 = scmp.lt.s32.totalorder %s73_s30, %s73_s30 }
  0x28   :  { %p10187_p5 = scmp.lt.s32.totalorder %s10185_s3, %s10181_s2 }
  0x2a   :  { %p10188_p6 = por %p10187_p5, %p10186_p4 }
  0x2c   :  { %p10189_p7 = pnand %p10188_p6, %p10182_p3 }
  0x2e   :  { %10192 = shalt.err (!%p10189_p7)
}
  0x2f   :  { %75 = dma.hbm_to_vmem [thread:$0]  %s12320_s0, 16, %s73_s30, [#allocation7]  }
  0x30   :  { %s12321_s26 = sld [smem:[#allocation61_spill]] }
  0x36   :  { %s10193_s28 = scalar_lea.hbm %s12321_s26, 32 }
  0x37   :  { %p10194_p8 = scmp.ne.s32.totalorder %s12321_s26, %s10193_s28  ;;  %p10197_p9 = scmp.lt.u32.totalorder %s10193_s28, %s12321_s26 }
  0x39   :  { %p10199_p10 = pnand %p10197_p9, %p10194_p8 }
  0x3b   :  { %10202 = shalt.err (!%p10199_p10)
}
  0x3c   :  { %s10203_s11 = scalar_lea.vmem %s95_s5, 32  ;;  %p10208_p12 = scmp.lt.s32.totalorder %s95_s5, %s95_s5 }
  0x3d   :  { %p10204_p11 = scmp.ne.s32.totalorder %s95_s5, %s10203_s11  ;;  %p10209_p13 = scmp.lt.s32.totalorder %s10203_s11, %s10203_s11 }
  0x3f   :  { %p10210_p0 = por %p10209_p13, %p10208_p12 }
  0x41   :  { %p10211_p1 = pnand %p10210_p0, %p10204_p11 }
  0x43   :  { %10214 = shalt.err (!%p10211_p1)
}
  0x44   :  { %97 = dma.hbm_to_vmem [thread:$0]  %s12321_s26, 32, %s95_s5, [#allocation10]  }
  0x45   :  { %s10681_s2 = smov [#allocation12]   ;;  %s10682_s7 = smov [#allocation15]  }
  0x46   :  { %s116_s3 = sshll.u32 %s10681_s2, 4  ;;  %s138_s4 = sshll.u32 %s10682_s7, 4  ;;  %s117_s3 = int_to_ptr.vmem [resolvable:$true] %s116_s3  ;;  %s139_s4 = int_to_ptr.vmem [resolvable:$true] %s138_s4 }
  0x47   :  { %s12322_s28 = sld [smem:[#allocation63_spill]] }
  0x4d   :  { %s10215_s29 = scalar_lea.hbm %s12322_s28, 48 }
  0x4e   :  { %p10216_p2 = scmp.ne.s32.totalorder %s12322_s28, %s10215_s29  ;;  %p10219_p3 = scmp.lt.u32.totalorder %s10215_s29, %s12322_s28 }
  0x50   :  { %p10221_p4 = pnand %p10219_p3, %p10216_p2 }
  0x52   :  { %10224 = shalt.err (!%p10221_p4)
}
  0x53   :  { %s10225_s5 = scalar_lea.vmem %s117_s3, 48  ;;  %s10229_s26 = scalar_lea.vmem %s117_s3, 64 }
  0x54   :  { %p10226_p5 = scmp.ne.s32.totalorder %s117_s3, %s10225_s5  ;;  %p10230_p6 = scmp.lt.s32.totalorder %s117_s3, %s117_s3 }
  0x55   :  { %p10231_p7 = scmp.lt.s32.totalorder %s10229_s26, %s10225_s5 }
  0x57   :  { %p10232_p8 = por %p10231_p7, %p10230_p6 }
  0x59   :  { %p10233_p9 = pnand %p10232_p8, %p10226_p5 }
  0x5b   :  { %10236 = shalt.err (!%p10233_p9)
}
  0x5c   :  { %119 = dma.hbm_to_vmem [thread:$0]  %s12322_s28, 48, %s117_s3, [#allocation13]  }
  0x5d   :  { %s12323_s8 = sld [smem:[#allocation65_spill]] }
  0x63   :  { %s10237_s9 = scalar_lea.hbm %s12323_s8, 128 }
  0x64   :  { %p10238_p10 = scmp.ne.s32.totalorder %s12323_s8, %s10237_s9  ;;  %p10241_p11 = scmp.lt.u32.totalorder %s10237_s9, %s12323_s8 }
  0x66   :  { %p10243_p12 = pnand %p10241_p11, %p10238_p10 }
  0x68   :  { %10246 = shalt.err (!%p10243_p12)
}
  0x69   :  { %s10247_s11 = scalar_lea.vmem %s139_s4, 128  ;;  %p10252_p0 = scmp.lt.s32.totalorder %s139_s4, %s139_s4 }
  0x6a   :  { %p10248_p13 = scmp.ne.s32.totalorder %s139_s4, %s10247_s11  ;;  %p10253_p1 = scmp.lt.s32.totalorder %s10247_s11, %s10247_s11 }
  0x6c   :  { %p10254_p2 = por %p10253_p1, %p10252_p0 }
  0x6e   :  { %p10255_p3 = pnand %p10254_p2, %p10248_p13 }
  0x70   :  { %10258 = shalt.err (!%p10255_p3)
}
  0x71   :  { %141 = dma.hbm_to_vmem [thread:$0]  %s12323_s8, 128, %s139_s4, [#allocation16]  }
  0x72   :  { %s10683_s5 = smov [#allocation18]   ;;  %s10684_s30 = smov [#allocation21]  }
  0x73   :  { %s160_s26 = sshll.u32 %s10683_s5, 4  ;;  %s182_s0 = sshll.u32 %s10684_s30, 4  ;;  %s161_s26 = int_to_ptr.vmem [resolvable:$true] %s160_s26  ;;  %s183_s0 = int_to_ptr.vmem [resolvable:$true] %s182_s0 }
  0x74   :  { %s10259_s9 = scalar_lea.hbm %s12262_s13, 16 }
  0x75   :  { %p10260_p4 = scmp.ne.s32.totalorder %s12262_s13, %s10259_s9  ;;  %p10263_p5 = scmp.lt.u32.totalorder %s10259_s9, %s12262_s13 }
  0x77   :  { %p10265_p6 = pnand %p10263_p5, %p10260_p4 }
  0x79   :  { %10268 = shalt.err (!%p10265_p6)
}
  0x7a   :  { %s10269_s4 = scalar_lea.vmem %s161_s26, 16  ;;  %s10273_s8 = scalar_lea.vmem %s161_s26, 32 }
  0x7b   :  { %p10270_p7 = scmp.ne.s32.totalorder %s161_s26, %s10269_s4  ;;  %p10274_p8 = scmp.lt.s32.totalorder %s161_s26, %s161_s26 }
  0x7c   :  { %p10275_p9 = scmp.lt.s32.totalorder %s10273_s8, %s10269_s4 }
  0x7e   :  { %p10276_p10 = por %p10275_p9, %p10274_p8 }
  0x80   :  { %p10277_p11 = pnand %p10276_p10, %p10270_p7 }
  0x82   :  { %10280 = shalt.err (!%p10277_p11)
}
  0x83   :  { %163 = dma.hbm_to_vmem [thread:$0]  %s12262_s13, 16, %s161_s26, [#allocation19]  }
  0x84   :  { %s10281_s30 = scalar_lea.hbm %s12264_s15, 64 }
  0x85   :  { %p10282_p12 = scmp.ne.s32.totalorder %s12264_s15, %s10281_s30  ;;  %p10285_p13 = scmp.lt.u32.totalorder %s10281_s30, %s12264_s15 }
  0x87   :  { %p10287_p0 = pnand %p10285_p13, %p10282_p12 }
  0x89   :  { %10290 = shalt.err (!%p10287_p0)
}
  0x8a   :  { %s10291_s29 = scalar_lea.vmem %s183_s0, 64  ;;  %p10296_p2 = scmp.lt.s32.totalorder %s183_s0, %s183_s0 }
  0x8b   :  { %p10292_p1 = scmp.ne.s32.totalorder %s183_s0, %s10291_s29  ;;  %p10297_p3 = scmp.lt.s32.totalorder %s10291_s29, %s10291_s29 }
  0x8d   :  { %p10298_p4 = por %p10297_p3, %p10296_p2 }
  0x8f   :  { %p10299_p5 = pnand %p10298_p4, %p10292_p1 }
  0x91   :  { %10302 = shalt.err (!%p10299_p5)
}
  0x92   :  { %185 = dma.hbm_to_vmem [thread:$0]  %s12264_s15, 64, %s183_s0, [#allocation22]  }
  0x93   :  { %s10685_s1 = smov [#allocation24]   ;;  %s10686_s4 = smov [#allocation27]  }
  0x94   :  { %s204_s6 = sshll.u32 %s10685_s1, 4  ;;  %s226_s8 = sshll.u32 %s10686_s4, 4  ;;  %s205_s6 = int_to_ptr.vmem [resolvable:$true] %s204_s6  ;;  %s227_s8 = int_to_ptr.vmem [resolvable:$true] %s226_s8 }
  0x95   :  { %s10303_s28 = scalar_lea.hbm %s12266_s17, 32 }
  0x96   :  { %p10304_p6 = scmp.ne.s32.totalorder %s12266_s17, %s10303_s28  ;;  %p10307_p7 = scmp.lt.u32.totalorder %s10303_s28, %s12266_s17 }
  0x98   :  { %p10309_p8 = pnand %p10307_p7, %p10304_p6 }
  0x9a   :  { %10312 = shalt.err (!%p10309_p8)
}
  0x9b   :  { %s10313_s15 = scalar_lea.vmem %s205_s6, 32  ;;  %p10318_p10 = scmp.lt.s32.totalorder %s205_s6, %s205_s6 }
  0x9c   :  { %p10314_p9 = scmp.ne.s32.totalorder %s205_s6, %s10313_s15  ;;  %p10319_p11 = scmp.lt.s32.totalorder %s10313_s15, %s10313_s15 }
  0x9e   :  { %p10320_p12 = por %p10319_p11, %p10318_p10 }
  0xa0   :  { %p10321_p13 = pnand %p10320_p12, %p10314_p9 }
  0xa2   :  { %10324 = shalt.err (!%p10321_p13)
}
  0xa3   :  { %207 = dma.hbm_to_vmem [thread:$0]  %s12266_s17, 32, %s205_s6, [#allocation25]  }
  0xa4   :  { %s10325_s13 = scalar_lea.hbm %s12268_s19, 16 }
  0xa5   :  { %p10326_p0 = scmp.ne.s32.totalorder %s12268_s19, %s10325_s13  ;;  %p10329_p1 = scmp.lt.u32.totalorder %s10325_s13, %s12268_s19 }
  0xa7   :  { %p10331_p2 = pnand %p10329_p1, %p10326_p0 }
  0xa9   :  { %10334 = shalt.err (!%p10331_p2)
}
  0xaa   :  { %s10335_s3 = scalar_lea.vmem %s227_s8, 16  ;;  %s10339_s28 = scalar_lea.vmem %s227_s8, 32 }
  0xab   :  { %p10336_p3 = scmp.ne.s32.totalorder %s227_s8, %s10335_s3  ;;  %p10340_p4 = scmp.lt.s32.totalorder %s227_s8, %s227_s8 }
  0xac   :  { %p10341_p5 = scmp.lt.s32.totalorder %s10339_s28, %s10335_s3 }
  0xae   :  { %p10342_p6 = por %p10341_p5, %p10340_p4 }
  0xb0   :  { %p10343_p7 = pnand %p10342_p6, %p10336_p3 }
  0xb2   :  { %10346 = shalt.err (!%p10343_p7)
}
  0xb3   :  { %229 = dma.hbm_to_vmem [thread:$0]  %s12268_s19, 16, %s227_s8, [#allocation28]  }
  0xb4   :  { %s10687_s5 = smov [#allocation30]   ;;  %s10347_s15 = scalar_lea.hbm %s12270_s21, 16384 }
  0xb5   :  { %s247_s30 = sshll.u32 %s10687_s5, 4  ;;  %p10348_p8 = scmp.ne.s32.totalorder %s12270_s21, %s10347_s15  ;;  %s248_s30 = int_to_ptr.vmem [resolvable:$true] %s247_s30 }
  0xb6   :  { %p10351_p9 = scmp.lt.u32.totalorder %s10347_s15, %s12270_s21 }
  0xb8   :  { %p10353_p10 = pnand %p10351_p9, %p10348_p8 }
  0xba   :  { %10356 = shalt.err (!%p10353_p10)
}
  0xbb   :  { %s10357_s13 = scalar_lea.vmem %s248_s30, 16384  ;;  %p10362_p12 = scmp.lt.s32.totalorder %s248_s30, %s248_s30 }
  0xbc   :  { %p10358_p11 = scmp.ne.s32.totalorder %s248_s30, %s10357_s13  ;;  %p10363_p13 = scmp.lt.s32.totalorder %s10357_s13, %s10357_s13 }
  0xbe   :  { %p10364_p0 = por %p10363_p13, %p10362_p12 }
  0xc0   :  { %p10365_p1 = pnand %p10364_p0, %p10358_p11 }
  0xc2   :  { %10368 = shalt.err (!%p10365_p1)
}
  0xc3   :  { %s10688_s19 = smov 1024   ;;  %s10689_s8 = smov 64  }
  0xc4   :  { %253 = dma.hbm_to_vmem [thread:$0]  %s12270_s21, 16384, %s248_s30, [#allocation31], %s10688_s19, %s10688_s19, %s10689_s8  }
  0xc5   :  { %s10690_s4 = smov [#allocation33]   ;;  %s10691_s3 = smov [#allocation4]  }
  0xc6   :  { %s269_s11 = sshll.u32 %s10690_s4, 4  ;;  %s59_s28 = sshll.u32 %s10691_s3, 4  ;;  %s270_s11 = int_to_ptr.vmem [resolvable:$true] %s269_s11  ;;  %s60_s28 = int_to_ptr.vmem [resolvable:$true] %s59_s28 }
  0xc7   :  { %s10369_s5 = scalar_lea.hbm %s12272_s23, 65536 }
  0xc8   :  { %p10370_p2 = scmp.ne.s32.totalorder %s12272_s23, %s10369_s5  ;;  %p10373_p3 = scmp.lt.u32.totalorder %s10369_s5, %s12272_s23 }
  0xca   :  { %p10375_p4 = pnand %p10373_p3, %p10370_p2 }
  0xcc   :  { %10378 = shalt.err (!%p10375_p4)
}
  0xcd   :  { %s10379_s21 = scalar_lea.vmem %s270_s11, 65536  ;;  %p10384_p6 = scmp.lt.s32.totalorder %s270_s11, %s270_s11 }
  0xce   :  { %p10380_p5 = scmp.ne.s32.totalorder %s270_s11, %s10379_s21  ;;  %p10385_p7 = scmp.lt.s32.totalorder %s10379_s21, %s10379_s21 }
  0xd0   :  { %p10386_p8 = por %p10385_p7, %p10384_p6 }
  0xd2   :  { %p10387_p9 = pnand %p10386_p8, %p10380_p5 }
  0xd4   :  { %10390 = shalt.err (!%p10387_p9)
}
  0xd5   :  { %s12289_s30 = smov 512   ;;  %s12292_s9 = smov 32  }
  0xd6   :  { %275 = dma.hbm_to_vmem [thread:$0]  %s12272_s23, 65536, %s270_s11, [#allocation34], %s12289_s30, %s12289_s30, %s12292_s9  }
  0xd7   :  { %s12324_s1 = sld [smem:[#allocation58_spill]] }
  0xdd   :  { %s10391_s4 = scalar_lea.hbm %s12324_s1, 2048 }
  0xde   :  { %p10392_p10 = scmp.ne.s32.totalorder %s12324_s1, %s10391_s4  ;;  %p10395_p11 = scmp.lt.u32.totalorder %s10391_s4, %s12324_s1 }
  0xe0   :  { %p10397_p12 = pnand %p10395_p11, %p10392_p10 }
  0xe2   :  { %10400 = shalt.err (!%p10397_p12)
}
  0xe3   :  { %s10401_s2 = scalar_lea.vmem %s60_s28, 2048  ;;  %p10406_p0 = scmp.lt.s32.totalorder %s60_s28, %s60_s28 }
  0xe4   :  { %p10402_p13 = scmp.ne.s32.totalorder %s60_s28, %s10401_s2  ;;  %p10407_p1 = scmp.lt.s32.totalorder %s10401_s2, %s10401_s2 }
  0xe6   :  { %p10408_p2 = por %p10407_p1, %p10406_p0 }
  0xe8   :  { %p10409_p3 = pnand %p10408_p2, %p10402_p13 }
  0xea   :  { %10412 = shalt.err (!%p10409_p3)
}
  0xeb   :  { %s10694_s23 = smov 128   ;;  %s10695_s11 = smov 8  }
  0xec   :  { %65 = dma.hbm_to_vmem [thread:$0]  %s12324_s1, 2048, %s60_s28, [#allocation5], %s10694_s23, %s10694_s23, %s10695_s11  }
  0xed   :  { %s10696_s0 = smov [#allocation8]   ;;  %s12325_s13 = sld [smem:[#allocation60_spill]] }
  0xee   :  { %s81_s21 = sshll.u32 %s10696_s0, 4  ;;  %s82_s21 = int_to_ptr.vmem [resolvable:$true] %s81_s21 }
  0xf3   :  { %s10413_s26 = scalar_lea.hbm %s12325_s13, 4096 }
  0xf4   :  { %p10414_p4 = scmp.ne.s32.totalorder %s12325_s13, %s10413_s26  ;;  %p10417_p5 = scmp.lt.u32.totalorder %s10413_s26, %s12325_s13 }
  0xf6   :  { %p10419_p6 = pnand %p10417_p5, %p10414_p4 }
  0xf8   :  { %10422 = shalt.err (!%p10419_p6)
}
  0xf9   :  { %s10423_s5 = scalar_lea.vmem %s82_s21, 4096  ;;  %p10428_p8 = scmp.lt.s32.totalorder %s82_s21, %s82_s21 }
  0xfa   :  { %p10424_p7 = scmp.ne.s32.totalorder %s82_s21, %s10423_s5  ;;  %p10429_p9 = scmp.lt.s32.totalorder %s10423_s5, %s10423_s5 }
  0xfc   :  { %p10430_p10 = por %p10429_p9, %p10428_p8 }
  0xfe   :  { %p10431_p11 = pnand %p10430_p10, %p10424_p7 }
 0x100   :  { %10434 = shalt.err (!%p10431_p11)
}
 0x101   :  { %s12290_s28 = smov 256   ;;  %s12291_s1 = smov 16  }
 0x102   :  { %87 = dma.hbm_to_vmem [thread:$0]  %s12325_s13, 4096, %s82_s21, [#allocation7], %s12290_s28, %s12290_s28, %s12291_s1  }
 0x103   :  { %s10699_s15 = smov [#allocation11]   ;;  %s12326_s26 = sld [smem:[#allocation62_spill]] }
 0x104   :  { %s103_s0 = sshll.u32 %s10699_s15, 4  ;;  %s104_s0 = int_to_ptr.vmem [resolvable:$true] %s103_s0 }
 0x109   :  { %s10435_s4 = scalar_lea.hbm %s12326_s26, 12288 }
 0x10a   :  { %p10436_p12 = scmp.ne.s32.totalorder %s12326_s26, %s10435_s4  ;;  %p10439_p13 = scmp.lt.u32.totalorder %s10435_s4, %s12326_s26 }
 0x10c   :  { %p10441_p0 = pnand %p10439_p13, %p10436_p12 }
 0x10e   :  { %10444 = shalt.err (!%p10441_p0)
}
 0x10f   :  { %s10445_s30 = scalar_lea.vmem %s104_s0, 12288  ;;  %p10450_p2 = scmp.lt.s32.totalorder %s104_s0, %s104_s0 }
 0x110   :  { %p10446_p1 = scmp.ne.s32.totalorder %s104_s0, %s10445_s30  ;;  %p10451_p3 = scmp.lt.s32.totalorder %s10445_s30, %s10445_s30 }
 0x112   :  { %p10452_p4 = por %p10451_p3, %p10450_p2 }
 0x114   :  { %p10453_p5 = pnand %p10452_p4, %p10446_p1 }
 0x116   :  { %10456 = shalt.err (!%p10453_p5)
}
 0x117   :  { %s10700_s21 = smov 384   ;;  %s10701_s13 = smov 24  }
 0x118   :  { %109 = dma.hbm_to_vmem [thread:$0]  %s12326_s26, 12288, %s104_s0, [#allocation10], %s10700_s21, %s10700_s21, %s10701_s13  }
 0x119   :  { %s10702_s15 = smov [#allocation14]   ;;  %s10703_s29 = smov [#allocation17]  }
 0x11a   :  { %s125_s10 = sshll.u32 %s10702_s15, 4  ;;  %s147_s4 = sshll.u32 %s10703_s29, 4  ;;  %s126_s10 = int_to_ptr.vmem [resolvable:$true] %s125_s10  ;;  %s148_s4 = int_to_ptr.vmem [resolvable:$true] %s147_s4 }
 0x11b   :  { %s12327_s6 = sld [smem:[#allocation64_spill]] }
 0x121   :  { %s10457_s5 = scalar_lea.hbm %s12327_s6, 49152 }
 0x122   :  { %p10458_p6 = scmp.ne.s32.totalorder %s12327_s6, %s10457_s5  ;;  %p10461_p7 = scmp.lt.u32.totalorder %s10457_s5, %s12327_s6 }
 0x124   :  { %p10463_p8 = pnand %p10461_p7, %p10458_p6 }
 0x126   :  { %10466 = shalt.err (!%p10463_p8)
}
 0x127   :  { %s10467_s0 = scalar_lea.vmem %s126_s10, 49152  ;;  %p10472_p10 = scmp.lt.s32.totalorder %s126_s10, %s126_s10 }
 0x128   :  { %p10468_p9 = scmp.ne.s32.totalorder %s126_s10, %s10467_s0  ;;  %p10473_p11 = scmp.lt.s32.totalorder %s10467_s0, %s10467_s0 }
 0x12a   :  { %p10474_p12 = por %p10473_p11, %p10472_p10 }
 0x12c   :  { %p10475_p13 = pnand %p10474_p12, %p10468_p9 }
 0x12e   :  { %10478 = shalt.err (!%p10475_p13)
}
 0x12f   :  { %131 = dma.hbm_to_vmem [thread:$0]  %s12327_s6, 49152, %s126_s10, [#allocation13], %s10688_s19, %s10688_s19, %s10689_s8  }
 0x130   :  { %s10479_s1 = scalar_lea.hbm %s12261_s12, 16384 }
 0x131   :  { %p10480_p0 = scmp.ne.s32.totalorder %s12261_s12, %s10479_s1  ;;  %p10483_p1 = scmp.lt.u32.totalorder %s10479_s1, %s12261_s12 }
 0x133   :  { %p10485_p2 = pnand %p10483_p1, %p10480_p0 }
 0x135   :  { %10488 = shalt.err (!%p10485_p2)
}
 0x136   :  { %s10489_s29 = scalar_lea.vmem %s148_s4, 16384  ;;  %p10494_p4 = scmp.lt.s32.totalorder %s148_s4, %s148_s4 }
 0x137   :  { %p10490_p3 = scmp.ne.s32.totalorder %s148_s4, %s10489_s29  ;;  %p10495_p5 = scmp.lt.s32.totalorder %s10489_s29, %s10489_s29 }
 0x139   :  { %p10496_p6 = por %p10495_p5, %p10494_p4 }
 0x13b   :  { %p10497_p7 = pnand %p10496_p6, %p10490_p3 }
 0x13d   :  { %10500 = shalt.err (!%p10497_p7)
}
 0x13e   :  { %153 = dma.hbm_to_vmem [thread:$0]  %s12261_s12, 16384, %s148_s4, [#allocation16], %s10694_s23, %s10694_s23, %s10695_s11  }
 0x13f   :  { %s10704_s17 = smov [#allocation20]   ;;  %s10705_s5 = smov [#allocation23]  }
 0x140   :  { %s169_s6 = sshll.u32 %s10704_s17, 4  ;;  %s191_s30 = sshll.u32 %s10705_s5, 4  ;;  %s170_s6 = int_to_ptr.vmem [resolvable:$true] %s169_s6  ;;  %s192_s30 = int_to_ptr.vmem [resolvable:$true] %s191_s30 }
 0x141   :  { %s10501_s21 = scalar_lea.hbm %s12263_s14, 57344 }
 0x142   :  { %p10502_p8 = scmp.ne.s32.totalorder %s12263_s14, %s10501_s21  ;;  %p10505_p9 = scmp.lt.u32.totalorder %s10501_s21, %s12263_s14 }
 0x144   :  { %p10507_p10 = pnand %p10505_p9, %p10502_p8 }
 0x146   :  { %10510 = shalt.err (!%p10507_p10)
}
 0x147   :  { %s10511_s12 = scalar_lea.vmem %s170_s6, 57344  ;;  %p10516_p12 = scmp.lt.s32.totalorder %s170_s6, %s170_s6 }
 0x148   :  { %p10512_p11 = scmp.ne.s32.totalorder %s170_s6, %s10511_s12  ;;  %p10517_p13 = scmp.lt.s32.totalorder %s10511_s12, %s10511_s12 }
 0x14a   :  { %p10518_p0 = por %p10517_p13, %p10516_p12 }
 0x14c   :  { %p10519_p1 = pnand %p10518_p0, %p10512_p11 }
 0x14e   :  { %10522 = shalt.err (!%p10519_p1)
}
 0x14f   :  { %s12328_s4 = smov 32   ;;  %s12329_s2 = smov 512  }
 0x150   :  { %175 = dma.hbm_to_vmem [thread:$0]  %s12263_s14, 57344, %s170_s6, [#allocation19], %s12329_s2, %s12329_s2, %s12328_s4  }
 0x151   :  { %s10523_s3 = scalar_lea.hbm %s12265_s16, 16384 }
 0x152   :  { %p10524_p2 = scmp.ne.s32.totalorder %s12265_s16, %s10523_s3  ;;  %p10527_p3 = scmp.lt.u32.totalorder %s10523_s3, %s12265_s16 }
 0x154   :  { %p10529_p4 = pnand %p10527_p3, %p10524_p2 }
 0x156   :  { %10532 = shalt.err (!%p10529_p4)
}
 0x157   :  { %s10533_s21 = scalar_lea.vmem %s192_s30, 16384  ;;  %p10538_p6 = scmp.lt.s32.totalorder %s192_s30, %s192_s30 }
 0x158   :  { %p10534_p5 = scmp.ne.s32.totalorder %s192_s30, %s10533_s21  ;;  %p10539_p7 = scmp.lt.s32.totalorder %s10533_s21, %s10533_s21 }
 0x15a   :  { %p10540_p8 = por %p10539_p7, %p10538_p6 }
 0x15c   :  { %p10541_p9 = pnand %p10540_p8, %p10534_p5 }
 0x15e   :  { %10544 = shalt.err (!%p10541_p9)
}
 0x15f   :  { %s12330_s14 = smov 16   ;;  %s12331_s6 = smov 256  }
 0x160   :  { %197 = dma.hbm_to_vmem [thread:$0]  %s12265_s16, 16384, %s192_s30, [#allocation22], %s12331_s6, %s12331_s6, %s12330_s14  }
 0x161   :  { %s10706_s1 = smov [#allocation26]   ;;  %s10707_s12 = smov [#allocation29]  }
 0x162   :  { %s213_s13 = sshll.u32 %s10706_s1, 4  ;;  %s235_s4 = sshll.u32 %s10707_s12, 4  ;;  %s214_s13 = int_to_ptr.vmem [resolvable:$true] %s213_s13  ;;  %s236_s4 = int_to_ptr.vmem [resolvable:$true] %s235_s4 }
 0x163   :  { %s10545_s15 = scalar_lea.hbm %s12267_s18, 4096 }
 0x164   :  { %p10546_p10 = scmp.ne.s32.totalorder %s12267_s18, %s10545_s15  ;;  %p10549_p11 = scmp.lt.u32.totalorder %s10545_s15, %s12267_s18 }
 0x166   :  { %p10551_p12 = pnand %p10549_p11, %p10546_p10 }
 0x168   :  { %10554 = shalt.err (!%p10551_p12)
}
 0x169   :  { %s10555_s16 = scalar_lea.vmem %s214_s13, 4096  ;;  %p10560_p0 = scmp.lt.s32.totalorder %s214_s13, %s214_s13 }
 0x16a   :  { %p10556_p13 = scmp.ne.s32.totalorder %s214_s13, %s10555_s16  ;;  %p10561_p1 = scmp.lt.s32.totalorder %s10555_s16, %s10555_s16 }
 0x16c   :  { %p10562_p2 = por %p10561_p1, %p10560_p0 }
 0x16e   :  { %p10563_p3 = pnand %p10562_p2, %p10556_p13 }
 0x170   :  { %10566 = shalt.err (!%p10563_p3)
}
 0x171   :  { %219 = dma.hbm_to_vmem [thread:$0]  %s12267_s18, 4096, %s214_s13, [#allocation25], %s10694_s23, %s10694_s23, %s10695_s11  }
 0x172   :  { %s10567_s21 = scalar_lea.hbm %s12269_s20, 16384 }
 0x173   :  { %p10568_p4 = scmp.ne.s32.totalorder %s12269_s20, %s10567_s21  ;;  %p10571_p5 = scmp.lt.u32.totalorder %s10567_s21, %s12269_s20 }
 0x175   :  { %p10573_p6 = pnand %p10571_p5, %p10568_p4 }
 0x177   :  { %10576 = shalt.err (!%p10573_p6)
}
 0x178   :  { %s10577_s1 = scalar_lea.vmem %s236_s4, 16384  ;;  %p10582_p8 = scmp.lt.s32.totalorder %s236_s4, %s236_s4 }
 0x179   :  { %p10578_p7 = scmp.ne.s32.totalorder %s236_s4, %s10577_s1  ;;  %p10583_p9 = scmp.lt.s32.totalorder %s10577_s1, %s10577_s1 }
 0x17b   :  { %p10584_p10 = por %p10583_p9, %p10582_p8 }
 0x17d   :  { %p10585_p11 = pnand %p10584_p10, %p10578_p7 }
 0x17f   :  { %10588 = shalt.err (!%p10585_p11)
}
 0x180   :  { %241 = dma.hbm_to_vmem [thread:$0]  %s12269_s20, 16384, %s236_s4, [#allocation28], %s10688_s19, %s10688_s19, %s10689_s8  }
 0x181   :  { %s10708_s11 = smov [#allocation32]   ;;  %s10709_s12 = smov [#allocation35]  }
 0x182   :  { %s260_s13 = sshll.u32 %s10708_s11, 4  ;;  %s282_s2 = sshll.u32 %s10709_s12, 4  ;;  %s261_s13 = int_to_ptr.vmem [resolvable:$true] %s260_s13  ;;  %s283_s2 = int_to_ptr.vmem [resolvable:$true] %s282_s2 }
 0x183   :  { %s10589_s29 = scalar_lea.hbm %s12271_s22, 128 }
 0x184   :  { %p10590_p12 = scmp.ne.s32.totalorder %s12271_s22, %s10589_s29  ;;  %p10593_p13 = scmp.lt.u32.totalorder %s10589_s29, %s12271_s22 }
 0x186   :  { %p10595_p0 = pnand %p10593_p13, %p10590_p12 }
 0x188   :  { %10598 = shalt.err (!%p10595_p0)
}
 0x189   :  { %s10599_s20 = scalar_lea.vmem %s261_s13, 128  ;;  %p10604_p2 = scmp.lt.s32.totalorder %s261_s13, %s261_s13 }
 0x18a   :  { %p10600_p1 = scmp.ne.s32.totalorder %s261_s13, %s10599_s20  ;;  %p10605_p3 = scmp.lt.s32.totalorder %s10599_s20, %s10599_s20 }
 0x18c   :  { %p10606_p4 = por %p10605_p3, %p10604_p2 }
 0x18e   :  { %p10607_p5 = pnand %p10606_p4, %p10600_p1 }
 0x190   :  { %10610 = shalt.err (!%p10607_p5)
}
 0x191   :  { %263 = dma.hbm_to_vmem [thread:$0]  %s12271_s22, 128, %s261_s13, [#allocation31]  }
 0x192   :  { %s10611_s5 = scalar_lea.hbm %s12273_s24, 64 }
 0x193   :  { %p10612_p6 = scmp.ne.s32.totalorder %s12273_s24, %s10611_s5  ;;  %p10615_p7 = scmp.lt.u32.totalorder %s10611_s5, %s12273_s24 }
 0x195   :  { %p10617_p8 = pnand %p10615_p7, %p10612_p6 }
 0x197   :  { %10620 = shalt.err (!%p10617_p8)
}
 0x198   :  { %s10621_s6 = scalar_lea.vmem %s283_s2, 64  ;;  %p10626_p10 = scmp.lt.s32.totalorder %s283_s2, %s283_s2 }
 0x199   :  { %p10622_p9 = scmp.ne.s32.totalorder %s283_s2, %s10621_s6  ;;  %p10627_p11 = scmp.lt.s32.totalorder %s10621_s6, %s10621_s6 }
 0x19b   :  { %p10628_p12 = por %p10627_p11, %p10626_p10 }
 0x19d   :  { %p10629_p13 = pnand %p10628_p12, %p10622_p9 }
 0x19f   :  { %10632 = shalt.err (!%p10629_p13)
}
 0x1a0   :  { %285 = dma.hbm_to_vmem [thread:$0]  %s12273_s24, 64, %s283_s2, [#allocation34]  }
 0x1a1   :  { %s10710_s9 = smov [#allocation36]   ;;  %s10633_s11 = scalar_lea.hbm %s12274_s25, 64 }
 0x1a2   :  { %s292_s1 = sshll.u32 %s10710_s9, 4  ;;  %p10634_p0 = scmp.ne.s32.totalorder %s12274_s25, %s10633_s11  ;;  %s293_s1 = int_to_ptr.vmem [resolvable:$true] %s292_s1 }
 0x1a3   :  { %p10637_p1 = scmp.lt.u32.totalorder %s10633_s11, %s12274_s25 }
 0x1a5   :  { %p10639_p2 = pnand %p10637_p1, %p10634_p0 }
 0x1a7   :  { %10642 = shalt.err (!%p10639_p2)
}
 0x1a8   :  { %s10643_s29 = scalar_lea.vmem %s293_s1, 64  ;;  %p10648_p4 = scmp.lt.s32.totalorder %s293_s1, %s293_s1 }
 0x1a9   :  { %p10644_p3 = scmp.ne.s32.totalorder %s293_s1, %s10643_s29  ;;  %p10649_p5 = scmp.lt.s32.totalorder %s10643_s29, %s10643_s29 }
 0x1ab   :  { %p10650_p6 = por %p10649_p5, %p10648_p4 }
 0x1ad   :  { %p10651_p7 = pnand %p10650_p6, %p10644_p3 }
 0x1af   :  { %10654 = shalt.err (!%p10651_p7)
}
 0x1b0   :  { %295 = dma.hbm_to_vmem [thread:$0]  %s12274_s25, 64, %s293_s1, [#allocation37]  }
 0x1b1   :  { %10655 = dma.done.wait [#allocation5], 2048  }
 0x1b2   :  { %10656 = vsyncadd [#allocation5], 4294965248 }
 0x1b3   :  { %10657 = dma.done.wait [#allocation7], 4112  }
 0x1b4   :  { %10658 = vsyncadd [#allocation7], 4294963184 }
 0x1b5   :  { %10659 = dma.done.wait [#allocation10], 12320  }
 0x1b6   :  { %10660 = vsyncadd [#allocation10], 4294954976 }
 0x1b7   :  { %10661 = dma.done.wait [#allocation13], 49200  }
 0x1b8   :  { %10662 = vsyncadd [#allocation13], 4294918096 }
 0x1b9   :  { %10663 = dma.done.wait [#allocation16], 16512  }
 0x1ba   :  { %10664 = vsyncadd [#allocation16], 4294950784 }
 0x1bb   :  { %10665 = dma.done.wait [#allocation19], 57360  }
 0x1bc   :  { %10666 = vsyncadd [#allocation19], 4294909936 }
 0x1bd   :  { %10667 = dma.done.wait [#allocation22], 16448  }
 0x1be   :  { %10668 = vsyncadd [#allocation22], 4294950848 }
 0x1bf   :  { %10669 = dma.done.wait [#allocation25], 4128  }
 0x1c0   :  { %10670 = vsyncadd [#allocation25], 4294963168 }
 0x1c1   :  { %10671 = dma.done.wait [#allocation28], 16400  }
 0x1c2   :  { %10672 = vsyncadd [#allocation28], 4294950896 }
 0x1c3   :  { %10673 = dma.done.wait [#allocation31], 16512  }
 0x1c4   :  { %10674 = vsyncadd [#allocation31], 4294950784 }
 0x1c5   :  { %10675 = dma.done.wait [#allocation34], 65600  }
 0x1c6   :  { %10676 = vsyncadd [#allocation34], 4294901696 }
 0x1c7   :  { %10677 = dma.done.wait [#allocation37], 64  }
 0x1c8   :  { %10678 = vsyncadd [#allocation37], 4294967232  ;;  %v396_v1 = vld [vmem:[#allocation4] sm:$0xff]  ;;  %v397_v2 = vld [vmem:[#allocation4 + $0x8] sm:$0xff]  ;;  %s12332_s3 = sld [smem:[#allocation55_spill]]  ;;  %s12333_s19 = sld [smem:[#allocation54_spill]] }
 0x1c9   :  { %v398_v3 = vld [vmem:[#allocation4 + $0x10] sm:$0xff]  ;;  %v7877_v4 = vpack.c.bf16 %v397_v2, %v396_v1  ;;  %v399_v5 = vld [vmem:[#allocation4 + $0x18] sm:$0xff]  ;;  %v400_v7 = vld [vmem:[#allocation4 + $0x20] sm:$0xff]  ;;  %s12337_s0 = sld [smem:[#allocation56_spill]]  ;;  %s12361_s6 = sld [smem:[#allocation57_spill]] }
 0x1ca   :  { %v7881_v6 = vpack.c.bf16 %v399_v5, %v398_v3  ;;  %v401_v8 = vld [vmem:[#allocation4 + $0x28] sm:$0xff]  ;;  %v402_v11 = vld [vmem:[#allocation4 + $0x30] sm:$0xff]  ;;  %v403_v12 = vld [vmem:[#allocation4 + $0x38] sm:$0xff] }
 0x1cb   :  { %7878 = vmatprep.subr.bf16.mxu0 %v7877_v4  ;;  %v7885_v9 = vpack.c.bf16 %v401_v8, %v400_v7  ;;  %v7889_v13 = vpack.c.bf16 %v403_v12, %v402_v11  ;;  %v404_v14 = vld [vmem:[#allocation4 + $0x40] sm:$0xff]  ;;  %v405_v15 = vld [vmem:[#allocation4 + $0x48] sm:$0xff]  ;;  %v406_v17 = vld [vmem:[#allocation4 + $0x50] sm:$0xff] }
 0x1cc   :  { %7880 = vmatpush3.bf16.msra.mxu0 %v7877_v4  ;;  %v7893_v16 = vpack.c.bf16 %v405_v15, %v404_v14  ;;  %v407_v18 = vld [vmem:[#allocation4 + $0x58] sm:$0xff]  ;;  %v408_v20 = vld [vmem:[#allocation4 + $0x60] sm:$0xff]  ;;  %v409_v21 = vld [vmem:[#allocation4 + $0x68] sm:$0xff] }
 0x1cd   :  { %7882 = vmatprep.subr.bf16.mxu0 %v7881_v6  ;;  %v7897_v19 = vpack.c.bf16 %v407_v18, %v406_v17  ;;  %v7901_v22 = vpack.c.bf16 %v409_v21, %v408_v20  ;;  %v410_v23 = vld [vmem:[#allocation4 + $0x70] sm:$0xff]  ;;  %v411_v24 = vld [vmem:[#allocation4 + $0x78] sm:$0xff]  ;;  %v725_v44 = vld [vmem:[#allocation8] sm:$0xff] }
 0x1ce   :  { %v380_v10 = vld [vmem:[%s12332_s3] sm:$0xff]  ;;  %v7905_v25 = vpack.c.bf16 %v411_v24, %v410_v23  ;;  %v381_v26 = vld [vmem:[%s12332_s3 + $0x8] sm:$0xff]  ;;  %v382_v27 = vld [vmem:[%s12332_s3 + $0x10] sm:$0xff] }
 0x1cf   :  { %7741 = vmatprep.mubr.f32.mxu0 %v380_v10  ;;  %v383_v28 = vld [vmem:[%s12332_s3 + $0x18] sm:$0xff]  ;;  %v384_v29 = vld [vmem:[%s12332_s3 + $0x20] sm:$0xff]  ;;  %v385_v30 = vld [vmem:[%s12332_s3 + $0x28] sm:$0xff] }
 0x1d0   :  { %7884 = vmatpush3.bf16.msra.mxu0 %v7881_v6  ;;  %v386_v31 = vld [vmem:[%s12332_s3 + $0x30] sm:$0xff]  ;;  %v387_v32 = vld [vmem:[%s12332_s3 + $0x38] sm:$0xff]  ;;  %v388_v33 = vld [vmem:[%s12332_s3 + $0x40] sm:$0xff] }
 0x1d1   :  { %7886 = vmatprep.subr.bf16.mxu0 %v7885_v9  ;;  %v389_v34 = vld [vmem:[%s12332_s3 + $0x48] sm:$0xff]  ;;  %v390_v35 = vld [vmem:[%s12332_s3 + $0x50] sm:$0xff]  ;;  %v391_v36 = vld [vmem:[%s12332_s3 + $0x58] sm:$0xff] }
 0x1d2   :  { %v392_v37 = vld [vmem:[%s12332_s3 + $0x60] sm:$0xff]  ;;  %v393_v38 = vld [vmem:[%s12332_s3 + $0x68] sm:$0xff]  ;;  %v394_v39 = vld [vmem:[%s12332_s3 + $0x70] sm:$0xff] }
 0x1d3   :  { %v395_v40 = vld [vmem:[%s12332_s3 + $0x78] sm:$0xff]  ;;  %v11203_v41 = vld [vmem:[%s12333_s19] sm:$0xff]  ;;  %v729_v51 = vld [vmem:[#allocation8 + $0x20] sm:$0xff] }
 0x1d4   :  { %7888 = vmatpush3.bf16.msra.mxu0 %v7885_v9  ;;  %7797 = vmatprep.mubr.f32.mxu1 %v11203_v41  ;;  %v726_v42 = vld [vmem:[#allocation8 + $0x8] sm:$0xff]  ;;  %v728_v43 = vld [vmem:[#allocation8 + $0x18] sm:$0xff]  ;;  %v727_v46 = vld [vmem:[#allocation8 + $0x10] sm:$0xff] }
 0x1d5   :  { %7890 = vmatprep.subr.bf16.mxu0 %v7889_v13  ;;  %v7941_v45 = vpack.c.bf16 %v728_v43, %v726_v42  ;;  %v730_v47 = vld [vmem:[#allocation8 + $0x28] sm:$0xff]  ;;  %v732_v48 = vld [vmem:[#allocation8 + $0x38] sm:$0xff]  ;;  %v7943_v49 = vpack.c.bf16 %v727_v46, %v725_v44  ;;  %v731_v52 = vld [vmem:[#allocation8 + $0x30] sm:$0xff] }
 0x1d6   :  { %v7945_v50 = vpack.c.bf16 %v732_v48, %v730_v47  ;;  %v734_v53 = vld [vmem:[#allocation8 + $0x48] sm:$0xff]  ;;  %v736_v54 = vld [vmem:[#allocation8 + $0x58] sm:$0xff]  ;;  %v7947_v55 = vpack.c.bf16 %v731_v52, %v729_v51  ;;  %v733_v57 = vld [vmem:[#allocation8 + $0x40] sm:$0xff] }
 0x1d7   :  { %v7949_v56 = vpack.c.bf16 %v736_v54, %v734_v53  ;;  %v735_v58 = vld [vmem:[#allocation8 + $0x50] sm:$0xff]  ;;  %v738_v59 = vld [vmem:[#allocation8 + $0x68] sm:$0xff]  ;;  %v740_v60 = vld [vmem:[#allocation8 + $0x78] sm:$0xff] }
 0x1d8   :  { %7892 = vmatpush3.bf16.msra.mxu0 %v7889_v13  ;;  %v7951_v61 = vpack.c.bf16 %v735_v58, %v733_v57  ;;  %v7953_v62 = vpack.c.bf16 %v740_v60, %v738_v59  ;;  %v737_v63 = vld [vmem:[#allocation8 + $0x60] sm:$0xff]  ;;  %v739_v0 = vld [vmem:[#allocation8 + $0x70] sm:$0xff]  ;;  %v742_v1 = vld [vmem:[#allocation8 + $0x88] sm:$0xff] }
 0x1d9   :  { %7894 = vmatprep.subr.bf16.mxu0 %v7893_v16  ;;  %v744_v2 = vld [vmem:[#allocation8 + $0x98] sm:$0xff]  ;;  %v7955_v3 = vpack.c.bf16 %v739_v0, %v737_v63  ;;  %v741_v5 = vld [vmem:[#allocation8 + $0x80] sm:$0xff]  ;;  %v743_v6 = vld [vmem:[#allocation8 + $0x90] sm:$0xff] }
 0x1da   :  { %v7957_v4 = vpack.c.bf16 %v744_v2, %v742_v1  ;;  %v746_v7 = vld [vmem:[#allocation8 + $0xa8] sm:$0xff]  ;;  %v748_v8 = vld [vmem:[#allocation8 + $0xb8] sm:$0xff]  ;;  %v7959_v9 = vpack.c.bf16 %v743_v6, %v741_v5  ;;  %v745_v11 = vld [vmem:[#allocation8 + $0xa0] sm:$0xff]  ;;  %v12293_v2 = vmov 0.0  }
 0x1db   :  { %v7961_v10 = vpack.c.bf16 %v748_v8, %v746_v7  ;;  %v747_v12 = vld [vmem:[#allocation8 + $0xb0] sm:$0xff]  ;;  %v750_v13 = vld [vmem:[#allocation8 + $0xc8] sm:$0xff]  ;;  %v752_v14 = vld [vmem:[#allocation8 + $0xd8] sm:$0xff] }
 0x1dc   :  { %7896 = vmatpush3.bf16.msra.mxu0 %v7893_v16  ;;  %v7963_v15 = vpack.c.bf16 %v747_v12, %v745_v11  ;;  %v7965_v16 = vpack.c.bf16 %v752_v14, %v750_v13  ;;  %v749_v17 = vld [vmem:[#allocation8 + $0xc0] sm:$0xff]  ;;  %v751_v18 = vld [vmem:[#allocation8 + $0xd0] sm:$0xff]  ;;  %v754_v60 = vld [vmem:[#allocation8 + $0xe8] sm:$0xff] }
 0x1dd   :  { %7898 = vmatprep.subr.bf16.mxu0 %v7897_v19  ;;  %v11214_v46 = vld [vmem:[%s12333_s19 + $0x10] sm:$0xff]  ;;  %v11221_v47 = vld [vmem:[%s12333_s19 + $0x18] sm:$0xff]  ;;  %v11226_v48 = vld [vmem:[%s12333_s19 + $0x20] sm:$0xff] }
 0x1de   :  { %v11245_v51 = vld [vmem:[%s12333_s19 + $0x38] sm:$0xff]  ;;  %v11250_v52 = vld [vmem:[%s12333_s19 + $0x40] sm:$0xff]  ;;  %v11257_v53 = vld [vmem:[%s12333_s19 + $0x48] sm:$0xff] }
 0x1df   :  { %v11262_v54 = vld [vmem:[%s12333_s19 + $0x50] sm:$0xff]  ;;  %v11281_v57 = vld [vmem:[%s12333_s19 + $0x68] sm:$0xff]  ;;  %v11293_v59 = vld [vmem:[%s12333_s19 + $0x78] sm:$0xff] }
 0x1e0   :  { %7900 = vmatpush3.bf16.msra.mxu0 %v7897_v19  ;;  %v7967_v19 = vpack.c.bf16 %v751_v18, %v749_v17  ;;  %v11286_v58 = vld [vmem:[%s12333_s19 + $0x70] sm:$0xff]  ;;  %v755_v0 = vld [vmem:[#allocation8 + $0xf0] sm:$0xff] }
 0x1e1   :  { %7902 = vmatprep.subr.bf16.mxu0 %v7901_v22  ;;  %v753_v63 = vld [vmem:[#allocation8 + $0xe0] sm:$0xff] }
 0x1e2   :  { %v7971_v1 = vpack.c.bf16 %v755_v0, %v753_v63 }
 0x1e4   :  { %7904 = vmatpush3.bf16.msra.mxu0 %v7901_v22 }
 0x1e5   :  { %7906 = vmatprep.subr.bf16.mxu0 %v7905_v25 }
 0x1e8   :  { %7908 = vmatpush3.bf16.msra.mxu0 %v7905_v25 }
 0x1e9   :  { %7942 = vmatprep.subr.bf16.mxu0 %v7941_v45  ;;  %v11209_v45 = vld [vmem:[%s12333_s19 + $0x8] sm:$0xff] }
 0x1eb   :  { %7742 = vmatmul.mubr.f32.vlgmr.msra.gmra.mrb[0].mxu0 %v381_v26 }
 0x1ec   :  { %7744 = vmatprep.mubr.f32.mxu0 %v382_v27  ;;  %7944 = vmatpush1.bf16.msra.mxu0 %v7943_v49  ;;  %v11233_v49 = vld [vmem:[%s12333_s19 + $0x28] sm:$0xff] }
 0x1ed   :  { %7946 = vmatprep.subr.bf16.mxu0 %v7945_v50  ;;  %v11238_v50 = vld [vmem:[%s12333_s19 + $0x30] sm:$0xff] }
 0x1ef   :  { %7745 = vmatmul.mubr.f32.gmra.mrb[2].mxu0 %v383_v28 }
 0x1f0   :  { %7747 = vmatprep.mubr.f32.mxu0 %v384_v29  ;;  %7948 = vmatpush1.bf16.msra.mxu0 %v7947_v55  ;;  %v11269_v55 = vld [vmem:[%s12333_s19 + $0x58] sm:$0xff] }
 0x1f1   :  { %7950 = vmatprep.subr.bf16.mxu0 %v7949_v56  ;;  %v11274_v56 = vld [vmem:[%s12333_s19 + $0x60] sm:$0xff] }
 0x1f3   :  { %7748 = vmatmul.mubr.f32.gmra.mrb[4].mxu0 %v385_v30 }
 0x1f4   :  { %7750 = vmatprep.mubr.f32.mxu0 %v386_v31  ;;  %7952 = vmatpush1.bf16.msra.mxu0 %v7951_v61  ;;  %v756_v61 = vld [vmem:[#allocation8 + $0xf8] sm:$0xff] }
 0x1f5   :  { %7954 = vmatprep.subr.bf16.mxu0 %v7953_v62  ;;  %v7969_v62 = vpack.c.bf16 %v756_v61, %v754_v60 }
 0x1f7   :  { %7751 = vmatmul.mubr.f32.gmra.mrb[6].mxu0 %v387_v32 }
 0x1f8   :  { %7753 = vmatprep.mubr.f32.mxu0 %v388_v33  ;;  %7956 = vmatpush1.bf16.msra.mxu0 %v7955_v3  ;;  %v11298_v3 = vld [vmem:[#allocation6] ss:$0 sm:$0xff] }
 0x1f9   :  { %7958 = vmatprep.subr.bf16.mxu0 %v7957_v4 }
 0x1fb   :  { %7754 = vmatmul.mubr.f32.gmra.mrb[8].mxu0 %v389_v34 }
 0x1fc   :  { %7756 = vmatprep.mubr.f32.mxu0 %v390_v35  ;;  %7960 = vmatpush1.bf16.msra.mxu0 %v7959_v9 }
 0x1fd   :  { %7962 = vmatprep.subr.bf16.mxu0 %v7961_v10 }
 0x1ff   :  { %7757 = vmatmul.mubr.f32.gmra.mrb[10].mxu0 %v391_v36 }
 0x200   :  { %7759 = vmatprep.mubr.f32.mxu0 %v392_v37  ;;  %7964 = vmatpush1.bf16.msra.mxu0 %v7963_v15 }
 0x201   :  { %7966 = vmatprep.subr.bf16.mxu0 %v7965_v16 }
 0x203   :  { %7760 = vmatmul.mubr.f32.gmra.mrb[12].mxu0 %v393_v38 }
 0x204   :  { %7762 = vmatprep.mubr.f32.mxu0 %v394_v39  ;;  %7968 = vmatpush1.bf16.msra.mxu0 %v7967_v19 }
 0x205   :  { %7970 = vmatprep.subr.bf16.mxu0 %v7969_v62 }
 0x207   :  { %7763 = vmatmul.mubr.f32.gmra.mrb[14].mxu0 %v395_v40 }
 0x208   :  { %7972 = vmatpush1.bf16.msra.mxu0 %v7971_v1  ;;  %821 = vmatprep.mubr.f32.mxu0 %v12293_v2 }
 0x2be   :  { %v7743_v20 = vpop.f32.mrb[0].mxu0 }
 0x2bf   :  { %v478_v21 = vpop.f32.mrb[1].mxu0 }
 0x2c0   :  { %v7909_v22 = vpack.c.bf16 %v7743_v20, %v478_v21 }
 0x2c2   :  { %v7746_v23 = vpop.f32.mrb[2].mxu0  ;;  %7910 = vmatprep.subr.bf16.mxu1 %v7909_v22 }
 0x2c3   :  { %v488_v24 = vpop.f32.mrb[3].mxu0  ;;  %7912 = vmatpush3.bf16.msra.mxu1 %v7909_v22 }
 0x2c4   :  { %v7913_v25 = vpack.c.bf16 %v7746_v23, %v488_v24 }
 0x2c6   :  { %v7749_v26 = vpop.f32.mrb[4].mxu0  ;;  %7914 = vmatprep.subr.bf16.mxu1 %v7913_v25 }
 0x2c7   :  { %v498_v27 = vpop.f32.mrb[5].mxu0  ;;  %7916 = vmatpush3.bf16.msra.mxu1 %v7913_v25 }
 0x2c8   :  { %v7917_v28 = vpack.c.bf16 %v7749_v26, %v498_v27 }
 0x2ca   :  { %v7752_v29 = vpop.f32.mrb[6].mxu0  ;;  %7918 = vmatprep.subr.bf16.mxu1 %v7917_v28 }
 0x2cb   :  { %v508_v30 = vpop.f32.mrb[7].mxu0  ;;  %7920 = vmatpush3.bf16.msra.mxu1 %v7917_v28 }
 0x2cc   :  { %v7921_v31 = vpack.c.bf16 %v7752_v29, %v508_v30 }
 0x2ce   :  { %v7755_v32 = vpop.f32.mrb[8].mxu0  ;;  %7922 = vmatprep.subr.bf16.mxu1 %v7921_v31 }
 0x2cf   :  { %v518_v33 = vpop.f32.mrb[9].mxu0  ;;  %7924 = vmatpush3.bf16.msra.mxu1 %v7921_v31 }
 0x2d0   :  { %v7925_v34 = vpack.c.bf16 %v7755_v32, %v518_v33 }
 0x2d2   :  { %v7758_v35 = vpop.f32.mrb[10].mxu0  ;;  %7926 = vmatprep.subr.bf16.mxu1 %v7925_v34 }
 0x2d3   :  { %v528_v36 = vpop.f32.mrb[11].mxu0  ;;  %7928 = vmatpush3.bf16.msra.mxu1 %v7925_v34 }
 0x2d4   :  { %v7929_v37 = vpack.c.bf16 %v7758_v35, %v528_v36 }
 0x2d6   :  { %v7761_v38 = vpop.f32.mrb[12].mxu0  ;;  %7930 = vmatprep.subr.bf16.mxu1 %v7929_v37 }
 0x2d7   :  { %v538_v39 = vpop.f32.mrb[13].mxu0  ;;  %7932 = vmatpush3.bf16.msra.mxu1 %v7929_v37 }
 0x2d8   :  { %v7933_v40 = vpack.c.bf16 %v7761_v38, %v538_v39 }
 0x2da   :  { %v7764_v42 = vpop.f32.mrb[14].mxu0  ;;  %7934 = vmatprep.subr.bf16.mxu1 %v7933_v40 }
 0x2db   :  { %v548_v43 = vpop.f32.mrb[15].mxu0  ;;  %7936 = vmatpush3.bf16.msra.mxu1 %v7933_v40 }
 0x2dc   :  { %v7937_v44 = vpack.c.bf16 %v7764_v42, %v548_v43 }
 0x2de   :  { %7938 = vmatprep.subr.bf16.mxu1 %v7937_v44 }
 0x2df   :  { %7940 = vmatpush3.bf16.msra.mxu1 %v7937_v44 }
 0x2e2   :  { %7798 = vmatmul.mubr.f32.vlgmr.msra.gmra.mrb[0].mxu1 %v11209_v45 }
 0x2e3   :  { %7800 = vmatprep.mubr.f32.mxu1 %v11214_v46 }
 0x2e6   :  { %7801 = vmatmul.mubr.f32.gmra.mrb[2].mxu1 %v11221_v47 }
 0x2e7   :  { %7803 = vmatprep.mubr.f32.mxu1 %v11226_v48 }
 0x2ea   :  { %7804 = vmatmul.mubr.f32.gmra.mrb[4].mxu1 %v11233_v49 }
 0x2eb   :  { %7806 = vmatprep.mubr.f32.mxu1 %v11238_v50 }
 0x2ee   :  { %7807 = vmatmul.mubr.f32.gmra.mrb[6].mxu1 %v11245_v51 }
 0x2ef   :  { %7809 = vmatprep.mubr.f32.mxu1 %v11250_v52 }
 0x2f2   :  { %7810 = vmatmul.mubr.f32.gmra.mrb[8].mxu1 %v11257_v53 }
 0x2f3   :  { %7812 = vmatprep.mubr.f32.mxu1 %v11262_v54 }
 0x2f6   :  { %7813 = vmatmul.mubr.f32.gmra.mrb[10].mxu1 %v11269_v55 }
 0x2f7   :  { %7815 = vmatprep.mubr.f32.mxu1 %v11274_v56 }
 0x2fa   :  { %7816 = vmatmul.mubr.f32.gmra.mrb[12].mxu1 %v11281_v57 }
 0x2fb   :  { %7818 = vmatprep.mubr.f32.mxu1 %v11286_v58 }
 0x2fe   :  { %7819 = vmatmul.mubr.f32.gmra.mrb[14].mxu1 %v11293_v59 }
 0x2ff   :  { %994 = vmatprep.mubr.f32.mxu1 %v12293_v2 }
 0x3b5   :  { %v7799_v4 = vpop.f32.mrb[0].mxu1 }
 0x3b6   :  { %v630_v5 = vpop.f32.mrb[1].mxu1  ;;  %v636_v7 = vadd.f32 %v7799_v4, %v11298_v3 }
 0x3b7   :  { %v631_v6 = vadd.f32 %v11298_v3, %v630_v5 }
 0x3b8   :  { %v710_v12 = vmax.f32 %v636_v7, 0.0  ;;  %v1124_v7 = vld [vmem:[#allocation11 + $0x8] sm:$0xff] }
 0x3b9   :  { %v709_v8 = vmax.f32 %v631_v6, 0.0  ;;  %v7802_v9 = vpop.f32.mrb[2].mxu1 }
 0x3ba   :  { %v640_v10 = vpop.f32.mrb[3].mxu1  ;;  %v646_v16 = vadd.f32 %v7802_v9, %v11298_v3  ;;  %v1123_v9 = vld [vmem:[#allocation11] sm:$0xff] }
 0x3bb   :  { %822 = vmatmul.mubr.f32.vlgmr.msra.gmra.mrb[16].mxu0 %v709_v8  ;;  %v641_v11 = vadd.f32 %v11298_v3, %v640_v10  ;;  %v1127_v8 = vld [vmem:[#allocation11 + $0x20] sm:$0xff] }
 0x3bc   :  { %827 = vmatprep.mubr.f32.mxu0 %v12293_v2  ;;  %v712_v20 = vmax.f32 %v646_v16, 0.0 }
 0x3bd   :  { %v7805_v13 = vpop.f32.mrb[4].mxu1  ;;  %v711_v15 = vmax.f32 %v641_v11, 0.0  ;;  %v8005_v11 = vpack.c.bf16 %v1127_v8, %v1124_v7  ;;  %v1156_v7 = vld [vmem:[#allocation11 + $0x108] sm:$0xff] }
 0x3be   :  { %v650_v14 = vpop.f32.mrb[5].mxu1  ;;  %v656_v24 = vadd.f32 %v7805_v13, %v11298_v3  ;;  %v1130_v13 = vld [vmem:[#allocation11 + $0x38] sm:$0xff]  ;;  %v1160_v8 = vld [vmem:[#allocation11 + $0x128] sm:$0xff] }
 0x3bf   :  { %828 = vmatmul.mubr.f32.gmra.mrb[18].mxu0 %v710_v12  ;;  %v651_v19 = vadd.f32 %v11298_v3, %v650_v14  ;;  %v1126_v12 = vld [vmem:[#allocation11 + $0x18] sm:$0xff]  ;;  %v1133_v14 = vld [vmem:[#allocation11 + $0x50] sm:$0xff]  ;;  %8006 = vmatprep.subr.bf16.mxu0 %v8005_v11 }
 0x3c0   :  { %833 = vmatprep.mubr.f32.mxu0 %v12293_v2  ;;  %v714_v28 = vmax.f32 %v656_v24, 0.0  ;;  %v8009_v16 = vpack.c.bf16 %v1133_v14, %v1130_v13 }
 0x3c1   :  { %v7808_v17 = vpop.f32.mrb[6].mxu1  ;;  %v713_v23 = vmax.f32 %v651_v19, 0.0  ;;  %v1136_v19 = vld [vmem:[#allocation11 + $0x68] sm:$0xff] }
 0x3c2   :  { %v660_v18 = vpop.f32.mrb[7].mxu1  ;;  %v666_v32 = vadd.f32 %v7808_v17, %v11298_v3  ;;  %v1129_v17 = vld [vmem:[#allocation11 + $0x30] sm:$0xff] }
 0x3c3   :  { %834 = vmatmul.mubr.f32.gmra.mrb[20].mxu0 %v711_v15  ;;  %v661_v27 = vadd.f32 %v11298_v3, %v660_v18  ;;  %v8007_v15 = vpack.c.bf16 %v1126_v12, %v1123_v9  ;;  %v1132_v18 = vld [vmem:[#allocation11 + $0x48] sm:$0xff]  ;;  %v1163_v9 = vld [vmem:[#allocation11 + $0x140] sm:$0xff] }
 0x3c4   :  { %839 = vmatprep.mubr.f32.mxu0 %v12293_v2  ;;  %v716_v36 = vmax.f32 %v666_v32, 0.0  ;;  %v8029_v14 = vpack.c.bf16 %v1163_v9, %v1160_v8  ;;  %v1193_v8 = vld [vmem:[#allocation11 + $0x230] sm:$0xff] }
 0x3c5   :  { %v7811_v21 = vpop.f32.mrb[8].mxu1  ;;  %v715_v31 = vmax.f32 %v661_v27, 0.0  ;;  %8008 = vmatpush1.bf16.msra.mxu0 %v8007_v15  ;;  %v1159_v15 = vld [vmem:[#allocation11 + $0x120] sm:$0xff] }
 0x3c6   :  { %v670_v22 = vpop.f32.mrb[9].mxu1  ;;  %v676_v38 = vadd.f32 %v7811_v21, %v11298_v3  ;;  %v8011_v21 = vpack.c.bf16 %v1132_v18, %v1129_v17  ;;  %8010 = vmatprep.subr.bf16.mxu0 %v8009_v16  ;;  %v1162_v16 = vld [vmem:[#allocation11 + $0x138] sm:$0xff] }
 0x3c7   :  { %840 = vmatmul.mubr.f32.gmra.mrb[22].mxu0 %v712_v20  ;;  %v671_v35 = vadd.f32 %v11298_v3, %v670_v22  ;;  %v1166_v18 = vld [vmem:[#allocation11 + $0x158] sm:$0xff] }
 0x3c8   :  { %845 = vmatprep.mubr.f32.mxu0 %v12293_v2  ;;  %v718_v40 = vmax.f32 %v676_v38, 0.0 }
 0x3c9   :  { %v7814_v25 = vpop.f32.mrb[10].mxu1  ;;  %v717_v37 = vmax.f32 %v671_v35, 0.0  ;;  %8012 = vmatpush1.bf16.msra.mxu0 %v8011_v21  ;;  %v1144_v35 = vld [vmem:[#allocation11 + $0xa8] sm:$0xff] }
 0x3ca   :  { %v680_v26 = vpop.f32.mrb[11].mxu1  ;;  %v686_v43 = vadd.f32 %v7814_v25, %v11298_v3  ;;  %v1135_v25 = vld [vmem:[#allocation11 + $0x60] sm:$0xff] }
 0x3cb   :  { %846 = vmatmul.mubr.f32.gmra.mrb[24].mxu0 %v713_v23  ;;  %v681_v39 = vadd.f32 %v11298_v3, %v680_v26  ;;  %v1138_v26 = vld [vmem:[#allocation11 + $0x78] sm:$0xff] }
 0x3cc   :  { %851 = vmatprep.mubr.f32.mxu0 %v12293_v2  ;;  %v720_v60 = vmax.f32 %v686_v43, 0.0 }
 0x3cd   :  { %v7817_v29 = vpop.f32.mrb[12].mxu1  ;;  %v719_v42 = vmax.f32 %v681_v39, 0.0 }
 0x3ce   :  { %v690_v30 = vpop.f32.mrb[13].mxu1  ;;  %v696_v62 = vadd.f32 %v7817_v29, %v11298_v3  ;;  %v1145_v29 = vld [vmem:[#allocation11 + $0xb0] sm:$0xff] }
 0x3cf   :  { %852 = vmatmul.mubr.f32.gmra.mrb[26].mxu0 %v714_v28  ;;  %v691_v44 = vadd.f32 %v11298_v3, %v690_v30  ;;  %v1142_v28 = vld [vmem:[#allocation11 + $0x98] sm:$0xff] }
 0x3d0   :  { %857 = vmatprep.mubr.f32.mxu0 %v12293_v2  ;;  %v722_v0 = vmax.f32 %v696_v62, 0.0  ;;  %v1154_v62 = vld [vmem:[#allocation11 + $0xf8] sm:$0xff] }
 0x3d1   :  { %v7820_v33 = vpop.f32.mrb[14].mxu1  ;;  %v721_v61 = vmax.f32 %v691_v44, 0.0  ;;  %v1147_v44 = vld [vmem:[#allocation11 + $0xc0] sm:$0xff] }
 0x3d2   :  { %v700_v34 = vpop.f32.mrb[15].mxu1  ;;  %v706_v4 = vadd.f32 %v7820_v33, %v11298_v3  ;;  %v8017_v33 = vpack.c.bf16 %v1145_v29, %v1142_v28 }
 0x3d3   :  { %858 = vmatmul.mubr.f32.gmra.mrb[28].mxu0 %v715_v31  ;;  %v701_v63 = vadd.f32 %v11298_v3, %v700_v34  ;;  %v1139_v3 = vld [vmem:[#allocation11 + $0x80] sm:$0xff]  ;;  %v8015_v31 = vpack.c.bf16 %v1138_v26, %v1135_v25  ;;  %v1141_v34 = vld [vmem:[#allocation11 + $0x90] sm:$0xff]  ;;  %v1172_v25 = vld [vmem:[#allocation11 + $0x188] sm:$0xff] }
 0x3d4   :  { %863 = vmatprep.mubr.f32.mxu0 %v12293_v2  ;;  %v724_v5 = vmax.f32 %v706_v4, 0.0  ;;  %v8013_v24 = vpack.c.bf16 %v1139_v3, %v1136_v19  ;;  %v8019_v39 = vpack.c.bf16 %v1144_v35, %v1141_v34  ;;  %v1169_v19 = vld [vmem:[#allocation11 + $0x170] sm:$0xff]  ;;  %v1175_v26 = vld [vmem:[#allocation11 + $0x1a0] sm:$0xff]  ;;  %v1178_v35 = vld [vmem:[#allocation11 + $0x1b8] sm:$0xff] }
 0x3d5   :  { %v723_v1 = vmax.f32 %v701_v63, 0.0  ;;  %v1157_v63 = vld [vmem:[#allocation11 + $0x110] sm:$0xff] }
 0x3d6   :  { %8014 = vmatprep.subr.bf16.mxu0 %v8013_v24  ;;  %v1168_v24 = vld [vmem:[#allocation11 + $0x168] sm:$0xff] }
 0x3d7   :  { %864 = vmatmul.mubr.f32.gmra.mrb[30].mxu0 %v716_v36  ;;  %v1148_v36 = vld [vmem:[#allocation11 + $0xc8] sm:$0xff] }
 0x3d8   :  { %869 = vmatprep.mubr.f32.mxu0 %v12293_v2  ;;  %8016 = vmatpush1.bf16.msra.mxu0 %v8015_v31  ;;  %v8037_v31 = vpack.c.bf16 %v1175_v26, %v1172_v25  ;;  %v1205_v25 = vld [vmem:[#allocation11 + $0x290] sm:$0xff] }
 0x3d9   :  { %8018 = vmatprep.subr.bf16.mxu0 %v8017_v33  ;;  %v1174_v33 = vld [vmem:[#allocation11 + $0x198] sm:$0xff] }
 0x3db   :  { %870 = vmatmul.mubr.f32.gmra.mrb[32].mxu0 %v717_v37  ;;  %v1151_v37 = vld [vmem:[#allocation11 + $0xe0] sm:$0xff] }
 0x3dc   :  { %875 = vmatprep.mubr.f32.mxu0 %v12293_v2  ;;  %v8021_v43 = vpack.c.bf16 %v1151_v37, %v1148_v36  ;;  %8020 = vmatpush1.bf16.msra.mxu0 %v8019_v39  ;;  %v1181_v36 = vld [vmem:[#allocation11 + $0x1d0] sm:$0xff] }
 0x3de   :  { %8022 = vmatprep.subr.bf16.mxu0 %v8021_v43  ;;  %v1180_v43 = vld [vmem:[#allocation11 + $0x1c8] sm:$0xff] }
 0x3df   :  { %876 = vmatmul.mubr.f32.gmra.mrb[34].mxu0 %v718_v40 }
 0x3e0   :  { %881 = vmatprep.mubr.f32.mxu0 %v12293_v2 }
 0x3e3   :  { %882 = vmatmul.mubr.f32.gmra.mrb[36].mxu0 %v719_v42 }
 0x3e4   :  { %887 = vmatprep.mubr.f32.mxu0 %v12293_v2 }
 0x3e7   :  { %888 = vmatmul.mubr.f32.gmra.mrb[38].mxu0 %v720_v60  ;;  %v1150_v60 = vld [vmem:[#allocation11 + $0xd8] sm:$0xff] }
 0x3e8   :  { %893 = vmatprep.mubr.f32.mxu0 %v12293_v2 }
 0x3eb   :  { %894 = vmatmul.mubr.f32.gmra.mrb[40].mxu0 %v721_v61 }
 0x3ec   :  { %899 = vmatprep.mubr.f32.mxu0 %v12293_v2 }
 0x3ef   :  { %900 = vmatmul.mubr.f32.gmra.mrb[42].mxu0 %v722_v0 }
 0x3f0   :  { %905 = vmatprep.mubr.f32.mxu0 %v12293_v2 }
 0x3f3   :  { %906 = vmatmul.mubr.f32.gmra.mrb[44].mxu0 %v723_v1  ;;  %v8023_v1 = vpack.c.bf16 %v1150_v60, %v1147_v44  ;;  %v1184_v44 = vld [vmem:[#allocation11 + $0x1e8] sm:$0xff]  ;;  %v1187_v60 = vld [vmem:[#allocation11 + $0x200] sm:$0xff] }
 0x3f4   :  { %911 = vmatprep.mubr.f32.mxu0 %v12293_v2 }
 0x3f5   :  { %8024 = vmatpush1.bf16.msra.mxu0 %v8023_v1  ;;  %v8045_v1 = vpack.c.bf16 %v1187_v60, %v1184_v44  ;;  %v1176_v44 = vld [vmem:[#allocation11 + $0x1a8] sm:$0xff] }
 0x3f7   :  { %912 = vmatmul.mubr.f32.gmra.mrb[46].mxu0 %v724_v5  ;;  %v8025_v5 = vpack.c.bf16 %v1157_v63, %v1154_v62 }
 0x3f9   :  { %8026 = vmatprep.subr.bf16.mxu0 %v8025_v5  ;;  %v1186_v5 = vld [vmem:[#allocation11 + $0x1f8] sm:$0xff] }
 0x48e   :  { %v823_v6 = vpop.f32.mrb[16].mxu0 }
 0x48f   :  { %v825_v10 = vpop.f32.mrb[17].mxu0 }
 0x492   :  { %v829_v20 = vpop.f32.mrb[18].mxu0 }
 0x493   :  { %v7975_v22 = vpack.c.bf16 %v829_v20, %v823_v6  ;;  %v831_v23 = vpop.f32.mrb[19].mxu0  ;;  %v1153_v6 = vld [vmem:[#allocation11 + $0xf0] sm:$0xff]  ;;  %v8031_v20 = vpack.c.bf16 %v1162_v16, %v1159_v15  ;;  %v1196_v15 = vld [vmem:[#allocation11 + $0x248] sm:$0xff]  ;;  %v1199_v16 = vld [vmem:[#allocation11 + $0x260] sm:$0xff] }
 0x494   :  { %v7973_v27 = vpack.c.bf16 %v831_v23, %v825_v10  ;;  %v8027_v11 = vpack.c.bf16 %v1156_v7, %v1153_v6  ;;  %v1165_v23 = vld [vmem:[#allocation11 + $0x150] sm:$0xff]  ;;  %v1190_v7 = vld [vmem:[#allocation11 + $0x218] sm:$0xff] }
 0x495   :  { %v8035_v28 = vpack.c.bf16 %v1168_v24, %v1165_v23  ;;  %v1202_v24 = vld [vmem:[#allocation11 + $0x278] sm:$0xff] }
 0x496   :  { %v835_v30 = vpop.f32.mrb[20].mxu0  ;;  %7974 = vmatprep.subr.bf16.mxu1 %v7973_v27  ;;  %8028 = vmatpush1.bf16.msra.mxu0 %v8027_v11 }
 0x497   :  { %v837_v32 = vpop.f32.mrb[21].mxu0  ;;  %7976 = vmatpush1.bf16.msra.mxu1 %v7975_v22  ;;  %8030 = vmatprep.subr.bf16.mxu0 %v8029_v14  ;;  %v8033_v22 = vpack.c.bf16 %v1169_v19, %v1166_v18  ;;  %v1192_v14 = vld [vmem:[#allocation11 + $0x228] sm:$0xff] }
 0x49a   :  { %v841_v38 = vpop.f32.mrb[22].mxu0  ;;  %8032 = vmatpush1.bf16.msra.mxu0 %v8031_v20  ;;  %v8053_v20 = vpack.c.bf16 %v1199_v16, %v1196_v15  ;;  %v1137_v15 = vld [vmem:[#allocation11 + $0x70] sm:$0xff]  ;;  %v1140_v16 = vld [vmem:[#allocation11 + $0x88] sm:$0xff] }
 0x49b   :  { %v7979_v40 = vpack.c.bf16 %v841_v38, %v835_v30  ;;  %v843_v42 = vpop.f32.mrb[23].mxu0  ;;  %8034 = vmatprep.subr.bf16.mxu0 %v8033_v22  ;;  %v1198_v22 = vld [vmem:[#allocation11 + $0x258] sm:$0xff] }
 0x49c   :  { %v7977_v61 = vpack.c.bf16 %v843_v42, %v837_v32  ;;  %v1171_v32 = vld [vmem:[#allocation11 + $0x180] sm:$0xff]  ;;  %v1177_v42 = vld [vmem:[#allocation11 + $0x1b0] sm:$0xff] }
 0x49d   :  { %v8039_v38 = vpack.c.bf16 %v1174_v33, %v1171_v32  ;;  %v8043_v62 = vpack.c.bf16 %v1180_v43, %v1177_v42  ;;  %v1208_v32 = vld [vmem:[#allocation11 + $0x2a8] sm:$0xff]  ;;  %v1211_v33 = vld [vmem:[#allocation11 + $0x2c0] sm:$0xff]  ;;  %v1173_v43 = vld [vmem:[#allocation11 + $0x190] sm:$0xff] }
 0x49e   :  { %v847_v0 = vpop.f32.mrb[24].mxu0  ;;  %7978 = vmatprep.subr.bf16.mxu1 %v7977_v61  ;;  %8036 = vmatpush1.bf16.msra.mxu0 %v8035_v28 }
 0x49f   :  { %v849_v4 = vpop.f32.mrb[25].mxu0  ;;  %7980 = vmatpush1.bf16.msra.mxu1 %v7979_v40  ;;  %8038 = vmatprep.subr.bf16.mxu0 %v8037_v31  ;;  %v8041_v40 = vpack.c.bf16 %v1181_v36, %v1178_v35  ;;  %v1204_v31 = vld [vmem:[#allocation11 + $0x288] sm:$0xff] }
 0x4a2   :  { %v853_v10 = vpop.f32.mrb[26].mxu0  ;;  %8040 = vmatpush1.bf16.msra.mxu0 %v8039_v38  ;;  %v8061_v38 = vpack.c.bf16 %v1211_v33, %v1208_v32  ;;  %v1212_v32 = vld [vmem:[#allocation11 + $0x2c8] sm:$0xff] }
 0x4a3   :  { %v7983_v12 = vpack.c.bf16 %v853_v10, %v847_v0  ;;  %v855_v13 = vpop.f32.mrb[27].mxu0  ;;  %8042 = vmatprep.subr.bf16.mxu0 %v8041_v40 }
 0x4a4   :  { %v7981_v17 = vpack.c.bf16 %v855_v13, %v849_v4  ;;  %v1183_v4 = vld [vmem:[#allocation11 + $0x1e0] sm:$0xff]  ;;  %v1189_v13 = vld [vmem:[#allocation11 + $0x210] sm:$0xff] }
 0x4a5   :  { %v8047_v10 = vpack.c.bf16 %v1186_v5, %v1183_v4  ;;  %v8051_v18 = vpack.c.bf16 %v1192_v14, %v1189_v13  ;;  %v1128_v4 = vld [vmem:[#allocation11 + $0x28] sm:$0xff]  ;;  %v1179_v5 = vld [vmem:[#allocation11 + $0x1c0] sm:$0xff] }
 0x4a6   :  { %v859_v3 = vpop.f32.mrb[28].mxu0  ;;  %7982 = vmatprep.subr.bf16.mxu1 %v7981_v17  ;;  %8044 = vmatpush1.bf16.msra.mxu0 %v8043_v62 }
 0x4a7   :  { %v861_v21 = vpop.f32.mrb[29].mxu0  ;;  %7984 = vmatpush1.bf16.msra.mxu1 %v7983_v12  ;;  %8046 = vmatprep.subr.bf16.mxu0 %v8045_v1  ;;  %v8049_v12 = vpack.c.bf16 %v1193_v8, %v1190_v7  ;;  %v1125_v1 = vld [vmem:[#allocation11 + $0x10] sm:$0xff] }
 0x4a8   :  { %v8071_v7 = vpack.c.bf16 %v1128_v4, %v1125_v1 }
 0x4aa   :  { %v865_v27 = vpop.f32.mrb[30].mxu0  ;;  %8048 = vmatpush1.bf16.msra.mxu0 %v8047_v10  ;;  %v1134_v10 = vld [vmem:[#allocation11 + $0x58] sm:$0xff] }
 0x4ab   :  { %v7987_v29 = vpack.c.bf16 %v865_v27, %v859_v3  ;;  %v867_v30 = vpop.f32.mrb[31].mxu0  ;;  %8050 = vmatprep.subr.bf16.mxu0 %v8049_v12  ;;  %v1188_v12 = vld [vmem:[#allocation11 + $0x208] sm:$0xff] }
 0x4ac   :  { %v7985_v34 = vpack.c.bf16 %v867_v30, %v861_v21  ;;  %v1195_v21 = vld [vmem:[#allocation11 + $0x240] sm:$0xff]  ;;  %v1201_v30 = vld [vmem:[#allocation11 + $0x270] sm:$0xff] }
 0x4ad   :  { %v8055_v27 = vpack.c.bf16 %v1198_v22, %v1195_v21  ;;  %v8059_v35 = vpack.c.bf16 %v1204_v31, %v1201_v30  ;;  %v1197_v21 = vld [vmem:[#allocation11 + $0x250] sm:$0xff]  ;;  %v1200_v22 = vld [vmem:[#allocation11 + $0x268] sm:$0xff]  ;;  %v1155_v30 = vld [vmem:[#allocation11 + $0x100] sm:$0xff] }
 0x4ae   :  { %v871_v37 = vpop.f32.mrb[32].mxu0  ;;  %7986 = vmatprep.subr.bf16.mxu1 %v7985_v34  ;;  %8052 = vmatpush1.bf16.msra.mxu0 %v8051_v18  ;;  %v1194_v18 = vld [vmem:[#allocation11 + $0x238] sm:$0xff]  ;;  %v1209_v31 = vld [vmem:[#allocation11 + $0x2b0] sm:$0xff] }
 0x4af   :  { %v873_v39 = vpop.f32.mrb[33].mxu0  ;;  %7988 = vmatpush1.bf16.msra.mxu1 %v7987_v29  ;;  %8054 = vmatprep.subr.bf16.mxu0 %v8053_v20  ;;  %v8057_v29 = vpack.c.bf16 %v1205_v25, %v1202_v24  ;;  %v1143_v20 = vld [vmem:[#allocation11 + $0xa0] sm:$0xff]  ;;  %v8085_v24 = vpack.c.bf16 %v1200_v22, %v1197_v21  ;;  %v1149_v25 = vld [vmem:[#allocation11 + $0xd0] sm:$0xff] }
 0x4b2   :  { %v877_v61 = vpop.f32.mrb[34].mxu0  ;;  %8056 = vmatpush1.bf16.msra.mxu0 %v8055_v27  ;;  %v1206_v27 = vld [vmem:[#allocation11 + $0x298] sm:$0xff] }
 0x4b3   :  { %v7991_v63 = vpack.c.bf16 %v877_v61, %v871_v37  ;;  %v879_v0 = vpop.f32.mrb[35].mxu0  ;;  %8058 = vmatprep.subr.bf16.mxu0 %v8057_v29 }
 0x4b4   :  { %v7989_v6 = vpack.c.bf16 %v879_v0, %v873_v39  ;;  %v8069_v0 = vpack.c.bf16 %v1176_v44, %v1173_v43  ;;  %v918_v44 = vld [vmem:[#allocation9] sm:$0x3] }
 0x4b6   :  { %v883_v9 = vpop.f32.mrb[36].mxu0  ;;  %7990 = vmatprep.subr.bf16.mxu1 %v7989_v6  ;;  %8060 = vmatpush1.bf16.msra.mxu0 %v8059_v35  ;;  %v1182_v6 = vld [vmem:[#allocation11 + $0x1d8] sm:$0xff]  ;;  %v1213_v35 = vld [vmem:[#allocation11 + $0x2d0] sm:$0xff] }
 0x4b7   :  { %v885_v11 = vpop.f32.mrb[37].mxu0  ;;  %7992 = vmatpush1.bf16.msra.mxu1 %v7991_v63  ;;  %8062 = vmatprep.subr.bf16.mxu0 %v8061_v38  ;;  %v8073_v8 = vpack.c.bf16 %v1182_v6, %v1179_v5  ;;  %v1167_v38 = vld [vmem:[#allocation11 + $0x160] sm:$0xff] }
 0x4ba   :  { %v889_v17 = vpop.f32.mrb[38].mxu0 }
 0x4bb   :  { %v7995_v19 = vpack.c.bf16 %v889_v17, %v883_v9  ;;  %v891_v3 = vpop.f32.mrb[39].mxu0  ;;  %v1131_v9 = vld [vmem:[#allocation11 + $0x40] sm:$0xff] }
 0x4bc   :  { %v7993_v23 = vpack.c.bf16 %v891_v3, %v885_v11  ;;  %v1185_v11 = vld [vmem:[#allocation11 + $0x1f0] sm:$0xff]  ;;  %v8075_v13 = vpack.c.bf16 %v1134_v10, %v1131_v9  ;;  %v1191_v17 = vld [vmem:[#allocation11 + $0x220] sm:$0xff] }
 0x4bd   :  { %v8077_v14 = vpack.c.bf16 %v1188_v12, %v1185_v11  ;;  %v8081_v3 = vpack.c.bf16 %v1194_v18, %v1191_v17 }
 0x4be   :  { %v895_v26 = vpop.f32.mrb[40].mxu0  ;;  %7994 = vmatprep.subr.bf16.mxu1 %v7993_v23 }
 0x4bf   :  { %v897_v28 = vpop.f32.mrb[41].mxu0  ;;  %7996 = vmatpush1.bf16.msra.mxu1 %v7995_v19  ;;  %v8079_v19 = vpack.c.bf16 %v1140_v16, %v1137_v15 }
 0x4c2   :  { %v901_v34 = vpop.f32.mrb[42].mxu0 }
 0x4c3   :  { %v7999_v36 = vpack.c.bf16 %v901_v34, %v895_v26  ;;  %v903_v37 = vpop.f32.mrb[43].mxu0  ;;  %v1203_v26 = vld [vmem:[#allocation11 + $0x280] sm:$0xff]  ;;  %v8093_v34 = vpack.c.bf16 %v1212_v32, %v1209_v31 }
 0x4c4   :  { %v7997_v39 = vpack.c.bf16 %v903_v37, %v897_v28  ;;  %v8089_v29 = vpack.c.bf16 %v1206_v27, %v1203_v26 }
 0x4c6   :  { %v907_v40 = vpop.f32.mrb[44].mxu0  ;;  %7998 = vmatprep.subr.bf16.mxu1 %v7997_v39  ;;  %v1170_v39 = vld [vmem:[#allocation11 + $0x178] sm:$0xff] }
 0x4c7   :  { %v909_v42 = vpop.f32.mrb[45].mxu0  ;;  %8000 = vmatpush1.bf16.msra.mxu1 %v7999_v36  ;;  %v1216_v36 = vld [vmem:[#allocation11 + $0x2e8] sm:$0xff] }
 0x4c8   :  { %v8067_v37 = vpack.c.bf16 %v1216_v36, %v1213_v35 }
 0x4ca   :  { %v913_v60 = vpop.f32.mrb[46].mxu0 }
 0x4cb   :  { %v8003_v61 = vpack.c.bf16 %v913_v60, %v907_v40  ;;  %v915_v62 = vpop.f32.mrb[47].mxu0  ;;  %v12295_v40 = vlaneseq }
 0x4cc   :  { %v8001_v63 = vpack.c.bf16 %v915_v62, %v909_v42 }
 0x4cd   :  { %v11363_v42 = vshrl.u32 %v12295_v40, 7 }
 0x4ce   :  { %8002 = vmatprep.subr.bf16.mxu1 %v8001_v63 }
 0x4cf   :  { %8004 = vmatpush1.bf16.msra.mxu1 %v8003_v61  ;;  %12334 = vst [vmem:[#allocation50_spill] sm:$0xff] %v11363_v42  ;;  %v11366_v43 = vsub.s32 0, %v11363_v42  ;;  %v11369_v60 = vsub.s32 1, %v11363_v42 }
 0x4d0   :  { %8070 = vmatprep.subr.bf16.mxu1 %v8069_v0 }
 0x4d1   :  { %12335 = vst [vmem:[#allocation51_spill] sm:$0xff] %v11366_v43  ;;  %12336 = vst [vmem:[#allocation52_spill] sm:$0xff] %v11369_v60  ;;  %v11372_v61 = vrot.slane %v918_v44, %v11366_v43  ;;  %v11375_v62 = vrot.slane %v918_v44, %v11369_v60 }
 0x4d2   :  { %995 = vmatmul.mubr.f32.vlgmr.msra.gmra.mrb[16].mxu1 %v11203_v41  ;;  %v1146_v41 = vld [vmem:[#allocation11 + $0xb8] sm:$0xff] }
 0x4d3   :  { %1000 = vmatprep.mubr.f32.mxu1 %v12293_v2  ;;  %8072 = vmatpush3.bf16.msra.mxu1 %v8071_v7  ;;  %v8083_v23 = vpack.c.bf16 %v1146_v41, %v1143_v20 }
 0x4d4   :  { %8074 = vmatprep.subr.bf16.mxu1 %v8073_v8 }
 0x4d6   :  { %1001 = vmatmul.mubr.f32.gmra.mrb[18].mxu1 %v11209_v45  ;;  %v1152_v45 = vld [vmem:[#allocation11 + $0xe8] sm:$0xff] }
 0x4d7   :  { %1006 = vmatprep.mubr.f32.mxu1 %v12293_v2  ;;  %8076 = vmatpush3.bf16.msra.mxu1 %v8075_v13  ;;  %v8087_v28 = vpack.c.bf16 %v1152_v45, %v1149_v25 }
 0x4d8   :  { %8078 = vmatprep.subr.bf16.mxu1 %v8077_v14 }
 0x4da   :  { %1007 = vmatmul.mubr.f32.gmra.mrb[20].mxu1 %v11214_v46  ;;  %v1158_v46 = vld [vmem:[#allocation11 + $0x118] sm:$0xff] }
 0x4db   :  { %1012 = vmatprep.mubr.f32.mxu1 %v12293_v2  ;;  %8080 = vmatpush3.bf16.msra.mxu1 %v8079_v19  ;;  %v8091_v33 = vpack.c.bf16 %v1158_v46, %v1155_v30 }
 0x4dc   :  { %8082 = vmatprep.subr.bf16.mxu1 %v8081_v3 }
 0x4de   :  { %1013 = vmatmul.mubr.f32.gmra.mrb[22].mxu1 %v11221_v47  ;;  %v1207_v47 = vld [vmem:[#allocation11 + $0x2a0] sm:$0xff] }
 0x4df   :  { %1018 = vmatprep.mubr.f32.mxu1 %v12293_v2  ;;  %8084 = vmatpush3.bf16.msra.mxu1 %v8083_v23 }
 0x4e0   :  { %8086 = vmatprep.subr.bf16.mxu1 %v8085_v24 }
 0x4e2   :  { %1019 = vmatmul.mubr.f32.gmra.mrb[24].mxu1 %v11226_v48  ;;  %v1210_v48 = vld [vmem:[#allocation11 + $0x2b8] sm:$0xff] }
 0x4e3   :  { %1024 = vmatprep.mubr.f32.mxu1 %v12293_v2  ;;  %8088 = vmatpush3.bf16.msra.mxu1 %v8087_v28 }
 0x4e4   :  { %8090 = vmatprep.subr.bf16.mxu1 %v8089_v29 }
 0x4e6   :  { %1025 = vmatmul.mubr.f32.gmra.mrb[26].mxu1 %v11233_v49  ;;  %v1161_v49 = vld [vmem:[#allocation11 + $0x130] sm:$0xff] }
 0x4e7   :  { %1030 = vmatprep.mubr.f32.mxu1 %v12293_v2  ;;  %8092 = vmatpush3.bf16.msra.mxu1 %v8091_v33 }
 0x4e8   :  { %8094 = vmatprep.subr.bf16.mxu1 %v8093_v34 }
 0x4ea   :  { %1031 = vmatmul.mubr.f32.gmra.mrb[28].mxu1 %v11238_v50  ;;  %v8063_v50 = vpack.c.bf16 %v1210_v48, %v1207_v47 }
 0x4eb   :  { %1036 = vmatprep.mubr.f32.mxu1 %v12293_v2 }
 0x4ec   :  { %8064 = vmatpush1.bf16.msra.mxu0 %v8063_v50 }
 0x4ee   :  { %1037 = vmatmul.mubr.f32.gmra.mrb[30].mxu1 %v11245_v51  ;;  %v1164_v51 = vld [vmem:[#allocation11 + $0x148] sm:$0xff] }
 0x4ef   :  { %1042 = vmatprep.mubr.f32.mxu1 %v12293_v2 }
 0x4f2   :  { %1043 = vmatmul.mubr.f32.gmra.mrb[32].mxu1 %v11250_v52  ;;  %v8095_v52 = vpack.c.bf16 %v1164_v51, %v1161_v49 }
 0x4f3   :  { %1048 = vmatprep.mubr.f32.mxu1 %v12293_v2 }
 0x4f4   :  { %8096 = vmatpush3.bf16.msra.mxu1 %v8095_v52 }
 0x4f6   :  { %1049 = vmatmul.mubr.f32.gmra.mrb[34].mxu1 %v11257_v53  ;;  %v1214_v53 = vld [vmem:[#allocation11 + $0x2d8] sm:$0xff] }
 0x4f7   :  { %1054 = vmatprep.mubr.f32.mxu1 %v12293_v2 }
 0x4fa   :  { %1055 = vmatmul.mubr.f32.gmra.mrb[36].mxu1 %v11262_v54  ;;  %v1217_v54 = vld [vmem:[#allocation11 + $0x2f0] sm:$0xff] }
 0x4fb   :  { %1060 = vmatprep.mubr.f32.mxu1 %v12293_v2 }
 0x4fe   :  { %1061 = vmatmul.mubr.f32.gmra.mrb[38].mxu1 %v11269_v55  ;;  %v1215_v55 = vld [vmem:[#allocation11 + $0x2e0] sm:$0xff] }
 0x4ff   :  { %1066 = vmatprep.mubr.f32.mxu1 %v12293_v2 }
 0x502   :  { %1067 = vmatmul.mubr.f32.gmra.mrb[40].mxu1 %v11274_v56  ;;  %v8065_v56 = vpack.c.bf16 %v1217_v54, %v1214_v53 }
 0x503   :  { %1072 = vmatprep.mubr.f32.mxu1 %v12293_v2 }
 0x504   :  { %8066 = vmatprep.subr.bf16.mxu0 %v8065_v56 }
 0x505   :  { %8068 = vmatpush1.bf16.msra.mxu0 %v8067_v37 }
 0x506   :  { %1073 = vmatmul.mubr.f32.gmra.mrb[42].mxu1 %v11281_v57  ;;  %v1218_v57 = vld [vmem:[#allocation11 + $0x2f8] sm:$0xff] }
 0x507   :  { %1078 = vmatprep.mubr.f32.mxu1 %v12293_v2 }
 0x50a   :  { %1079 = vmatmul.mubr.f32.gmra.mrb[44].mxu1 %v11286_v58  ;;  %v8097_v58 = vpack.c.bf16 %v1218_v57, %v1215_v55 }
 0x50b   :  { %1084 = vmatprep.mubr.f32.mxu1 %v12293_v2 }
 0x50c   :  { %8098 = vmatprep.subr.bf16.mxu1 %v8097_v58 }
 0x50e   :  { %1085 = vmatmul.mubr.f32.gmra.mrb[46].mxu1 %v11293_v59  ;;  %v8099_v59 = vpack.c.bf16 %v1170_v39, %v1167_v38 }
 0x510   :  { %8100 = vmatpush3.bf16.msra.mxu1 %v8099_v59 }
 0x5a5   :  { %v996_v63 = vpop.f32.mrb[16].mxu1 }
 0x5a6   :  { %v997_v0 = vadd.f32 %v996_v63, %v11372_v61  ;;  %v998_v1 = vpop.f32.mrb[17].mxu1 }
 0x5a7   :  { %v999_v4 = vadd.f32 %v998_v1, %v11375_v62 }
 0x5a8   :  { %v1091_v7 = vmax.f32 %v997_v0, 0.0 }
 0x5a9   :  { %v1092_v5 = vmax.f32 %v999_v4, 0.0  ;;  %v1002_v6 = vpop.f32.mrb[18].mxu1 }
 0x5aa   :  { %v1003_v8 = vadd.f32 %v1002_v6, %v11372_v61  ;;  %v1004_v9 = vpop.f32.mrb[19].mxu1 }
 0x5ab   :  { %v1005_v10 = vadd.f32 %v1004_v9, %v11375_v62  ;;  %1283 = vmatprep.mubr.f32.mxu0 %v1092_v5  ;;  %1444 = vmatprep.mubr.f32.mxu1 %v1092_v5 }
 0x5ac   :  { %1284 = vmatmul.mubr.f32.vlgmr.msra.gmra.mrb[48].mxu0 %v1091_v7  ;;  %1445 = vmatmul.mubr.f32.vlgmr.msra.gmra.mrb[48].mxu1 %v1091_v7  ;;  %v1093_v13 = vmax.f32 %v1003_v8, 0.0 }
 0x5ad   :  { %v1094_v11 = vmax.f32 %v1005_v10, 0.0  ;;  %v1008_v12 = vpop.f32.mrb[20].mxu1 }
 0x5ae   :  { %v1009_v14 = vadd.f32 %v1008_v12, %v11372_v61  ;;  %v1010_v15 = vpop.f32.mrb[21].mxu1 }
 0x5af   :  { %v1011_v16 = vadd.f32 %v1010_v15, %v11375_v62  ;;  %1289 = vmatprep.mubr.f32.mxu0 %v1094_v11  ;;  %1449 = vmatprep.mubr.f32.mxu1 %v1094_v11 }
 0x5b0   :  { %1290 = vmatmul.mubr.f32.gmra.mrb[50].mxu0 %v1093_v13  ;;  %1450 = vmatmul.mubr.f32.gmra.mrb[50].mxu1 %v1093_v13  ;;  %v1095_v19 = vmax.f32 %v1009_v14, 0.0 }
 0x5b1   :  { %v1096_v17 = vmax.f32 %v1011_v16, 0.0  ;;  %v1014_v18 = vpop.f32.mrb[22].mxu1 }
 0x5b2   :  { %v1015_v3 = vadd.f32 %v1014_v18, %v11372_v61  ;;  %v1016_v20 = vpop.f32.mrb[23].mxu1 }
 0x5b3   :  { %v1017_v41 = vadd.f32 %v1016_v20, %v11375_v62  ;;  %1295 = vmatprep.mubr.f32.mxu0 %v1096_v17  ;;  %1454 = vmatprep.mubr.f32.mxu1 %v1096_v17 }
 0x5b4   :  { %1296 = vmatmul.mubr.f32.gmra.mrb[52].mxu0 %v1095_v19  ;;  %1455 = vmatmul.mubr.f32.gmra.mrb[52].mxu1 %v1095_v19  ;;  %v1097_v23 = vmax.f32 %v1015_v3, 0.0 }
 0x5b5   :  { %v1098_v21 = vmax.f32 %v1017_v41, 0.0  ;;  %v1020_v22 = vpop.f32.mrb[24].mxu1 }
 0x5b6   :  { %v1021_v24 = vadd.f32 %v1020_v22, %v11372_v61  ;;  %v1022_v25 = vpop.f32.mrb[25].mxu1 }
 0x5b7   :  { %v1023_v45 = vadd.f32 %v1022_v25, %v11375_v62  ;;  %1301 = vmatprep.mubr.f32.mxu0 %v1098_v21  ;;  %1459 = vmatprep.mubr.f32.mxu1 %v1098_v21 }
 0x5b8   :  { %1302 = vmatmul.mubr.f32.gmra.mrb[54].mxu0 %v1097_v23  ;;  %1460 = vmatmul.mubr.f32.gmra.mrb[54].mxu1 %v1097_v23  ;;  %v1099_v28 = vmax.f32 %v1021_v24, 0.0 }
 0x5b9   :  { %v1100_v26 = vmax.f32 %v1023_v45, 0.0  ;;  %v1026_v27 = vpop.f32.mrb[26].mxu1 }
 0x5ba   :  { %v1027_v29 = vadd.f32 %v1026_v27, %v11372_v61  ;;  %v1028_v30 = vpop.f32.mrb[27].mxu1 }
 0x5bb   :  { %v1029_v46 = vadd.f32 %v1028_v30, %v11375_v62  ;;  %1307 = vmatprep.mubr.f32.mxu0 %v1100_v26  ;;  %1464 = vmatprep.mubr.f32.mxu1 %v1100_v26 }
 0x5bc   :  { %1308 = vmatmul.mubr.f32.gmra.mrb[56].mxu0 %v1099_v28  ;;  %1465 = vmatmul.mubr.f32.gmra.mrb[56].mxu1 %v1099_v28  ;;  %v1101_v33 = vmax.f32 %v1027_v29, 0.0 }
 0x5bd   :  { %v1102_v31 = vmax.f32 %v1029_v46, 0.0  ;;  %v1032_v32 = vpop.f32.mrb[28].mxu1 }
 0x5be   :  { %v1033_v34 = vadd.f32 %v1032_v32, %v11372_v61  ;;  %v1034_v47 = vpop.f32.mrb[29].mxu1 }
 0x5bf   :  { %v1035_v48 = vadd.f32 %v1034_v47, %v11375_v62  ;;  %1313 = vmatprep.mubr.f32.mxu0 %v1102_v31  ;;  %1469 = vmatprep.mubr.f32.mxu1 %v1102_v31 }
 0x5c0   :  { %1314 = vmatmul.mubr.f32.gmra.mrb[58].mxu0 %v1101_v33  ;;  %1470 = vmatmul.mubr.f32.gmra.mrb[58].mxu1 %v1101_v33  ;;  %v1103_v51 = vmax.f32 %v1033_v34, 0.0 }
 0x5c1   :  { %v1104_v49 = vmax.f32 %v1035_v48, 0.0  ;;  %v1038_v50 = vpop.f32.mrb[30].mxu1  ;;  %v11413_v48 = vld [vmem:[%s12333_s19] sm:$0xff] }
 0x5c2   :  { %v1039_v52 = vadd.f32 %v1038_v50, %v11372_v61  ;;  %v1040_v53 = vpop.f32.mrb[31].mxu1 }
 0x5c3   :  { %v1041_v54 = vadd.f32 %v1040_v53, %v11375_v62  ;;  %1319 = vmatprep.mubr.f32.mxu0 %v1104_v49  ;;  %1474 = vmatprep.mubr.f32.mxu1 %v1104_v49  ;;  %v10712_v49 = vmov 0   ;;  %v1897_v53 = vld [vmem:[%s12337_s0 + $0x8] sm:$0xff] }
 0x5c4   :  { %1320 = vmatmul.mubr.f32.gmra.mrb[60].mxu0 %v1103_v51  ;;  %1475 = vmatmul.mubr.f32.gmra.mrb[60].mxu1 %v1103_v51  ;;  %v1105_v57 = vmax.f32 %v1039_v52, 0.0  ;;  %v1899_v52 = vld [vmem:[%s12337_s0 + $0x18] sm:$0xff]  ;;  %vm1913_vm3 = vcmp.eq.s32.totalorder %v1897_v53, 0  ;;  %vm2152_vm4 = vcmp.eq.s32.totalorder %v1897_v53, 1 }
 0x5c5   :  { %v1106_v55 = vmax.f32 %v1041_v54, 0.0  ;;  %v1044_v56 = vpop.f32.mrb[32].mxu1  ;;  %10150 = vset.pattern.permute.xlu1 %v10712_v49  ;;  %10149 = vset.pattern.permute.xlu0 %v10712_v49  ;;  %vm1915_vm2 = vcmp.eq.s32.totalorder %v1899_v52, 0  ;;  %vm2154_vm6 = vcmp.eq.s32.totalorder %v1899_v52, 1 }
 0x5c6   :  { %v1045_v35 = vadd.f32 %v1044_v56, %v11372_v61  ;;  %v1046_v36 = vpop.f32.mrb[33].mxu1  ;;  %v1931_v54 = vsel %vm1915_vm2, 1, %v10712_v49  ;;  %v2168_v56 = vsel %vm2152_vm4, 1, %v10712_v49 }
 0x5c7   :  { %v1047_v58 = vadd.f32 %v1046_v36, %v11375_v62  ;;  %1325 = vmatprep.mubr.f32.mxu0 %v1106_v55  ;;  %1479 = vmatprep.mubr.f32.mxu1 %v1106_v55  ;;  %v1929_v55 = vsel %vm1913_vm3, 1, %v10712_v49 }
 0x5c8   :  { %1326 = vmatmul.mubr.f32.gmra.mrb[62].mxu0 %v1105_v57  ;;  %1480 = vmatmul.mubr.f32.gmra.mrb[62].mxu1 %v1105_v57  ;;  %v1107_v39 = vmax.f32 %v1045_v35, 0.0  ;;  %v2170_v35 = vsel %vm2154_vm6, 1, %v10712_v49 }
 0x5c9   :  { %v1108_v37 = vmax.f32 %v1047_v58, 0.0  ;;  %v1050_v38 = vpop.f32.mrb[34].mxu1  ;;  %v1901_v58 = vld [vmem:[%s12337_s0 + $0x28] sm:$0xff] }
 0x5ca   :  { %v1051_v59 = vadd.f32 %v1050_v38, %v11372_v61  ;;  %v1052_v44 = vpop.f32.mrb[35].mxu1  ;;  %vm1917_vm8 = vcmp.eq.s32.totalorder %v1901_v58, 0  ;;  %vm2156_vm10 = vcmp.eq.s32.totalorder %v1901_v58, 1  ;;  %v1910_v58 = vld [vmem:[%s12337_s0 + $0x70] sm:$0xff] }
 0x5cb   :  { %v1053_v63 = vadd.f32 %v1052_v44, %v11375_v62  ;;  %1331 = vmatprep.mubr.f32.mxu0 %v1108_v37  ;;  %1484 = vmatprep.mubr.f32.mxu1 %v1108_v37  ;;  %v1900_v37 = vld [vmem:[%s12337_s0 + $0x20] sm:$0xff]  ;;  %v1933_v38 = vsel %vm1917_vm8, 1, %v10712_v49 }
 0x5cc   :  { %1332 = vmatmul.mubr.f32.gmra.mrb[64].mxu0 %v1107_v39  ;;  %1485 = vmatmul.mubr.f32.gmra.mrb[64].mxu1 %v1107_v39  ;;  %v1109_v4 = vmax.f32 %v1051_v59, 0.0  ;;  %vm1916_vm9 = vcmp.eq.s32.totalorder %v1900_v37, 0  ;;  %vm2155_vm11 = vcmp.eq.s32.totalorder %v1900_v37, 1  ;;  %v2172_v59 = vsel %vm2156_vm10, 1, %v10712_v49 }
 0x5cd   :  { %v1110_v0 = vmax.f32 %v1053_v63, 0.0  ;;  %v1056_v1 = vpop.f32.mrb[36].mxu1  ;;  %v1932_v39 = vsel %vm1916_vm9, 1, %v10712_v49  ;;  %v2171_v44 = vsel %vm2155_vm11, 1, %v10712_v49  ;;  %v1903_v63 = vld [vmem:[%s12337_s0 + $0x38] sm:$0xff] }
 0x5ce   :  { %v1057_v5 = vadd.f32 %v1056_v1, %v11372_v61  ;;  %v1058_v6 = vpop.f32.mrb[37].mxu1  ;;  %vm1919_vm12 = vcmp.eq.s32.totalorder %v1903_v63, 0  ;;  %vm2158_vm14 = vcmp.eq.s32.totalorder %v1903_v63, 1 }
 0x5cf   :  { %v1059_v7 = vadd.f32 %v1058_v6, %v11375_v62  ;;  %1337 = vmatprep.mubr.f32.mxu0 %v1110_v0  ;;  %1489 = vmatprep.mubr.f32.mxu1 %v1110_v0  ;;  %v1902_v0 = vld [vmem:[%s12337_s0 + $0x30] sm:$0xff]  ;;  %v1935_v1 = vsel %vm1919_vm12, 1, %v10712_v49 }
 0x5d0   :  { %1338 = vmatmul.mubr.f32.gmra.mrb[66].mxu0 %v1109_v4  ;;  %1490 = vmatmul.mubr.f32.gmra.mrb[66].mxu1 %v1109_v4  ;;  %v1111_v10 = vmax.f32 %v1057_v5, 0.0  ;;  %vm1918_vm13 = vcmp.eq.s32.totalorder %v1902_v0, 0  ;;  %vm2157_vm15 = vcmp.eq.s32.totalorder %v1902_v0, 1  ;;  %v2174_v5 = vsel %vm2158_vm14, 1, %v10712_v49 }
 0x5d1   :  { %v1112_v8 = vmax.f32 %v1059_v7, 0.0  ;;  %v1062_v9 = vpop.f32.mrb[38].mxu1  ;;  %v1934_v4 = vsel %vm1918_vm13, 1, %v10712_v49  ;;  %v2173_v6 = vsel %vm2157_vm15, 1, %v10712_v49  ;;  %v1905_v7 = vld [vmem:[%s12337_s0 + $0x48] sm:$0xff]  ;;  %vm1926_vm13 = vcmp.eq.s32.totalorder %v1910_v58, 0 }
 0x5d2   :  { %v1063_v11 = vadd.f32 %v1062_v9, %v11372_v61  ;;  %v1064_v12 = vpop.f32.mrb[39].mxu1  ;;  %vm2160_vm2 = vcmp.eq.s32.totalorder %v1905_v7, 1  ;;  %vm2165_vm15 = vcmp.eq.s32.totalorder %v1910_v58, 1 }
 0x5d3   :  { %v1065_v13 = vadd.f32 %v1064_v12, %v11375_v62  ;;  %1343 = vmatprep.mubr.f32.mxu0 %v1112_v8  ;;  %1494 = vmatprep.mubr.f32.mxu1 %v1112_v8  ;;  %v1904_v8 = vld [vmem:[%s12337_s0 + $0x40] sm:$0xff] }
 0x5d4   :  { %1344 = vmatmul.mubr.f32.gmra.mrb[68].mxu0 %v1111_v10  ;;  %1495 = vmatmul.mubr.f32.gmra.mrb[68].mxu1 %v1111_v10  ;;  %v1113_v16 = vmax.f32 %v1063_v11, 0.0  ;;  %vm2159_vm3 = vcmp.eq.s32.totalorder %v1904_v8, 1 }
 0x5d5   :  { %v1114_v14 = vmax.f32 %v1065_v13, 0.0  ;;  %v1068_v15 = vpop.f32.mrb[40].mxu1  ;;  %v1907_v13 = vld [vmem:[%s12337_s0 + $0x58] sm:$0xff] }
 0x5d6   :  { %v1069_v17 = vadd.f32 %v1068_v15, %v11372_v61  ;;  %v1070_v18 = vpop.f32.mrb[41].mxu1  ;;  %vm1923_vm4 = vcmp.eq.s32.totalorder %v1907_v13, 0  ;;  %vm2162_vm6 = vcmp.eq.s32.totalorder %v1907_v13, 1 }
 0x5d7   :  { %v1071_v19 = vadd.f32 %v1070_v18, %v11375_v62  ;;  %1349 = vmatprep.mubr.f32.mxu0 %v1114_v14  ;;  %1499 = vmatprep.mubr.f32.mxu1 %v1114_v14  ;;  %v1906_v14 = vld [vmem:[%s12337_s0 + $0x50] sm:$0xff]  ;;  %v2175_v18 = vsel %vm2159_vm3, 1, %v10712_v49 }
 0x5d8   :  { %1350 = vmatmul.mubr.f32.gmra.mrb[70].mxu0 %v1113_v16  ;;  %1500 = vmatmul.mubr.f32.gmra.mrb[70].mxu1 %v1113_v16  ;;  %v1115_v41 = vmax.f32 %v1069_v17, 0.0  ;;  %v2176_v17 = vsel %vm2160_vm2, 1, %v10712_v49 }
 0x5d9   :  { %v1116_v3 = vmax.f32 %v1071_v19, 0.0  ;;  %v1074_v20 = vpop.f32.mrb[42].mxu1 }
 0x5da   :  { %v1075_v21 = vadd.f32 %v1074_v20, %v11372_v61  ;;  %v1076_v22 = vpop.f32.mrb[43].mxu1 }
 0x5db   :  { %v1077_v23 = vadd.f32 %v1076_v22, %v11375_v62  ;;  %1355 = vmatprep.mubr.f32.mxu0 %v1116_v3  ;;  %1504 = vmatprep.mubr.f32.mxu1 %v1116_v3 }
 0x5dc   :  { %1356 = vmatmul.mubr.f32.gmra.mrb[72].mxu0 %v1115_v41  ;;  %1505 = vmatmul.mubr.f32.gmra.mrb[72].mxu1 %v1115_v41  ;;  %v1117_v45 = vmax.f32 %v1075_v21, 0.0 }
 0x5dd   :  { %v1118_v24 = vmax.f32 %v1077_v23, 0.0  ;;  %v1080_v25 = vpop.f32.mrb[44].mxu1  ;;  %v1939_v23 = vsel %vm1923_vm4, 1, %v10712_v49 }
 0x5de   :  { %v1081_v26 = vadd.f32 %v1080_v25, %v11372_v61  ;;  %v1082_v27 = vpop.f32.mrb[45].mxu1 }
 0x5df   :  { %v1083_v28 = vadd.f32 %v1082_v27, %v11375_v62  ;;  %1361 = vmatprep.mubr.f32.mxu0 %v1118_v24  ;;  %1509 = vmatprep.mubr.f32.mxu1 %v1118_v24 }
 0x5e0   :  { %1362 = vmatmul.mubr.f32.gmra.mrb[74].mxu0 %v1117_v45  ;;  %1510 = vmatmul.mubr.f32.gmra.mrb[74].mxu1 %v1117_v45  ;;  %v1119_v46 = vmax.f32 %v1081_v26, 0.0  ;;  %v1909_v26 = vld [vmem:[%s12337_s0 + $0x68] sm:$0xff] }
 0x5e1   :  { %v1120_v29 = vmax.f32 %v1083_v28, 0.0  ;;  %v1086_v30 = vpop.f32.mrb[46].mxu1  ;;  %vm1925_vm8 = vcmp.eq.s32.totalorder %v1909_v26, 0  ;;  %vm2164_vm10 = vcmp.eq.s32.totalorder %v1909_v26, 1 }
 0x5e2   :  { %v1087_v31 = vadd.f32 %v1086_v30, %v11372_v61  ;;  %v1088_v32 = vpop.f32.mrb[47].mxu1  ;;  %v1898_v61 = vld [vmem:[%s12337_s0 + $0x10] sm:$0xff]  ;;  %v1908_v30 = vld [vmem:[%s12337_s0 + $0x60] sm:$0xff]  ;;  %v1941_v52 = vsel %vm1925_vm8, 1, %v10712_v49 }
 0x5e3   :  { %v1089_v33 = vadd.f32 %v1088_v32, %v11375_v62  ;;  %1367 = vmatprep.mubr.f32.mxu0 %v1120_v29  ;;  %1514 = vmatprep.mubr.f32.mxu1 %v1120_v29  ;;  %v1896_v62 = vld [vmem:[%s12337_s0] sm:$0xff]  ;;  %vm1914_vm0 = vcmp.eq.s32.totalorder %v1898_v61, 0  ;;  %vm2153_vm7 = vcmp.eq.s32.totalorder %v1898_v61, 1  ;;  %v2178_v32 = vsel %vm2162_vm6, 1, %v10712_v49 }
 0x5e4   :  { %1368 = vmatmul.mubr.f32.gmra.mrb[76].mxu0 %v1119_v46  ;;  %1515 = vmatmul.mubr.f32.gmra.mrb[76].mxu1 %v1119_v46  ;;  %v1121_v47 = vmax.f32 %v1087_v31, 0.0  ;;  %vm1912_vm1 = vcmp.eq.s32.totalorder %v1896_v62, 0  ;;  %v1930_v50 = vsel %vm1914_vm0, 1, %v10712_v49  ;;  %vm2151_vm5 = vcmp.eq.s32.totalorder %v1896_v62, 1 }
 0x5e5   :  { %v1122_v34 = vmax.f32 %v1089_v33, 0.0  ;;  %v1928_v51 = vsel %vm1912_vm1, 1, %v10712_v49  ;;  %1951 = vperm.xlu1 %10150, %v1930_v50   ;;  %v2167_v57 = vsel %vm2151_vm5, 1, %v10712_v49  ;;  %v2169_v36 = vsel %vm2153_vm7, 1, %v10712_v49 }
 0x5e6   :  { %1945 = vperm.xlu0 %10149, %v1928_v51   ;;  %vm1921_vm0 = vcmp.eq.s32.totalorder %v1905_v7, 0  ;;  %vm1920_vm1 = vcmp.eq.s32.totalorder %v1904_v8, 0  ;;  %vm1922_vm5 = vcmp.eq.s32.totalorder %v1906_v14, 0  ;;  %vm2161_vm7 = vcmp.eq.s32.totalorder %v1906_v14, 1 }
 0x5e7   :  { %1373 = vmatprep.mubr.f32.mxu0 %v1122_v34  ;;  %1519 = vmatprep.mubr.f32.mxu1 %v1122_v34  ;;  %v1937_v9 = vsel %vm1921_vm0, 1, %v10712_v49  ;;  %v1936_v10 = vsel %vm1920_vm1, 1, %v10712_v49  ;;  %v1938_v45 = vsel %vm1922_vm5, 1, %v10712_v49  ;;  %v2177_v34 = vsel %vm2161_vm7, 1, %v10712_v49 }
 0x5e8   :  { %1374 = vmatmul.mubr.f32.gmra.mrb[78].mxu0 %v1121_v47  ;;  %1520 = vmatmul.mubr.f32.gmra.mrb[78].mxu1 %v1121_v47  ;;  %vm1924_vm9 = vcmp.eq.s32.totalorder %v1908_v30, 0  ;;  %vm2163_vm11 = vcmp.eq.s32.totalorder %v1908_v30, 1 }
 0x5e9   :  { %1606 = vmatprep.mubr.f32.mxu0 %v12293_v2  ;;  %7853 = vmatprep.mubr.f32.mxu1 %v11413_v48 }
 0x5ea   :  { %1954 = vperm.xlu1 %10150, %v1931_v54   ;;  %1948 = vperm.xlu0 %10149, %v1929_v55   ;;  %v1940_v55 = vsel %vm1924_vm9, 1, %v10712_v49 }
 0x5ee   :  { %2187 = vperm.xlu1 %10150, %v2168_v56   ;;  %2184 = vperm.xlu0 %10149, %v2167_v57   ;;  %v1911_v56 = vld [vmem:[%s12337_s0 + $0x78] sm:$0xff] }
 0x5ef   :  { %vm1927_vm12 = vcmp.eq.s32.totalorder %v1911_v56, 0  ;;  %vm2166_vm14 = vcmp.eq.s32.totalorder %v1911_v56, 1 }
 0x5f2   :  { %2193 = vperm.xlu1 %10150, %v2170_v35   ;;  %2190 = vperm.xlu0 %10149, %v2169_v36  }
 0x5f6   :  { %1960 = vperm.xlu1 %10150, %v1933_v38   ;;  %1957 = vperm.xlu0 %10149, %v1932_v39   ;;  %v2180_v39 = vsel %vm2164_vm10, 1, %v10712_v49 }
 0x5fa   :  { %2199 = vperm.xlu1 %10150, %v2172_v59   ;;  %2196 = vperm.xlu0 %10149, %v2171_v44   ;;  %v2179_v44 = vsel %vm2163_vm11, 1, %v10712_v49 }
 0x5fe   :  { %1966 = vperm.xlu1 %10150, %v1935_v1   ;;  %1963 = vperm.xlu0 %10149, %v1934_v4  }
 0x602   :  { %2205 = vperm.xlu1 %10150, %v2174_v5   ;;  %2202 = vperm.xlu0 %10149, %v2173_v6   ;;  %v1943_v6 = vsel %vm1927_vm12, 1, %v10712_v49 }
 0x606   :  { %1972 = vperm.xlu1 %10150, %v1937_v9   ;;  %1969 = vperm.xlu0 %10149, %v1936_v10   ;;  %v1942_v9 = vsel %vm1926_vm13, 1, %v10712_v49 }
 0x60a   :  { %2211 = vperm.xlu1 %10150, %v2176_v17   ;;  %2208 = vperm.xlu0 %10149, %v2175_v18   ;;  %v2181_v17 = vsel %vm2165_vm15, 1, %v10712_v49 }
 0x60e   :  { %1978 = vperm.xlu1 %10150, %v1939_v23   ;;  %1975 = vperm.xlu0 %10149, %v1938_v45  }
 0x612   :  { %2217 = vperm.xlu1 %10150, %v2178_v32   ;;  %2214 = vperm.xlu0 %10149, %v2177_v34  }
 0x616   :  { %1984 = vperm.xlu1 %10150, %v1941_v52   ;;  %1981 = vperm.xlu0 %10149, %v1940_v55  }
 0x61a   :  { %2223 = vperm.xlu1 %10150, %v2180_v39   ;;  %2220 = vperm.xlu0 %10149, %v2179_v44  }
 0x61e   :  { %1990 = vperm.xlu1 %10150, %v1943_v6   ;;  %1987 = vperm.xlu0 %10149, %v1942_v9  }
 0x622   :  { %2226 = vperm.xlu0 %10149, %v2181_v17  }
 0x67f   :  { %v1285_v11 = vpop.f32.mrb[48].mxu0  ;;  %v7454_v12 = vpop.f32.mrb[48].mxu1 }
 0x680   :  { %v1287_v15 = vpop.f32.mrb[49].mxu0  ;;  %v7455_v16 = vpop.f32.mrb[49].mxu1 }
 0x681   :  { %v7456_v19 = vadd.f32 %v7455_v16, %v7454_v12 }
 0x683   :  { %v1291_v3 = vpop.f32.mrb[50].mxu0  ;;  %v7457_v20 = vpop.f32.mrb[50].mxu1 }
 0x684   :  { %v8103_v41 = vpack.c.bf16 %v1291_v3, %v1285_v11  ;;  %v1293_v21 = vpop.f32.mrb[51].mxu0  ;;  %v7458_v22 = vpop.f32.mrb[51].mxu1 }
 0x685   :  { %v8101_v24 = vpack.c.bf16 %v1293_v21, %v1287_v15  ;;  %v7459_v25 = vadd.f32 %v7458_v22, %v7457_v20  ;;  %v2182_v15 = vsel %vm2166_vm14, 1, %v10712_v49 }
 0x686   :  { %2229 = vperm.xlu1 %10150, %v2182_v15  }
 0x687   :  { %v8133_v27 = vpack.c.bf16 %v7459_v25, %v7456_v19  ;;  %v1297_v28 = vpop.f32.mrb[52].mxu0  ;;  %v7460_v29 = vpop.f32.mrb[52].mxu1  ;;  %8102 = vmatprep.subr.bf16.mxu0 %v8101_v24 }
 0x688   :  { %v1299_v46 = vpop.f32.mrb[53].mxu0  ;;  %v7461_v31 = vpop.f32.mrb[53].mxu1  ;;  %8104 = vmatpush1.bf16.msra.mxu0 %v8103_v41 }
 0x689   :  { %v7462_v33 = vadd.f32 %v7461_v31, %v7460_v29  ;;  %8134 = vmatprep.subr.bf16.mxu1 %v8133_v27 }
 0x68a   :  { %8136 = vmatpush3.bf16.msra.mxu1 %v8133_v27 }
 0x68b   :  { %v1303_v47 = vpop.f32.mrb[54].mxu0  ;;  %v7463_v61 = vpop.f32.mrb[54].mxu1 }
 0x68c   :  { %v8107_v62 = vpack.c.bf16 %v1303_v47, %v1297_v28  ;;  %v1305_v50 = vpop.f32.mrb[55].mxu0  ;;  %v7464_v51 = vpop.f32.mrb[55].mxu1 }
 0x68d   :  { %v8105_v53 = vpack.c.bf16 %v1305_v50, %v1299_v46  ;;  %v7465_v54 = vadd.f32 %v7464_v51, %v7463_v61 }
 0x68f   :  { %v8137_v57 = vpack.c.bf16 %v7465_v54, %v7462_v33  ;;  %v1309_v35 = vpop.f32.mrb[56].mxu0  ;;  %v7466_v36 = vpop.f32.mrb[56].mxu1  ;;  %8106 = vmatprep.subr.bf16.mxu0 %v8105_v53 }
 0x690   :  { %v1311_v37 = vpop.f32.mrb[57].mxu0  ;;  %v7467_v38 = vpop.f32.mrb[57].mxu1  ;;  %8108 = vmatpush1.bf16.msra.mxu0 %v8107_v62 }
 0x691   :  { %v7468_v59 = vadd.f32 %v7467_v38, %v7466_v36  ;;  %8138 = vmatprep.subr.bf16.mxu1 %v8137_v57 }
 0x692   :  { %8140 = vmatpush3.bf16.msra.mxu1 %v8137_v57 }
 0x693   :  { %v1315_v63 = vpop.f32.mrb[58].mxu0  ;;  %v7469_v0 = vpop.f32.mrb[58].mxu1 }
 0x694   :  { %v8111_v1 = vpack.c.bf16 %v1315_v63, %v1309_v35  ;;  %v1317_v4 = vpop.f32.mrb[59].mxu0  ;;  %v7470_v5 = vpop.f32.mrb[59].mxu1 }
 0x695   :  { %v8109_v7 = vpack.c.bf16 %v1317_v4, %v1311_v37  ;;  %v7471_v8 = vadd.f32 %v7470_v5, %v7469_v0 }
 0x697   :  { %v8141_v10 = vpack.c.bf16 %v7471_v8, %v7468_v59  ;;  %v1321_v11 = vpop.f32.mrb[60].mxu0  ;;  %v7472_v12 = vpop.f32.mrb[60].mxu1  ;;  %8110 = vmatprep.subr.bf16.mxu0 %v8109_v7 }
 0x698   :  { %v1323_v13 = vpop.f32.mrb[61].mxu0  ;;  %v7473_v14 = vpop.f32.mrb[61].mxu1  ;;  %8112 = vmatpush1.bf16.msra.mxu0 %v8111_v1 }
 0x699   :  { %v7474_v16 = vadd.f32 %v7473_v14, %v7472_v12  ;;  %8142 = vmatprep.subr.bf16.mxu1 %v8141_v10 }
 0x69a   :  { %8144 = vmatpush3.bf16.msra.mxu1 %v8141_v10 }
 0x69b   :  { %v1327_v18 = vpop.f32.mrb[62].mxu0  ;;  %v7475_v19 = vpop.f32.mrb[62].mxu1 }
 0x69c   :  { %v8115_v3 = vpack.c.bf16 %v1327_v18, %v1321_v11  ;;  %v1329_v20 = vpop.f32.mrb[63].mxu0  ;;  %v7476_v41 = vpop.f32.mrb[63].mxu1 }
 0x69d   :  { %v8113_v21 = vpack.c.bf16 %v1329_v20, %v1323_v13  ;;  %v7477_v22 = vadd.f32 %v7476_v41, %v7475_v19  ;;  %v10156_v20 = vld [vmem:[%s12333_s19 + $0x10] sm:$0xff]  ;;  %v10157_v41 = vld [vmem:[%s12333_s19 + $0x18] sm:$0xff] }
 0x69f   :  { %v8145_v23 = vpack.c.bf16 %v7477_v22, %v7474_v16  ;;  %v1333_v24 = vpop.f32.mrb[64].mxu0  ;;  %v7478_v25 = vpop.f32.mrb[64].mxu1  ;;  %8114 = vmatprep.subr.bf16.mxu0 %v8113_v21  ;;  %v10159_v21 = vld [vmem:[%s12333_s19 + $0x28] sm:$0xff]  ;;  %v10160_v22 = vld [vmem:[%s12333_s19 + $0x30] sm:$0xff] }
 0x6a0   :  { %v1335_v45 = vpop.f32.mrb[65].mxu0  ;;  %v7479_v26 = vpop.f32.mrb[65].mxu1  ;;  %8116 = vmatpush1.bf16.msra.mxu0 %v8115_v3  ;;  %v10155_v3 = vld [vmem:[%s12333_s19 + $0x8] sm:$0xff] }
 0x6a1   :  { %v7480_v27 = vadd.f32 %v7479_v26, %v7478_v25  ;;  %8146 = vmatprep.subr.bf16.mxu1 %v8145_v23  ;;  %v10163_v25 = vld [vmem:[%s12333_s19 + $0x48] sm:$0xff]  ;;  %v10165_v26 = vld [vmem:[%s12333_s19 + $0x58] sm:$0xff] }
 0x6a2   :  { %8148 = vmatpush3.bf16.msra.mxu1 %v8145_v23  ;;  %v10161_v23 = vld [vmem:[%s12333_s19 + $0x38] sm:$0xff] }
 0x6a3   :  { %v1339_v49 = vpop.f32.mrb[66].mxu0  ;;  %v7481_v28 = vpop.f32.mrb[66].mxu1 }
 0x6a4   :  { %v8119_v29 = vpack.c.bf16 %v1339_v49, %v1333_v24  ;;  %v1341_v30 = vpop.f32.mrb[67].mxu0  ;;  %v7482_v46 = vpop.f32.mrb[67].mxu1  ;;  %v10162_v24 = vld [vmem:[%s12333_s19 + $0x40] sm:$0xff]  ;;  %v10167_v49 = vld [vmem:[%s12333_s19 + $0x68] sm:$0xff] }
 0x6a5   :  { %v8117_v31 = vpack.c.bf16 %v1341_v30, %v1335_v45  ;;  %v7483_v32 = vadd.f32 %v7482_v46, %v7481_v28  ;;  %v10164_v45 = vld [vmem:[%s12333_s19 + $0x50] sm:$0xff] }
 0x6a6   :  { %v10168_v28 = vld [vmem:[%s12333_s19 + $0x70] sm:$0xff] }
 0x6a7   :  { %v8149_v33 = vpack.c.bf16 %v7483_v32, %v7480_v27  ;;  %v1345_v34 = vpop.f32.mrb[68].mxu0  ;;  %v7484_v47 = vpop.f32.mrb[68].mxu1  ;;  %8118 = vmatprep.subr.bf16.mxu0 %v8117_v31  ;;  %v10166_v27 = vld [vmem:[%s12333_s19 + $0x60] sm:$0xff]  ;;  %v2389_v30 = vld [vmem:[#allocation14 + $0x8] sm:$0xff] }
 0x6a8   :  { %v1347_v61 = vpop.f32.mrb[69].mxu0  ;;  %v7485_v62 = vpop.f32.mrb[69].mxu1  ;;  %8120 = vmatpush1.bf16.msra.mxu0 %v8119_v29  ;;  %v10169_v29 = vld [vmem:[%s12333_s19 + $0x78] sm:$0xff]  ;;  %v2391_v31 = vld [vmem:[#allocation14 + $0x18] sm:$0xff] }
 0x6a9   :  { %v7486_v50 = vadd.f32 %v7485_v62, %v7484_v47  ;;  %8150 = vmatprep.subr.bf16.mxu1 %v8149_v33  ;;  %v2397_v46 = vld [vmem:[#allocation14 + $0x48] sm:$0xff]  ;;  %v2396_v47 = vld [vmem:[#allocation14 + $0x40] sm:$0xff] }
 0x6aa   :  { %8152 = vmatpush3.bf16.msra.mxu1 %v8149_v33  ;;  %v8165_v32 = vpack.c.bf16 %v2397_v46, %v2389_v30  ;;  %v2399_v33 = vld [vmem:[#allocation14 + $0x58] sm:$0xff]  ;;  %v2469_v46 = vld [vmem:[#allocation14 + $0x288] sm:$0xff] }
 0x6ab   :  { %v1351_v51 = vpop.f32.mrb[70].mxu0  ;;  %v7487_v52 = vpop.f32.mrb[70].mxu1 }
 0x6ac   :  { %v8123_v53 = vpack.c.bf16 %v1351_v51, %v1345_v34  ;;  %v1353_v54 = vpop.f32.mrb[71].mxu0  ;;  %v7488_v55 = vpop.f32.mrb[71].mxu1  ;;  %v2388_v34 = vld [vmem:[#allocation14] sm:$0xff]  ;;  %v2398_v51 = vld [vmem:[#allocation14 + $0x50] sm:$0xff] }
 0x6ad   :  { %v8121_v56 = vpack.c.bf16 %v1353_v54, %v1347_v61  ;;  %v7489_v57 = vadd.f32 %v7488_v55, %v7487_v52  ;;  %v8261_v61 = vpack.c.bf16 %v2399_v33, %v2391_v31  ;;  %v8167_v62 = vpack.c.bf16 %v2396_v47, %v2388_v34  ;;  %v2413_v54 = vld [vmem:[#allocation14 + $0xc8] sm:$0xff]  ;;  %v2407_v55 = vld [vmem:[#allocation14 + $0x98] sm:$0xff]  ;;  %v2468_v47 = vld [vmem:[#allocation14 + $0x280] sm:$0xff] }
 0x6ae   :  { %v2477_v31 = vld [vmem:[#allocation14 + $0x2c8] sm:$0xff]  ;;  %v2479_v34 = vld [vmem:[#allocation14 + $0x2d8] sm:$0xff] }
 0x6af   :  { %v8153_v35 = vpack.c.bf16 %v7489_v57, %v7486_v50  ;;  %v1357_v36 = vpop.f32.mrb[72].mxu0  ;;  %v7490_v58 = vpop.f32.mrb[72].mxu1  ;;  %8122 = vmatprep.subr.bf16.mxu0 %v8121_v56  ;;  %v2390_v50 = vld [vmem:[#allocation14 + $0x10] sm:$0xff]  ;;  %v2415_v57 = vld [vmem:[#allocation14 + $0xd8] sm:$0xff]  ;;  %v8185_v33 = vpack.c.bf16 %v2477_v31, %v2469_v46  ;;  %v2532_v46 = vld [vmem:[#allocation14 + $0x480] sm:$0xff] }
 0x6b0   :  { %v1359_v37 = vpop.f32.mrb[73].mxu0  ;;  %v7491_v38 = vpop.f32.mrb[73].mxu1  ;;  %8124 = vmatpush1.bf16.msra.mxu0 %v8123_v53  ;;  %v8263_v52 = vpack.c.bf16 %v2398_v51, %v2390_v50  ;;  %v2405_v53 = vld [vmem:[#allocation14 + $0x88] sm:$0xff]  ;;  %v2540_v31 = vld [vmem:[#allocation14 + $0x4c0] sm:$0xff] }
 0x6b1   :  { %v7492_v39 = vadd.f32 %v7491_v38, %v7490_v58  ;;  %8154 = vmatprep.subr.bf16.mxu1 %v8153_v35  ;;  %v8169_v56 = vpack.c.bf16 %v2413_v54, %v2405_v53  ;;  %v8265_v58 = vpack.c.bf16 %v2415_v57, %v2407_v55  ;;  %v2406_v38 = vld [vmem:[#allocation14 + $0x90] sm:$0xff]  ;;  %v2485_v55 = vld [vmem:[#allocation14 + $0x308] sm:$0xff]  ;;  %v2487_v57 = vld [vmem:[#allocation14 + $0x318] sm:$0xff] }
 0x6b2   :  { %8156 = vmatpush3.bf16.msra.mxu1 %v8153_v35  ;;  %v2404_v35 = vld [vmem:[#allocation14 + $0x80] sm:$0xff]  ;;  %v2478_v53 = vld [vmem:[#allocation14 + $0x2d0] sm:$0xff] }
 0x6b3   :  { %v1363_v59 = vpop.f32.mrb[74].mxu0  ;;  %v7493_v44 = vpop.f32.mrb[74].mxu1 }
 0x6b4   :  { %v8127_v63 = vpack.c.bf16 %v1363_v59, %v1357_v36  ;;  %v1365_v0 = vpop.f32.mrb[75].mxu0  ;;  %v7494_v1 = vpop.f32.mrb[75].mxu1  ;;  %v2412_v36 = vld [vmem:[#allocation14 + $0xc0] sm:$0xff] }
 0x6b5   :  { %v8125_v4 = vpack.c.bf16 %v1365_v0, %v1359_v37  ;;  %v7495_v5 = vadd.f32 %v7494_v1, %v7493_v44  ;;  %v8171_v37 = vpack.c.bf16 %v2412_v36, %v2404_v35  ;;  %v2421_v44 = vld [vmem:[#allocation14 + $0x108] sm:$0xff]  ;;  %v2423_v0 = vld [vmem:[#allocation14 + $0x118] sm:$0xff]  ;;  %v11561_v35 = vpop.permute.xlu0 %1945 }
 0x6b6   :  { %vm1992_vm0 = vcmp.eq.s32.totalorder %v11561_v35, 1 }
 0x6b7   :  { %v8157_v6 = vpack.c.bf16 %v7495_v5, %v7492_v39  ;;  %v1369_v7 = vpop.f32.mrb[76].mxu0  ;;  %v7496_v8 = vpop.f32.mrb[76].mxu1  ;;  %8126 = vmatprep.subr.bf16.mxu0 %v8125_v4  ;;  %v2414_v39 = vld [vmem:[#allocation14 + $0xd0] sm:$0xff]  ;;  %v2431_v4 = vld [vmem:[#allocation14 + $0x158] sm:$0xff]  ;;  %v2420_v5 = vld [vmem:[#allocation14 + $0x100] sm:$0xff] }
 0x6b8   :  { %v1371_v9 = vpop.f32.mrb[77].mxu0  ;;  %v7497_v10 = vpop.f32.mrb[77].mxu1  ;;  %8128 = vmatpush1.bf16.msra.mxu0 %v8127_v63  ;;  %v8267_v59 = vpack.c.bf16 %v2414_v39, %v2406_v38  ;;  %v2429_v63 = vld [vmem:[#allocation14 + $0x148] sm:$0xff]  ;;  %v2492_v38 = vld [vmem:[#allocation14 + $0x340] sm:$0xff] }
 0x6b9   :  { %v7498_v11 = vadd.f32 %v7497_v10, %v7496_v8  ;;  %8158 = vmatprep.subr.bf16.mxu1 %v8157_v6  ;;  %v8173_v1 = vpack.c.bf16 %v2429_v63, %v2421_v44  ;;  %v2430_v10 = vld [vmem:[#allocation14 + $0x150] sm:$0xff] }
 0x6ba   :  { %8160 = vmatpush3.bf16.msra.mxu1 %v8157_v6  ;;  %v2428_v6 = vld [vmem:[#allocation14 + $0x140] sm:$0xff]  ;;  %v2486_v44 = vld [vmem:[#allocation14 + $0x310] sm:$0xff] }
 0x6bb   :  { %v1375_v12 = vpop.f32.mrb[78].mxu0  ;;  %v7499_v13 = vpop.f32.mrb[78].mxu1  ;;  %v8175_v8 = vpack.c.bf16 %v2428_v6, %v2420_v5  ;;  %v2494_v63 = vld [vmem:[#allocation14 + $0x350] sm:$0xff]  ;;  %v2509_v5 = vld [vmem:[#allocation14 + $0x3c8] sm:$0xff]  ;;  %v2503_v6 = vld [vmem:[#allocation14 + $0x398] sm:$0xff] }
 0x6bc   :  { %v8131_v14 = vpack.c.bf16 %v1375_v12, %v1369_v7  ;;  %v1377_v15 = vpop.f32.mrb[79].mxu0  ;;  %v7500_v16 = vpop.f32.mrb[79].mxu1  ;;  %v8269_v7 = vpack.c.bf16 %v2431_v4, %v2423_v0  ;;  %v2437_v12 = vld [vmem:[#allocation14 + $0x188] sm:$0xff]  ;;  %v8287_v0 = vpack.c.bf16 %v2494_v63, %v2486_v44 }
 0x6bd   :  { %v8129_v17 = vpack.c.bf16 %v1377_v15, %v1371_v9  ;;  %v7501_v18 = vadd.f32 %v7500_v16, %v7499_v13  ;;  %v2422_v9 = vld [vmem:[#allocation14 + $0x110] sm:$0xff]  ;;  %v2445_v13 = vld [vmem:[#allocation14 + $0x1c8] sm:$0xff]  ;;  %v2447_v16 = vld [vmem:[#allocation14 + $0x1d8] sm:$0xff] }
 0x6be   :  { %v8177_v15 = vpack.c.bf16 %v2445_v13, %v2437_v12  ;;  %v2501_v4 = vld [vmem:[#allocation14 + $0x388] sm:$0xff]  ;;  %v2502_v13 = vld [vmem:[#allocation14 + $0x390] sm:$0xff] }
 0x6bf   :  { %v8161_v19 = vpack.c.bf16 %v7501_v18, %v7498_v11  ;;  %8130 = vmatprep.subr.bf16.mxu0 %v8129_v17  ;;  %v8271_v11 = vpack.c.bf16 %v2430_v10, %v2422_v9  ;;  %v2436_v17 = vld [vmem:[#allocation14 + $0x180] sm:$0xff]  ;;  %v2565_v44 = vld [vmem:[#allocation14 + $0x588] sm:$0xff] }
 0x6c0   :  { %8132 = vmatpush1.bf16.msra.mxu0 %v8131_v14  ;;  %v2439_v14 = vld [vmem:[#allocation14 + $0x198] sm:$0xff]  ;;  %v2444_v18 = vld [vmem:[#allocation14 + $0x1c0] sm:$0xff]  ;;  %v2573_v63 = vld [vmem:[#allocation14 + $0x5c8] sm:$0xff] }
 0x6c1   :  { %8162 = vmatprep.subr.bf16.mxu1 %v8161_v19  ;;  %8166 = vmatprep.subr.bf16.mxu0 %v8165_v32  ;;  %v2471_v32 = vld [vmem:[#allocation14 + $0x298] sm:$0xff]  ;;  %v2500_v9 = vld [vmem:[#allocation14 + $0x380] sm:$0xff] }
 0x6c2   :  { %8164 = vmatpush3.bf16.msra.mxu1 %v8161_v19  ;;  %v8273_v19 = vpack.c.bf16 %v2447_v16, %v2439_v14  ;;  %v8281_v50 = vpack.c.bf16 %v2479_v34, %v2471_v32  ;;  %v2508_v10 = vld [vmem:[#allocation14 + $0x3c0] sm:$0xff]  ;;  %v2510_v14 = vld [vmem:[#allocation14 + $0x3d0] sm:$0xff] }
 0x6c3   :  { %1607 = vmatmul.mubr.f32.vlgmr.msra.gmra.mrb[80].mxu0 %v11413_v48  ;;  %v10158_v48 = vld [vmem:[%s12333_s19 + $0x20] sm:$0xff]  ;;  %8262 = vmatprep.subr.bf16.mxu1 %v8261_v61  ;;  %v2476_v61 = vld [vmem:[#allocation14 + $0x2c0] sm:$0xff]  ;;  %v8195_v12 = vpack.c.bf16 %v2508_v10, %v2500_v9  ;;  %v8291_v16 = vpack.c.bf16 %v2510_v14, %v2502_v13  ;;  %v2581_v14 = vld [vmem:[#allocation14 + $0x608] sm:$0xff] }
 0x6c4   :  { %1612 = vmatprep.mubr.f32.mxu0 %v12293_v2  ;;  %8168 = vmatpush1.bf16.msra.mxu0 %v8167_v62  ;;  %v11559_v62 = vpop.permute.xlu1 %1951  ;;  %v8187_v51 = vpack.c.bf16 %v2476_v61, %v2468_v47  ;;  %v2534_v34 = vld [vmem:[#allocation14 + $0x490] sm:$0xff] }
 0x6c5   :  { %7854 = vmatmul.mubr.f32.vlgmr.msra.gmra.mrb[80].mxu1 %v10155_v3  ;;  %8170 = vmatprep.subr.bf16.mxu0 %v8169_v56  ;;  %v2493_v56 = vld [vmem:[#allocation14 + $0x348] sm:$0xff]  ;;  %v2542_v47 = vld [vmem:[#allocation14 + $0x4d0] sm:$0xff]  ;;  %vm1994_vm3 = vcmp.eq.s32.totalorder %v11559_v62, 1 }
 0x6c6   :  { %7856 = vmatprep.mubr.f32.mxu1 %v10156_v20  ;;  %8264 = vmatpush1.bf16.msra.mxu1 %v8263_v52  ;;  %v2470_v52 = vld [vmem:[#allocation14 + $0x290] sm:$0xff]  ;;  %v8189_v36 = vpack.c.bf16 %v2493_v56, %v2485_v55  ;;  %v8299_v61 = vpack.c.bf16 %v2542_v47, %v2534_v34  ;;  %v2559_v55 = vld [vmem:[#allocation14 + $0x558] sm:$0xff]  ;;  %v2548_v56 = vld [vmem:[#allocation14 + $0x500] sm:$0xff] }
 0x6c7   :  { %1613 = vmatmul.mubr.f32.gmra.mrb[82].mxu0 %v10155_v3  ;;  %8266 = vmatprep.subr.bf16.mxu1 %v8265_v58  ;;  %v8179_v3 = vpack.c.bf16 %v2444_v18, %v2436_v17  ;;  %v8283_v54 = vpack.c.bf16 %v2478_v53, %v2470_v52  ;;  %v2495_v58 = vld [vmem:[#allocation14 + $0x358] sm:$0xff]  ;;  %v2517_v17 = vld [vmem:[#allocation14 + $0x408] sm:$0xff]  ;;  %v2598_v34 = vld [vmem:[#allocation14 + $0x690] sm:$0xff] }
 0x6c8   :  { %1618 = vmatprep.mubr.f32.mxu0 %v12293_v2  ;;  %8172 = vmatpush1.bf16.msra.mxu0 %v8171_v37  ;;  %v2484_v37 = vld [vmem:[#allocation14 + $0x300] sm:$0xff]  ;;  %v8285_v39 = vpack.c.bf16 %v2495_v58, %v2487_v57  ;;  %v2525_v18 = vld [vmem:[#allocation14 + $0x448] sm:$0xff]  ;;  %v2551_v53 = vld [vmem:[#allocation14 + $0x518] sm:$0xff] }
 0x6c9   :  { %7857 = vmatmul.mubr.f32.gmra.mrb[82].mxu1 %v10157_v41  ;;  %8174 = vmatprep.subr.bf16.mxu0 %v8173_v1  ;;  %v11563_v1 = vpop.permute.xlu1 %1954  ;;  %v2557_v52 = vld [vmem:[#allocation14 + $0x548] sm:$0xff]  ;;  %v2556_v57 = vld [vmem:[#allocation14 + $0x540] sm:$0xff]  ;;  %v2606_v47 = vld [vmem:[#allocation14 + $0x6d0] sm:$0xff] }
 0x6ca   :  { %7859 = vmatprep.mubr.f32.mxu1 %v10158_v48  ;;  %8268 = vmatpush1.bf16.msra.mxu1 %v8267_v59  ;;  %v8191_v59 = vpack.c.bf16 %v2492_v38, %v2484_v37  ;;  %v8207_v58 = vpack.c.bf16 %v2556_v57, %v2548_v56  ;;  %v2550_v37 = vld [vmem:[#allocation14 + $0x510] sm:$0xff]  ;;  %vm1995_vm1 = vcmp.eq.s32.totalorder %v11563_v1, 1 }
 0x6cb   :  { %1619 = vmatmul.mubr.f32.gmra.mrb[84].mxu0 %v10156_v20  ;;  %8270 = vmatprep.subr.bf16.mxu1 %v8269_v7  ;;  %v2438_v20 = vld [vmem:[#allocation14 + $0x190] sm:$0xff]  ;;  %v8193_v7 = vpack.c.bf16 %v2509_v5, %v2501_v4  ;;  %v8209_v4 = vpack.c.bf16 %v2573_v63, %v2565_v44  ;;  %v2575_v5 = vld [vmem:[#allocation14 + $0x5d8] sm:$0xff]  ;;  %v2629_v44 = vld [vmem:[#allocation14 + $0x788] sm:$0xff] }
 0x6cc   :  { %1624 = vmatprep.mubr.f32.mxu0 %v12293_v2  ;;  %8176 = vmatpush1.bf16.msra.mxu0 %v8175_v8  ;;  %v2511_v8 = vld [vmem:[#allocation14 + $0x3d8] sm:$0xff]  ;;  %v2558_v38 = vld [vmem:[#allocation14 + $0x550] sm:$0xff]  ;;  %v2637_v63 = vld [vmem:[#allocation14 + $0x7c8] sm:$0xff] }
 0x6cd   :  { %7860 = vmatmul.mubr.f32.gmra.mrb[84].mxu1 %v10159_v21  ;;  %8178 = vmatprep.subr.bf16.mxu0 %v8177_v15  ;;  %v11565_v15 = vpop.permute.xlu0 %1948 }
 0x6ce   :  { %7862 = vmatprep.mubr.f32.mxu1 %v10160_v22  ;;  %8272 = vmatpush1.bf16.msra.mxu1 %v8271_v11  ;;  %v8289_v11 = vpack.c.bf16 %v2511_v8, %v2503_v6  ;;  %v2564_v6 = vld [vmem:[#allocation14 + $0x580] sm:$0xff]  ;;  %vm1993_vm4 = vcmp.eq.s32.totalorder %v11565_v15, 1 }
 0x6cf   :  { %1625 = vmatmul.mubr.f32.gmra.mrb[86].mxu0 %v10157_v41  ;;  %v2446_v41 = vld [vmem:[#allocation14 + $0x1d0] sm:$0xff]  ;;  %8274 = vmatprep.subr.bf16.mxu1 %v8273_v19  ;;  %v2519_v19 = vld [vmem:[#allocation14 + $0x418] sm:$0xff] }
 0x6d0   :  { %1630 = vmatprep.mubr.f32.mxu0 %v12293_v2  ;;  %8180 = vmatpush1.bf16.msra.mxu0 %v8179_v3  ;;  %v8197_v3 = vpack.c.bf16 %v2525_v18, %v2517_v17  ;;  %v2583_v17 = vld [vmem:[#allocation14 + $0x618] sm:$0xff] }
 0x6d1   :  { %7863 = vmatmul.mubr.f32.gmra.mrb[86].mxu1 %v10161_v23 }
 0x6d2   :  { %7865 = vmatprep.mubr.f32.mxu1 %v10162_v24 }
 0x6d3   :  { %1631 = vmatmul.mubr.f32.gmra.mrb[88].mxu0 %v10158_v48  ;;  %v8275_v48 = vpack.c.bf16 %v2446_v41, %v2438_v20  ;;  %v2527_v20 = vld [vmem:[#allocation14 + $0x458] sm:$0xff]  ;;  %v2516_v41 = vld [vmem:[#allocation14 + $0x400] sm:$0xff] }
 0x6d4   :  { %1636 = vmatprep.mubr.f32.mxu0 %v12293_v2 }
 0x6d5   :  { %7866 = vmatmul.mubr.f32.gmra.mrb[88].mxu1 %v10163_v25 }
 0x6d6   :  { %7868 = vmatprep.mubr.f32.mxu1 %v10164_v45  ;;  %8276 = vmatpush1.bf16.msra.mxu1 %v8275_v48  ;;  %v2524_v48 = vld [vmem:[#allocation14 + $0x440] sm:$0xff] }
 0x6d7   :  { %1637 = vmatmul.mubr.f32.gmra.mrb[90].mxu0 %v10159_v21  ;;  %v2453_v21 = vld [vmem:[#allocation14 + $0x208] sm:$0xff] }
 0x6d8   :  { %1642 = vmatprep.mubr.f32.mxu0 %v12293_v2 }
 0x6d9   :  { %7869 = vmatmul.mubr.f32.gmra.mrb[90].mxu1 %v10165_v26 }
 0x6da   :  { %7871 = vmatprep.mubr.f32.mxu1 %v10166_v27 }
 0x6db   :  { %1643 = vmatmul.mubr.f32.gmra.mrb[92].mxu0 %v10160_v22  ;;  %v2461_v22 = vld [vmem:[#allocation14 + $0x248] sm:$0xff] }
 0x6dc   :  { %1648 = vmatprep.mubr.f32.mxu0 %v12293_v2 }
 0x6dd   :  { %7872 = vmatmul.mubr.f32.gmra.mrb[92].mxu1 %v10167_v49 }
 0x6de   :  { %7874 = vmatprep.mubr.f32.mxu1 %v10168_v28 }
 0x6df   :  { %1649 = vmatmul.mubr.f32.gmra.mrb[94].mxu0 %v10161_v23  ;;  %v2455_v23 = vld [vmem:[#allocation14 + $0x218] sm:$0xff] }
 0x6e0   :  { %1654 = vmatprep.mubr.f32.mxu0 %v12293_v2 }
 0x6e1   :  { %7875 = vmatmul.mubr.f32.gmra.mrb[94].mxu1 %v10169_v29 }
 0x6e3   :  { %1655 = vmatmul.mubr.f32.gmra.mrb[96].mxu0 %v10162_v24  ;;  %v8181_v24 = vpack.c.bf16 %v2461_v22, %v2453_v21  ;;  %v11567_v21 = vpop.permute.xlu1 %2187  ;;  %v8293_v22 = vpack.c.bf16 %v2527_v20, %v2519_v19  ;;  %v2580_v20 = vld [vmem:[#allocation14 + $0x600] sm:$0xff] }
 0x6e4   :  { %1660 = vmatprep.mubr.f32.mxu0 %v12293_v2  ;;  %vm2232_vm5 = vcmp.eq.s32.totalorder %v11567_v21, 1 }
 0x6e5   :  { %8182 = vmatprep.subr.bf16.mxu0 %v8181_v24  ;;  %v2518_v24 = vld [vmem:[#allocation14 + $0x410] sm:$0xff] }
 0x6e7   :  { %1661 = vmatmul.mubr.f32.gmra.mrb[98].mxu0 %v10163_v25  ;;  %v2463_v25 = vld [vmem:[#allocation14 + $0x258] sm:$0xff] }
 0x6e8   :  { %1666 = vmatprep.mubr.f32.mxu0 %v12293_v2 }
 0x6eb   :  { %1667 = vmatmul.mubr.f32.gmra.mrb[100].mxu0 %v10164_v45  ;;  %v2452_v45 = vld [vmem:[#allocation14 + $0x200] sm:$0xff] }
 0x6ec   :  { %1672 = vmatprep.mubr.f32.mxu0 %v12293_v2 }
 0x6ef   :  { %1673 = vmatmul.mubr.f32.gmra.mrb[102].mxu0 %v10165_v26  ;;  %v2460_v26 = vld [vmem:[#allocation14 + $0x240] sm:$0xff] }
 0x6f0   :  { %1678 = vmatprep.mubr.f32.mxu0 %v12293_v2 }
 0x6f3   :  { %1679 = vmatmul.mubr.f32.gmra.mrb[104].mxu0 %v10166_v27  ;;  %v8277_v27 = vpack.c.bf16 %v2463_v25, %v2455_v23  ;;  %v8199_v23 = vpack.c.bf16 %v2524_v48, %v2516_v41  ;;  %v2526_v25 = vld [vmem:[#allocation14 + $0x450] sm:$0xff]  ;;  %v2588_v41 = vld [vmem:[#allocation14 + $0x640] sm:$0xff] }
 0x6f4   :  { %1684 = vmatprep.mubr.f32.mxu0 %v12293_v2 }
 0x6f5   :  { %8278 = vmatprep.subr.bf16.mxu1 %v8277_v27  ;;  %v2541_v27 = vld [vmem:[#allocation14 + $0x4c8] sm:$0xff] }
 0x6f7   :  { %1685 = vmatmul.mubr.f32.gmra.mrb[106].mxu0 %v10167_v49  ;;  %v8183_v49 = vpack.c.bf16 %v2460_v26, %v2452_v45  ;;  %v8295_v45 = vpack.c.bf16 %v2526_v25, %v2518_v24  ;;  %v2533_v26 = vld [vmem:[#allocation14 + $0x488] sm:$0xff]  ;;  %v2590_v24 = vld [vmem:[#allocation14 + $0x650] sm:$0xff] }
 0x6f8   :  { %1690 = vmatprep.mubr.f32.mxu0 %v12293_v2 }
 0x6f9   :  { %8184 = vmatpush1.bf16.msra.mxu0 %v8183_v49  ;;  %v2535_v49 = vld [vmem:[#allocation14 + $0x498] sm:$0xff] }
 0x6fa   :  { %8186 = vmatprep.subr.bf16.mxu0 %v8185_v33  ;;  %v8203_v33 = vpack.c.bf16 %v2540_v31, %v2532_v46  ;;  %v2596_v46 = vld [vmem:[#allocation14 + $0x680] sm:$0xff] }
 0x6fb   :  { %1691 = vmatmul.mubr.f32.gmra.mrb[108].mxu0 %v10168_v28  ;;  %v2454_v28 = vld [vmem:[#allocation14 + $0x210] sm:$0xff]  ;;  %v2604_v31 = vld [vmem:[#allocation14 + $0x6c0] sm:$0xff] }
 0x6fc   :  { %1696 = vmatprep.mubr.f32.mxu0 %v12293_v2 }
 0x6fd   :  { %8188 = vmatpush1.bf16.msra.mxu0 %v8187_v51  ;;  %v2549_v51 = vld [vmem:[#allocation14 + $0x508] sm:$0xff] }
 0x6fe   :  { %8190 = vmatprep.subr.bf16.mxu0 %v8189_v36  ;;  %v8301_v36 = vpack.c.bf16 %v2559_v55, %v2551_v53  ;;  %v2615_v53 = vld [vmem:[#allocation14 + $0x718] sm:$0xff] }
 0x6ff   :  { %1697 = vmatmul.mubr.f32.gmra.mrb[110].mxu0 %v10169_v29  ;;  %v2462_v29 = vld [vmem:[#allocation14 + $0x250] sm:$0xff] }
 0x700   :  { %v8279_v30 = vpack.c.bf16 %v2462_v29, %v2454_v28  ;;  %v11569_v28 = vpop.permute.xlu0 %2184  ;;  %v8201_v29 = vpack.c.bf16 %v2541_v27, %v2533_v26  ;;  %v2605_v26 = vld [vmem:[#allocation14 + $0x6c8] sm:$0xff]  ;;  %v2599_v27 = vld [vmem:[#allocation14 + $0x698] sm:$0xff] }
 0x701   :  { %8192 = vmatpush1.bf16.msra.mxu0 %v8191_v59  ;;  %v8303_v59 = vpack.c.bf16 %v2558_v38, %v2550_v37  ;;  %v2614_v37 = vld [vmem:[#allocation14 + $0x710] sm:$0xff]  ;;  %vm2231_vm2 = vcmp.eq.s32.totalorder %v11569_v28, 1 }
 0x702   :  { %8280 = vmatpush1.bf16.msra.mxu1 %v8279_v30  ;;  %8194 = vmatprep.subr.bf16.mxu0 %v8193_v7  ;;  %v2543_v30 = vld [vmem:[#allocation14 + $0x4d8] sm:$0xff]  ;;  %v2572_v7 = vld [vmem:[#allocation14 + $0x5c0] sm:$0xff] }
 0x703   :  { %8282 = vmatprep.subr.bf16.mxu1 %v8281_v50  ;;  %v8297_v32 = vpack.c.bf16 %v2543_v30, %v2535_v49  ;;  %v11571_v50 = vpop.permute.xlu1 %2193  ;;  %v8211_v10 = vpack.c.bf16 %v2572_v7, %v2564_v6  ;;  %v2607_v30 = vld [vmem:[#allocation14 + $0x6d8] sm:$0xff]  ;;  %v2628_v7 = vld [vmem:[#allocation14 + $0x780] sm:$0xff] }
 0x704   :  { %v2639_v6 = vld [vmem:[#allocation14 + $0x7d8] sm:$0xff]  ;;  %vm2234_vm6 = vcmp.eq.s32.totalorder %v11571_v50, 1 }
 0x705   :  { %8196 = vmatpush1.bf16.msra.mxu0 %v8195_v12  ;;  %v2574_v12 = vld [vmem:[#allocation14 + $0x5d0] sm:$0xff] }
 0x706   :  { %8284 = vmatpush1.bf16.msra.mxu1 %v8283_v54  ;;  %8198 = vmatprep.subr.bf16.mxu0 %v8197_v3  ;;  %v8205_v54 = vpack.c.bf16 %v2557_v52, %v2549_v51  ;;  %v2591_v3 = vld [vmem:[#allocation14 + $0x658] sm:$0xff]  ;;  %v8315_v51 = vpack.c.bf16 %v2606_v47, %v2598_v34  ;;  %v2621_v52 = vld [vmem:[#allocation14 + $0x748] sm:$0xff] }
 0x707   :  { %8286 = vmatprep.subr.bf16.mxu1 %v8285_v39  ;;  %v11573_v39 = vpop.permute.xlu0 %2190  ;;  %v11575_v8 = vpop.permute.xlu1 %1960  ;;  %v8309_v48 = vpack.c.bf16 %v2591_v3, %v2583_v17  ;;  %v2653_v3 = vld [vmem:[#allocation14 + $0x848] sm:$0xff] }
 0x708   :  { %vm2233_vm7 = vcmp.eq.s32.totalorder %v11573_v39, 1  ;;  %vm1997_vm8 = vcmp.eq.s32.totalorder %v11575_v8, 1 }
 0x709   :  { %8200 = vmatpush1.bf16.msra.mxu0 %v8199_v23  ;;  %v2582_v23 = vld [vmem:[#allocation14 + $0x610] sm:$0xff] }
 0x70a   :  { %8288 = vmatpush1.bf16.msra.mxu1 %v8287_v0  ;;  %8202 = vmatprep.subr.bf16.mxu0 %v8201_v29  ;;  %v2567_v0 = vld [vmem:[#allocation14 + $0x598] sm:$0xff]  ;;  %v8311_v25 = vpack.c.bf16 %v2590_v24, %v2582_v23 }
 0x70b   :  { %8290 = vmatprep.subr.bf16.mxu1 %v8289_v11  ;;  %v8305_v9 = vpack.c.bf16 %v2575_v5, %v2567_v0  ;;  %v2566_v11 = vld [vmem:[#allocation14 + $0x590] sm:$0xff]  ;;  %v11577_v18 = vpop.permute.xlu0 %1957  ;;  %v11579_v49 = vpop.permute.xlu1 %2199  ;;  %v2631_v5 = vld [vmem:[#allocation14 + $0x798] sm:$0xff] }
 0x70c   :  { %v8307_v13 = vpack.c.bf16 %v2574_v12, %v2566_v11  ;;  %v2636_v11 = vld [vmem:[#allocation14 + $0x7c0] sm:$0xff]  ;;  %v2630_v12 = vld [vmem:[#allocation14 + $0x790] sm:$0xff]  ;;  %vm2236_vm9 = vcmp.eq.s32.totalorder %v11579_v49, 1  ;;  %vm1996_vm10 = vcmp.eq.s32.totalorder %v11577_v18, 1 }
 0x70d   :  { %8204 = vmatpush1.bf16.msra.mxu0 %v8203_v33  ;;  %v8219_v33 = vpack.c.bf16 %v2604_v31, %v2596_v46 }
 0x70e   :  { %8292 = vmatpush1.bf16.msra.mxu1 %v8291_v16  ;;  %8206 = vmatprep.subr.bf16.mxu0 %v8205_v54  ;;  %v2589_v16 = vld [vmem:[#allocation14 + $0x648] sm:$0xff]  ;;  %v2623_v54 = vld [vmem:[#allocation14 + $0x758] sm:$0xff] }
 0x70f   :  { %8294 = vmatprep.subr.bf16.mxu1 %v8293_v22  ;;  %v8213_v19 = vpack.c.bf16 %v2589_v16, %v2581_v14  ;;  %v8215_v22 = vpack.c.bf16 %v2588_v41, %v2580_v20  ;;  %v11581_v55 = vpop.permute.xlu0 %2196  ;;  %v8317_v57 = vpack.c.bf16 %v2623_v54, %v2615_v53  ;;  %v8227_v14 = vpack.c.bf16 %v2636_v11, %v2628_v7  ;;  %v2647_v20 = vld [vmem:[#allocation14 + $0x818] sm:$0xff] }
 0x710   :  { %vm2235_vm11 = vcmp.eq.s32.totalorder %v11581_v55, 1 }
 0x711   :  { %8208 = vmatpush1.bf16.msra.mxu0 %v8207_v58  ;;  %v2620_v58 = vld [vmem:[#allocation14 + $0x740] sm:$0xff] }
 0x712   :  { %8296 = vmatpush1.bf16.msra.mxu1 %v8295_v45  ;;  %8210 = vmatprep.subr.bf16.mxu0 %v8209_v4  ;;  %v2597_v45 = vld [vmem:[#allocation14 + $0x688] sm:$0xff]  ;;  %v8225_v4 = vpack.c.bf16 %v2637_v63, %v2629_v44 }
 0x713   :  { %8298 = vmatprep.subr.bf16.mxu1 %v8297_v32  ;;  %v8217_v29 = vpack.c.bf16 %v2605_v26, %v2597_v45  ;;  %v8313_v32 = vpack.c.bf16 %v2607_v30, %v2599_v27  ;;  %v11585_v16 = vpop.permute.xlu0 %1963  ;;  %v1525_v45 = vld [vmem:[#allocation12] sm:$0x7]  ;;  %v11596_v27 = vsub.s32 2, %v11363_v42 }
 0x714   :  { %v11604_v46 = vrot.slane %v1525_v45, %v11369_v60  ;;  %vm1998_vm14 = vcmp.eq.s32.totalorder %v11585_v16, 1 }
 0x715   :  { %8212 = vmatpush1.bf16.msra.mxu0 %v8211_v10  ;;  %v8321_v10 = vpack.c.bf16 %v2639_v6, %v2631_v5  ;;  %12338 = vst [vmem:[#allocation53_spill] sm:$0xff] %v11596_v27  ;;  %v11607_v31 = vrot.slane %v1525_v45, %v11596_v27 }
 0x716   :  { %8300 = vmatpush1.bf16.msra.mxu1 %v8299_v61  ;;  %8214 = vmatprep.subr.bf16.mxu0 %v8213_v19  ;;  %v2613_v61 = vld [vmem:[#allocation14 + $0x708] sm:$0xff] }
 0x717   :  { %8302 = vmatprep.subr.bf16.mxu1 %v8301_v36  ;;  %v8221_v56 = vpack.c.bf16 %v2621_v52, %v2613_v61  ;;  %v2612_v36 = vld [vmem:[#allocation14 + $0x700] sm:$0xff]  ;;  %v2645_v19 = vld [vmem:[#allocation14 + $0x808] sm:$0xff]  ;;  %v11589_v24 = vpop.permute.xlu0 %2202 }
 0x718   :  { %v8223_v38 = vpack.c.bf16 %v2620_v58, %v2612_v36  ;;  %vm2237_vm15 = vcmp.eq.s32.totalorder %v11589_v24, 1 }
 0x719   :  { %8216 = vmatpush1.bf16.msra.mxu0 %v8215_v22  ;;  %v2655_v22 = vld [vmem:[#allocation14 + $0x858] sm:$0xff] }
 0x71a   :  { %8304 = vmatpush1.bf16.msra.mxu1 %v8303_v59  ;;  %8218 = vmatprep.subr.bf16.mxu0 %v8217_v29  ;;  %v2622_v59 = vld [vmem:[#allocation14 + $0x750] sm:$0xff]  ;;  %v8325_v23 = vpack.c.bf16 %v2655_v22, %v2647_v20  ;;  %v11599_v29 = vrot.slane %v1525_v45, %v11366_v43 }
 0x71b   :  { %8306 = vmatprep.subr.bf16.mxu1 %v8305_v9  ;;  %v8319_v0 = vpack.c.bf16 %v2622_v59, %v2614_v37  ;;  %v11583_v9 = vpop.permute.xlu1 %1966  ;;  %v11593_v26 = vpop.permute.xlu0 %1969 }
 0x71c   :  { %vm1999_vm12 = vcmp.eq.s32.totalorder %v11583_v9, 1 }
 0x71d   :  { %8220 = vmatpush1.bf16.msra.mxu0 %v8219_v33 }
 0x71e   :  { %8308 = vmatpush1.bf16.msra.mxu1 %v8307_v13  ;;  %8222 = vmatprep.subr.bf16.mxu0 %v8221_v56  ;;  %v2638_v13 = vld [vmem:[#allocation14 + $0x7d0] sm:$0xff] }
 0x71f   :  { %8310 = vmatprep.subr.bf16.mxu1 %v8309_v48  ;;  %v8323_v17 = vpack.c.bf16 %v2638_v13, %v2630_v12  ;;  %v11587_v41 = vpop.permute.xlu1 %2205  ;;  %v8229_v48 = vpack.c.bf16 %v2653_v3, %v2645_v19  ;;  %v11609_v33 = vpop.permute.xlu0 %2208 }
 0x720   :  { %vm2238_vm13 = vcmp.eq.s32.totalorder %v11587_v41, 1 }
 0x721   :  { %8224 = vmatpush1.bf16.msra.mxu0 %v8223_v38 }
 0x722   :  { %8312 = vmatpush1.bf16.msra.mxu1 %v8311_v25  ;;  %8226 = vmatprep.subr.bf16.mxu0 %v8225_v4 }
 0x723   :  { %8314 = vmatprep.subr.bf16.mxu1 %v8313_v32  ;;  %v11591_v25 = vpop.permute.xlu1 %1972 }
 0x725   :  { %8228 = vmatpush1.bf16.msra.mxu0 %v8227_v14 }
 0x726   :  { %8316 = vmatpush1.bf16.msra.mxu1 %v8315_v51  ;;  %8230 = vmatprep.subr.bf16.mxu0 %v8229_v48 }
 0x727   :  { %8318 = vmatprep.subr.bf16.mxu1 %v8317_v57  ;;  %v11601_v30 = vpop.permute.xlu1 %2211 }
 0x72a   :  { %8320 = vmatpush1.bf16.msra.mxu1 %v8319_v0 }
 0x72b   :  { %8322 = vmatprep.subr.bf16.mxu1 %v8321_v10  ;;  %v11622_v56 = vpop.permute.xlu1 %1978  ;;  %v11644_v10 = vpop.permute.xlu0 %1975 }
 0x72e   :  { %8324 = vmatpush1.bf16.msra.mxu1 %v8323_v17 }
 0x72f   :  { %8326 = vmatprep.subr.bf16.mxu1 %v8325_v23 }
 0x796   :  { %v1608_v32 = vpop.f32.mrb[80].mxu0 }
 0x797   :  { %v1609_v34 = vadd.f32 %v1608_v32, %v11599_v29  ;;  %v1610_v47 = vpop.f32.mrb[81].mxu0 }
 0x798   :  { %v1611_v61 = vadd.f32 %v1610_v47, %v11604_v46  ;;  %v7855_v51 = vpop.f32.mrb[80].mxu1  ;;  %v11672_v47 = vpop.permute.xlu1 %2217 }
 0x799   :  { %v1848_v52 = vmax.f32 %v1609_v34, 0.0  ;;  %v1775_v53 = vadd.f32 %v7855_v51, %v11607_v31  ;;  %v1769_v54 = vpop.f32.mrb[81].mxu1 }
 0x79a   :  { %v1849_v57 = vmax.f32 %v1611_v61, 0.0  ;;  %v1614_v36 = vpop.f32.mrb[82].mxu0  ;;  %v1770_v58 = vadd.f32 %v1769_v54, %v11607_v31 }
 0x79b   :  { %v11627_v37 = vsel %vm1992_vm0, %v1848_v52, -3e+38  ;;  %v11631_v38 = vsel %vm2231_vm2, %v1848_v52, -3e+38  ;;  %v1853_v59 = vmax.f32 %v1775_v53, 0.0  ;;  %v1615_v44 = vadd.f32 %v1614_v36, %v11599_v29  ;;  %v1616_v63 = vpop.f32.mrb[83].mxu0 }
 0x79c   :  { %v11636_v0 = vsel %vm1992_vm0, %v1849_v57, -3e+38  ;;  %v11640_v4 = vsel %vm2231_vm2, %v1849_v57, -3e+38  ;;  %v1850_v5 = vmax.f32 %v1770_v58, 0.0  ;;  %v1617_v6 = vadd.f32 %v1616_v63, %v11604_v46  ;;  %v7858_v7 = vpop.f32.mrb[82].mxu1 }
 0x79d   :  { %v2013_v11 = vsel %vm1993_vm4, %v1853_v59, -3e+38  ;;  %v11650_v12 = vsel %vm2232_vm5, %v1853_v59, -3e+38  ;;  %v1851_v13 = vmax.f32 %v1615_v44, 0.0  ;;  %v1785_v14 = vadd.f32 %v7858_v7, %v11607_v31  ;;  %v1779_v17 = vpop.f32.mrb[83].mxu1 }
 0x79e   :  { %v11656_v19 = vsel %vm1992_vm0, %v1850_v5, -3e+38  ;;  %v11660_v3 = vsel %vm2231_vm2, %v1850_v5, -3e+38  ;;  %v1852_v20 = vmax.f32 %v1617_v6, 0.0  ;;  %v1780_v48 = vadd.f32 %v1779_v17, %v11607_v31  ;;  %v1620_v22 = vpop.f32.mrb[84].mxu0  ;;  %v11696_v6 = vpop.permute.xlu0 %2214 }
 0x79f   :  { %v11665_v23 = vsel %vm1993_vm4, %v1851_v13, -3e+38  ;;  %v11669_v45 = vsel %vm2232_vm5, %v1851_v13, -3e+38  ;;  %v1859_v32 = vmax.f32 %v1785_v14, 0.0  ;;  %v1621_v35 = vadd.f32 %v1620_v22, %v11599_v29  ;;  %v1622_v34 = vpop.f32.mrb[85].mxu0 }
 0x7a0   :  { %v11676_v28 = vsel %vm1993_vm4, %v1852_v20, -3e+38  ;;  %v11680_v61 = vsel %vm2232_vm5, %v1852_v20, -3e+38  ;;  %v1856_v51 = vmax.f32 %v1780_v48, 0.0  ;;  %v1623_v52 = vadd.f32 %v1622_v34, %v11604_v46  ;;  %v7861_v53 = vpop.f32.mrb[84].mxu1 }
 0x7a1   :  { %v2019_v54 = vsel %vm1995_vm1, %v1859_v32, -3e+38  ;;  %v2258_v15 = vsel %vm2234_vm6, %v1859_v32, -3e+38  ;;  %v1854_v57 = vmax.f32 %v1621_v35, 0.0  ;;  %v1795_v36 = vadd.f32 %v7861_v53, %v11607_v31  ;;  %v1789_v21 = vpop.f32.mrb[85].mxu1  ;;  %v11719_v53 = vpop.permute.xlu1 %1984 }
 0x7a2   :  { %v2099_v58 = vmax.f32 %v2013_v11, %v2019_v54  ;;  %v2338_v59 = vmax.f32 %v11650_v12, %v2258_v15  ;;  %v2016_v44 = vsel %vm1994_vm3, %v1856_v51, -3e+38  ;;  %v2255_v63 = vsel %vm2233_vm7, %v1856_v51, -3e+38  ;;  %v1626_v5 = vpop.f32.mrb[86].mxu0 }
 0x7a3   :  { %v2098_v7 = vmax.f32 %v11656_v19, %v2016_v44  ;;  %v2337_v13 = vmax.f32 %v11660_v3, %v2255_v63  ;;  %v11702_v11 = vsel %vm1994_vm3, %v1854_v57, -3e+38  ;;  %v11706_v12 = vsel %vm2233_vm7, %v1854_v57, -3e+38  ;;  %v1628_v14 = vpop.f32.mrb[87].mxu0 }
 0x7a4   :  { %v1855_v19 = vmax.f32 %v1623_v52, 0.0  ;;  %v1865_v48 = vmax.f32 %v1795_v36, 0.0  ;;  %v7864_v3 = vpop.f32.mrb[86].mxu1  ;;  %v1790_v22 = vadd.f32 %v1789_v21, %v11607_v31  ;;  %v1627_v32 = vadd.f32 %v1626_v5, %v11599_v29 }
 0x7a5   :  { %v1629_v35 = vadd.f32 %v1628_v14, %v11604_v46  ;;  %v1805_v34 = vadd.f32 %v7864_v3, %v11607_v31  ;;  %v1799_v51 = vpop.f32.mrb[87].mxu1  ;;  %vm12305_vm0 = vcmp.eq.s32.totalorder %v11591_v25, 1  ;;  %vm12304_vm2 = vcmp.eq.s32.totalorder %v11601_v30, 1 }
 0x7a6   :  { %v11723_v52 = vsel %vm1994_vm3, %v1855_v19, -3e+38  ;;  %v11727_v54 = vsel %vm2233_vm7, %v1855_v19, -3e+38  ;;  %v2025_v15 = vsel %vm1997_vm8, %v1865_v48, -3e+38  ;;  %v1800_v57 = vadd.f32 %v1799_v51, %v11607_v31  ;;  %v11744_v51 = vpop.permute.xlu0 %1981 }
 0x7a7   :  { %v11736_v44 = vmax.f32 %v2099_v58, %v2025_v15  ;;  %v2264_v62 = vsel %vm2236_vm9, %v1865_v48, -3e+38  ;;  %v1632_v63 = vpop.f32.mrb[88].mxu0  ;;  %v1862_v5 = vmax.f32 %v1790_v22, 0.0  ;;  %v1857_v14 = vmax.f32 %v1627_v32, 0.0 }
 0x7a8   :  { %v11740_v39 = vmax.f32 %v2338_v59, %v2264_v62  ;;  %v1858_v19 = vmax.f32 %v1629_v35, 0.0  ;;  %v1634_v3 = vpop.f32.mrb[89].mxu0  ;;  %v7867_v2 = vpop.f32.mrb[88].mxu1  ;;  %v1871_v40 = vmax.f32 %v1805_v34, 0.0  ;;  %v1868_v58 = vmax.f32 %v1800_v57, 0.0 }
 0x7a9   :  { %v1633_v15 = vadd.f32 %v1632_v63, %v11599_v29  ;;  %v1635_v48 = vadd.f32 %v1634_v3, %v11604_v46  ;;  %v1809_v21 = vpop.f32.mrb[89].mxu1  ;;  %v2022_v59 = vsel %vm1996_vm10, %v1862_v5, -3e+38  ;;  %v2261_v22 = vsel %vm2235_vm11, %v1862_v5, -3e+38  ;;  %v11769_v5 = vpop.permute.xlu1 %2223 }
 0x7aa   :  { %v11754_v32 = vsel %vm1995_vm1, %v1857_v14, -3e+38  ;;  %v1815_v35 = vadd.f32 %v7867_v2, %v11607_v31  ;;  %v11757_v62 = vmax.f32 %v2098_v7, %v2022_v59  ;;  %v11759_v34 = vmax.f32 %v2337_v13, %v2261_v22  ;;  %v1638_v3 = vpop.f32.mrb[90].mxu0  ;;  %v11795_v60 = vpop.permute.xlu0 %2220 }
 0x7ab   :  { %v11765_v63 = vsel %vm2234_vm6, %v1857_v14, -3e+38  ;;  %vm2000_vm3 = vcmp.eq.s32.totalorder %v11593_v26, 1  ;;  %vm2239_vm4 = vcmp.eq.s32.totalorder %v11609_v33, 1  ;;  %v11775_v7 = vsel %vm1995_vm1, %v1858_v19, -3e+38 }
 0x7ac   :  { %v11779_v13 = vsel %vm2234_vm6, %v1858_v19, -3e+38  ;;  %v2031_v14 = vsel %vm1999_vm12, %v1871_v40, -3e+38  ;;  %v2270_v1 = vsel %vm2238_vm13, %v1871_v40, -3e+38 }
 0x7ad   :  { %v2103_v57 = vmax.f32 %v11736_v44, %v2031_v14  ;;  %v1640_v2 = vpop.f32.mrb[91].mxu0  ;;  %v7870_v36 = vpop.f32.mrb[90].mxu1  ;;  %v2342_v50 = vmax.f32 %v11740_v39, %v2270_v1  ;;  %v2028_v19 = vsel %vm1998_vm14, %v1868_v58, -3e+38  ;;  %v2267_v20 = vsel %vm2237_vm15, %v1868_v58, -3e+38 }
 0x7ae   :  { %v1860_v17 = vmax.f32 %v1633_v15, 0.0  ;;  %v1819_v59 = vpop.f32.mrb[91].mxu1  ;;  %v2102_v22 = vmax.f32 %v11757_v62, %v2028_v19  ;;  %v2341_v44 = vmax.f32 %v11759_v34, %v2267_v20  ;;  %v1861_v14 = vmax.f32 %v1635_v48, 0.0  ;;  %v1644_v27 = vpop.f32.mrb[92].mxu0 }
 0x7af   :  { %v1877_v40 = vmax.f32 %v1815_v35, 0.0  ;;  %vm12307_vm1 = vcmp.eq.s32.totalorder %v11622_v56, 1  ;;  %v1810_v58 = vadd.f32 %v1809_v21, %v11607_v31  ;;  %v1639_v15 = vadd.f32 %v1638_v3, %v11599_v29  ;;  %v1646_v43 = vpop.f32.mrb[93].mxu0  ;;  %v11837_v19 = vpop.permute.xlu1 %1990 }
 0x7b0   :  { %v2020_v39 = vsel %vm1996_vm10, %v1860_v17, -3e+38  ;;  %v2259_v1 = vsel %vm2235_vm11, %v1860_v17, -3e+38  ;;  %v7873_v42 = vpop.f32.mrb[92].mxu1  ;;  %vm12306_vm5 = vcmp.eq.s32.totalorder %v11672_v47, 1  ;;  %v12339_v20 = vmax.f32 %v11627_v37, %v11702_v11 }
 0x7b1   :  { %v12340_v35 = vmax.f32 %v11631_v38, %v11706_v12  ;;  %v2021_v17 = vsel %vm1996_vm10, %v1861_v14, -3e+38  ;;  %v2260_v21 = vsel %vm2235_vm11, %v1861_v14, -3e+38  ;;  %v1829_v34 = vpop.f32.mrb[93].mxu1  ;;  %vm2002_vm6 = vcmp.eq.s32.totalorder %v11644_v10, 1 }
 0x7b2   :  { %v11810_v48 = vmax.f32 %v12339_v20, %v2020_v39  ;;  %vm2241_vm7 = vcmp.eq.s32.totalorder %v11696_v6, 1  ;;  %v12341_v37 = vmax.f32 %v11636_v0, %v11723_v52  ;;  %v12342_v38 = vmax.f32 %v11640_v4, %v11727_v54  ;;  %v1650_v3 = vpop.f32.mrb[94].mxu0 }
 0x7b3   :  { %v11815_v62 = vmax.f32 %v12340_v35, %v2259_v1  ;;  %v2037_v18 = vsel %vm12305_vm0, %v1877_v40, -3e+38  ;;  %v2276_v55 = vsel %vm12304_vm2, %v1877_v40, -3e+38  ;;  %v1874_v0 = vmax.f32 %v1810_v58, 0.0  ;;  %v11843_v1 = vpop.f32.mrb[95].mxu0 }
 0x7b4   :  { %v11826_v11 = vmax.f32 %v12341_v37, %v2021_v17  ;;  %v11831_v12 = vmax.f32 %v12342_v38, %v2260_v21  ;;  %v11839_v14 = vmax.f32 %v2103_v57, %v2037_v18  ;;  %v11841_v39 = vmax.f32 %v2342_v50, %v2276_v55  ;;  %v7876_v40 = vpop.f32.mrb[94].mxu1  ;;  %v11849_v17 = vpop.permute.xlu0 %1987 }
 0x7b5   :  { %v1863_v52 = vmax.f32 %v1639_v15, 0.0  ;;  %v1641_v4 = vadd.f32 %v1640_v2, %v11604_v46  ;;  %v1825_v54 = vadd.f32 %v7870_v36, %v11607_v31  ;;  %v1820_v20 = vadd.f32 %v1819_v59, %v11607_v31  ;;  %v11867_v37 = vpop.f32.mrb[95].mxu1 }
 0x7b6   :  { %v1645_v35 = vadd.f32 %v1644_v27, %v11599_v29  ;;  %v2034_v57 = vsel %vm2000_vm3, %v1874_v0, -3e+38  ;;  %v2273_v50 = vsel %vm2239_vm4, %v1874_v0, -3e+38  ;;  %v1647_v2 = vadd.f32 %v1646_v43, %v11604_v46  ;;  %v11869_v38 = vpop.f32.mrb[96].mxu0 }
 0x7b7   :  { %v2023_v58 = vsel %vm1997_vm8, %v1863_v52, -3e+38  ;;  %vm2005_vm10 = vcmp.eq.s32.totalorder %v11719_v53, 1  ;;  %vm2244_vm11 = vcmp.eq.s32.totalorder %v11769_v5, 1  ;;  %v2104_v36 = vmax.f32 %v2102_v22, %v2034_v57  ;;  %v1658_v18 = vpop.f32.mrb[97].mxu0 }
 0x7b8   :  { %v2343_v27 = vmax.f32 %v2341_v44, %v2273_v50  ;;  %v12343_v59 = vmax.f32 %v11665_v23, %v11754_v32  ;;  %v2262_v21 = vsel %vm2236_vm9, %v1863_v52, -3e+38  ;;  %vm2004_vm2 = vcmp.eq.s32.totalorder %v11744_v51, 1  ;;  %v11880_v50 = vpop.permute.xlu1 %2229 }
 0x7b9   :  { %vm2243_vm0 = vcmp.eq.s32.totalorder %v11795_v60, 1  ;;  %v12344_v43 = vmax.f32 %v11669_v45, %v11765_v63  ;;  %v1864_v44 = vmax.f32 %v1641_v4, 0.0  ;;  %v1883_v23 = vmax.f32 %v1825_v54, 0.0 }
 0x7ba   :  { %v11863_v15 = vmax.f32 %v12343_v59, %v2023_v58  ;;  %v1880_v32 = vmax.f32 %v1820_v20, 0.0  ;;  %v1866_v55 = vmax.f32 %v1645_v35, 0.0  ;;  %v1867_v0 = vmax.f32 %v1647_v2, 0.0  ;;  %v1662_v35 = vpop.f32.mrb[98].mxu0 }
 0x7bb   :  { %v11876_v22 = vmax.f32 %v12344_v43, %v2262_v21  ;;  %v1835_v52 = vadd.f32 %v7873_v42, %v11607_v31  ;;  %v1830_v57 = vadd.f32 %v1829_v34, %v11607_v31  ;;  %v2024_v58 = vsel %vm1997_vm8, %v1864_v44, -3e+38  ;;  %v1664_v21 = vpop.f32.mrb[99].mxu0 }
 0x7bc   :  { %v2263_v45 = vsel %vm2236_vm9, %v1864_v44, -3e+38  ;;  %v2043_v63 = vsel %vm12307_vm1, %v1883_v23, -3e+38  ;;  %v1651_v4 = vadd.f32 %v1650_v3, %v11599_v29  ;;  %v12345_v54 = vmax.f32 %v11676_v28, %v11775_v7 }
 0x7bd   :  { %v12346_v42 = vmax.f32 %v11680_v61, %v11779_v13  ;;  %v2107_v8 = vmax.f32 %v11839_v14, %v2043_v63  ;;  %v2282_v49 = vsel %vm12306_vm5, %v1883_v23, -3e+38  ;;  %vm2007_vm8 = vcmp.eq.s32.totalorder %v11837_v19, 1  ;;  %v11913_v13 = vpop.permute.xlu0 %2226 }
 0x7be   :  { %v11892_v20 = vmax.f32 %v12345_v54, %v2024_v58  ;;  %v2346_v3 = vmax.f32 %v11841_v39, %v2282_v49  ;;  %v2040_v28 = vsel %vm2002_vm6, %v1880_v32, -3e+38  ;;  %v2279_v7 = vsel %vm2241_vm7, %v1880_v32, -3e+38  ;;  %v1668_v58 = vpop.f32.mrb[100].mxu0 }
 0x7bf   :  { %v11897_v34 = vmax.f32 %v12346_v42, %v2263_v45  ;;  %v11910_v61 = vsel %vm1998_vm14, %v1866_v55, -3e+38  ;;  %vm2246_vm9 = vcmp.eq.s32.totalorder %v11880_v50, 1  ;;  %v2106_v14 = vmax.f32 %v2104_v36, %v2040_v28 }
 0x7c0   :  { %v2345_v2 = vmax.f32 %v2343_v27, %v2279_v7  ;;  %v2060_v59 = vmax.f32 %v11810_v48, %v11910_v61  ;;  %v11919_v39 = vsel %vm2237_vm15, %v1866_v55, -3e+38  ;;  %v11925_v44 = vsel %vm1998_vm14, %v1867_v0, -3e+38 }
 0x7c1   :  { %v2299_v43 = vmax.f32 %v11815_v62, %v11919_v39  ;;  %v11929_v23 = vsel %vm2237_vm15, %v1867_v0, -3e+38  ;;  %v1889_v36 = vmax.f32 %v1835_v52, 0.0  ;;  %v2081_v48 = vmax.f32 %v11826_v11, %v11925_v44  ;;  %v1670_v0 = vpop.f32.mrb[101].mxu0 }
 0x7c2   :  { %v2320_v27 = vmax.f32 %v11831_v12, %v11929_v23  ;;  %v1886_v32 = vmax.f32 %v1830_v57, 0.0  ;;  %v1869_v55 = vmax.f32 %v1651_v4, 0.0  ;;  %vm2006_vm5 = vcmp.eq.s32.totalorder %v11849_v17, 1 }
 0x7c3   :  { %vm2245_vm1 = vcmp.eq.s32.totalorder %v11913_v13, 1  ;;  %v2049_v16 = vsel %vm2005_vm10, %v1889_v36, -3e+38  ;;  %v2288_v24 = vsel %vm2244_vm11, %v1889_v36, -3e+38  ;;  %v1653_v62 = vadd.f32 %v11843_v1, %v11604_v46 }
 0x7c4   :  { %v1845_v11 = vadd.f32 %v7876_v40, %v11607_v31  ;;  %v2109_v12 = vmax.f32 %v2107_v8, %v2049_v16  ;;  %v2348_v52 = vmax.f32 %v2346_v3, %v2288_v24  ;;  %v2046_v57 = vsel %vm2004_vm2, %v1886_v32, -3e+38  ;;  %v1674_v3 = vpop.f32.mrb[102].mxu0 }
 0x7c5   :  { %v2285_v45 = vsel %vm2243_vm0, %v1886_v32, -3e+38  ;;  %v2108_v63 = vmax.f32 %v2106_v14, %v2046_v57  ;;  %v2029_v54 = vsel %vm1999_vm12, %v1869_v55, -3e+38  ;;  %v2268_v42 = vsel %vm2238_vm13, %v1869_v55, -3e+38 }
 0x7c6   :  { %v2347_v4 = vmax.f32 %v2345_v2, %v2285_v45  ;;  %v2061_v1 = vmax.f32 %v11863_v15, %v2029_v54  ;;  %v2300_v40 = vmax.f32 %v11876_v22, %v2268_v42  ;;  %v1870_v8 = vmax.f32 %v1653_v62, 0.0  ;;  %v1676_v2 = vpop.f32.mrb[103].mxu0 }
 0x7c7   :  { %v1895_v49 = vmax.f32 %v1845_v11, 0.0  ;;  %v1840_v28 = vadd.f32 %v11867_v37, %v11607_v31  ;;  %v1657_v7 = vadd.f32 %v11869_v38, %v11599_v29  ;;  %v1659_v61 = vadd.f32 %v1658_v18, %v11604_v46  ;;  %v1680_v32 = vpop.f32.mrb[104].mxu0 }
 0x7c8   :  { %v1663_v14 = vadd.f32 %v1662_v35, %v11599_v29  ;;  %v2030_v39 = vsel %vm1999_vm12, %v1870_v8, -3e+38  ;;  %v2269_v15 = vsel %vm2238_vm13, %v1870_v8, -3e+38  ;;  %v1665_v44 = vadd.f32 %v1664_v21, %v11604_v46  ;;  %v1682_v21 = vpop.f32.mrb[105].mxu0 }
 0x7c9   :  { %v2055_v22 = vsel %vm2007_vm8, %v1895_v49, -3e+38  ;;  %v2082_v31 = vmax.f32 %v11892_v20, %v2030_v39  ;;  %v2321_v37 = vmax.f32 %v11897_v34, %v2269_v15  ;;  %v2294_v18 = vsel %vm2246_vm9, %v1895_v49, -3e+38 }
 0x7ca   :  { %v2111_v38 = vmax.f32 %v2109_v12, %v2055_v22  ;;  %v2350_v35 = vmax.f32 %v2348_v52, %v2294_v18  ;;  %v1892_v23 = vmax.f32 %v1840_v28, 0.0  ;;  %v1872_v9 = vmax.f32 %v1657_v7, 0.0 }
 0x7cb   :  { %v1873_v36 = vmax.f32 %v1659_v61, 0.0  ;;  %v1875_v41 = vmax.f32 %v1663_v14, 0.0  ;;  %v1876_v55 = vmax.f32 %v1665_v44, 0.0  ;;  %v1669_v16 = vadd.f32 %v1668_v58, %v11599_v29 }
 0x7cc   :  { %v1671_v24 = vadd.f32 %v1670_v0, %v11604_v46  ;;  %v2052_v20 = vsel %vm2006_vm5, %v1892_v23, -3e+38  ;;  %v2291_v34 = vsel %vm2245_vm1, %v1892_v23, -3e+38  ;;  %v2032_v62 = vsel %vm2000_vm3, %v1872_v9, -3e+38 }
 0x7cd   :  { %v1675_v11 = vadd.f32 %v1674_v3, %v11599_v29  ;;  %v2110_v12 = vmax.f32 %v2108_v63, %v2052_v20  ;;  %v2349_v52 = vmax.f32 %v2347_v4, %v2291_v34  ;;  %v2062_v57 = vmax.f32 %v2060_v59, %v2032_v62  ;;  %v1686_v59 = vpop.f32.mrb[106].mxu0 }
 0x7ce   :  { %v2271_v58 = vsel %vm2239_vm4, %v1872_v9, -3e+38  ;;  %v2033_v0 = vsel %vm2000_vm3, %v1873_v36, -3e+38  ;;  %v2272_v54 = vsel %vm2239_vm4, %v1873_v36, -3e+38 }
 0x7cf   :  { %v2301_v45 = vmax.f32 %v2299_v43, %v2271_v58  ;;  %vm12347_vm12 = vcmp.eq.s32.totalorder %v11591_v25, 1  ;;  %v11988_v8 = vmax.f32 %v2110_v12, %v2111_v38  ;;  %v11990_v49 = vmax.f32 %v2349_v52, %v2350_v35  ;;  %v1688_v61 = vpop.f32.mrb[107].mxu0 }
 0x7d0   :  { %v2035_v42 = vsel %vm12347_vm12, %v1875_v41, -3e+38  ;;  %v2083_v63 = vmax.f32 %v2081_v48, %v2033_v0  ;;  %v2322_v4 = vmax.f32 %v2320_v27, %v2272_v54  ;;  %vm12348_vm13 = vcmp.eq.s32.totalorder %v11601_v30, 1  ;;  %vm12349_vm14 = vmmov %vm12347_vm12  ;;  %v1692_v48 = vpop.f32.mrb[108].mxu0 }
 0x7d1   :  { %v2063_v3 = vmax.f32 %v2061_v1, %v2035_v42  ;;  %v2274_v43 = vsel %vm12348_vm13, %v1875_v41, -3e+38  ;;  %v2036_v26 = vsel %vm12349_vm14, %v1876_v55, -3e+38  ;;  %vm12350_vm15 = vmmov %vm12348_vm13  ;;  %v1878_v39 = vmax.f32 %v1669_v16, 0.0  ;;  %v1694_v44 = vpop.f32.mrb[109].mxu0 }
 0x7d2   :  { %v2275_v33 = vsel %vm12350_vm15, %v1876_v55, -3e+38  ;;  %v2302_v28 = vmax.f32 %v2300_v40, %v2274_v43  ;;  %v2084_v7 = vmax.f32 %v2082_v31, %v2036_v26  ;;  %v1879_v15 = vmax.f32 %v1671_v24, 0.0 }
 0x7d3   :  { %v2323_v14 = vmax.f32 %v2321_v37, %v2275_v33  ;;  %v1881_v22 = vmax.f32 %v1675_v11, 0.0  ;;  %v1677_v27 = vadd.f32 %v1676_v2, %v11604_v46  ;;  %v1681_v1 = vadd.f32 %v1680_v32, %v11599_v29  ;;  %v1698_v32 = vpop.f32.mrb[110].mxu0 }
 0x7d4   :  { %v2038_v25 = vsel %vm2002_vm6, %v1878_v39, -3e+38  ;;  %v2277_v30 = vsel %vm2241_vm7, %v1878_v39, -3e+38  ;;  %v2039_v40 = vsel %vm2002_vm6, %v1879_v15, -3e+38  ;;  %v1683_v31 = vadd.f32 %v1682_v21, %v11604_v46 }
 0x7d5   :  { %v2064_v37 = vmax.f32 %v2062_v57, %v2038_v25  ;;  %v2303_v38 = vmax.f32 %v2301_v45, %v2277_v30  ;;  %v2085_v18 = vmax.f32 %v2083_v63, %v2039_v40  ;;  %v2278_v2 = vsel %vm2241_vm7, %v1879_v15, -3e+38  ;;  %v1700_v24 = vpop.f32.mrb[111].mxu0 }
 0x7d6   :  { %vm12351_vm3 = vcmp.eq.s32.totalorder %v11622_v56, 1  ;;  %vm12352_vm4 = vcmp.eq.s32.totalorder %v11672_v47, 1  ;;  %v2324_v9 = vmax.f32 %v2322_v4, %v2278_v2  ;;  %v1882_v10 = vmax.f32 %v1677_v27, 0.0 }
 0x7d7   :  { %v2041_v35 = vsel %vm12351_vm3, %v1881_v22, -3e+38  ;;  %v2280_v23 = vsel %vm12352_vm4, %v1881_v22, -3e+38  ;;  %v1884_v55 = vmax.f32 %v1681_v1, 0.0  ;;  %v1885_v16 = vmax.f32 %v1683_v31, 0.0  ;;  %vm12353_vm6 = vmmov %vm12351_vm3 }
 0x7d8   :  { %v2065_v36 = vmax.f32 %v2063_v3, %v2041_v35  ;;  %v2304_v41 = vmax.f32 %v2302_v28, %v2280_v23  ;;  %v1687_v21 = vadd.f32 %v1686_v59, %v11599_v29  ;;  %v1689_v20 = vadd.f32 %v1688_v61, %v11604_v46  ;;  %vm12354_vm7 = vmmov %vm12352_vm4 }
 0x7d9   :  { %v2042_v6 = vsel %vm12353_vm6, %v1882_v10, -3e+38  ;;  %v2281_v34 = vsel %vm12354_vm7, %v1882_v10, -3e+38  ;;  %v2044_v62 = vsel %vm2004_vm2, %v1884_v55, -3e+38  ;;  %v1693_v11 = vadd.f32 %v1692_v48, %v11599_v29 }
 0x7da   :  { %v2086_v12 = vmax.f32 %v2084_v7, %v2042_v6  ;;  %v2325_v52 = vmax.f32 %v2323_v14, %v2281_v34  ;;  %v2066_v57 = vmax.f32 %v2064_v37, %v2044_v62  ;;  %v2283_v58 = vsel %vm2243_vm0, %v1884_v55, -3e+38 }
 0x7db   :  { %v2045_v45 = vsel %vm2004_vm2, %v1885_v16, -3e+38  ;;  %v2284_v56 = vsel %vm2243_vm0, %v1885_v16, -3e+38  ;;  %v2113_v47 = vrot.slane %v11988_v8, 4  ;;  %v2305_v0 = vmax.f32 %v2303_v38, %v2283_v58 }
 0x7dc   :  { %v2087_v54 = vmax.f32 %v2085_v18, %v2045_v45  ;;  %v2326_v42 = vmax.f32 %v2324_v9, %v2284_v56  ;;  %v1887_v63 = vmax.f32 %v1687_v21, 0.0  ;;  %v1888_v4 = vmax.f32 %v1689_v20, 0.0 }
 0x7dd   :  { %v1890_v59 = vmax.f32 %v1693_v11, 0.0  ;;  %v2352_v3 = vrot.slane %v11990_v49, 4  ;;  %v1695_v43 = vadd.f32 %v1694_v44, %v11604_v46  ;;  %v1699_v26 = vadd.f32 %v1698_v32, %v11599_v29 }
 0x7de   :  { %v1701_v51 = vadd.f32 %v1700_v24, %v11604_v46  ;;  %v2047_v60 = vsel %vm2005_vm10, %v1887_v63, -3e+38  ;;  %v2286_v33 = vsel %vm2244_vm11, %v1887_v63, -3e+38  ;;  %v2048_v28 = vsel %vm2005_vm10, %v1888_v4, -3e+38 }
 0x7df   :  { %v2067_v7 = vmax.f32 %v2065_v36, %v2047_v60  ;;  %v2306_v61 = vmax.f32 %v2304_v41, %v2286_v33  ;;  %v2088_v14 = vmax.f32 %v2086_v12, %v2048_v28  ;;  %v2287_v39 = vsel %vm2244_vm11, %v1888_v4, -3e+38 }
 0x7e0   :  { %v2327_v15 = vmax.f32 %v2325_v52, %v2287_v39  ;;  %v2050_v29 = vsel %vm2006_vm5, %v1890_v59, -3e+38  ;;  %v2289_v46 = vsel %vm2245_vm1, %v1890_v59, -3e+38  ;;  %v1891_v22 = vmax.f32 %v1695_v43, 0.0 }
 0x7e1   :  { %v2068_v48 = vmax.f32 %v2066_v57, %v2050_v29  ;;  %v2307_v27 = vmax.f32 %v2305_v0, %v2289_v46  ;;  %v1893_v1 = vmax.f32 %v1699_v26, 0.0  ;;  %v1894_v44 = vmax.f32 %v1701_v51, 0.0  ;;  %v12355_v26 = vld [vmem:[#allocation50_spill] sm:$0xff] }
 0x7e2   :  { %v2114_v53 = vmax.f32 %v11988_v8, %v2113_v47  ;;  %v2353_v25 = vmax.f32 %v11990_v49, %v2352_v3  ;;  %v2051_v5 = vsel %vm2006_vm5, %v1891_v22, -3e+38  ;;  %v2290_v30 = vsel %vm2245_vm1, %v1891_v22, -3e+38 }
 0x7e3   :  { %v2089_v40 = vmax.f32 %v2087_v54, %v2051_v5  ;;  %v2328_v31 = vmax.f32 %v2326_v42, %v2290_v30  ;;  %v2053_v37 = vsel %vm2007_vm8, %v1893_v1, -3e+38  ;;  %v2292_v38 = vsel %vm2246_vm9, %v1893_v1, -3e+38 }
 0x7e4   :  { %v2069_v18 = vmax.f32 %v2067_v7, %v2053_v37  ;;  %v2308_v2 = vmax.f32 %v2306_v61, %v2292_v38  ;;  %v2054_v8 = vsel %vm2007_vm8, %v1894_v44, -3e+38  ;;  %v2293_v17 = vsel %vm2246_vm9, %v1894_v44, -3e+38  ;;  %v2644_v37 = vld [vmem:[#allocation14 + $0x800] sm:$0xff] }
 0x7e5   :  { %v2090_v49 = vmax.f32 %v2088_v14, %v2054_v8  ;;  %v2329_v35 = vmax.f32 %v2327_v15, %v2293_v17  ;;  %v2115_v9 = vrot.slane %v2114_v53, 2  ;;  %v2354_v36 = vrot.slane %v2353_v25, 2  ;;  %v2652_v38 = vld [vmem:[#allocation14 + $0x840] sm:$0xff]  ;;  %v2654_v8 = vld [vmem:[#allocation14 + $0x850] sm:$0xff]  ;;  %v2661_v17 = vld [vmem:[#allocation14 + $0x888] sm:$0xff] }
 0x7e6   :  { %v2070_v13 = vmax.f32 %v2068_v48, %v2069_v18  ;;  %v2309_v23 = vmax.f32 %v2307_v27, %v2308_v2  ;;  %v10713_v21 = vmov 1966171168   ;;  %v10714_v44 = vmov 1983009808   ;;  %v2646_v18 = vld [vmem:[#allocation14 + $0x810] sm:$0xff] }
 0x7e7   :  { %v2091_v32 = vmax.f32 %v2089_v40, %v2090_v49  ;;  %v2330_v41 = vmax.f32 %v2328_v31, %v2329_v35  ;;  %v2124_v20 = vunpack.c.l.s4 %v10713_v21  ;;  %v2116_v34 = vmax.f32 %v2114_v53, %v2115_v9  ;;  %v2669_v35 = vld [vmem:[#allocation14 + $0x8c8] sm:$0xff]  ;;  %v2670_v21 = vld [vmem:[#allocation14 + $0x8d0] sm:$0xff] }
 0x7e8   :  { %v2071_v10 = vrot.slane %v2070_v13, 4  ;;  %v2310_v55 = vrot.slane %v2309_v23, 4  ;;  %v2355_v62 = vmax.f32 %v2353_v25, %v2354_v36  ;;  %v2817_v53 = vunpack.c.l.s4 %v10714_v44  ;;  %v2725_v44 = vld [vmem:[#allocation14 + $0xa88] sm:$0xff] }
 0x7e9   :  { %v2092_v16 = vrot.slane %v2091_v32, 4  ;;  %v2331_v24 = vrot.slane %v2330_v41, 4  ;;  %v2125_v45 = vunpack.c.0.s8 %v2124_v20  ;;  %v2117_v0 = vrot.slane %v2116_v34, 1  ;;  %v2677_v20 = vld [vmem:[#allocation14 + $0x908] sm:$0xff] }
 0x7ea   :  { %v2072_v6 = vmax.f32 %v2070_v13, %v2071_v10  ;;  %v2311_v19 = vmax.f32 %v2309_v23, %v2310_v55  ;;  %v2356_v54 = vrot.slane %v2355_v62, 1  ;;  %v12356_v25 = vlaneseq  ;;  %v2663_v13 = vld [vmem:[#allocation14 + $0x898] sm:$0xff]  ;;  %v2668_v10 = vld [vmem:[#allocation14 + $0x8c0] sm:$0xff] }
 0x7eb   :  { %v2093_v50 = vmax.f32 %v2091_v32, %v2092_v16  ;;  %v2332_v11 = vmax.f32 %v2330_v41, %v2331_v24  ;;  %v2128_v51 = vsub.s32 %v2125_v45, %v12355_v26  ;;  %v2118_v28 = vmax.f32 %v2116_v34, %v2117_v0  ;;  %v2671_v23 = vld [vmem:[#allocation14 + $0x8d8] sm:$0xff]  ;;  %v2660_v41 = vld [vmem:[#allocation14 + $0x880] sm:$0xff]  ;;  %v2662_v24 = vld [vmem:[#allocation14 + $0x890] sm:$0xff] }
 0x7ec   :  { %v2073_v12 = vrot.slane %v2072_v6, 2  ;;  %v2312_v52 = vrot.slane %v2311_v19, 2  ;;  %v2357_v7 = vmax.f32 %v2355_v62, %v2356_v54  ;;  %vm2148_vm0 = vcmp.lt.s32.totalorder %v12356_v25, 384  ;;  %v2687_v34 = vld [vmem:[#allocation14 + $0x958] sm:$0xff]  ;;  %v2686_v45 = vld [vmem:[#allocation14 + $0x950] sm:$0xff] }
 0x7ed   :  { %v2094_v57 = vrot.slane %v2093_v50, 2  ;;  %v2333_v58 = vrot.slane %v2332_v11, 2  ;;  %v2136_v29 = vrot.slane %v2118_v28, %v2128_v51  ;;  %v2818_v40 = vunpack.c.0.s8 %v2817_v53  ;;  %v2695_v0 = vld [vmem:[#allocation14 + $0x998] sm:$0xff]  ;;  %v2709_v28 = vld [vmem:[#allocation14 + $0xa08] sm:$0xff] }
 0x7ee   :  { %v2074_v56 = vmax.f32 %v2072_v6, %v2073_v12  ;;  %v2313_v47 = vmax.f32 %v2311_v19, %v2312_v52  ;;  %v2375_v46 = vrot.slane %v2357_v7, %v2128_v51  ;;  %v8231_v36 = vpack.c.bf16 %v2652_v38, %v2644_v37  ;;  %v2685_v6 = vld [vmem:[#allocation14 + $0x948] sm:$0xff]  ;;  %v2679_v19 = vld [vmem:[#allocation14 + $0x918] sm:$0xff]  ;;  %v2684_v12 = vld [vmem:[#allocation14 + $0x940] sm:$0xff] }
 0x7ef   :  { %v2095_v42 = vmax.f32 %v2093_v50, %v2094_v57  ;;  %v2334_v63 = vmax.f32 %v2332_v11, %v2333_v58  ;;  %v12062_v31 = vsub.s32 %v2818_v40, %v12355_v26  ;;  %v8327_v32 = vpack.c.bf16 %v2654_v8, %v2646_v18  ;;  %v2676_v11 = vld [vmem:[#allocation14 + $0x900] sm:$0xff]  ;;  %v2678_v58 = vld [vmem:[#allocation14 + $0x910] sm:$0xff]  ;;  %v2703_v54 = vld [vmem:[#allocation14 + $0x9d8] sm:$0xff] }
 0x7f0   :  { %v2075_v4 = vrot.slane %v2074_v56, 1  ;;  %v2314_v59 = vrot.slane %v2313_v47, 1  ;;  %v8233_v55 = vpack.c.bf16 %v2669_v35, %v2661_v17  ;;  %v8329_v16 = vpack.c.bf16 %v2671_v23, %v2663_v13  ;;  %v2717_v7 = vld [vmem:[#allocation14 + $0xa48] sm:$0xff]  ;;  %v2727_v25 = vld [vmem:[#allocation14 + $0xa98] sm:$0xff]  ;;  %v2724_v37 = vld [vmem:[#allocation14 + $0xa80] sm:$0xff] }
 0x7f1   :  { %v2096_v3 = vrot.slane %v2095_v42, 1  ;;  %v2335_v43 = vrot.slane %v2334_v63, 1  ;;  %v8235_v62 = vpack.c.bf16 %v2668_v10, %v2660_v41  ;;  %v8331_v50 = vpack.c.bf16 %v2670_v21, %v2662_v24  ;;  %v2733_v53 = vld [vmem:[#allocation14 + $0xac8] sm:$0xff]  ;;  %v2732_v38 = vld [vmem:[#allocation14 + $0xac0] sm:$0xff]  ;;  %v2726_v17 = vld [vmem:[#allocation14 + $0xa90] sm:$0xff] }
 0x7f2   :  { %v2076_v60 = vmax.f32 %v2074_v56, %v2075_v4  ;;  %v2315_v33 = vmax.f32 %v2313_v47, %v2314_v59  ;;  %v8237_v52 = vpack.c.bf16 %v2685_v6, %v2677_v20  ;;  %v8333_v57 = vpack.c.bf16 %v2687_v34, %v2679_v19  ;;  %v2693_v56 = vld [vmem:[#allocation14 + $0x988] sm:$0xff]  ;;  %v2692_v59 = vld [vmem:[#allocation14 + $0x980] sm:$0xff]  ;;  %v2734_v35 = vld [vmem:[#allocation14 + $0xad0] sm:$0xff] }
 0x7f3   :  { %v2097_v61 = vmax.f32 %v2095_v42, %v2096_v3  ;;  %v2336_v14 = vmax.f32 %v2334_v63, %v2335_v43  ;;  %v2701_v47 = vld [vmem:[#allocation14 + $0x9c8] sm:$0xff]  ;;  %v12357_v42 = vmov 0.0   ;;  %v8239_v63 = vpack.c.bf16 %v2684_v12, %v2676_v11  ;;  %v2700_v3 = vld [vmem:[#allocation14 + $0x9c0] sm:$0xff]  ;;  %v2742_v20 = vld [vmem:[#allocation14 + $0xb10] sm:$0xff] }
 0x7f4   :  { %v8335_v4 = vpack.c.bf16 %v2686_v45, %v2678_v58  ;;  %v8241_v43 = vpack.c.bf16 %v2701_v47, %v2693_v56  ;;  %v8249_v18 = vpack.c.bf16 %v2733_v53, %v2725_v44  ;;  %v2741_v13 = vld [vmem:[#allocation14 + $0xb08] sm:$0xff]  ;;  %v8251_v41 = vpack.c.bf16 %v2732_v38, %v2724_v37  ;;  %v2750_v6 = vld [vmem:[#allocation14 + $0xb50] sm:$0xff]  ;;  %v2435_v37 = vld [vmem:[#allocation14 + $0x178] sm:$0xff] }
 0x7f5   :  { %v2122_v39 = vcombine.low %v2076_v60, %v2097_v61  ;;  %v2361_v15 = vcombine.low %v2315_v33, %v2336_v14  ;;  %v2694_v60 = vld [vmem:[#allocation14 + $0x990] sm:$0xff]  ;;  %v2711_v61 = vld [vmem:[#allocation14 + $0xa18] sm:$0xff]  ;;  %v2749_v23 = vld [vmem:[#allocation14 + $0xb48] sm:$0xff]  ;;  %v8347_v10 = vpack.c.bf16 %v2734_v35, %v2726_v17  ;;  %v8351_v12 = vpack.c.bf16 %v2750_v6, %v2742_v20 }
 0x7f6   :  { %v2702_v33 = vld [vmem:[#allocation14 + $0x9d0] sm:$0xff]  ;;  %v2719_v14 = vld [vmem:[#allocation14 + $0xa58] sm:$0xff]  ;;  %v8253_v24 = vpack.c.bf16 %v2749_v23, %v2741_v13  ;;  %v2757_v19 = vld [vmem:[#allocation14 + $0xb88] sm:$0xff]  ;;  %vm7318_vm2 = vcmask 1041408   ;;  %vm7336_vm1 = vcmask 1024  }
 0x7f7   :  { %v2129_v22 = vrot.slane %v2122_v39, %v2128_v51  ;;  %v2368_v48 = vrot.slane %v2361_v15, %v2128_v51  ;;  %v8243_v39 = vpack.c.bf16 %v2700_v3, %v2692_v59  ;;  %v8339_v15 = vpack.c.bf16 %v2702_v33, %v2694_v60  ;;  %v2765_v34 = vld [vmem:[#allocation14 + $0xbc8] sm:$0xff]  ;;  %v2758_v56 = vld [vmem:[#allocation14 + $0xb90] sm:$0xff]  ;;  %v2392_v33 = vld [vmem:[#allocation14 + $0x20] sm:$0xff] }
 0x7f8   :  { %v8257_v58 = vpack.c.bf16 %v2765_v34, %v2757_v19  ;;  %v2766_v47 = vld [vmem:[#allocation14 + $0xbd0] sm:$0xff]  ;;  %v2424_v17 = vld [vmem:[#allocation14 + $0x120] sm:$0xff] }
 0x7f9   :  { %v2137_v27 = vcombine.low %v2129_v22, %v2136_v29  ;;  %v2376_v1 = vcombine.low %v2368_v48, %v2375_v46  ;;  %v2708_v29 = vld [vmem:[#allocation14 + $0xa00] sm:$0xff]  ;;  %v8245_v22 = vpack.c.bf16 %v2717_v7, %v2709_v28  ;;  %v8341_v48 = vpack.c.bf16 %v2719_v14, %v2711_v61  ;;  %v2394_v7 = vld [vmem:[#allocation14 + $0x30] sm:$0xff]  ;;  %v2409_v14 = vld [vmem:[#allocation14 + $0xa8] sm:$0xff] }
 0x7fa   :  { %v2716_v46 = vld [vmem:[#allocation14 + $0xa40] sm:$0xff]  ;;  %v8355_v3 = vpack.c.bf16 %v2766_v47, %v2758_v56  ;;  %v2402_v61 = vld [vmem:[#allocation14 + $0x70] sm:$0xff] }
 0x7fb   :  { %v2144_v5 = vrot.slane %v2137_v27, %v2128_v51  ;;  %v2383_v30 = vrot.slane %v2376_v1, %v2128_v51  ;;  %v8337_v51 = vpack.c.bf16 %v2703_v54, %v2695_v0  ;;  %v2710_v27 = vld [vmem:[#allocation14 + $0xa10] sm:$0xff]  ;;  %v2393_v0 = vld [vmem:[#allocation14 + $0x28] sm:$0xff]  ;;  %v2400_v28 = vld [vmem:[#allocation14 + $0x60] sm:$0xff] }
 0x7fc   :  { %v2718_v1 = vld [vmem:[#allocation14 + $0xa50] sm:$0xff]  ;;  %v2401_v54 = vld [vmem:[#allocation14 + $0x68] sm:$0xff]  ;;  %v2432_v35 = vld [vmem:[#allocation14 + $0x160] sm:$0xff] }
 0x7fd   :  { %2150 = vst.msk [vmem:[#allocation2] ss:$2 sm:$0x7] %vm2148_vm0, %v2144_v5  ;;  %2386 = vst.msk [vmem:[#allocation2 + $0x1] ss:$2 sm:$0x7] %vm2148_vm0, %v2383_v30  ;;  %v8247_v30 = vpack.c.bf16 %v2716_v46, %v2708_v29  ;;  %v8343_v40 = vpack.c.bf16 %v2718_v1, %v2710_v27  ;;  %v8359_v46 = vpack.c.bf16 %v2400_v28, %v2392_v33 }
 0x7fe   :  { %v2735_v5 = vld [vmem:[#allocation14 + $0xad8] sm:$0xff]  ;;  %v2416_v27 = vld [vmem:[#allocation14 + $0xe0] sm:$0xff]  ;;  %v2410_v1 = vld [vmem:[#allocation14 + $0xb0] sm:$0xff] }
 0x7ff   :  { %v8345_v8 = vpack.c.bf16 %v2735_v5, %v2727_v25  ;;  %v2419_v29 = vld [vmem:[#allocation14 + $0xf8] sm:$0xff]  ;;  %v2418_v25 = vld [vmem:[#allocation14 + $0xf0] sm:$0xff]  ;;  %v2425_v5 = vld [vmem:[#allocation14 + $0x128] sm:$0xff] }
 0x800   :  { %v2426_v13 = vld [vmem:[#allocation14 + $0x130] sm:$0xff]  ;;  %v2448_v20 = vld [vmem:[#allocation14 + $0x1e0] sm:$0xff] }
 0x801   :  { %v2442_v6 = vld [vmem:[#allocation14 + $0x1b0] sm:$0xff]  ;;  %v2464_v56 = vld [vmem:[#allocation14 + $0x260] sm:$0xff] }
 0x802   :  { %v2450_v34 = vld [vmem:[#allocation14 + $0x1f0] sm:$0xff]  ;;  %v2472_v33 = vld [vmem:[#allocation14 + $0x2a0] sm:$0xff] }
 0x803   :  { %v2458_v47 = vld [vmem:[#allocation14 + $0x230] sm:$0xff]  ;;  %v2480_v28 = vld [vmem:[#allocation14 + $0x2e0] sm:$0xff] }
 0x804   :  { %v12064_v2 = vld [vmem:[#allocation2] sm:$0x3f] }
 0x805   :  { %v12068_v49 = vrot.slane %v12064_v2, %v12062_v31 }
 0x807   :  { %v12072_v9 = vcombine.high %v12068_v49, %v12068_v49 }
 0x809   :  { %2898 = vmatprep.mubr.f32.mxu0 %v12072_v9  ;;  %3040 = vmatprep.mubr.f32.mxu1 %v12072_v9 }
 0x80a   :  { %2899 = vmatmul.mubr.f32.vlgmr.msra.gmra.mrb[112].mxu0 %v12068_v49  ;;  %3041 = vmatmul.mubr.f32.vlgmr.msra.gmra.mrb[96].mxu1 %v12068_v49 }
 0x80b   :  { %8232 = vmatpush1.bf16.msra.mxu0 %v8231_v36  ;;  %8328 = vmatpush1.bf16.msra.mxu1 %v8327_v32  ;;  %v2743_v36 = vld [vmem:[#allocation14 + $0xb18] sm:$0xff] }
 0x80c   :  { %8234 = vmatprep.subr.bf16.mxu0 %v8233_v55  ;;  %8330 = vmatprep.subr.bf16.mxu1 %v8329_v16  ;;  %v2751_v32 = vld [vmem:[#allocation14 + $0xb58] sm:$0xff]  ;;  %v2740_v55 = vld [vmem:[#allocation14 + $0xb00] sm:$0xff] }
 0x80d   :  { %2969 = vmatprep.mubr.f32.mxu0 %v12357_v42  ;;  %3111 = vmatprep.mubr.f32.mxu1 %v12357_v42  ;;  %v2748_v16 = vld [vmem:[#allocation14 + $0xb40] sm:$0xff]  ;;  %v8349_v21 = vpack.c.bf16 %v2751_v32, %v2743_v36  ;;  %v2434_v36 = vld [vmem:[#allocation14 + $0x170] sm:$0xff]  ;;  %v2441_v32 = vld [vmem:[#allocation14 + $0x1a8] sm:$0xff] }
 0x80e   :  { %v8255_v11 = vpack.c.bf16 %v2748_v16, %v2740_v55  ;;  %v2451_v55 = vld [vmem:[#allocation14 + $0x1f8] sm:$0xff]  ;;  %v8367_v16 = vpack.c.bf16 %v2432_v35, %v2424_v17  ;;  %v2504_v35 = vld [vmem:[#allocation14 + $0x3a0] sm:$0xff] }
 0x80f   :  { %8236 = vmatpush1.bf16.msra.mxu0 %v8235_v62  ;;  %8332 = vmatpush1.bf16.msra.mxu1 %v8331_v50  ;;  %v2759_v62 = vld [vmem:[#allocation14 + $0xb98] sm:$0xff] }
 0x810   :  { %8238 = vmatprep.subr.bf16.mxu0 %v8237_v52  ;;  %8334 = vmatprep.subr.bf16.mxu1 %v8333_v57  ;;  %v2767_v50 = vld [vmem:[#allocation14 + $0xbd8] sm:$0xff]  ;;  %v2756_v52 = vld [vmem:[#allocation14 + $0xb80] sm:$0xff] }
 0x811   :  { %v2764_v57 = vld [vmem:[#allocation14 + $0xbc0] sm:$0xff]  ;;  %v8353_v45 = vpack.c.bf16 %v2767_v50, %v2759_v62  ;;  %v2457_v62 = vld [vmem:[#allocation14 + $0x228] sm:$0xff] }
 0x812   :  { %v8259_v59 = vpack.c.bf16 %v2764_v57, %v2756_v52  ;;  %v2465_v50 = vld [vmem:[#allocation14 + $0x268] sm:$0xff]  ;;  %v8467_v57 = vpack.c.bf16 %v2450_v34, %v2442_v6  ;;  %v2528_v6 = vld [vmem:[#allocation14 + $0x460] sm:$0xff] }
 0x813   :  { %8240 = vmatpush1.bf16.msra.mxu0 %v8239_v63  ;;  %8336 = vmatpush1.bf16.msra.mxu1 %v8335_v4  ;;  %v2395_v63 = vld [vmem:[#allocation14 + $0x38] sm:$0xff] }
 0x814   :  { %8242 = vmatprep.subr.bf16.mxu0 %v8241_v43  ;;  %8338 = vmatprep.subr.bf16.mxu1 %v8337_v51  ;;  %v2403_v4 = vld [vmem:[#allocation14 + $0x78] sm:$0xff]  ;;  %v2815_v43 = vcombine.high %v12064_v2, %v12064_v2  ;;  %v8357_v51 = vpack.c.bf16 %v2401_v54, %v2393_v0  ;;  %v2408_v2 = vld [vmem:[#allocation14 + $0xa0] sm:$0xff]  ;;  %v2466_v54 = vld [vmem:[#allocation14 + $0x270] sm:$0xff] }
 0x815   :  { %v8453_v60 = vpack.c.bf16 %v2403_v4, %v2395_v63  ;;  %v8363_v38 = vpack.c.bf16 %v2416_v27, %v2408_v2  ;;  %v2473_v63 = vld [vmem:[#allocation14 + $0x2a8] sm:$0xff] }
 0x816   :  { %v2481_v4 = vld [vmem:[#allocation14 + $0x2e8] sm:$0xff] }
 0x817   :  { %8244 = vmatpush1.bf16.msra.mxu0 %v8243_v39  ;;  %8340 = vmatpush1.bf16.msra.mxu1 %v8339_v15  ;;  %v2417_v39 = vld [vmem:[#allocation14 + $0xe8] sm:$0xff]  ;;  %v2411_v15 = vld [vmem:[#allocation14 + $0xb8] sm:$0xff] }
 0x818   :  { %8246 = vmatprep.subr.bf16.mxu0 %v8245_v22  ;;  %8342 = vmatprep.subr.bf16.mxu1 %v8341_v48  ;;  %v12083_v22 = vrot.slane %v2815_v43, %v12062_v31  ;;  %v8455_v48 = vpack.c.bf16 %v2402_v61, %v2394_v7  ;;  %v8361_v44 = vpack.c.bf16 %v2417_v39, %v2409_v14  ;;  %v2474_v7 = vld [vmem:[#allocation14 + $0x2b0] sm:$0xff]  ;;  %v2489_v39 = vld [vmem:[#allocation14 + $0x328] sm:$0xff] }
 0x819   :  { %v8457_v53 = vpack.c.bf16 %v2419_v29, %v2411_v15  ;;  %v2482_v14 = vld [vmem:[#allocation14 + $0x2f0] sm:$0xff]  ;;  %v2497_v15 = vld [vmem:[#allocation14 + $0x368] sm:$0xff]  ;;  %v2491_v29 = vld [vmem:[#allocation14 + $0x338] sm:$0xff] }
 0x81a   :  { %v8475_v2 = vpack.c.bf16 %v2482_v14, %v2474_v7  ;;  %v8381_v27 = vpack.c.bf16 %v2497_v15, %v2489_v39  ;;  %v2560_v7 = vld [vmem:[#allocation14 + $0x560] sm:$0xff]  ;;  %v2562_v39 = vld [vmem:[#allocation14 + $0x570] sm:$0xff]  ;;  %v2569_v15 = vld [vmem:[#allocation14 + $0x5a8] sm:$0xff] }
 0x81b   :  { %8248 = vmatpush1.bf16.msra.mxu0 %v8247_v30  ;;  %8344 = vmatpush1.bf16.msra.mxu1 %v8343_v40  ;;  %v2433_v30 = vld [vmem:[#allocation14 + $0x168] sm:$0xff]  ;;  %v2427_v40 = vld [vmem:[#allocation14 + $0x138] sm:$0xff] }
 0x81c   :  { %8250 = vmatprep.subr.bf16.mxu0 %v8249_v18  ;;  %8346 = vmatprep.subr.bf16.mxu1 %v8345_v8  ;;  %v8459_v18 = vpack.c.bf16 %v2418_v25, %v2410_v1  ;;  %v8365_v8 = vpack.c.bf16 %v2433_v30, %v2425_v5  ;;  %v8461_v23 = vpack.c.bf16 %v2435_v37, %v2427_v40  ;;  %v2488_v1 = vld [vmem:[#allocation14 + $0x320] sm:$0xff]  ;;  %v2498_v5 = vld [vmem:[#allocation14 + $0x370] sm:$0xff]  ;;  %v2505_v30 = vld [vmem:[#allocation14 + $0x3a8] sm:$0xff] }
 0x81d   :  { %v2513_v40 = vld [vmem:[#allocation14 + $0x3e8] sm:$0xff]  ;;  %v2507_v37 = vld [vmem:[#allocation14 + $0x3b8] sm:$0xff] }
 0x81e   :  { %v8385_v17 = vpack.c.bf16 %v2513_v40, %v2505_v30  ;;  %v2578_v30 = vld [vmem:[#allocation14 + $0x5f0] sm:$0xff]  ;;  %v2585_v40 = vld [vmem:[#allocation14 + $0x628] sm:$0xff] }
 0x81f   :  { %8252 = vmatpush1.bf16.msra.mxu0 %v8251_v41  ;;  %8348 = vmatpush1.bf16.msra.mxu1 %v8347_v10  ;;  %v2449_v41 = vld [vmem:[#allocation14 + $0x1e8] sm:$0xff]  ;;  %v2443_v10 = vld [vmem:[#allocation14 + $0x1b8] sm:$0xff] }
 0x820   :  { %8254 = vmatprep.subr.bf16.mxu0 %v8253_v24  ;;  %8350 = vmatprep.subr.bf16.mxu1 %v8349_v21  ;;  %v8463_v24 = vpack.c.bf16 %v2434_v36, %v2426_v13  ;;  %v8369_v21 = vpack.c.bf16 %v2449_v41, %v2441_v32  ;;  %v8465_v19 = vpack.c.bf16 %v2451_v55, %v2443_v10  ;;  %v2512_v13 = vld [vmem:[#allocation14 + $0x3e0] sm:$0xff]  ;;  %v2514_v32 = vld [vmem:[#allocation14 + $0x3f0] sm:$0xff]  ;;  %v2521_v41 = vld [vmem:[#allocation14 + $0x428] sm:$0xff] }
 0x821   :  { %v2529_v10 = vld [vmem:[#allocation14 + $0x468] sm:$0xff]  ;;  %v2523_v55 = vld [vmem:[#allocation14 + $0x438] sm:$0xff] }
 0x823   :  { %8256 = vmatpush1.bf16.msra.mxu0 %v8255_v11  ;;  %8352 = vmatpush1.bf16.msra.mxu1 %v8351_v12  ;;  %v2459_v11 = vld [vmem:[#allocation14 + $0x238] sm:$0xff] }
 0x824   :  { %8258 = vmatprep.subr.bf16.mxu0 %v8257_v58  ;;  %8354 = vmatprep.subr.bf16.mxu1 %v8353_v45  ;;  %v2467_v12 = vld [vmem:[#allocation14 + $0x278] sm:$0xff]  ;;  %v8373_v58 = vpack.c.bf16 %v2465_v50, %v2457_v62  ;;  %v2456_v45 = vld [vmem:[#allocation14 + $0x220] sm:$0xff]  ;;  %v2530_v62 = vld [vmem:[#allocation14 + $0x470] sm:$0xff] }
 0x825   :  { %v8469_v0 = vpack.c.bf16 %v2467_v12, %v2459_v11  ;;  %v8375_v43 = vpack.c.bf16 %v2464_v56, %v2456_v45  ;;  %v2537_v50 = vld [vmem:[#allocation14 + $0x4a8] sm:$0xff]  ;;  %v2539_v12 = vld [vmem:[#allocation14 + $0x4b8] sm:$0xff]  ;;  %v2536_v56 = vld [vmem:[#allocation14 + $0x4a0] sm:$0xff] }
 0x826   :  { %v2545_v11 = vld [vmem:[#allocation14 + $0x4e8] sm:$0xff] }
 0x827   :  { %8260 = vmatpush1.bf16.msra.mxu0 %v8259_v59  ;;  %8356 = vmatpush1.bf16.msra.mxu1 %v8355_v3  ;;  %v2475_v59 = vld [vmem:[#allocation14 + $0x2b8] sm:$0xff]  ;;  %v8393_v45 = vpack.c.bf16 %v2545_v11, %v2537_v50  ;;  %v2610_v50 = vld [vmem:[#allocation14 + $0x6f0] sm:$0xff]  ;;  %v2617_v11 = vld [vmem:[#allocation14 + $0x728] sm:$0xff] }
 0x828   :  { %8358 = vmatprep.subr.bf16.mxu0 %v8357_v51  ;;  %8454 = vmatprep.subr.bf16.mxu1 %v8453_v60  ;;  %v2483_v3 = vld [vmem:[#allocation14 + $0x2f8] sm:$0xff]  ;;  %v8471_v51 = vpack.c.bf16 %v2466_v54, %v2458_v47  ;;  %v8377_v60 = vpack.c.bf16 %v2481_v4, %v2473_v63  ;;  %v2544_v47 = vld [vmem:[#allocation14 + $0x4e0] sm:$0xff]  ;;  %v2546_v63 = vld [vmem:[#allocation14 + $0x4f0] sm:$0xff] }
 0x829   :  { %v8473_v61 = vpack.c.bf16 %v2483_v3, %v2475_v59  ;;  %v2553_v4 = vld [vmem:[#allocation14 + $0x528] sm:$0xff]  ;;  %v2555_v3 = vld [vmem:[#allocation14 + $0x538] sm:$0xff] }
 0x82a   :  { %2970 = vmatmul.mubr.f32.vlgmr.msra.gmra.mrb[112].mxu0 %v12083_v22  ;;  %3112 = vmatmul.mubr.f32.vlgmr.msra.gmra.mrb[96].mxu1 %v12083_v22  ;;  %v2561_v59 = vld [vmem:[#allocation14 + $0x568] sm:$0xff] }
 0x82b   :  { %8360 = vmatpush1.bf16.msra.mxu0 %v8359_v46  ;;  %3182 = vmatprep.mubr.f32.mxu0 %v12072_v9  ;;  %v2499_v46 = vld [vmem:[#allocation14 + $0x378] sm:$0xff] }
 0x82c   :  { %8456 = vmatpush1.bf16.msra.mxu1 %v8455_v48  ;;  %3324 = vmatprep.mubr.f32.mxu1 %v12072_v9  ;;  %v2440_v9 = vld [vmem:[#allocation14 + $0x1a0] sm:$0xff]  ;;  %v8379_v48 = vpack.c.bf16 %v2480_v28, %v2472_v33  ;;  %v8477_v25 = vpack.c.bf16 %v2499_v46, %v2491_v29  ;;  %v8397_v33 = vpack.c.bf16 %v2561_v59, %v2553_v4  ;;  %v2577_v29 = vld [vmem:[#allocation14 + $0x5e8] sm:$0xff]  ;;  %v2571_v46 = vld [vmem:[#allocation14 + $0x5b8] sm:$0xff] }
 0x82d   :  { %8362 = vmatprep.subr.bf16.mxu0 %v8361_v44  ;;  %8458 = vmatprep.subr.bf16.mxu1 %v8457_v53  ;;  %v8371_v52 = vpack.c.bf16 %v2448_v20, %v2440_v9  ;;  %v2496_v44 = vld [vmem:[#allocation14 + $0x360] sm:$0xff]  ;;  %v2490_v53 = vld [vmem:[#allocation14 + $0x330] sm:$0xff]  ;;  %v8389_v9 = vpack.c.bf16 %v2529_v10, %v2521_v41  ;;  %v2601_v10 = vld [vmem:[#allocation14 + $0x6a8] sm:$0xff] }
 0x82e   :  { %v2520_v20 = vld [vmem:[#allocation14 + $0x420] sm:$0xff]  ;;  %v2594_v41 = vld [vmem:[#allocation14 + $0x670] sm:$0xff]  ;;  %v2633_v59 = vld [vmem:[#allocation14 + $0x7a8] sm:$0xff] }
 0x82f   :  { %8364 = vmatpush1.bf16.msra.mxu0 %v8363_v38  ;;  %v2515_v38 = vld [vmem:[#allocation14 + $0x3f8] sm:$0xff]  ;;  %v2552_v28 = vld [vmem:[#allocation14 + $0x520] sm:$0xff]  ;;  %v2626_v4 = vld [vmem:[#allocation14 + $0x770] sm:$0xff] }
 0x830   :  { %8460 = vmatpush1.bf16.msra.mxu1 %v8459_v18  ;;  %8366 = vmatprep.subr.bf16.mxu0 %v8365_v8  ;;  %v8383_v18 = vpack.c.bf16 %v2496_v44, %v2488_v1  ;;  %v8479_v8 = vpack.c.bf16 %v2498_v5, %v2490_v53  ;;  %v8481_v36 = vpack.c.bf16 %v2515_v38, %v2507_v37  ;;  %v2568_v44 = vld [vmem:[#allocation14 + $0x5a0] sm:$0xff]  ;;  %v2593_v37 = vld [vmem:[#allocation14 + $0x668] sm:$0xff]  ;;  %v2587_v38 = vld [vmem:[#allocation14 + $0x638] sm:$0xff] }
 0x831   :  { %8462 = vmatprep.subr.bf16.mxu1 %v8461_v23  ;;  %v2506_v23 = vld [vmem:[#allocation14 + $0x3b0] sm:$0xff]  ;;  %v8401_v1 = vpack.c.bf16 %v2577_v29, %v2569_v15  ;;  %v2576_v53 = vld [vmem:[#allocation14 + $0x5e0] sm:$0xff]  ;;  %v2649_v29 = vld [vmem:[#allocation14 + $0x828] sm:$0xff] }
 0x832   :  { %v2642_v15 = vld [vmem:[#allocation14 + $0x7f0] sm:$0xff] }
 0x833   :  { %8368 = vmatpush1.bf16.msra.mxu0 %v8367_v16  ;;  %v2531_v16 = vld [vmem:[#allocation14 + $0x478] sm:$0xff] }
 0x834   :  { %8464 = vmatpush1.bf16.msra.mxu1 %v8463_v24  ;;  %8370 = vmatprep.subr.bf16.mxu0 %v8369_v21  ;;  %v8387_v24 = vpack.c.bf16 %v2512_v13, %v2504_v35  ;;  %v8483_v21 = vpack.c.bf16 %v2514_v32, %v2506_v23  ;;  %v8485_v34 = vpack.c.bf16 %v2531_v16, %v2523_v55  ;;  %v2584_v13 = vld [vmem:[#allocation14 + $0x620] sm:$0xff]  ;;  %v2609_v55 = vld [vmem:[#allocation14 + $0x6e8] sm:$0xff]  ;;  %v2603_v16 = vld [vmem:[#allocation14 + $0x6b8] sm:$0xff] }
 0x835   :  { %8466 = vmatprep.subr.bf16.mxu1 %v8465_v19  ;;  %v2522_v19 = vld [vmem:[#allocation14 + $0x430] sm:$0xff]  ;;  %v8405_v35 = vpack.c.bf16 %v2593_v37, %v2585_v40  ;;  %v2592_v23 = vld [vmem:[#allocation14 + $0x660] sm:$0xff]  ;;  %v2665_v37 = vld [vmem:[#allocation14 + $0x8a8] sm:$0xff] }
 0x836   :  { %v2658_v40 = vld [vmem:[#allocation14 + $0x870] sm:$0xff] }
 0x837   :  { %8372 = vmatpush1.bf16.msra.mxu0 %v8371_v52  ;;  %v2547_v52 = vld [vmem:[#allocation14 + $0x4f8] sm:$0xff] }
 0x838   :  { %8468 = vmatpush1.bf16.msra.mxu1 %v8467_v57  ;;  %8374 = vmatprep.subr.bf16.mxu0 %v8373_v58  ;;  %v8391_v57 = vpack.c.bf16 %v2528_v6, %v2520_v20  ;;  %v8487_v58 = vpack.c.bf16 %v2530_v62, %v2522_v19  ;;  %v8489_v54 = vpack.c.bf16 %v2547_v52, %v2539_v12  ;;  %v2600_v6 = vld [vmem:[#allocation14 + $0x6a0] sm:$0xff]  ;;  %v2625_v12 = vld [vmem:[#allocation14 + $0x768] sm:$0xff]  ;;  %v2619_v52 = vld [vmem:[#allocation14 + $0x738] sm:$0xff] }
 0x839   :  { %8470 = vmatprep.subr.bf16.mxu1 %v8469_v0  ;;  %v2538_v0 = vld [vmem:[#allocation14 + $0x4b0] sm:$0xff]  ;;  %v8409_v20 = vpack.c.bf16 %v2609_v55, %v2601_v10  ;;  %v2608_v19 = vld [vmem:[#allocation14 + $0x6e0] sm:$0xff]  ;;  %v2681_v55 = vld [vmem:[#allocation14 + $0x928] sm:$0xff] }
 0x83a   :  { %v2674_v10 = vld [vmem:[#allocation14 + $0x8f0] sm:$0xff] }
 0x83b   :  { %8376 = vmatpush1.bf16.msra.mxu0 %v8375_v43  ;;  %v2563_v43 = vld [vmem:[#allocation14 + $0x578] sm:$0xff] }
 0x83c   :  { %8472 = vmatpush1.bf16.msra.mxu1 %v8471_v51  ;;  %8378 = vmatprep.subr.bf16.mxu0 %v8377_v60  ;;  %v8395_v51 = vpack.c.bf16 %v2544_v47, %v2536_v56  ;;  %v8491_v60 = vpack.c.bf16 %v2546_v63, %v2538_v0  ;;  %v8493_v14 = vpack.c.bf16 %v2563_v43, %v2555_v3  ;;  %v2616_v47 = vld [vmem:[#allocation14 + $0x720] sm:$0xff]  ;;  %v2641_v3 = vld [vmem:[#allocation14 + $0x7e8] sm:$0xff]  ;;  %v2635_v43 = vld [vmem:[#allocation14 + $0x7b8] sm:$0xff] }
 0x83d   :  { %8474 = vmatprep.subr.bf16.mxu1 %v8473_v61  ;;  %v2554_v61 = vld [vmem:[#allocation14 + $0x530] sm:$0xff]  ;;  %v8413_v56 = vpack.c.bf16 %v2625_v12, %v2617_v11  ;;  %v2624_v0 = vld [vmem:[#allocation14 + $0x760] sm:$0xff]  ;;  %v2697_v12 = vld [vmem:[#allocation14 + $0x9a8] sm:$0xff] }
 0x83e   :  { %v2690_v11 = vld [vmem:[#allocation14 + $0x970] sm:$0xff] }
 0x83f   :  { %8380 = vmatpush1.bf16.msra.mxu0 %v8379_v48  ;;  %v2579_v48 = vld [vmem:[#allocation14 + $0x5f8] sm:$0xff] }
 0x840   :  { %8476 = vmatpush1.bf16.msra.mxu1 %v8475_v2  ;;  %8382 = vmatprep.subr.bf16.mxu0 %v8381_v27  ;;  %v8399_v2 = vpack.c.bf16 %v2560_v7, %v2552_v28  ;;  %v8495_v27 = vpack.c.bf16 %v2562_v39, %v2554_v61  ;;  %v8497_v5 = vpack.c.bf16 %v2579_v48, %v2571_v46  ;;  %v2632_v7 = vld [vmem:[#allocation14 + $0x7a0] sm:$0xff]  ;;  %v2657_v46 = vld [vmem:[#allocation14 + $0x868] sm:$0xff]  ;;  %v2651_v48 = vld [vmem:[#allocation14 + $0x838] sm:$0xff] }
 0x841   :  { %8478 = vmatprep.subr.bf16.mxu1 %v8477_v25  ;;  %v2570_v25 = vld [vmem:[#allocation14 + $0x5b0] sm:$0xff]  ;;  %v8417_v28 = vpack.c.bf16 %v2641_v3, %v2633_v59  ;;  %v2640_v61 = vld [vmem:[#allocation14 + $0x7e0] sm:$0xff]  ;;  %v2713_v59 = vld [vmem:[#allocation14 + $0xa28] sm:$0xff] }
 0x842   :  { %v2721_v3 = vld [vmem:[#allocation14 + $0xa68] sm:$0xff] }
 0x843   :  { %8384 = vmatpush1.bf16.msra.mxu0 %v8383_v18  ;;  %v2595_v18 = vld [vmem:[#allocation14 + $0x678] sm:$0xff] }
 0x844   :  { %8480 = vmatpush1.bf16.msra.mxu1 %v8479_v8  ;;  %8386 = vmatprep.subr.bf16.mxu0 %v8385_v17  ;;  %v8403_v8 = vpack.c.bf16 %v2576_v53, %v2568_v44  ;;  %v8499_v17 = vpack.c.bf16 %v2578_v30, %v2570_v25  ;;  %v8501_v32 = vpack.c.bf16 %v2595_v18, %v2587_v38  ;;  %v2648_v53 = vld [vmem:[#allocation14 + $0x820] sm:$0xff]  ;;  %v2673_v38 = vld [vmem:[#allocation14 + $0x8e8] sm:$0xff]  ;;  %v2667_v18 = vld [vmem:[#allocation14 + $0x8b8] sm:$0xff] }
 0x845   :  { %8482 = vmatprep.subr.bf16.mxu1 %v8481_v36  ;;  %v2586_v36 = vld [vmem:[#allocation14 + $0x630] sm:$0xff]  ;;  %v8421_v44 = vpack.c.bf16 %v2657_v46, %v2649_v29  ;;  %v2656_v25 = vld [vmem:[#allocation14 + $0x860] sm:$0xff]  ;;  %v2729_v29 = vld [vmem:[#allocation14 + $0xaa8] sm:$0xff] }
 0x846   :  { %v2737_v46 = vld [vmem:[#allocation14 + $0xae8] sm:$0xff] }
 0x847   :  { %8388 = vmatpush1.bf16.msra.mxu0 %v8387_v24  ;;  %v2611_v24 = vld [vmem:[#allocation14 + $0x6f8] sm:$0xff] }
 0x848   :  { %8484 = vmatpush1.bf16.msra.mxu1 %v8483_v21  ;;  %8390 = vmatprep.subr.bf16.mxu0 %v8389_v9  ;;  %v8407_v21 = vpack.c.bf16 %v2592_v23, %v2584_v13  ;;  %v8503_v9 = vpack.c.bf16 %v2594_v41, %v2586_v36  ;;  %v8505_v62 = vpack.c.bf16 %v2611_v24, %v2603_v16  ;;  %v2664_v23 = vld [vmem:[#allocation14 + $0x8a0] sm:$0xff]  ;;  %v2689_v16 = vld [vmem:[#allocation14 + $0x968] sm:$0xff]  ;;  %v2683_v24 = vld [vmem:[#allocation14 + $0x938] sm:$0xff] }
 0x849   :  { %8486 = vmatprep.subr.bf16.mxu1 %v8485_v34  ;;  %v2602_v34 = vld [vmem:[#allocation14 + $0x6b0] sm:$0xff]  ;;  %v8425_v13 = vpack.c.bf16 %v2673_v38, %v2665_v37  ;;  %v2672_v36 = vld [vmem:[#allocation14 + $0x8e0] sm:$0xff]  ;;  %v2745_v37 = vld [vmem:[#allocation14 + $0xb28] sm:$0xff] }
 0x84a   :  { %v2753_v38 = vld [vmem:[#allocation14 + $0xb68] sm:$0xff] }
 0x84b   :  { %8392 = vmatpush1.bf16.msra.mxu0 %v8391_v57  ;;  %v2627_v57 = vld [vmem:[#allocation14 + $0x778] sm:$0xff] }
 0x84c   :  { %8488 = vmatpush1.bf16.msra.mxu1 %v8487_v58  ;;  %8394 = vmatprep.subr.bf16.mxu0 %v8393_v45  ;;  %v8411_v58 = vpack.c.bf16 %v2608_v19, %v2600_v6  ;;  %v8507_v45 = vpack.c.bf16 %v2610_v50, %v2602_v34  ;;  %v8509_v63 = vpack.c.bf16 %v2627_v57, %v2619_v52  ;;  %v2680_v19 = vld [vmem:[#allocation14 + $0x920] sm:$0xff]  ;;  %v2705_v52 = vld [vmem:[#allocation14 + $0x9e8] sm:$0xff]  ;;  %v2699_v57 = vld [vmem:[#allocation14 + $0x9b8] sm:$0xff] }
 0x84d   :  { %8490 = vmatprep.subr.bf16.mxu1 %v8489_v54  ;;  %v2618_v54 = vld [vmem:[#allocation14 + $0x730] sm:$0xff]  ;;  %v8429_v6 = vpack.c.bf16 %v2689_v16, %v2681_v55  ;;  %v2688_v34 = vld [vmem:[#allocation14 + $0x960] sm:$0xff]  ;;  %v2761_v55 = vld [vmem:[#allocation14 + $0xba8] sm:$0xff] }
 0x84e   :  { %v2769_v16 = vld [vmem:[#allocation14 + $0xbe8] sm:$0xff] }
 0x84f   :  { %8396 = vmatpush1.bf16.msra.mxu0 %v8395_v51  ;;  %v2643_v51 = vld [vmem:[#allocation14 + $0x7f8] sm:$0xff] }
 0x850   :  { %8492 = vmatpush1.bf16.msra.mxu1 %v8491_v60  ;;  %8398 = vmatprep.subr.bf16.mxu0 %v8397_v33  ;;  %v8415_v60 = vpack.c.bf16 %v2624_v0, %v2616_v47  ;;  %v8511_v33 = vpack.c.bf16 %v2626_v4, %v2618_v54  ;;  %v8513_v39 = vpack.c.bf16 %v2643_v51, %v2635_v43  ;;  %v2696_v47 = vld [vmem:[#allocation14 + $0x9a0] sm:$0xff]  ;;  %v2698_v54 = vld [vmem:[#allocation14 + $0x9b0] sm:$0xff]  ;;  %v2715_v43 = vld [vmem:[#allocation14 + $0xa38] sm:$0xff] }
 0x851   :  { %8494 = vmatprep.subr.bf16.mxu1 %v8493_v14  ;;  %v2634_v14 = vld [vmem:[#allocation14 + $0x7b0] sm:$0xff]  ;;  %v2704_v0 = vld [vmem:[#allocation14 + $0x9e0] sm:$0xff]  ;;  %v2723_v51 = vld [vmem:[#allocation14 + $0xa78] sm:$0xff] }
 0x852   :  { %v2706_v4 = vld [vmem:[#allocation14 + $0x9f0] sm:$0xff] }
 0x853   :  { %8400 = vmatpush1.bf16.msra.mxu0 %v8399_v2  ;;  %v2659_v2 = vld [vmem:[#allocation14 + $0x878] sm:$0xff] }
 0x854   :  { %8496 = vmatpush1.bf16.msra.mxu1 %v8495_v27  ;;  %8402 = vmatprep.subr.bf16.mxu0 %v8401_v1  ;;  %v8419_v27 = vpack.c.bf16 %v2640_v61, %v2632_v7  ;;  %v8515_v1 = vpack.c.bf16 %v2642_v15, %v2634_v14  ;;  %v8517_v30 = vpack.c.bf16 %v2659_v2, %v2651_v48  ;;  %v2712_v7 = vld [vmem:[#allocation14 + $0xa20] sm:$0xff]  ;;  %v2714_v14 = vld [vmem:[#allocation14 + $0xa30] sm:$0xff]  ;;  %v2731_v48 = vld [vmem:[#allocation14 + $0xab8] sm:$0xff] }
 0x855   :  { %8498 = vmatprep.subr.bf16.mxu1 %v8497_v5  ;;  %v2650_v5 = vld [vmem:[#allocation14 + $0x830] sm:$0xff]  ;;  %v2720_v61 = vld [vmem:[#allocation14 + $0xa60] sm:$0xff]  ;;  %v2739_v2 = vld [vmem:[#allocation14 + $0xaf8] sm:$0xff] }
 0x856   :  { %v2722_v15 = vld [vmem:[#allocation14 + $0xa70] sm:$0xff] }
 0x857   :  { %8404 = vmatpush1.bf16.msra.mxu0 %v8403_v8  ;;  %v2675_v8 = vld [vmem:[#allocation14 + $0x8f8] sm:$0xff] }
 0x858   :  { %8500 = vmatpush1.bf16.msra.mxu1 %v8499_v17  ;;  %8406 = vmatprep.subr.bf16.mxu0 %v8405_v35  ;;  %v8423_v17 = vpack.c.bf16 %v2656_v25, %v2648_v53  ;;  %v8519_v35 = vpack.c.bf16 %v2658_v40, %v2650_v5  ;;  %v8521_v41 = vpack.c.bf16 %v2675_v8, %v2667_v18  ;;  %v2728_v53 = vld [vmem:[#allocation14 + $0xaa0] sm:$0xff]  ;;  %v2730_v5 = vld [vmem:[#allocation14 + $0xab0] sm:$0xff]  ;;  %v2747_v18 = vld [vmem:[#allocation14 + $0xb38] sm:$0xff] }
 0x859   :  { %8502 = vmatprep.subr.bf16.mxu1 %v8501_v32  ;;  %v2666_v32 = vld [vmem:[#allocation14 + $0x8b0] sm:$0xff]  ;;  %v2736_v25 = vld [vmem:[#allocation14 + $0xae0] sm:$0xff]  ;;  %v2755_v8 = vld [vmem:[#allocation14 + $0xb78] sm:$0xff] }
 0x85a   :  { %v2738_v40 = vld [vmem:[#allocation14 + $0xaf0] sm:$0xff] }
 0x85b   :  { %8408 = vmatpush1.bf16.msra.mxu0 %v8407_v21  ;;  %v2691_v21 = vld [vmem:[#allocation14 + $0x978] sm:$0xff] }
 0x85c   :  { %8504 = vmatpush1.bf16.msra.mxu1 %v8503_v9  ;;  %8410 = vmatprep.subr.bf16.mxu0 %v8409_v20  ;;  %v8427_v9 = vpack.c.bf16 %v2672_v36, %v2664_v23  ;;  %v8523_v20 = vpack.c.bf16 %v2674_v10, %v2666_v32  ;;  %v8525_v50 = vpack.c.bf16 %v2691_v21, %v2683_v24  ;;  %v2744_v23 = vld [vmem:[#allocation14 + $0xb20] sm:$0xff]  ;;  %v2746_v32 = vld [vmem:[#allocation14 + $0xb30] sm:$0xff]  ;;  %v2763_v24 = vld [vmem:[#allocation14 + $0xbb8] sm:$0xff] }
 0x85d   :  { %8506 = vmatprep.subr.bf16.mxu1 %v8505_v62  ;;  %v2682_v62 = vld [vmem:[#allocation14 + $0x930] sm:$0xff]  ;;  %v2752_v36 = vld [vmem:[#allocation14 + $0xb60] sm:$0xff]  ;;  %v2771_v21 = vld [vmem:[#allocation14 + $0xbf8] sm:$0xff] }
 0x85e   :  { %v2754_v10 = vld [vmem:[#allocation14 + $0xb70] sm:$0xff] }
 0x85f   :  { %8412 = vmatpush1.bf16.msra.mxu0 %v8411_v58  ;;  %v2707_v58 = vld [vmem:[#allocation14 + $0x9f8] sm:$0xff] }
 0x860   :  { %8508 = vmatpush1.bf16.msra.mxu1 %v8507_v45  ;;  %8414 = vmatprep.subr.bf16.mxu0 %v8413_v56  ;;  %v8527_v45 = vpack.c.bf16 %v2690_v11, %v2682_v62  ;;  %v8433_v56 = vpack.c.bf16 %v2705_v52, %v2697_v12  ;;  %v2762_v62 = vld [vmem:[#allocation14 + $0xbb0] sm:$0xff]  ;;  %v3426_v12 = vld [vmem:[#allocation17 + $0x80] sm:$0xff] }
 0x861   :  { %8510 = vmatprep.subr.bf16.mxu1 %v8509_v63  ;;  %v8529_v63 = vpack.c.bf16 %v2707_v58, %v2699_v57  ;;  %v2770_v11 = vld [vmem:[#allocation14 + $0xbf0] sm:$0xff]  ;;  %v3458_v57 = vld [vmem:[#allocation17 + $0x180] sm:$0xff] }
 0x862   :  { %v3427_v52 = vld [vmem:[#allocation17 + $0x88] sm:$0xff] }
 0x863   :  { %8416 = vmatpush1.bf16.msra.mxu0 %v8415_v60  ;;  %v8435_v60 = vpack.c.bf16 %v2704_v0, %v2696_v47  ;;  %v3459_v58 = vld [vmem:[#allocation17 + $0x188] sm:$0xff]  ;;  %v3410_v47 = vld [vmem:[#allocation17] sm:$0xff] }
 0x864   :  { %8512 = vmatpush1.bf16.msra.mxu1 %v8511_v33  ;;  %8418 = vmatprep.subr.bf16.mxu0 %v8417_v28  ;;  %v8531_v33 = vpack.c.bf16 %v2706_v4, %v2698_v54  ;;  %v8437_v28 = vpack.c.bf16 %v2721_v3, %v2713_v59  ;;  %v3411_v0 = vld [vmem:[#allocation17 + $0x8] sm:$0xff]  ;;  %v3442_v54 = vld [vmem:[#allocation17 + $0x100] sm:$0xff]  ;;  %v3428_v59 = vld [vmem:[#allocation17 + $0x90] sm:$0xff] }
 0x865   :  { %8514 = vmatprep.subr.bf16.mxu1 %v8513_v39  ;;  %v8533_v39 = vpack.c.bf16 %v2723_v51, %v2715_v43  ;;  %v3443_v4 = vld [vmem:[#allocation17 + $0x108] sm:$0xff]  ;;  %v3429_v3 = vld [vmem:[#allocation17 + $0x98] sm:$0xff]  ;;  %v3460_v43 = vld [vmem:[#allocation17 + $0x190] sm:$0xff] }
 0x866   :  { %v3461_v51 = vld [vmem:[#allocation17 + $0x198] sm:$0xff] }
 0x867   :  { %8420 = vmatpush1.bf16.msra.mxu0 %v8419_v27  ;;  %v8439_v27 = vpack.c.bf16 %v2720_v61, %v2712_v7  ;;  %v3412_v7 = vld [vmem:[#allocation17 + $0x10] sm:$0xff]  ;;  %v3413_v61 = vld [vmem:[#allocation17 + $0x18] sm:$0xff] }
 0x868   :  { %8516 = vmatpush1.bf16.msra.mxu1 %v8515_v1  ;;  %8422 = vmatprep.subr.bf16.mxu0 %v8421_v44  ;;  %v8535_v1 = vpack.c.bf16 %v2722_v15, %v2714_v14  ;;  %v8441_v44 = vpack.c.bf16 %v2737_v46, %v2729_v29  ;;  %v3444_v14 = vld [vmem:[#allocation17 + $0x110] sm:$0xff]  ;;  %v3445_v15 = vld [vmem:[#allocation17 + $0x118] sm:$0xff]  ;;  %v3430_v29 = vld [vmem:[#allocation17 + $0xa0] sm:$0xff] }
 0x869   :  { %8518 = vmatprep.subr.bf16.mxu1 %v8517_v30  ;;  %v8537_v30 = vpack.c.bf16 %v2739_v2, %v2731_v48  ;;  %v3431_v46 = vld [vmem:[#allocation17 + $0xa8] sm:$0xff]  ;;  %v3462_v48 = vld [vmem:[#allocation17 + $0x1a0] sm:$0xff] }
 0x86a   :  { %3183 = vmatmul.mubr.f32.vlgmr.msra.gmra.mrb[114].mxu0 %v12068_v49  ;;  %v3463_v2 = vld [vmem:[#allocation17 + $0x1a8] sm:$0xff] }
 0x86b   :  { %3325 = vmatmul.mubr.f32.vlgmr.msra.gmra.mrb[98].mxu1 %v12068_v49  ;;  %8424 = vmatpush1.bf16.msra.mxu0 %v8423_v17  ;;  %v8431_v49 = vpack.c.bf16 %v2688_v34, %v2680_v19  ;;  %v8443_v17 = vpack.c.bf16 %v2736_v25, %v2728_v53  ;;  %v2760_v19 = vld [vmem:[#allocation14 + $0xba0] sm:$0xff]  ;;  %v3414_v53 = vld [vmem:[#allocation17 + $0x20] sm:$0xff]  ;;  %v3415_v25 = vld [vmem:[#allocation17 + $0x28] sm:$0xff] }
 0x86c   :  { %8520 = vmatpush1.bf16.msra.mxu1 %v8519_v35  ;;  %8426 = vmatprep.subr.bf16.mxu0 %v8425_v13  ;;  %v8539_v35 = vpack.c.bf16 %v2738_v40, %v2730_v5  ;;  %v8445_v13 = vpack.c.bf16 %v2753_v38, %v2745_v37  ;;  %v2768_v34 = vld [vmem:[#allocation14 + $0xbe0] sm:$0xff]  ;;  %v3446_v5 = vld [vmem:[#allocation17 + $0x120] sm:$0xff]  ;;  %v3447_v40 = vld [vmem:[#allocation17 + $0x128] sm:$0xff] }
 0x86d   :  { %8522 = vmatprep.subr.bf16.mxu1 %v8521_v41  ;;  %3253 = vmatprep.mubr.f32.mxu0 %v12357_v42  ;;  %v8541_v41 = vpack.c.bf16 %v2755_v8, %v2747_v18  ;;  %v3432_v37 = vld [vmem:[#allocation17 + $0xb0] sm:$0xff]  ;;  %v3433_v38 = vld [vmem:[#allocation17 + $0xb8] sm:$0xff] }
 0x86e   :  { %3395 = vmatprep.mubr.f32.mxu1 %v12357_v42  ;;  %v3464_v18 = vld [vmem:[#allocation17 + $0x1b0] sm:$0xff]  ;;  %v3465_v8 = vld [vmem:[#allocation17 + $0x1b8] sm:$0xff] }
 0x86f   :  { %8428 = vmatpush1.bf16.msra.mxu0 %v8427_v9  ;;  %v8447_v9 = vpack.c.bf16 %v2752_v36, %v2744_v23  ;;  %v3417_v23 = vld [vmem:[#allocation17 + $0x38] sm:$0xff]  ;;  %v3448_v36 = vld [vmem:[#allocation17 + $0x130] sm:$0xff] }
 0x870   :  { %8524 = vmatpush1.bf16.msra.mxu1 %v8523_v20  ;;  %8430 = vmatprep.subr.bf16.mxu0 %v8429_v6  ;;  %v8543_v20 = vpack.c.bf16 %v2754_v10, %v2746_v32  ;;  %v8449_v6 = vpack.c.bf16 %v2769_v16, %v2761_v55  ;;  %v8593_v32 = vpack.c.bf16 %v3465_v8, %v3464_v18  ;;  %v3434_v10 = vld [vmem:[#allocation17 + $0xc0] sm:$0xff]  ;;  %v3435_v55 = vld [vmem:[#allocation17 + $0xc8] sm:$0xff] }
 0x871   :  { %8526 = vmatprep.subr.bf16.mxu1 %v8525_v50  ;;  %v8545_v50 = vpack.c.bf16 %v2771_v21, %v2763_v24  ;;  %v3466_v16 = vld [vmem:[#allocation17 + $0x1c0] sm:$0xff]  ;;  %v3467_v24 = vld [vmem:[#allocation17 + $0x1c8] sm:$0xff] }
 0x872   :  { %v3523_v18 = vld [vmem:[#allocation17 + $0x388] sm:$0xff] }
 0x873   :  { %8432 = vmatpush1.bf16.msra.mxu0 %v8431_v49  ;;  %v8451_v49 = vpack.c.bf16 %v2768_v34, %v2760_v19  ;;  %v3419_v19 = vld [vmem:[#allocation17 + $0x48] sm:$0xff]  ;;  %v3450_v34 = vld [vmem:[#allocation17 + $0x140] sm:$0xff] }
 0x874   :  { %8528 = vmatpush1.bf16.msra.mxu1 %v8527_v45  ;;  %8434 = vmatprep.subr.bf16.mxu0 %v8433_v56  ;;  %v8547_v45 = vpack.c.bf16 %v2770_v11, %v2762_v62  ;;  %v8549_v56 = vpack.c.bf16 %v3427_v52, %v3426_v12  ;;  %v8597_v62 = vpack.c.bf16 %v3467_v24, %v3466_v16  ;;  %v3436_v11 = vld [vmem:[#allocation17 + $0xd0] sm:$0xff]  ;;  %v3437_v12 = vld [vmem:[#allocation17 + $0xd8] sm:$0xff] }
 0x875   :  { %8530 = vmatprep.subr.bf16.mxu1 %v8529_v63  ;;  %v8581_v63 = vpack.c.bf16 %v3459_v58, %v3458_v57  ;;  %v3468_v52 = vld [vmem:[#allocation17 + $0x1d0] sm:$0xff]  ;;  %v3469_v57 = vld [vmem:[#allocation17 + $0x1d8] sm:$0xff] }
 0x877   :  { %8436 = vmatpush1.bf16.msra.mxu0 %v8435_v60  ;;  %v8551_v60 = vpack.c.bf16 %v3411_v0, %v3410_v47  ;;  %v3421_v47 = vld [vmem:[#allocation17 + $0x58] sm:$0xff]  ;;  %v3452_v0 = vld [vmem:[#allocation17 + $0x150] sm:$0xff] }
 0x878   :  { %8532 = vmatpush1.bf16.msra.mxu1 %v8531_v33  ;;  %8438 = vmatprep.subr.bf16.mxu0 %v8437_v28  ;;  %v8583_v33 = vpack.c.bf16 %v3443_v4, %v3442_v54  ;;  %v8553_v28 = vpack.c.bf16 %v3429_v3, %v3428_v59  ;;  %v8601_v54 = vpack.c.bf16 %v3469_v57, %v3468_v52  ;;  %v3438_v4 = vld [vmem:[#allocation17 + $0xe0] sm:$0xff]  ;;  %v3439_v59 = vld [vmem:[#allocation17 + $0xe8] sm:$0xff]  ;;  %v3492_v52 = vld [vmem:[#allocation17 + $0x290] sm:$0xff] }
 0x879   :  { %8534 = vmatprep.subr.bf16.mxu1 %v8533_v39  ;;  %v8585_v39 = vpack.c.bf16 %v3461_v51, %v3460_v43  ;;  %v3470_v3 = vld [vmem:[#allocation17 + $0x1e0] sm:$0xff]  ;;  %v3471_v43 = vld [vmem:[#allocation17 + $0x1e8] sm:$0xff] }
 0x87b   :  { %8440 = vmatpush1.bf16.msra.mxu0 %v8439_v27  ;;  %v8555_v27 = vpack.c.bf16 %v3413_v61, %v3412_v7  ;;  %v3423_v7 = vld [vmem:[#allocation17 + $0x68] sm:$0xff]  ;;  %v3454_v61 = vld [vmem:[#allocation17 + $0x160] sm:$0xff] }
 0x87c   :  { %8536 = vmatpush1.bf16.msra.mxu1 %v8535_v1  ;;  %8442 = vmatprep.subr.bf16.mxu0 %v8441_v44  ;;  %v8587_v1 = vpack.c.bf16 %v3445_v15, %v3444_v14  ;;  %v8557_v44 = vpack.c.bf16 %v3431_v46, %v3430_v29  ;;  %v8605_v14 = vpack.c.bf16 %v3471_v43, %v3470_v3  ;;  %v3440_v15 = vld [vmem:[#allocation17 + $0xf0] sm:$0xff]  ;;  %v3441_v29 = vld [vmem:[#allocation17 + $0xf8] sm:$0xff] }
 0x87d   :  { %8538 = vmatprep.subr.bf16.mxu1 %v8537_v30  ;;  %v8589_v30 = vpack.c.bf16 %v3463_v2, %v3462_v48  ;;  %v3472_v46 = vld [vmem:[#allocation17 + $0x1f0] sm:$0xff]  ;;  %v3473_v48 = vld [vmem:[#allocation17 + $0x1f8] sm:$0xff] }
 0x87f   :  { %8444 = vmatpush1.bf16.msra.mxu0 %v8443_v17  ;;  %v8559_v17 = vpack.c.bf16 %v3415_v25, %v3414_v53  ;;  %v3425_v53 = vld [vmem:[#allocation17 + $0x78] sm:$0xff]  ;;  %v3456_v25 = vld [vmem:[#allocation17 + $0x170] sm:$0xff] }
 0x880   :  { %8540 = vmatpush1.bf16.msra.mxu1 %v8539_v35  ;;  %8446 = vmatprep.subr.bf16.mxu0 %v8445_v13  ;;  %v8561_v35 = vpack.c.bf16 %v3433_v38, %v3432_v37  ;;  %v3416_v13 = vld [vmem:[#allocation17 + $0x30] sm:$0xff]  ;;  %v3491_v37 = vld [vmem:[#allocation17 + $0x288] sm:$0xff]  ;;  %v3522_v38 = vld [vmem:[#allocation17 + $0x380] sm:$0xff] }
 0x881   :  { %8542 = vmatprep.subr.bf16.mxu1 %v8541_v41  ;;  %v3449_v41 = vld [vmem:[#allocation17 + $0x138] sm:$0xff]  ;;  %v8563_v21 = vpack.c.bf16 %v3417_v23, %v3416_v13  ;;  %v12098_v23 = vsub.s32 3, %v12355_v26 }
 0x882   :  { %v12095_v13 = vld [vmem:[#allocation15] sm:$0xff] }
 0x883   :  { %8448 = vmatpush1.bf16.msra.mxu0 %v8447_v9  ;;  %v8595_v9 = vpack.c.bf16 %v3449_v41, %v3448_v36  ;;  %v12358_v36 = vld [vmem:[#allocation51_spill] sm:$0xff]  ;;  %v12359_v41 = vld [vmem:[#allocation53_spill] sm:$0xff]  ;;  %v2789_v24 = vrot.slane %v12095_v13, %v12098_v23 }
 0x884   :  { %8544 = vmatpush1.bf16.msra.mxu1 %v8543_v20  ;;  %8450 = vmatprep.subr.bf16.mxu0 %v8449_v6  ;;  %v8565_v20 = vpack.c.bf16 %v3435_v55, %v3434_v10  ;;  %v3418_v6 = vld [vmem:[#allocation17 + $0x40] sm:$0xff]  ;;  %v2785_v10 = vrot.slane %v12095_v13, %v12359_v41  ;;  %v12360_v55 = vld [vmem:[#allocation52_spill] sm:$0xff] }
 0x885   :  { %8546 = vmatprep.subr.bf16.mxu1 %v8545_v50  ;;  %v3451_v50 = vld [vmem:[#allocation17 + $0x148] sm:$0xff]  ;;  %v8567_v58 = vpack.c.bf16 %v3419_v19, %v3418_v6  ;;  %v2781_v16 = vrot.slane %v12095_v13, %v12360_v55 }
 0x886   :  { %v3475_v6 = vld [vmem:[#allocation17 + $0x208] sm:$0xff] }
 0x887   :  { %8452 = vmatpush1.bf16.msra.mxu0 %v8451_v49  ;;  %v8599_v49 = vpack.c.bf16 %v3451_v50, %v3450_v34 }
 0x888   :  { %8548 = vmatpush1.bf16.msra.mxu1 %v8547_v45  ;;  %8550 = vmatprep.subr.bf16.mxu0 %v8549_v56  ;;  %v8569_v45 = vpack.c.bf16 %v3437_v12, %v3436_v11  ;;  %v3420_v56 = vld [vmem:[#allocation17 + $0x50] sm:$0xff]  ;;  %v3506_v11 = vld [vmem:[#allocation17 + $0x300] sm:$0xff]  ;;  %v3507_v12 = vld [vmem:[#allocation17 + $0x308] sm:$0xff] }
 0x889   :  { %8582 = vmatprep.subr.bf16.mxu1 %v8581_v63  ;;  %v3453_v63 = vld [vmem:[#allocation17 + $0x158] sm:$0xff]  ;;  %v8571_v51 = vpack.c.bf16 %v3421_v47, %v3420_v56 }
 0x88a   :  { %3254 = vmatmul.mubr.f32.vlgmr.msra.gmra.mrb[114].mxu0 %v12083_v22  ;;  %v3525_v56 = vld [vmem:[#allocation17 + $0x398] sm:$0xff] }
 0x88b   :  { %3396 = vmatmul.mubr.f32.vlgmr.msra.gmra.mrb[98].mxu1 %v12083_v22  ;;  %8552 = vmatpush3.bf16.msra.mxu0 %v8551_v60  ;;  %v8591_v22 = vpack.c.bf16 %v3447_v40, %v3446_v5  ;;  %v8603_v60 = vpack.c.bf16 %v3453_v63, %v3452_v0  ;;  %v8609_v5 = vpack.c.bf16 %v3473_v48, %v3472_v46  ;;  %v3490_v40 = vld [vmem:[#allocation17 + $0x280] sm:$0xff]  ;;  %v3479_v48 = vld [vmem:[#allocation17 + $0x228] sm:$0xff] }
 0x88c   :  { %8584 = vmatpush3.bf16.msra.mxu1 %v8583_v33  ;;  %8554 = vmatprep.subr.bf16.mxu0 %v8553_v28  ;;  %v8573_v33 = vpack.c.bf16 %v3439_v59, %v3438_v4  ;;  %v3422_v28 = vld [vmem:[#allocation17 + $0x60] sm:$0xff]  ;;  %v8647_v63 = vpack.c.bf16 %v3507_v12, %v3506_v11  ;;  %v3476_v4 = vld [vmem:[#allocation17 + $0x210] sm:$0xff]  ;;  %v3477_v59 = vld [vmem:[#allocation17 + $0x218] sm:$0xff] }
 0x88d   :  { %8586 = vmatprep.subr.bf16.mxu1 %v8585_v39  ;;  %v3455_v39 = vld [vmem:[#allocation17 + $0x168] sm:$0xff]  ;;  %v8575_v2 = vpack.c.bf16 %v3423_v7, %v3422_v28  ;;  %v3509_v28 = vld [vmem:[#allocation17 + $0x318] sm:$0xff]  ;;  %v3494_v7 = vld [vmem:[#allocation17 + $0x2a0] sm:$0xff] }
 0x88e   :  { %v3478_v46 = vld [vmem:[#allocation17 + $0x220] sm:$0xff]  ;;  %v3500_v11 = vld [vmem:[#allocation17 + $0x2d0] sm:$0xff]  ;;  %v3501_v12 = vld [vmem:[#allocation17 + $0x2d8] sm:$0xff] }
 0x88f   :  { %8556 = vmatpush3.bf16.msra.mxu0 %v8555_v27  ;;  %v8607_v27 = vpack.c.bf16 %v3455_v39, %v3454_v61  ;;  %v3495_v61 = vld [vmem:[#allocation17 + $0x2a8] sm:$0xff] }
 0x890   :  { %8588 = vmatpush3.bf16.msra.mxu1 %v8587_v1  ;;  %8558 = vmatprep.subr.bf16.mxu0 %v8557_v44  ;;  %v8577_v1 = vpack.c.bf16 %v3441_v29, %v3440_v15  ;;  %v3424_v44 = vld [vmem:[#allocation17 + $0x70] sm:$0xff]  ;;  %v3527_v39 = vld [vmem:[#allocation17 + $0x3a8] sm:$0xff]  ;;  %v8619_v15 = vpack.c.bf16 %v3477_v59, %v3476_v4  ;;  %v3502_v4 = vld [vmem:[#allocation17 + $0x2e0] sm:$0xff] }
 0x891   :  { %8590 = vmatprep.subr.bf16.mxu1 %v8589_v30  ;;  %v3457_v30 = vld [vmem:[#allocation17 + $0x178] sm:$0xff]  ;;  %v8579_v8 = vpack.c.bf16 %v3425_v53, %v3424_v44  ;;  %v3511_v44 = vld [vmem:[#allocation17 + $0x328] sm:$0xff]  ;;  %v3496_v53 = vld [vmem:[#allocation17 + $0x2b0] sm:$0xff] }
 0x892   :  { %v3503_v59 = vld [vmem:[#allocation17 + $0x2e8] sm:$0xff] }
 0x893   :  { %8560 = vmatpush3.bf16.msra.mxu0 %v8559_v17  ;;  %v8611_v17 = vpack.c.bf16 %v3457_v30, %v3456_v25  ;;  %v3497_v25 = vld [vmem:[#allocation17 + $0x2b8] sm:$0xff] }
 0x894   :  { %8592 = vmatpush3.bf16.msra.mxu1 %v8591_v22  ;;  %8562 = vmatprep.subr.bf16.mxu0 %v8561_v35  ;;  %v8613_v22 = vpack.c.bf16 %v3491_v37, %v3490_v40  ;;  %v8645_v35 = vpack.c.bf16 %v3523_v18, %v3522_v38  ;;  %v3529_v30 = vld [vmem:[#allocation17 + $0x3b8] sm:$0xff]  ;;  %v8623_v40 = vpack.c.bf16 %v3479_v48, %v3478_v46  ;;  %v3480_v38 = vld [vmem:[#allocation17 + $0x230] sm:$0xff] }
 0x895   :  { %8594 = vmatprep.subr.bf16.mxu1 %v8593_v32  ;;  %v2777_v32 = vrot.slane %v12095_v13, %v12358_v36  ;;  %v3481_v18 = vld [vmem:[#allocation17 + $0x238] sm:$0xff]  ;;  %v3536_v46 = vld [vmem:[#allocation17 + $0x3f0] sm:$0xff] }
 0x896   :  { %v3537_v48 = vld [vmem:[#allocation17 + $0x3f8] sm:$0xff] }
 0x897   :  { %8564 = vmatpush3.bf16.msra.mxu0 %v8563_v21 }
 0x898   :  { %8596 = vmatpush3.bf16.msra.mxu1 %v8595_v9  ;;  %8566 = vmatprep.subr.bf16.mxu0 %v8565_v20  ;;  %v3474_v20 = vld [vmem:[#allocation17 + $0x200] sm:$0xff] }
 0x899   :  { %8598 = vmatprep.subr.bf16.mxu1 %v8597_v62 }
 0x89b   :  { %8568 = vmatpush3.bf16.msra.mxu0 %v8567_v58 }
 0x89c   :  { %8600 = vmatpush3.bf16.msra.mxu1 %v8599_v49  ;;  %8570 = vmatprep.subr.bf16.mxu0 %v8569_v45  ;;  %v3493_v49 = vld [vmem:[#allocation17 + $0x298] sm:$0xff]  ;;  %v3524_v45 = vld [vmem:[#allocation17 + $0x390] sm:$0xff] }
 0x89d   :  { %8602 = vmatprep.subr.bf16.mxu1 %v8601_v54  ;;  %v8615_v54 = vpack.c.bf16 %v3475_v6, %v3474_v20  ;;  %v3482_v20 = vld [vmem:[#allocation17 + $0x240] sm:$0xff]  ;;  %v3483_v6 = vld [vmem:[#allocation17 + $0x248] sm:$0xff] }
 0x89f   :  { %8572 = vmatpush3.bf16.msra.mxu0 %v8571_v51  ;;  %v8617_v51 = vpack.c.bf16 %v3493_v49, %v3492_v52  ;;  %v3532_v52 = vld [vmem:[#allocation17 + $0x3d0] sm:$0xff] }
 0x8a0   :  { %8604 = vmatpush3.bf16.msra.mxu1 %v8603_v60  ;;  %8574 = vmatprep.subr.bf16.mxu0 %v8573_v33  ;;  %v8649_v60 = vpack.c.bf16 %v3525_v56, %v3524_v45  ;;  %v3508_v33 = vld [vmem:[#allocation17 + $0x310] sm:$0xff]  ;;  %v3485_v56 = vld [vmem:[#allocation17 + $0x258] sm:$0xff] }
 0x8a1   :  { %8606 = vmatprep.subr.bf16.mxu1 %v8605_v14  ;;  %v3526_v14 = vld [vmem:[#allocation17 + $0x3a0] sm:$0xff]  ;;  %v8651_v29 = vpack.c.bf16 %v3509_v28, %v3508_v33  ;;  %v3484_v45 = vld [vmem:[#allocation17 + $0x250] sm:$0xff]  ;;  %v3487_v28 = vld [vmem:[#allocation17 + $0x268] sm:$0xff] }
 0x8a2   :  { %v3486_v33 = vld [vmem:[#allocation17 + $0x260] sm:$0xff] }
 0x8a3   :  { %8576 = vmatpush3.bf16.msra.mxu0 %v8575_v2  ;;  %v8621_v2 = vpack.c.bf16 %v3495_v61, %v3494_v7  ;;  %v8637_v7 = vpack.c.bf16 %v3503_v59, %v3502_v4  ;;  %v3842_v4 = vld [vmem:[#allocation20 + $0x78] sm:$0xff] }
 0x8a4   :  { %8608 = vmatpush3.bf16.msra.mxu1 %v8607_v27  ;;  %8578 = vmatprep.subr.bf16.mxu0 %v8577_v1  ;;  %v8653_v27 = vpack.c.bf16 %v3527_v39, %v3526_v14  ;;  %v3510_v1 = vld [vmem:[#allocation17 + $0x320] sm:$0xff]  ;;  %v3519_v39 = vld [vmem:[#allocation17 + $0x368] sm:$0xff] }
 0x8a5   :  { %8610 = vmatprep.subr.bf16.mxu1 %v8609_v5  ;;  %v3528_v5 = vld [vmem:[#allocation17 + $0x3b0] sm:$0xff]  ;;  %v8655_v37 = vpack.c.bf16 %v3511_v44, %v3510_v1  ;;  %v3518_v14 = vld [vmem:[#allocation17 + $0x360] sm:$0xff]  ;;  %v3489_v44 = vld [vmem:[#allocation17 + $0x278] sm:$0xff] }
 0x8a6   :  { %v3488_v1 = vld [vmem:[#allocation17 + $0x270] sm:$0xff] }
 0x8a7   :  { %8580 = vmatpush3.bf16.msra.mxu0 %v8579_v8  ;;  %v8625_v8 = vpack.c.bf16 %v3497_v25, %v3496_v53  ;;  %v8673_v25 = vpack.c.bf16 %v3537_v48, %v3536_v46  ;;  %v3848_v46 = vld [vmem:[#allocation20 + $0xa8] sm:$0xff] }
 0x8a8   :  { %8612 = vmatpush3.bf16.msra.mxu1 %v8611_v17  ;;  %8614 = vmatprep.subr.bf16.mxu0 %v8613_v22  ;;  %v8657_v17 = vpack.c.bf16 %v3529_v30, %v3528_v5  ;;  %v3512_v22 = vld [vmem:[#allocation17 + $0x330] sm:$0xff]  ;;  %v3521_v30 = vld [vmem:[#allocation17 + $0x378] sm:$0xff] }
 0x8a9   :  { %8646 = vmatprep.subr.bf16.mxu1 %v8645_v35  ;;  %v3513_v35 = vld [vmem:[#allocation17 + $0x338] sm:$0xff]  ;;  %v3520_v5 = vld [vmem:[#allocation17 + $0x370] sm:$0xff] }
 0x8fd   :  { %v2971_v21 = vpop.f32.mrb[112].mxu0  ;;  %v3113_v9 = vpop.f32.mrb[96].mxu1 }
 0x8fe   :  { %v10053_v19 = vadd.f32 %v2971_v21, %v2777_v32  ;;  %v10055_v34 = vadd.f32 %v3113_v9, %v2785_v10  ;;  %v2973_v62 = vpop.f32.mrb[113].mxu0  ;;  %v3115_v50 = vpop.f32.mrb[97].mxu1  ;;  %v3498_v32 = vld [vmem:[#allocation17 + $0x2c0] sm:$0xff]  ;;  %v3499_v10 = vld [vmem:[#allocation17 + $0x2c8] sm:$0xff]  ;;  %v8627_v21 = vpack.c.bf16 %v3481_v18, %v3480_v38  ;;  %v8659_v9 = vpack.c.bf16 %v3513_v35, %v3512_v22 }
 0x8ff   :  { %v10054_v57 = vadd.f32 %v2973_v62, %v2781_v16  ;;  %v10056_v58 = vadd.f32 %v3115_v50, %v2789_v24  ;;  %v3530_v16 = vld [vmem:[#allocation17 + $0x3c0] sm:$0xff]  ;;  %v3531_v24 = vld [vmem:[#allocation17 + $0x3c8] sm:$0xff] }
 0x900   :  { %v3402_v3 = vmax.f32 %v10053_v19, 0.0  ;;  %v3404_v43 = vmax.f32 %v10055_v34, 0.0  ;;  %v8629_v19 = vpack.c.bf16 %v3499_v10, %v3498_v32  ;;  %v8661_v34 = vpack.c.bf16 %v3531_v24, %v3530_v16  ;;  %v3514_v62 = vld [vmem:[#allocation17 + $0x340] sm:$0xff]  ;;  %v3515_v50 = vld [vmem:[#allocation17 + $0x348] sm:$0xff] }
 0x901   :  { %v3403_v47 = vmax.f32 %v10054_v57, 0.0  ;;  %v3405_v0 = vmax.f32 %v10056_v58, 0.0  ;;  %v3533_v57 = vld [vmem:[#allocation17 + $0x3d8] sm:$0xff]  ;;  %v8631_v58 = vpack.c.bf16 %v3483_v6, %v3482_v20  ;;  %v8663_v49 = vpack.c.bf16 %v3515_v50, %v3514_v62 }
 0x902   :  { %v3830_v38 = vld [vmem:[#allocation20 + $0x18] sm:$0xff]  ;;  %v2792_v32 = vsub.s32 4, %v12355_v26  ;;  %v2800_v10 = vsub.s32 6, %v12355_v26  ;;  %v2796_v16 = vsub.s32 5, %v12355_v26  ;;  %v2804_v24 = vsub.s32 7, %v12355_v26 }
 0x903   :  { %3609 = vmatprep.mubr.f32.mxu0 %v3403_v47  ;;  %3679 = vmatprep.mubr.f32.mxu1 %v3405_v0  ;;  %v8633_v47 = vpack.c.bf16 %v3501_v12, %v3500_v11  ;;  %v8665_v0 = vpack.c.bf16 %v3533_v57, %v3532_v52  ;;  %v3834_v18 = vld [vmem:[#allocation20 + $0x38] sm:$0xff]  ;;  %v3827_v12 = vld [vmem:[#allocation20] sm:$0xff]  ;;  %v3829_v57 = vld [vmem:[#allocation20 + $0x10] sm:$0xff] }
 0x904   :  { %3610 = vmatmul.mubr.f32.vlgmr.msra.gmra.mrb[116].mxu0 %v3402_v3  ;;  %3680 = vmatmul.mubr.f32.vlgmr.msra.gmra.mrb[100].mxu1 %v3404_v43  ;;  %v3534_v3 = vld [vmem:[#allocation17 + $0x3e0] sm:$0xff]  ;;  %v3535_v43 = vld [vmem:[#allocation17 + $0x3e8] sm:$0xff]  ;;  %v8901_v35 = vpack.c.bf16 %v3834_v18, %v3830_v38  ;;  %v2797_v20 = vrot.slane %v12095_v13, %v2796_v16  ;;  %v2805_v6 = vrot.slane %v12095_v13, %v2804_v24 }
 0x905   :  { %8616 = vmatpush3.bf16.msra.mxu0 %v8615_v54  ;;  %8648 = vmatpush3.bf16.msra.mxu1 %v8647_v63  ;;  %v3516_v54 = vld [vmem:[#allocation17 + $0x350] sm:$0xff]  ;;  %v3517_v63 = vld [vmem:[#allocation17 + $0x358] sm:$0xff]  ;;  %v8669_v61 = vpack.c.bf16 %v3535_v43, %v3534_v3  ;;  %v3831_v52 = vld [vmem:[#allocation20 + $0x20] sm:$0xff] }
 0x906   :  { %8618 = vmatprep.subr.bf16.mxu0 %v8617_v51  ;;  %8650 = vmatprep.subr.bf16.mxu1 %v8649_v60  ;;  %v8635_v51 = vpack.c.bf16 %v3485_v56, %v3484_v45  ;;  %v8667_v60 = vpack.c.bf16 %v3517_v63, %v3516_v54  ;;  %v3833_v56 = vld [vmem:[#allocation20 + $0x30] sm:$0xff]  ;;  %v3838_v63 = vld [vmem:[#allocation20 + $0x58] sm:$0xff]  ;;  %v8679_v3 = vpack.c.bf16 %v3831_v52, %v3827_v12  ;;  %v3852_v38 = vld [vmem:[#allocation20 + $0xc8] sm:$0xff] }
 0x907   :  { %v3856_v18 = vld [vmem:[#allocation20 + $0xe8] sm:$0xff]  ;;  %v3862_v12 = vld [vmem:[#allocation20 + $0x118] sm:$0xff] }
 0x908   :  { %v3866_v52 = vld [vmem:[#allocation20 + $0x138] sm:$0xff] }
 0x909   :  { %8620 = vmatpush3.bf16.msra.mxu0 %v8619_v15  ;;  %8652 = vmatpush3.bf16.msra.mxu1 %v8651_v29  ;;  %v3504_v15 = vld [vmem:[#allocation17 + $0x2f0] sm:$0xff]  ;;  %v3505_v29 = vld [vmem:[#allocation17 + $0x2f8] sm:$0xff] }
 0x90a   :  { %8622 = vmatprep.subr.bf16.mxu0 %v8621_v2  ;;  %8654 = vmatprep.subr.bf16.mxu1 %v8653_v27  ;;  %v8639_v2 = vpack.c.bf16 %v3487_v28, %v3486_v33  ;;  %v8671_v27 = vpack.c.bf16 %v3519_v39, %v3518_v14  ;;  %v8641_v53 = vpack.c.bf16 %v3505_v29, %v3504_v15  ;;  %v3835_v28 = vld [vmem:[#allocation20 + $0x40] sm:$0xff]  ;;  %v3841_v15 = vld [vmem:[#allocation20 + $0x70] sm:$0xff]  ;;  %v3844_v29 = vld [vmem:[#allocation20 + $0x88] sm:$0xff] }
 0x90b   :  { %v8905_v39 = vpack.c.bf16 %v3842_v4, %v3838_v63  ;;  %v3868_v63 = vld [vmem:[#allocation20 + $0x148] sm:$0xff] }
 0x90c   :  { %v3872_v4 = vld [vmem:[#allocation20 + $0x168] sm:$0xff] }
 0x90d   :  { %8624 = vmatpush3.bf16.msra.mxu0 %v8623_v40  ;;  %8656 = vmatpush3.bf16.msra.mxu1 %v8655_v37  ;;  %v3828_v40 = vld [vmem:[#allocation20 + $0x8] sm:$0xff] }
 0x90e   :  { %8626 = vmatprep.subr.bf16.mxu0 %v8625_v8  ;;  %8658 = vmatprep.subr.bf16.mxu1 %v8657_v17  ;;  %v3832_v37 = vld [vmem:[#allocation20 + $0x28] sm:$0xff]  ;;  %v8643_v8 = vpack.c.bf16 %v3489_v44, %v3488_v1  ;;  %v8675_v17 = vpack.c.bf16 %v3521_v30, %v3520_v5  ;;  %v3847_v5 = vld [vmem:[#allocation20 + $0xa0] sm:$0xff]  ;;  %v3845_v30 = vld [vmem:[#allocation20 + $0x90] sm:$0xff] }
 0x90f   :  { %v8677_v22 = vpack.c.bf16 %v3832_v37, %v3828_v40  ;;  %v3849_v37 = vld [vmem:[#allocation20 + $0xb0] sm:$0xff] }
 0x911   :  { %8628 = vmatpush3.bf16.msra.mxu0 %v8627_v21  ;;  %8660 = vmatpush3.bf16.msra.mxu1 %v8659_v9  ;;  %v2793_v21 = vrot.slane %v12095_v13, %v2792_v32  ;;  %v2801_v9 = vrot.slane %v12095_v13, %v2800_v10 }
 0x912   :  { %8630 = vmatprep.subr.bf16.mxu0 %v8629_v19  ;;  %8662 = vmatprep.subr.bf16.mxu1 %v8661_v34  ;;  %v12127_v19 = vld [vmem:[%s12361_s6] sm:$0xff] }
 0x913   :  { %v12131_v13 = vrot.slane %v12127_v19, %v12062_v31 }
 0x915   :  { %8632 = vmatpush3.bf16.msra.mxu0 %v8631_v58  ;;  %8664 = vmatpush3.bf16.msra.mxu1 %v8663_v49  ;;  %v4314_v48 = vcombine.high %v12131_v13, %v12131_v13 }
 0x916   :  { %8634 = vmatprep.subr.bf16.mxu0 %v8633_v47  ;;  %8666 = vmatprep.subr.bf16.mxu1 %v8665_v0  ;;  %v3836_v47 = vld [vmem:[#allocation20 + $0x48] sm:$0xff] }
 0x917   :  { %v3840_v0 = vld [vmem:[#allocation20 + $0x68] sm:$0xff] }
 0x918   :  { %v8681_v33 = vpack.c.bf16 %v3840_v0, %v3836_v47  ;;  %v3861_v47 = vld [vmem:[#allocation20 + $0x110] sm:$0xff]  ;;  %v8917_v0 = vpack.c.bf16 %v3866_v52, %v3862_v12 }
 0x919   :  { %8636 = vmatpush3.bf16.msra.mxu0 %v8635_v51  ;;  %8668 = vmatpush3.bf16.msra.mxu1 %v8667_v60  ;;  %v8903_v60 = vpack.c.bf16 %v3833_v56, %v3829_v57  ;;  %v3863_v56 = vld [vmem:[#allocation20 + $0x120] sm:$0xff] }
 0x91a   :  { %8638 = vmatprep.subr.bf16.mxu0 %v8637_v7  ;;  %8670 = vmatprep.subr.bf16.mxu1 %v8669_v61  ;;  %v3839_v7 = vld [vmem:[#allocation20 + $0x60] sm:$0xff]  ;;  %v3837_v61 = vld [vmem:[#allocation20 + $0x50] sm:$0xff] }
 0x91b   :  { %v8683_v1 = vpack.c.bf16 %v3839_v7, %v3835_v28  ;;  %v8907_v44 = vpack.c.bf16 %v3841_v15, %v3837_v61  ;;  %v3871_v28 = vld [vmem:[#allocation20 + $0x160] sm:$0xff]  ;;  %v3869_v7 = vld [vmem:[#allocation20 + $0x150] sm:$0xff]  ;;  %v3880_v15 = vld [vmem:[#allocation20 + $0x1a8] sm:$0xff] }
 0x91d   :  { %8640 = vmatpush3.bf16.msra.mxu0 %v8639_v2  ;;  %8672 = vmatpush3.bf16.msra.mxu1 %v8671_v27  ;;  %v3846_v2 = vld [vmem:[#allocation20 + $0x98] sm:$0xff] }
 0x91e   :  { %8642 = vmatprep.subr.bf16.mxu0 %v8641_v53  ;;  %8674 = vmatprep.subr.bf16.mxu1 %v8673_v25  ;;  %v3850_v27 = vld [vmem:[#allocation20 + $0xb8] sm:$0xff]  ;;  %v8685_v53 = vpack.c.bf16 %v3848_v46, %v3844_v29  ;;  %v3843_v25 = vld [vmem:[#allocation20 + $0x80] sm:$0xff] }
 0x91f   :  { %v8909_v40 = vpack.c.bf16 %v3850_v27, %v3846_v2  ;;  %v3878_v29 = vld [vmem:[#allocation20 + $0x198] sm:$0xff] }
 0x920   :  { %v3882_v46 = vld [vmem:[#allocation20 + $0x1b8] sm:$0xff] }
 0x921   :  { %8644 = vmatpush3.bf16.msra.mxu0 %v8643_v8  ;;  %8676 = vmatpush3.bf16.msra.mxu1 %v8675_v17  ;;  %v3854_v8 = vld [vmem:[#allocation20 + $0xd8] sm:$0xff] }
 0x922   :  { %8678 = vmatprep.subr.bf16.mxu0 %v8677_v22  ;;  %8902 = vmatprep.subr.bf16.mxu1 %v8901_v35  ;;  %v3858_v17 = vld [vmem:[#allocation20 + $0xf8] sm:$0xff]  ;;  %v8687_v22 = vpack.c.bf16 %v3847_v5, %v3843_v25  ;;  %v8911_v35 = vpack.c.bf16 %v3849_v37, %v3845_v30  ;;  %v8925_v25 = vpack.c.bf16 %v3882_v46, %v3878_v29  ;;  %v3881_v5 = vld [vmem:[#allocation20 + $0x1b0] sm:$0xff]  ;;  %v3884_v30 = vld [vmem:[#allocation20 + $0x1c8] sm:$0xff] }
 0x923   :  { %v3886_v37 = vld [vmem:[#allocation20 + $0x1d8] sm:$0xff] }
 0x95d   :  { %v3255_v34 = vpop.f32.mrb[114].mxu0 }
 0x95e   :  { %v10057_v62 = vadd.f32 %v3255_v34, %v2793_v21  ;;  %v3397_v50 = vpop.f32.mrb[98].mxu1  ;;  %v3257_v11 = vpop.f32.mrb[115].mxu0  ;;  %v8689_v21 = vpack.c.bf16 %v3856_v18, %v3852_v38  ;;  %v8913_v34 = vpack.c.bf16 %v3858_v17, %v3854_v8  ;;  %v3890_v38 = vld [vmem:[#allocation20 + $0x1f8] sm:$0xff] }
 0x95f   :  { %v10059_v58 = vadd.f32 %v3397_v50, %v2801_v9  ;;  %v10058_v49 = vadd.f32 %v3257_v11, %v2797_v20  ;;  %v3399_v45 = vpop.f32.mrb[99].mxu1  ;;  %v3851_v9 = vld [vmem:[#allocation20 + $0xc0] sm:$0xff]  ;;  %v3860_v50 = vld [vmem:[#allocation20 + $0x108] sm:$0xff] }
 0x960   :  { %v10060_v54 = vadd.f32 %v3399_v45, %v2805_v6  ;;  %v3406_v43 = vmax.f32 %v10057_v62, 0.0  ;;  %v3855_v20 = vld [vmem:[#allocation20 + $0xe0] sm:$0xff]  ;;  %v3853_v6 = vld [vmem:[#allocation20 + $0xd0] sm:$0xff]  ;;  %v3864_v11 = vld [vmem:[#allocation20 + $0x128] sm:$0xff] }
 0x961   :  { %v3407_v59 = vmax.f32 %v10058_v49, 0.0  ;;  %v3408_v14 = vmax.f32 %v10059_v58, 0.0  ;;  %v3857_v62 = vld [vmem:[#allocation20 + $0xf0] sm:$0xff]  ;;  %v8691_v57 = vpack.c.bf16 %v3855_v20, %v3851_v9  ;;  %v8693_v49 = vpack.c.bf16 %v3864_v11, %v3860_v50  ;;  %v3859_v45 = vld [vmem:[#allocation20 + $0x100] sm:$0xff]  ;;  %v3898_v50 = vld [vmem:[#allocation20 + $0x238] sm:$0xff] }
 0x962   :  { %v3409_v51 = vmax.f32 %v10060_v54, 0.0  ;;  %v8915_v58 = vpack.c.bf16 %v3857_v62, %v3853_v6  ;;  %v3865_v54 = vld [vmem:[#allocation20 + $0x130] sm:$0xff]  ;;  %v8929_v9 = vpack.c.bf16 %v3890_v38, %v3886_v37  ;;  %v3892_v6 = vld [vmem:[#allocation20 + $0x208] sm:$0xff]  ;;  %v3894_v62 = vld [vmem:[#allocation20 + $0x218] sm:$0xff] }
 0x963   :  { %3749 = vmatprep.mubr.f32.mxu0 %v3407_v59  ;;  %v3870_v59 = vld [vmem:[#allocation20 + $0x158] sm:$0xff]  ;;  %v3889_v20 = vld [vmem:[#allocation20 + $0x1f0] sm:$0xff] }
 0x964   :  { %3819 = vmatprep.mubr.f32.mxu1 %v3409_v51  ;;  %3750 = vmatmul.mubr.f32.vlgmr.msra.gmra.mrb[118].mxu0 %v3406_v43  ;;  %v8695_v43 = vpack.c.bf16 %v3863_v56, %v3859_v45  ;;  %v8919_v51 = vpack.c.bf16 %v3865_v54, %v3861_v47  ;;  %v8933_v45 = vpack.c.bf16 %v3898_v50, %v3894_v62  ;;  %v3897_v56 = vld [vmem:[#allocation20 + $0x230] sm:$0xff]  ;;  %v3900_v47 = vld [vmem:[#allocation20 + $0x248] sm:$0xff]  ;;  %v3902_v54 = vld [vmem:[#allocation20 + $0x258] sm:$0xff] }
 0x965   :  { %3820 = vmatmul.mubr.f32.vlgmr.msra.gmra.mrb[102].mxu1 %v3408_v14  ;;  %8680 = vmatpush1.bf16.msra.mxu0 %v8679_v3  ;;  %v3874_v3 = vld [vmem:[#allocation20 + $0x178] sm:$0xff]  ;;  %v3873_v14 = vld [vmem:[#allocation20 + $0x170] sm:$0xff] }
 0x966   :  { %8904 = vmatpush1.bf16.msra.mxu1 %v8903_v60  ;;  %8682 = vmatprep.subr.bf16.mxu0 %v8681_v33  ;;  %v8697_v60 = vpack.c.bf16 %v3872_v4, %v3868_v63  ;;  %v3867_v33 = vld [vmem:[#allocation20 + $0x140] sm:$0xff]  ;;  %v8921_v61 = vpack.c.bf16 %v3874_v3, %v3870_v59  ;;  %v8923_v2 = vpack.c.bf16 %v3873_v14, %v3869_v7  ;;  %v3906_v63 = vld [vmem:[#allocation20 + $0x278] sm:$0xff]  ;;  %v3908_v7 = vld [vmem:[#allocation20 + $0x288] sm:$0xff] }
 0x967   :  { %8906 = vmatprep.subr.bf16.mxu1 %v8905_v39  ;;  %4403 = vmatprep.mubr.f32.mxu0 %v4314_v48  ;;  %v3876_v39 = vld [vmem:[#allocation20 + $0x188] sm:$0xff]  ;;  %v3910_v14 = vld [vmem:[#allocation20 + $0x298] sm:$0xff] }
 0x968   :  { %4687 = vmatprep.mubr.f32.mxu1 %v4314_v48  ;;  %v8699_v48 = vpack.c.bf16 %v3871_v28, %v3867_v33  ;;  %v8701_v27 = vpack.c.bf16 %v3880_v15, %v3876_v39  ;;  %v8937_v33 = vpack.c.bf16 %v3906_v63, %v3902_v54  ;;  %v3905_v28 = vld [vmem:[#allocation20 + $0x270] sm:$0xff]  ;;  %v3914_v39 = vld [vmem:[#allocation20 + $0x2b8] sm:$0xff] }
 0x969   :  { %8684 = vmatpush1.bf16.msra.mxu0 %v8683_v1  ;;  %v3875_v1 = vld [vmem:[#allocation20 + $0x180] sm:$0xff] }
 0x96a   :  { %8908 = vmatpush1.bf16.msra.mxu1 %v8907_v44  ;;  %8686 = vmatprep.subr.bf16.mxu0 %v8685_v53  ;;  %v3879_v44 = vld [vmem:[#allocation20 + $0x1a0] sm:$0xff]  ;;  %v3877_v53 = vld [vmem:[#allocation20 + $0x190] sm:$0xff] }
 0x96b   :  { %8910 = vmatprep.subr.bf16.mxu1 %v8909_v40  ;;  %v3888_v40 = vld [vmem:[#allocation20 + $0x1e8] sm:$0xff]  ;;  %v8703_v18 = vpack.c.bf16 %v3879_v44, %v3875_v1  ;;  %v8927_v8 = vpack.c.bf16 %v3881_v5, %v3877_v53  ;;  %v8941_v1 = vpack.c.bf16 %v3914_v39, %v3910_v14  ;;  %v3913_v44 = vld [vmem:[#allocation20 + $0x2b0] sm:$0xff]  ;;  %v3918_v5 = vld [vmem:[#allocation20 + $0x2d8] sm:$0xff] }
 0x96c   :  { %v8705_v17 = vpack.c.bf16 %v3888_v40, %v3884_v30  ;;  %v3916_v53 = vld [vmem:[#allocation20 + $0x2c8] sm:$0xff]  ;;  %v3922_v30 = vld [vmem:[#allocation20 + $0x2f8] sm:$0xff] }
 0x96d   :  { %8688 = vmatpush1.bf16.msra.mxu0 %v8687_v22  ;;  %v3883_v22 = vld [vmem:[#allocation20 + $0x1c0] sm:$0xff] }
 0x96e   :  { %8912 = vmatpush1.bf16.msra.mxu1 %v8911_v35  ;;  %8690 = vmatprep.subr.bf16.mxu0 %v8689_v21  ;;  %v3887_v35 = vld [vmem:[#allocation20 + $0x1e0] sm:$0xff]  ;;  %v3885_v21 = vld [vmem:[#allocation20 + $0x1d0] sm:$0xff] }
 0x96f   :  { %8914 = vmatprep.subr.bf16.mxu1 %v8913_v34  ;;  %v3896_v34 = vld [vmem:[#allocation20 + $0x228] sm:$0xff]  ;;  %v8707_v11 = vpack.c.bf16 %v3887_v35, %v3883_v22  ;;  %v8931_v12 = vpack.c.bf16 %v3889_v20, %v3885_v21  ;;  %v8945_v22 = vpack.c.bf16 %v3922_v30, %v3918_v5  ;;  %v3921_v35 = vld [vmem:[#allocation20 + $0x2f0] sm:$0xff]  ;;  %v3926_v20 = vld [vmem:[#allocation20 + $0x318] sm:$0xff] }
 0x970   :  { %v8709_v52 = vpack.c.bf16 %v3896_v34, %v3892_v6  ;;  %v3924_v21 = vld [vmem:[#allocation20 + $0x308] sm:$0xff]  ;;  %v3930_v6 = vld [vmem:[#allocation20 + $0x338] sm:$0xff] }
 0x971   :  { %8692 = vmatpush1.bf16.msra.mxu0 %v8691_v57  ;;  %v3891_v57 = vld [vmem:[#allocation20 + $0x200] sm:$0xff] }
 0x972   :  { %8916 = vmatpush1.bf16.msra.mxu1 %v8915_v58  ;;  %8694 = vmatprep.subr.bf16.mxu0 %v8693_v49  ;;  %v3895_v58 = vld [vmem:[#allocation20 + $0x220] sm:$0xff]  ;;  %v3893_v49 = vld [vmem:[#allocation20 + $0x210] sm:$0xff] }
 0x973   :  { %8918 = vmatprep.subr.bf16.mxu1 %v8917_v0  ;;  %v3904_v0 = vld [vmem:[#allocation20 + $0x268] sm:$0xff]  ;;  %v8711_v4 = vpack.c.bf16 %v3895_v58, %v3891_v57  ;;  %v8935_v59 = vpack.c.bf16 %v3897_v56, %v3893_v49  ;;  %v8949_v57 = vpack.c.bf16 %v3930_v6, %v3926_v20  ;;  %v3929_v58 = vld [vmem:[#allocation20 + $0x330] sm:$0xff]  ;;  %v3934_v56 = vld [vmem:[#allocation20 + $0x358] sm:$0xff] }
 0x974   :  { %v8713_v3 = vpack.c.bf16 %v3904_v0, %v3900_v47  ;;  %v3932_v49 = vld [vmem:[#allocation20 + $0x348] sm:$0xff]  ;;  %v3938_v47 = vld [vmem:[#allocation20 + $0x378] sm:$0xff] }
 0x975   :  { %8696 = vmatpush1.bf16.msra.mxu0 %v8695_v43  ;;  %v3899_v43 = vld [vmem:[#allocation20 + $0x240] sm:$0xff] }
 0x976   :  { %8920 = vmatpush1.bf16.msra.mxu1 %v8919_v51  ;;  %8698 = vmatprep.subr.bf16.mxu0 %v8697_v60  ;;  %v3903_v51 = vld [vmem:[#allocation20 + $0x260] sm:$0xff]  ;;  %v3901_v60 = vld [vmem:[#allocation20 + $0x250] sm:$0xff] }
 0x977   :  { %8922 = vmatprep.subr.bf16.mxu1 %v8921_v61  ;;  %v3912_v61 = vld [vmem:[#allocation20 + $0x2a8] sm:$0xff]  ;;  %v8715_v15 = vpack.c.bf16 %v3903_v51, %v3899_v43  ;;  %v8939_v29 = vpack.c.bf16 %v3905_v28, %v3901_v60  ;;  %v8953_v43 = vpack.c.bf16 %v3938_v47, %v3934_v56  ;;  %v3937_v51 = vld [vmem:[#allocation20 + $0x370] sm:$0xff]  ;;  %v3942_v28 = vld [vmem:[#allocation20 + $0x398] sm:$0xff] }
 0x978   :  { %v8717_v46 = vpack.c.bf16 %v3912_v61, %v3908_v7  ;;  %v3940_v60 = vld [vmem:[#allocation20 + $0x388] sm:$0xff]  ;;  %v3946_v7 = vld [vmem:[#allocation20 + $0x3b8] sm:$0xff] }
 0x979   :  { %8700 = vmatpush1.bf16.msra.mxu0 %v8699_v48  ;;  %v3907_v48 = vld [vmem:[#allocation20 + $0x280] sm:$0xff] }
 0x97a   :  { %8924 = vmatpush1.bf16.msra.mxu1 %v8923_v2  ;;  %8702 = vmatprep.subr.bf16.mxu0 %v8701_v27  ;;  %v3911_v2 = vld [vmem:[#allocation20 + $0x2a0] sm:$0xff]  ;;  %v3909_v27 = vld [vmem:[#allocation20 + $0x290] sm:$0xff] }
 0x97b   :  { %8926 = vmatprep.subr.bf16.mxu1 %v8925_v25  ;;  %v3920_v25 = vld [vmem:[#allocation20 + $0x2e8] sm:$0xff]  ;;  %v8719_v40 = vpack.c.bf16 %v3911_v2, %v3907_v48  ;;  %v8943_v37 = vpack.c.bf16 %v3913_v44, %v3909_v27  ;;  %v8957_v48 = vpack.c.bf16 %v3946_v7, %v3942_v28  ;;  %v3945_v2 = vld [vmem:[#allocation20 + $0x3b0] sm:$0xff]  ;;  %v3950_v44 = vld [vmem:[#allocation20 + $0x3d8] sm:$0xff] }
 0x97c   :  { %v8721_v38 = vpack.c.bf16 %v3920_v25, %v3916_v53  ;;  %v3948_v27 = vld [vmem:[#allocation20 + $0x3c8] sm:$0xff]  ;;  %v3954_v53 = vld [vmem:[#allocation20 + $0x3f8] sm:$0xff] }
 0x97d   :  { %8704 = vmatpush1.bf16.msra.mxu0 %v8703_v18  ;;  %v3915_v18 = vld [vmem:[#allocation20 + $0x2c0] sm:$0xff]  ;;  %v3978_v28 = vld [vmem:[#allocation20 + $0x4b8] sm:$0xff] }
 0x97e   :  { %8928 = vmatpush1.bf16.msra.mxu1 %v8927_v8  ;;  %8706 = vmatprep.subr.bf16.mxu0 %v8705_v17  ;;  %v3919_v8 = vld [vmem:[#allocation20 + $0x2e0] sm:$0xff]  ;;  %v3917_v17 = vld [vmem:[#allocation20 + $0x2d0] sm:$0xff] }
 0x97f   :  { %8930 = vmatprep.subr.bf16.mxu1 %v8929_v9  ;;  %v3928_v9 = vld [vmem:[#allocation20 + $0x328] sm:$0xff]  ;;  %v8723_v34 = vpack.c.bf16 %v3919_v8, %v3915_v18  ;;  %v8947_v62 = vpack.c.bf16 %v3921_v35, %v3917_v17  ;;  %v8961_v18 = vpack.c.bf16 %v3954_v53, %v3950_v44  ;;  %v3953_v8 = vld [vmem:[#allocation20 + $0x3f0] sm:$0xff]  ;;  %v4299_v35 = vcombine.high %v12127_v19, %v12127_v19  ;;  %v3966_v19 = vld [vmem:[#allocation20 + $0x458] sm:$0xff] }
 0x980   :  { %v8725_v50 = vpack.c.bf16 %v3928_v9, %v3924_v21  ;;  %v3956_v17 = vld [vmem:[#allocation20 + $0x408] sm:$0xff]  ;;  %v3958_v21 = vld [vmem:[#allocation20 + $0x418] sm:$0xff] }
 0x981   :  { %8708 = vmatpush1.bf16.msra.mxu0 %v8707_v11  ;;  %v3923_v11 = vld [vmem:[#allocation20 + $0x300] sm:$0xff]  ;;  %v3962_v9 = vld [vmem:[#allocation20 + $0x438] sm:$0xff] }
 0x982   :  { %8932 = vmatpush1.bf16.msra.mxu1 %v8931_v12  ;;  %8710 = vmatprep.subr.bf16.mxu0 %v8709_v52  ;;  %v3927_v12 = vld [vmem:[#allocation20 + $0x320] sm:$0xff]  ;;  %v3925_v52 = vld [vmem:[#allocation20 + $0x310] sm:$0xff]  ;;  %v3986_v44 = vld [vmem:[#allocation20 + $0x4f8] sm:$0xff] }
 0x983   :  { %8934 = vmatprep.subr.bf16.mxu1 %v8933_v45  ;;  %v3936_v45 = vld [vmem:[#allocation20 + $0x368] sm:$0xff]  ;;  %v8727_v0 = vpack.c.bf16 %v3927_v12, %v3923_v11  ;;  %v8951_v54 = vpack.c.bf16 %v3929_v58, %v3925_v52  ;;  %v3957_v11 = vld [vmem:[#allocation20 + $0x410] sm:$0xff]  ;;  %v8965_v12 = vpack.c.bf16 %v3962_v9, %v3958_v21 }
 0x984   :  { %v8729_v63 = vpack.c.bf16 %v3936_v45, %v3932_v49  ;;  %v3961_v52 = vld [vmem:[#allocation20 + $0x430] sm:$0xff]  ;;  %v3968_v58 = vld [vmem:[#allocation20 + $0x468] sm:$0xff]  ;;  %v12138_v49 = vrot.slane %v4299_v35, %v12062_v31  ;;  %v3970_v45 = vld [vmem:[#allocation20 + $0x478] sm:$0xff] }
 0x985   :  { %8712 = vmatpush1.bf16.msra.mxu0 %v8711_v4  ;;  %v3931_v4 = vld [vmem:[#allocation20 + $0x340] sm:$0xff]  ;;  %v8967_v47 = vpack.c.bf16 %v3961_v52, %v3957_v11  ;;  %v3996_v11 = vld [vmem:[#allocation20 + $0x548] sm:$0xff]  ;;  %v3998_v52 = vld [vmem:[#allocation20 + $0x558] sm:$0xff] }
 0x986   :  { %8936 = vmatpush1.bf16.msra.mxu1 %v8935_v59  ;;  %8714 = vmatprep.subr.bf16.mxu0 %v8713_v3  ;;  %v3935_v59 = vld [vmem:[#allocation20 + $0x360] sm:$0xff]  ;;  %v3933_v3 = vld [vmem:[#allocation20 + $0x350] sm:$0xff] }
 0x987   :  { %8938 = vmatprep.subr.bf16.mxu1 %v8937_v33  ;;  %v3944_v33 = vld [vmem:[#allocation20 + $0x3a8] sm:$0xff]  ;;  %v8731_v61 = vpack.c.bf16 %v3935_v59, %v3931_v4  ;;  %v8955_v14 = vpack.c.bf16 %v3937_v51, %v3933_v3  ;;  %v3965_v4 = vld [vmem:[#allocation20 + $0x450] sm:$0xff]  ;;  %v8969_v59 = vpack.c.bf16 %v3970_v45, %v3966_v19 }
 0x988   :  { %v8733_v39 = vpack.c.bf16 %v3944_v33, %v3940_v60  ;;  %v3969_v3 = vld [vmem:[#allocation20 + $0x470] sm:$0xff]  ;;  %v3976_v51 = vld [vmem:[#allocation20 + $0x4a8] sm:$0xff]  ;;  %v4315_v60 = vcombine.high %v12138_v49, %v12138_v49  ;;  %v3974_v33 = vld [vmem:[#allocation20 + $0x498] sm:$0xff] }
 0x989   :  { %8716 = vmatpush1.bf16.msra.mxu0 %v8715_v15  ;;  %v3939_v15 = vld [vmem:[#allocation20 + $0x380] sm:$0xff] }
 0x98a   :  { %8940 = vmatpush1.bf16.msra.mxu1 %v8939_v29  ;;  %8718 = vmatprep.subr.bf16.mxu0 %v8717_v46  ;;  %v3943_v29 = vld [vmem:[#allocation20 + $0x3a0] sm:$0xff]  ;;  %v3941_v46 = vld [vmem:[#allocation20 + $0x390] sm:$0xff] }
 0x98b   :  { %8942 = vmatprep.subr.bf16.mxu1 %v8941_v1  ;;  %v3952_v1 = vld [vmem:[#allocation20 + $0x3e8] sm:$0xff]  ;;  %v8735_v25 = vpack.c.bf16 %v3943_v29, %v3939_v15  ;;  %v8959_v5 = vpack.c.bf16 %v3945_v2, %v3941_v46  ;;  %v3975_v15 = vld [vmem:[#allocation20 + $0x4a0] sm:$0xff]  ;;  %v3973_v29 = vld [vmem:[#allocation20 + $0x490] sm:$0xff]  ;;  %v8973_v46 = vpack.c.bf16 %v3978_v28, %v3974_v33 }
 0x98c   :  { %v8737_v30 = vpack.c.bf16 %v3952_v1, %v3948_v27  ;;  %v3980_v2 = vld [vmem:[#allocation20 + $0x4c8] sm:$0xff]  ;;  %v3982_v1 = vld [vmem:[#allocation20 + $0x4d8] sm:$0xff]  ;;  %v4003_v28 = vld [vmem:[#allocation20 + $0x580] sm:$0xff] }
 0x98d   :  { %8720 = vmatpush1.bf16.msra.mxu0 %v8719_v40  ;;  %v3947_v40 = vld [vmem:[#allocation20 + $0x3c0] sm:$0xff]  ;;  %v3984_v27 = vld [vmem:[#allocation20 + $0x4e8] sm:$0xff] }
 0x98e   :  { %8944 = vmatpush1.bf16.msra.mxu1 %v8943_v37  ;;  %8722 = vmatprep.subr.bf16.mxu0 %v8721_v38  ;;  %v3951_v37 = vld [vmem:[#allocation20 + $0x3e0] sm:$0xff]  ;;  %v3949_v38 = vld [vmem:[#allocation20 + $0x3d0] sm:$0xff] }
 0x98f   :  { %8946 = vmatprep.subr.bf16.mxu1 %v8945_v22  ;;  %v3960_v22 = vld [vmem:[#allocation20 + $0x428] sm:$0xff]  ;;  %v8739_v20 = vpack.c.bf16 %v3951_v37, %v3947_v40  ;;  %v8963_v6 = vpack.c.bf16 %v3953_v8, %v3949_v38  ;;  %v3981_v40 = vld [vmem:[#allocation20 + $0x4d0] sm:$0xff]  ;;  %v8977_v37 = vpack.c.bf16 %v3986_v44, %v3982_v1  ;;  %v4011_v44 = vld [vmem:[#allocation20 + $0x5c0] sm:$0xff] }
 0x990   :  { %v3985_v38 = vld [vmem:[#allocation20 + $0x4f0] sm:$0xff]  ;;  %v3992_v8 = vld [vmem:[#allocation20 + $0x528] sm:$0xff] }
 0x991   :  { %8724 = vmatpush1.bf16.msra.mxu0 %v8723_v34  ;;  %v8741_v34 = vpack.c.bf16 %v3960_v22, %v3956_v17  ;;  %v3990_v17 = vld [vmem:[#allocation20 + $0x518] sm:$0xff]  ;;  %v8979_v21 = vpack.c.bf16 %v3985_v38, %v3981_v40  ;;  %v4024_v40 = vld [vmem:[#allocation20 + $0x628] sm:$0xff] }
 0x992   :  { %8948 = vmatpush1.bf16.msra.mxu1 %v8947_v62  ;;  %8726 = vmatprep.subr.bf16.mxu0 %v8725_v50  ;;  %v3955_v62 = vld [vmem:[#allocation20 + $0x400] sm:$0xff]  ;;  %v3994_v22 = vld [vmem:[#allocation20 + $0x538] sm:$0xff] }
 0x993   :  { %8950 = vmatprep.subr.bf16.mxu1 %v8949_v57  ;;  %v3959_v50 = vld [vmem:[#allocation20 + $0x420] sm:$0xff]  ;;  %v3964_v57 = vld [vmem:[#allocation20 + $0x448] sm:$0xff]  ;;  %v4026_v38 = vld [vmem:[#allocation20 + $0x638] sm:$0xff] }
 0x994   :  { %v8743_v56 = vpack.c.bf16 %v3959_v50, %v3955_v62  ;;  %v8981_v62 = vpack.c.bf16 %v3994_v22, %v3990_v17  ;;  %v3993_v50 = vld [vmem:[#allocation20 + $0x530] sm:$0xff]  ;;  %v4019_v22 = vld [vmem:[#allocation20 + $0x600] sm:$0xff] }
 0x995   :  { %8728 = vmatpush1.bf16.msra.mxu0 %v8727_v0  ;;  %v8745_v0 = vpack.c.bf16 %v3968_v58, %v3964_v57  ;;  %v4002_v57 = vld [vmem:[#allocation20 + $0x578] sm:$0xff] }
 0x996   :  { %8952 = vmatpush1.bf16.msra.mxu1 %v8951_v54  ;;  %8730 = vmatprep.subr.bf16.mxu0 %v8729_v63  ;;  %v3963_v54 = vld [vmem:[#allocation20 + $0x440] sm:$0xff] }
 0x997   :  { %8954 = vmatprep.subr.bf16.mxu1 %v8953_v43  ;;  %v3967_v63 = vld [vmem:[#allocation20 + $0x460] sm:$0xff]  ;;  %v3972_v43 = vld [vmem:[#allocation20 + $0x488] sm:$0xff] }
 0x998   :  { %v8747_v7 = vpack.c.bf16 %v3967_v63, %v3963_v54  ;;  %v8985_v54 = vpack.c.bf16 %v4002_v57, %v3998_v52  ;;  %v4001_v63 = vld [vmem:[#allocation20 + $0x570] sm:$0xff]  ;;  %v4027_v57 = vld [vmem:[#allocation20 + $0x640] sm:$0xff] }
 0x999   :  { %8732 = vmatpush1.bf16.msra.mxu0 %v8731_v61  ;;  %v8971_v61 = vpack.c.bf16 %v3969_v3, %v3965_v4  ;;  %v4004_v4 = vld [vmem:[#allocation20 + $0x588] sm:$0xff]  ;;  %v4006_v3 = vld [vmem:[#allocation20 + $0x598] sm:$0xff] }
 0x99a   :  { %8956 = vmatpush1.bf16.msra.mxu1 %v8955_v14  ;;  %8734 = vmatprep.subr.bf16.mxu0 %v8733_v39  ;;  %v8749_v14 = vpack.c.bf16 %v3976_v51, %v3972_v43  ;;  %v3971_v39 = vld [vmem:[#allocation20 + $0x480] sm:$0xff]  ;;  %v4010_v43 = vld [vmem:[#allocation20 + $0x5b8] sm:$0xff] }
 0x99b   :  { %8958 = vmatprep.subr.bf16.mxu1 %v8957_v48  ;;  %v3977_v48 = vld [vmem:[#allocation20 + $0x4b0] sm:$0xff]  ;;  %v8751_v53 = vpack.c.bf16 %v3975_v15, %v3971_v39  ;;  %v4012_v15 = vld [vmem:[#allocation20 + $0x5c8] sm:$0xff] }
 0x99c   :  { %v4009_v39 = vld [vmem:[#allocation20 + $0x5b0] sm:$0xff] }
 0x99d   :  { %8736 = vmatpush1.bf16.msra.mxu0 %v8735_v25  ;;  %v8753_v25 = vpack.c.bf16 %v3984_v27, %v3980_v2 }
 0x99e   :  { %8960 = vmatpush1.bf16.msra.mxu1 %v8959_v5  ;;  %8738 = vmatprep.subr.bf16.mxu0 %v8737_v30  ;;  %v3979_v5 = vld [vmem:[#allocation20 + $0x4c0] sm:$0xff] }
 0x99f   :  { %8962 = vmatprep.subr.bf16.mxu1 %v8961_v18  ;;  %v3983_v30 = vld [vmem:[#allocation20 + $0x4e0] sm:$0xff]  ;;  %v3988_v18 = vld [vmem:[#allocation20 + $0x508] sm:$0xff] }
 0x9a0   :  { %v8755_v35 = vpack.c.bf16 %v3983_v30, %v3979_v5  ;;  %v8757_v9 = vpack.c.bf16 %v3992_v8, %v3988_v18  ;;  %v4017_v5 = vld [vmem:[#allocation20 + $0x5f0] sm:$0xff]  ;;  %v4020_v30 = vld [vmem:[#allocation20 + $0x608] sm:$0xff] }
 0x9a1   :  { %8740 = vmatpush1.bf16.msra.mxu0 %v8739_v20  ;;  %v3987_v20 = vld [vmem:[#allocation20 + $0x500] sm:$0xff]  ;;  %v8773_v17 = vpack.c.bf16 %v4024_v40, %v4020_v30 }
 0x9a2   :  { %8964 = vmatpush1.bf16.msra.mxu1 %v8963_v6  ;;  %8742 = vmatprep.subr.bf16.mxu0 %v8741_v34  ;;  %v3991_v6 = vld [vmem:[#allocation20 + $0x520] sm:$0xff]  ;;  %v3989_v34 = vld [vmem:[#allocation20 + $0x510] sm:$0xff] }
 0x9a3   :  { %8966 = vmatprep.subr.bf16.mxu1 %v8965_v12  ;;  %v4000_v12 = vld [vmem:[#allocation20 + $0x568] sm:$0xff]  ;;  %v8759_v58 = vpack.c.bf16 %v3991_v6, %v3987_v20  ;;  %v8983_v19 = vpack.c.bf16 %v3993_v50, %v3989_v34  ;;  %v4025_v20 = vld [vmem:[#allocation20 + $0x630] sm:$0xff]  ;;  %v4034_v50 = vld [vmem:[#allocation20 + $0x678] sm:$0xff] }
 0x9a4   :  { %4404 = vmatmul.mubr.f32.vlgmr.msra.gmra.mrb[120].mxu0 %v12131_v13  ;;  %v8761_v45 = vpack.c.bf16 %v4000_v12, %v3996_v11  ;;  %v4028_v6 = vld [vmem:[#allocation20 + $0x648] sm:$0xff] }
 0x9a5   :  { %8744 = vmatpush1.bf16.msra.mxu0 %v8743_v56  ;;  %4688 = vmatmul.mubr.f32.vlgmr.msra.gmra.mrb[104].mxu1 %v12131_v13  ;;  %v8975_v13 = vpack.c.bf16 %v3977_v48, %v3973_v29  ;;  %v3995_v56 = vld [vmem:[#allocation20 + $0x540] sm:$0xff]  ;;  %v4016_v29 = vld [vmem:[#allocation20 + $0x5e8] sm:$0xff]  ;;  %v4018_v48 = vld [vmem:[#allocation20 + $0x5f8] sm:$0xff] }
 0x9a6   :  { %8968 = vmatpush1.bf16.msra.mxu1 %v8967_v47  ;;  %8746 = vmatprep.subr.bf16.mxu0 %v8745_v0  ;;  %v3999_v47 = vld [vmem:[#allocation20 + $0x560] sm:$0xff]  ;;  %v3997_v0 = vld [vmem:[#allocation20 + $0x550] sm:$0xff]  ;;  %v8769_v1 = vpack.c.bf16 %v4016_v29, %v4012_v15  ;;  %v4032_v34 = vld [vmem:[#allocation20 + $0x668] sm:$0xff] }
 0x9a7   :  { %8970 = vmatprep.subr.bf16.mxu1 %v8969_v59  ;;  %4474 = vmatprep.mubr.f32.mxu0 %v4315_v60  ;;  %v4008_v59 = vld [vmem:[#allocation20 + $0x5a8] sm:$0xff]  ;;  %v8763_v51 = vpack.c.bf16 %v3999_v47, %v3995_v56  ;;  %v8777_v52 = vpack.c.bf16 %v4032_v34, %v4028_v6  ;;  %v4033_v56 = vld [vmem:[#allocation20 + $0x670] sm:$0xff] }
 0x9a8   :  { %4758 = vmatprep.mubr.f32.mxu1 %v4315_v60  ;;  %v8987_v60 = vpack.c.bf16 %v4001_v63, %v3997_v0  ;;  %v8765_v33 = vpack.c.bf16 %v4008_v59, %v4004_v4  ;;  %v4036_v47 = vld [vmem:[#allocation20 + $0x688] sm:$0xff]  ;;  %v4042_v63 = vld [vmem:[#allocation20 + $0x6b8] sm:$0xff] }
 0x9a9   :  { %8748 = vmatpush1.bf16.msra.mxu0 %v8747_v7  ;;  %v4007_v7 = vld [vmem:[#allocation20 + $0x5a0] sm:$0xff]  ;;  %v4040_v0 = vld [vmem:[#allocation20 + $0x6a8] sm:$0xff] }
 0x9aa   :  { %8972 = vmatpush1.bf16.msra.mxu1 %v8971_v61  ;;  %8750 = vmatprep.subr.bf16.mxu0 %v8749_v14  ;;  %v4005_v61 = vld [vmem:[#allocation20 + $0x590] sm:$0xff]  ;;  %v8989_v14 = vpack.c.bf16 %v4010_v43, %v4006_v3  ;;  %v8767_v2 = vpack.c.bf16 %v4007_v7, %v4003_v28  ;;  %v8781_v3 = vpack.c.bf16 %v4040_v0, %v4036_v47  ;;  %v4035_v43 = vld [vmem:[#allocation20 + $0x680] sm:$0xff]  ;;  %v4044_v7 = vld [vmem:[#allocation20 + $0x6c8] sm:$0xff] }
 0x9ab   :  { %8974 = vmatprep.subr.bf16.mxu1 %v8973_v46  ;;  %v4014_v46 = vld [vmem:[#allocation20 + $0x5d8] sm:$0xff]  ;;  %v8991_v27 = vpack.c.bf16 %v4009_v39, %v4005_v61  ;;  %v4041_v28 = vld [vmem:[#allocation20 + $0x6b0] sm:$0xff]  ;;  %v4048_v61 = vld [vmem:[#allocation20 + $0x6e8] sm:$0xff] }
 0x9ac   :  { %v4050_v39 = vld [vmem:[#allocation20 + $0x6f8] sm:$0xff] }
 0x9ad   :  { %8752 = vmatpush1.bf16.msra.mxu0 %v8751_v53  ;;  %v4015_v53 = vld [vmem:[#allocation20 + $0x5e0] sm:$0xff] }
 0x9ae   :  { %8976 = vmatpush1.bf16.msra.mxu1 %v8975_v13  ;;  %8754 = vmatprep.subr.bf16.mxu0 %v8753_v25  ;;  %v4013_v13 = vld [vmem:[#allocation20 + $0x5d0] sm:$0xff]  ;;  %v8993_v25 = vpack.c.bf16 %v4018_v48, %v4014_v46  ;;  %v8771_v18 = vpack.c.bf16 %v4015_v53, %v4011_v44  ;;  %v8785_v46 = vpack.c.bf16 %v4048_v61, %v4044_v7  ;;  %v4043_v48 = vld [vmem:[#allocation20 + $0x6c0] sm:$0xff]  ;;  %v4052_v53 = vld [vmem:[#allocation20 + $0x708] sm:$0xff] }
 0x9af   :  { %8978 = vmatprep.subr.bf16.mxu1 %v8977_v37  ;;  %v4022_v37 = vld [vmem:[#allocation20 + $0x618] sm:$0xff]  ;;  %v8995_v8 = vpack.c.bf16 %v4017_v5, %v4013_v13  ;;  %v4049_v44 = vld [vmem:[#allocation20 + $0x6f0] sm:$0xff]  ;;  %v4056_v13 = vld [vmem:[#allocation20 + $0x728] sm:$0xff] }
 0x9b0   :  { %v4058_v5 = vld [vmem:[#allocation20 + $0x738] sm:$0xff] }
 0x9b1   :  { %8756 = vmatpush1.bf16.msra.mxu0 %v8755_v35  ;;  %v4023_v35 = vld [vmem:[#allocation20 + $0x620] sm:$0xff]  ;;  %v7355_v7 = vld [vmem:[#allocation18] ss:$0 sm:$0xff] }
 0x9b2   :  { %8980 = vmatpush1.bf16.msra.mxu1 %v8979_v21  ;;  %8758 = vmatprep.subr.bf16.mxu0 %v8757_v9  ;;  %v4021_v21 = vld [vmem:[#allocation20 + $0x610] sm:$0xff]  ;;  %v8997_v9 = vpack.c.bf16 %v4026_v38, %v4022_v37  ;;  %v8775_v11 = vpack.c.bf16 %v4023_v35, %v4019_v22  ;;  %v8789_v37 = vpack.c.bf16 %v4056_v13, %v4052_v53  ;;  %v4051_v38 = vld [vmem:[#allocation20 + $0x700] sm:$0xff]  ;;  %v4060_v35 = vld [vmem:[#allocation20 + $0x748] sm:$0xff] }
 0x9b3   :  { %8982 = vmatprep.subr.bf16.mxu1 %v8981_v62  ;;  %v4030_v62 = vld [vmem:[#allocation20 + $0x658] sm:$0xff]  ;;  %v8999_v12 = vpack.c.bf16 %v4025_v20, %v4021_v21  ;;  %v4057_v22 = vld [vmem:[#allocation20 + $0x730] sm:$0xff]  ;;  %v4064_v21 = vld [vmem:[#allocation20 + $0x768] sm:$0xff] }
 0x9b4   :  { %v4066_v20 = vld [vmem:[#allocation20 + $0x778] sm:$0xff]  ;;  %v4077_v53 = vld [vmem:[#allocation20 + $0x7d0] sm:$0xff] }
 0x9b5   :  { %8760 = vmatpush1.bf16.msra.mxu0 %v8759_v58  ;;  %v4031_v58 = vld [vmem:[#allocation20 + $0x660] sm:$0xff] }
 0x9b6   :  { %8984 = vmatpush1.bf16.msra.mxu1 %v8983_v19  ;;  %8762 = vmatprep.subr.bf16.mxu0 %v8761_v45  ;;  %v4029_v19 = vld [vmem:[#allocation20 + $0x650] sm:$0xff]  ;;  %v9001_v45 = vpack.c.bf16 %v4034_v50, %v4030_v62  ;;  %v8779_v4 = vpack.c.bf16 %v4031_v58, %v4027_v57  ;;  %v8793_v62 = vpack.c.bf16 %v4064_v21, %v4060_v35  ;;  %v4059_v50 = vld [vmem:[#allocation20 + $0x740] sm:$0xff]  ;;  %v4068_v58 = vld [vmem:[#allocation20 + $0x788] sm:$0xff] }
 0x9b7   :  { %8986 = vmatprep.subr.bf16.mxu1 %v8985_v54  ;;  %v4038_v54 = vld [vmem:[#allocation20 + $0x698] sm:$0xff]  ;;  %v9003_v59 = vpack.c.bf16 %v4033_v56, %v4029_v19  ;;  %v4065_v57 = vld [vmem:[#allocation20 + $0x770] sm:$0xff]  ;;  %v4072_v19 = vld [vmem:[#allocation20 + $0x7a8] sm:$0xff] }
 0x9b8   :  { %v4074_v56 = vld [vmem:[#allocation20 + $0x7b8] sm:$0xff]  ;;  %v4083_v21 = vld [vmem:[#allocation20 + $0x800] sm:$0xff] }
 0x9b9   :  { %8764 = vmatpush1.bf16.msra.mxu0 %v8763_v51  ;;  %v4039_v51 = vld [vmem:[#allocation20 + $0x6a0] sm:$0xff] }
 0x9ba   :  { %8988 = vmatpush1.bf16.msra.mxu1 %v8987_v60  ;;  %8766 = vmatprep.subr.bf16.mxu0 %v8765_v33  ;;  %v4037_v60 = vld [vmem:[#allocation20 + $0x690] sm:$0xff]  ;;  %v9005_v33 = vpack.c.bf16 %v4042_v63, %v4038_v54  ;;  %v8783_v15 = vpack.c.bf16 %v4039_v51, %v4035_v43  ;;  %v8797_v54 = vpack.c.bf16 %v4072_v19, %v4068_v58  ;;  %v4067_v63 = vld [vmem:[#allocation20 + $0x780] sm:$0xff] }
 0x9bb   :  { %8990 = vmatprep.subr.bf16.mxu1 %v8989_v14  ;;  %v4046_v14 = vld [vmem:[#allocation20 + $0x6d8] sm:$0xff]  ;;  %v9007_v29 = vpack.c.bf16 %v4041_v28, %v4037_v60  ;;  %v4073_v60 = vld [vmem:[#allocation20 + $0x7b0] sm:$0xff]  ;;  %v4080_v28 = vld [vmem:[#allocation20 + $0x7e8] sm:$0xff] }
 0x9bd   :  { %8768 = vmatpush1.bf16.msra.mxu0 %v8767_v2  ;;  %v4047_v2 = vld [vmem:[#allocation20 + $0x6e0] sm:$0xff] }
 0x9be   :  { %8992 = vmatpush1.bf16.msra.mxu1 %v8991_v27  ;;  %8770 = vmatprep.subr.bf16.mxu0 %v8769_v1  ;;  %v4045_v27 = vld [vmem:[#allocation20 + $0x6d0] sm:$0xff]  ;;  %v9009_v1 = vpack.c.bf16 %v4050_v39, %v4046_v14  ;;  %v8787_v30 = vpack.c.bf16 %v4047_v2, %v4043_v48  ;;  %v4078_v39 = vld [vmem:[#allocation20 + $0x7d8] sm:$0xff] }
 0x9bf   :  { %8994 = vmatprep.subr.bf16.mxu1 %v8993_v25  ;;  %v4054_v25 = vld [vmem:[#allocation20 + $0x718] sm:$0xff]  ;;  %v9011_v40 = vpack.c.bf16 %v4049_v44, %v4045_v27  ;;  %v4079_v44 = vld [vmem:[#allocation20 + $0x7e0] sm:$0xff] }
 0x9c1   :  { %8772 = vmatpush1.bf16.msra.mxu0 %v8771_v18  ;;  %v4055_v18 = vld [vmem:[#allocation20 + $0x720] sm:$0xff] }
 0x9c2   :  { %8996 = vmatpush1.bf16.msra.mxu1 %v8995_v8  ;;  %8774 = vmatprep.subr.bf16.mxu0 %v8773_v17  ;;  %v4053_v8 = vld [vmem:[#allocation20 + $0x710] sm:$0xff]  ;;  %v9013_v17 = vpack.c.bf16 %v4058_v5, %v4054_v25  ;;  %v8791_v6 = vpack.c.bf16 %v4055_v18, %v4051_v38  ;;  %v4090_v38 = vld [vmem:[#allocation20 + $0x838] sm:$0xff] }
 0x9c3   :  { %8998 = vmatprep.subr.bf16.mxu1 %v8997_v9  ;;  %v4062_v9 = vld [vmem:[#allocation20 + $0x758] sm:$0xff]  ;;  %v9015_v34 = vpack.c.bf16 %v4057_v22, %v4053_v8  ;;  %v4081_v5 = vld [vmem:[#allocation20 + $0x7f0] sm:$0xff] }
 0x9c4   :  { %v12147_v18 = vld [vmem:[%s12361_s6 + $0x8] sm:$0x3f]  ;;  %v9027_v22 = vpack.c.bf16 %v4081_v5, %v4077_v53 }
 0x9c5   :  { %8776 = vmatpush1.bf16.msra.mxu0 %v8775_v11  ;;  %v4063_v11 = vld [vmem:[#allocation20 + $0x760] sm:$0xff]  ;;  %v4109_v53 = vld [vmem:[#allocation20 + $0x8d0] sm:$0xff]  ;;  %v4116_v5 = vld [vmem:[#allocation20 + $0x908] sm:$0xff] }
 0x9c6   :  { %9000 = vmatpush1.bf16.msra.mxu1 %v8999_v12  ;;  %8778 = vmatprep.subr.bf16.mxu0 %v8777_v52  ;;  %v4061_v12 = vld [vmem:[#allocation20 + $0x750] sm:$0xff]  ;;  %v9017_v52 = vpack.c.bf16 %v4066_v20, %v4062_v9  ;;  %v8795_v47 = vpack.c.bf16 %v4063_v11, %v4059_v50  ;;  %v4087_v9 = vld [vmem:[#allocation20 + $0x820] sm:$0xff]  ;;  %v4096_v50 = vld [vmem:[#allocation20 + $0x868] sm:$0xff]  ;;  %v12153_v11 = vrot.slane %v12147_v18, %v12062_v31 }
 0x9c7   :  { %9002 = vmatprep.subr.bf16.mxu1 %v9001_v45  ;;  %v4070_v45 = vld [vmem:[#allocation20 + $0x798] sm:$0xff]  ;;  %v9019_v0 = vpack.c.bf16 %v4065_v57, %v4061_v12  ;;  %v4085_v20 = vld [vmem:[#allocation20 + $0x810] sm:$0xff]  ;;  %v8807_v57 = vpack.c.bf16 %v4087_v9, %v4083_v21  ;;  %v4119_v21 = vld [vmem:[#allocation20 + $0x920] sm:$0xff] }
 0x9c8   :  { %v9021_v51 = vpack.c.bf16 %v4074_v56, %v4070_v45  ;;  %v4094_v12 = vld [vmem:[#allocation20 + $0x858] sm:$0xff]  ;;  %v4091_v45 = vld [vmem:[#allocation20 + $0x840] sm:$0xff]  ;;  %v4117_v9 = vld [vmem:[#allocation20 + $0x910] sm:$0xff] }
 0x9c9   :  { %8780 = vmatpush1.bf16.msra.mxu0 %v8779_v4  ;;  %v4071_v4 = vld [vmem:[#allocation20 + $0x7a0] sm:$0xff] }
 0x9ca   :  { %9004 = vmatpush1.bf16.msra.mxu1 %v9003_v59  ;;  %8782 = vmatprep.subr.bf16.mxu0 %v8781_v3  ;;  %v4069_v59 = vld [vmem:[#allocation20 + $0x790] sm:$0xff]  ;;  %v8799_v48 = vpack.c.bf16 %v4071_v4, %v4067_v63  ;;  %v4095_v56 = vld [vmem:[#allocation20 + $0x860] sm:$0xff]  ;;  %v4100_v63 = vld [vmem:[#allocation20 + $0x888] sm:$0xff] }
 0x9cb   :  { %9006 = vmatprep.subr.bf16.mxu1 %v9005_v33  ;;  %v4076_v33 = vld [vmem:[#allocation20 + $0x7c8] sm:$0xff]  ;;  %v9023_v2 = vpack.c.bf16 %v4073_v60, %v4069_v59  ;;  %v4331_v59 = vcombine.high %v12153_v11, %v12153_v11 }
 0x9cc   :  { %v8801_v27 = vpack.c.bf16 %v4080_v28, %v4076_v33  ;;  %v4104_v4 = vld [vmem:[#allocation20 + $0x8a8] sm:$0xff]  ;;  %v4099_v28 = vld [vmem:[#allocation20 + $0x880] sm:$0xff] }
 0x9cd   :  { %8784 = vmatpush1.bf16.msra.mxu0 %v8783_v15  ;;  %v4082_v15 = vld [vmem:[#allocation20 + $0x7f8] sm:$0xff]  ;;  %v8813_v33 = vpack.c.bf16 %v4104_v4, %v4100_v63  ;;  %v4136_v63 = vld [vmem:[#allocation20 + $0x9a8] sm:$0xff] }
 0x9ce   :  { %9008 = vmatpush1.bf16.msra.mxu1 %v9007_v29  ;;  %8786 = vmatprep.subr.bf16.mxu0 %v8785_v46  ;;  %v9025_v25 = vpack.c.bf16 %v4082_v15, %v4078_v39  ;;  %v4105_v39 = vld [vmem:[#allocation20 + $0x8b0] sm:$0xff]  ;;  %v4108_v15 = vld [vmem:[#allocation20 + $0x8c8] sm:$0xff]  ;;  %v4134_v4 = vld [vmem:[#allocation20 + $0x998] sm:$0xff] }
 0x9cf   :  { %9010 = vmatprep.subr.bf16.mxu1 %v9009_v1  ;;  %v4075_v1 = vld [vmem:[#allocation20 + $0x7c0] sm:$0xff] }
 0x9d1   :  { %8788 = vmatpush1.bf16.msra.mxu0 %v8787_v30  ;;  %v4084_v30 = vld [vmem:[#allocation20 + $0x808] sm:$0xff] }
 0x9d2   :  { %9012 = vmatpush1.bf16.msra.mxu1 %v9011_v40  ;;  %8790 = vmatprep.subr.bf16.mxu0 %v8789_v37  ;;  %v4088_v40 = vld [vmem:[#allocation20 + $0x828] sm:$0xff]  ;;  %v4086_v37 = vld [vmem:[#allocation20 + $0x818] sm:$0xff] }
 0x9d3   :  { %9014 = vmatprep.subr.bf16.mxu1 %v9013_v17  ;;  %v8803_v17 = vpack.c.bf16 %v4079_v44, %v4075_v1  ;;  %v8805_v35 = vpack.c.bf16 %v4088_v40, %v4084_v30  ;;  %v4107_v1 = vld [vmem:[#allocation20 + $0x8c0] sm:$0xff]  ;;  %v4120_v30 = vld [vmem:[#allocation20 + $0x928] sm:$0xff]  ;;  %v4118_v40 = vld [vmem:[#allocation20 + $0x918] sm:$0xff] }
 0x9d4   :  { %v4111_v44 = vld [vmem:[#allocation20 + $0x8e0] sm:$0xff] }
 0x9d5   :  { %8792 = vmatpush1.bf16.msra.mxu0 %v8791_v6  ;;  %v9029_v6 = vpack.c.bf16 %v4090_v38, %v4086_v37  ;;  %v4122_v37 = vld [vmem:[#allocation20 + $0x938] sm:$0xff]  ;;  %v8819_v38 = vpack.c.bf16 %v4111_v44, %v4107_v1  ;;  %v4141_v1 = vld [vmem:[#allocation20 + $0x9d0] sm:$0xff] }
 0x9d6   :  { %9016 = vmatpush1.bf16.msra.mxu1 %v9015_v34  ;;  %8794 = vmatprep.subr.bf16.mxu0 %v8793_v62  ;;  %v4089_v34 = vld [vmem:[#allocation20 + $0x830] sm:$0xff]  ;;  %v4092_v62 = vld [vmem:[#allocation20 + $0x848] sm:$0xff] }
 0x9d7   :  { %v7566_v3 = vpop.f32.mrb[116].mxu0  ;;  %v7601_v43 = vpop.f32.mrb[100].mxu1  ;;  %9018 = vmatprep.subr.bf16.mxu1 %v9017_v52  ;;  %v4098_v52 = vld [vmem:[#allocation20 + $0x878] sm:$0xff]  ;;  %v9031_v58 = vpack.c.bf16 %v4089_v34, %v4085_v20  ;;  %v8809_v19 = vpack.c.bf16 %v4096_v50, %v4092_v62  ;;  %v9045_v20 = vpack.c.bf16 %v4122_v37, %v4118_v40  ;;  %v4124_v34 = vld [vmem:[#allocation20 + $0x948] sm:$0xff] }
 0x9d8   :  { %v7567_v61 = vpop.f32.mrb[117].mxu0  ;;  %v7602_v14 = vpop.f32.mrb[101].mxu1  ;;  %v4128_v62 = vld [vmem:[#allocation20 + $0x968] sm:$0xff]  ;;  %v4126_v50 = vld [vmem:[#allocation20 + $0x958] sm:$0xff] }
 0x9d9   :  { %v7568_v29 = vadd.f32 %v7567_v61, %v7566_v3  ;;  %v7603_v46 = vadd.f32 %v7602_v14, %v7601_v43  ;;  %8796 = vmatpush1.bf16.msra.mxu0 %v8795_v47  ;;  %v4093_v47 = vld [vmem:[#allocation20 + $0x850] sm:$0xff]  ;;  %v4102_v3 = vld [vmem:[#allocation20 + $0x898] sm:$0xff] }
 0x9da   :  { %9020 = vmatpush1.bf16.msra.mxu1 %v9019_v0  ;;  %8798 = vmatprep.subr.bf16.mxu0 %v8797_v54  ;;  %v9033_v0 = vpack.c.bf16 %v4098_v52, %v4094_v12  ;;  %v4097_v54 = vld [vmem:[#allocation20 + $0x870] sm:$0xff]  ;;  %v4106_v43 = vld [vmem:[#allocation20 + $0x8b8] sm:$0xff] }
 0x9db   :  { %v3612_v13 = vadd.f32 %v7568_v29, %v7355_v7  ;;  %9022 = vmatprep.subr.bf16.mxu1 %v9021_v51  ;;  %v8811_v51 = vpack.c.bf16 %v4095_v56, %v4091_v45  ;;  %v9035_v60 = vpack.c.bf16 %v4097_v54, %v4093_v47  ;;  %v4103_v7 = vld [vmem:[#allocation20 + $0x8a0] sm:$0xff]  ;;  %v4101_v61 = vld [vmem:[#allocation20 + $0x890] sm:$0xff]  ;;  %v9037_v14 = vpack.c.bf16 %v4106_v43, %v4102_v3  ;;  %v4112_v29 = vld [vmem:[#allocation20 + $0x8e8] sm:$0xff] }
 0x9dc   :  { %v4130_v12 = vld [vmem:[#allocation20 + $0x978] sm:$0xff]  ;;  %v4127_v45 = vld [vmem:[#allocation20 + $0x960] sm:$0xff]  ;;  %v4125_v56 = vld [vmem:[#allocation20 + $0x950] sm:$0xff] }
 0x9dd   :  { %v12149_v8 = vadd.f32 %v7603_v46, %v3612_v13  ;;  %8800 = vmatpush1.bf16.msra.mxu0 %v8799_v48  ;;  %v4110_v46 = vld [vmem:[#allocation20 + $0x8d8] sm:$0xff]  ;;  %v9049_v47 = vpack.c.bf16 %v4130_v12, %v4126_v50  ;;  %v4132_v54 = vld [vmem:[#allocation20 + $0x988] sm:$0xff] }
 0x9de   :  { %9024 = vmatpush1.bf16.msra.mxu1 %v9023_v2  ;;  %8802 = vmatprep.subr.bf16.mxu0 %v8801_v27  ;;  %v4114_v48 = vld [vmem:[#allocation20 + $0x8f8] sm:$0xff]  ;;  %v8815_v2 = vpack.c.bf16 %v4103_v7, %v4099_v28  ;;  %v8817_v27 = vpack.c.bf16 %v4112_v29, %v4108_v15  ;;  %v4133_v28 = vld [vmem:[#allocation20 + $0x990] sm:$0xff] }
 0x9df   :  { %9026 = vmatprep.subr.bf16.mxu1 %v9025_v25  ;;  %v9041_v13 = vpack.c.bf16 %v4114_v48, %v4110_v46  ;;  %v4113_v25 = vld [vmem:[#allocation20 + $0x8f0] sm:$0xff]  ;;  %v4142_v15 = vld [vmem:[#allocation20 + $0x9d8] sm:$0xff] }
 0x9e0   :  { %v4146_v29 = vld [vmem:[#allocation20 + $0x9f8] sm:$0xff] }
 0x9e1   :  { %8804 = vmatpush1.bf16.msra.mxu0 %v8803_v17  ;;  %v9043_v17 = vpack.c.bf16 %v4113_v25, %v4109_v53  ;;  %v9057_v44 = vpack.c.bf16 %v4146_v29, %v4142_v15  ;;  %v4145_v53 = vld [vmem:[#allocation20 + $0x9f0] sm:$0xff]  ;;  %v4152_v25 = vld [vmem:[#allocation20 + $0xa28] sm:$0xff] }
 0x9e2   :  { %9028 = vmatpush1.bf16.msra.mxu1 %v9027_v22  ;;  %8806 = vmatprep.subr.bf16.mxu0 %v8805_v35  ;;  %v8821_v22 = vpack.c.bf16 %v4120_v30, %v4116_v5  ;;  %v4115_v35 = vld [vmem:[#allocation20 + $0x900] sm:$0xff]  ;;  %v4150_v5 = vld [vmem:[#allocation20 + $0xa18] sm:$0xff]  ;;  %v9059_v37 = vpack.c.bf16 %v4145_v53, %v4141_v1  ;;  %v4177_v1 = vld [vmem:[#allocation20 + $0xaf0] sm:$0xff] }
 0x9e3   :  { %9030 = vmatprep.subr.bf16.mxu1 %v9029_v6  ;;  %v4121_v6 = vld [vmem:[#allocation20 + $0x930] sm:$0xff]  ;;  %v8823_v52 = vpack.c.bf16 %v4119_v21, %v4115_v35  ;;  %v4154_v30 = vld [vmem:[#allocation20 + $0xa38] sm:$0xff]  ;;  %v4184_v53 = vld [vmem:[#allocation20 + $0xb28] sm:$0xff] }
 0x9e4   :  { %4475 = vmatmul.mubr.f32.vlgmr.msra.gmra.mrb[120].mxu0 %v12138_v49  ;;  %v4149_v35 = vld [vmem:[#allocation20 + $0xa10] sm:$0xff]  ;;  %v9061_v21 = vpack.c.bf16 %v4154_v30, %v4150_v5 }
 0x9e5   :  { %8808 = vmatpush1.bf16.msra.mxu0 %v8807_v57  ;;  %4759 = vmatmul.mubr.f32.vlgmr.msra.gmra.mrb[104].mxu1 %v12138_v49  ;;  %v9039_v49 = vpack.c.bf16 %v4105_v39, %v4101_v61  ;;  %v9047_v57 = vpack.c.bf16 %v4121_v6, %v4117_v9  ;;  %v4137_v61 = vld [vmem:[#allocation20 + $0x9b0] sm:$0xff]  ;;  %v4144_v39 = vld [vmem:[#allocation20 + $0x9e8] sm:$0xff] }
 0x9e6   :  { %9032 = vmatpush1.bf16.msra.mxu1 %v9031_v58  ;;  %8810 = vmatprep.subr.bf16.mxu0 %v8809_v19  ;;  %v8825_v58 = vpack.c.bf16 %v4128_v62, %v4124_v34  ;;  %v4123_v19 = vld [vmem:[#allocation20 + $0x940] sm:$0xff]  ;;  %v9055_v48 = vpack.c.bf16 %v4137_v61, %v4133_v28  ;;  %v4153_v9 = vld [vmem:[#allocation20 + $0xa30] sm:$0xff]  ;;  %v4160_v6 = vld [vmem:[#allocation20 + $0xa68] sm:$0xff] }
 0x9e7   :  { %9034 = vmatprep.subr.bf16.mxu1 %v9033_v0  ;;  %4545 = vmatprep.mubr.f32.mxu0 %v4331_v59  ;;  %v4129_v0 = vld [vmem:[#allocation20 + $0x970] sm:$0xff]  ;;  %v8827_v3 = vpack.c.bf16 %v4127_v45, %v4123_v19  ;;  %v4158_v34 = vld [vmem:[#allocation20 + $0xa58] sm:$0xff]  ;;  %v9063_v12 = vpack.c.bf16 %v4153_v9, %v4149_v35  ;;  %v4176_v61 = vld [vmem:[#allocation20 + $0xae8] sm:$0xff] }
 0x9e8   :  { %4829 = vmatprep.mubr.f32.mxu1 %v4331_v59  ;;  %v4138_v59 = vld [vmem:[#allocation20 + $0x9b8] sm:$0xff]  ;;  %v9051_v43 = vpack.c.bf16 %v4129_v0, %v4125_v56  ;;  %v4157_v19 = vld [vmem:[#allocation20 + $0xa50] sm:$0xff]  ;;  %v4168_v0 = vld [vmem:[#allocation20 + $0xaa8] sm:$0xff] }
 0x9e9   :  { %8812 = vmatpush1.bf16.msra.mxu0 %v8811_v51  ;;  %v8829_v51 = vpack.c.bf16 %v4136_v63, %v4132_v54  ;;  %v9053_v7 = vpack.c.bf16 %v4138_v59, %v4134_v4  ;;  %v4162_v62 = vld [vmem:[#allocation20 + $0xa78] sm:$0xff]  ;;  %v4161_v56 = vld [vmem:[#allocation20 + $0xa70] sm:$0xff]  ;;  %v4192_v9 = vld [vmem:[#allocation20 + $0xb68] sm:$0xff] }
 0x9ea   :  { %9036 = vmatpush1.bf16.msra.mxu1 %v9035_v60  ;;  %8814 = vmatprep.subr.bf16.mxu0 %v8813_v33  ;;  %v4131_v60 = vld [vmem:[#allocation20 + $0x980] sm:$0xff]  ;;  %v9065_v45 = vpack.c.bf16 %v4162_v62, %v4158_v34  ;;  %v4166_v54 = vld [vmem:[#allocation20 + $0xa98] sm:$0xff]  ;;  %v9067_v59 = vpack.c.bf16 %v4161_v56, %v4157_v19  ;;  %v4169_v28 = vld [vmem:[#allocation20 + $0xab0] sm:$0xff] }
 0x9eb   :  { %9038 = vmatprep.subr.bf16.mxu1 %v9037_v14  ;;  %v4135_v33 = vld [vmem:[#allocation20 + $0x9a0] sm:$0xff]  ;;  %v4140_v14 = vld [vmem:[#allocation20 + $0x9c8] sm:$0xff]  ;;  %v4170_v63 = vld [vmem:[#allocation20 + $0xab8] sm:$0xff] }
 0x9ec   :  { %v8831_v46 = vpack.c.bf16 %v4135_v33, %v4131_v60  ;;  %v4165_v60 = vld [vmem:[#allocation20 + $0xa90] sm:$0xff]  ;;  %v9069_v33 = vpack.c.bf16 %v4170_v63, %v4166_v54  ;;  %v4200_v56 = vld [vmem:[#allocation20 + $0xba8] sm:$0xff] }
 0x9ed   :  { %8816 = vmatpush1.bf16.msra.mxu0 %v8815_v2  ;;  %v8833_v2 = vpack.c.bf16 %v4144_v39, %v4140_v14  ;;  %v4174_v14 = vld [vmem:[#allocation20 + $0xad8] sm:$0xff]  ;;  %v9071_v29 = vpack.c.bf16 %v4169_v28, %v4165_v60  ;;  %v4185_v35 = vld [vmem:[#allocation20 + $0xb30] sm:$0xff]  ;;  %v4208_v28 = vld [vmem:[#allocation20 + $0xbe8] sm:$0xff] }
 0x9ee   :  { %9040 = vmatpush1.bf16.msra.mxu1 %v9039_v49  ;;  %8818 = vmatprep.subr.bf16.mxu0 %v8817_v27  ;;  %v4139_v49 = vld [vmem:[#allocation20 + $0x9c0] sm:$0xff]  ;;  %v4178_v39 = vld [vmem:[#allocation20 + $0xaf8] sm:$0xff]  ;;  %v4193_v19 = vld [vmem:[#allocation20 + $0xb70] sm:$0xff] }
 0x9ef   :  { %9042 = vmatprep.subr.bf16.mxu1 %v9041_v13  ;;  %v4143_v27 = vld [vmem:[#allocation20 + $0x9e0] sm:$0xff]  ;;  %v4148_v13 = vld [vmem:[#allocation20 + $0xa08] sm:$0xff]  ;;  %v4201_v60 = vld [vmem:[#allocation20 + $0xbb0] sm:$0xff] }
 0x9f0   :  { %v8835_v40 = vpack.c.bf16 %v4143_v27, %v4139_v49  ;;  %v4173_v49 = vld [vmem:[#allocation20 + $0xad0] sm:$0xff]  ;;  %v9073_v27 = vpack.c.bf16 %v4178_v39, %v4174_v14 }
 0x9f1   :  { %8820 = vmatpush1.bf16.msra.mxu0 %v8819_v38  ;;  %v8837_v38 = vpack.c.bf16 %v4152_v25, %v4148_v13  ;;  %v4182_v13 = vld [vmem:[#allocation20 + $0xb18] sm:$0xff]  ;;  %v9075_v30 = vpack.c.bf16 %v4177_v1, %v4173_v49  ;;  %v4209_v49 = vld [vmem:[#allocation20 + $0xbf0] sm:$0xff]  ;;  %v4216_v1 = vld [vmem:[#allocation20 + $0xc28] sm:$0xff] }
 0x9f2   :  { %9044 = vmatpush1.bf16.msra.mxu1 %v9043_v17  ;;  %8822 = vmatprep.subr.bf16.mxu0 %v8821_v22  ;;  %v4147_v17 = vld [vmem:[#allocation20 + $0xa00] sm:$0xff]  ;;  %v4186_v25 = vld [vmem:[#allocation20 + $0xb38] sm:$0xff] }
 0x9f3   :  { %9046 = vmatprep.subr.bf16.mxu1 %v9045_v20  ;;  %v4151_v22 = vld [vmem:[#allocation20 + $0xa20] sm:$0xff]  ;;  %v4156_v20 = vld [vmem:[#allocation20 + $0xa48] sm:$0xff] }
 0x9f4   :  { %v8839_v50 = vpack.c.bf16 %v4151_v22, %v4147_v17  ;;  %v4181_v17 = vld [vmem:[#allocation20 + $0xb10] sm:$0xff]  ;;  %v9077_v22 = vpack.c.bf16 %v4186_v25, %v4182_v13 }
 0x9f5   :  { %8824 = vmatpush1.bf16.msra.mxu0 %v8823_v52  ;;  %v8841_v52 = vpack.c.bf16 %v4160_v6, %v4156_v20  ;;  %v4190_v20 = vld [vmem:[#allocation20 + $0xb58] sm:$0xff]  ;;  %v9079_v62 = vpack.c.bf16 %v4185_v35, %v4181_v17  ;;  %v4217_v17 = vld [vmem:[#allocation20 + $0xc30] sm:$0xff]  ;;  %v4224_v35 = vld [vmem:[#allocation20 + $0xc68] sm:$0xff] }
 0x9f6   :  { %9048 = vmatpush1.bf16.msra.mxu1 %v9047_v57  ;;  %8826 = vmatprep.subr.bf16.mxu0 %v8825_v58  ;;  %v4155_v57 = vld [vmem:[#allocation20 + $0xa40] sm:$0xff]  ;;  %v4194_v6 = vld [vmem:[#allocation20 + $0xb78] sm:$0xff] }
 0x9f7   :  { %9050 = vmatprep.subr.bf16.mxu1 %v9049_v47  ;;  %v4159_v58 = vld [vmem:[#allocation20 + $0xa60] sm:$0xff]  ;;  %v4164_v47 = vld [vmem:[#allocation20 + $0xa88] sm:$0xff] }
 0x9f8   :  { %v8843_v4 = vpack.c.bf16 %v4159_v58, %v4155_v57  ;;  %v4189_v57 = vld [vmem:[#allocation20 + $0xb50] sm:$0xff]  ;;  %v9081_v58 = vpack.c.bf16 %v4194_v6, %v4190_v20 }
 0x9f9   :  { %8828 = vmatpush1.bf16.msra.mxu0 %v8827_v3  ;;  %v8845_v3 = vpack.c.bf16 %v4168_v0, %v4164_v47  ;;  %v4198_v47 = vld [vmem:[#allocation20 + $0xb98] sm:$0xff]  ;;  %v9083_v63 = vpack.c.bf16 %v4193_v19, %v4189_v57  ;;  %v4225_v57 = vld [vmem:[#allocation20 + $0xc70] sm:$0xff]  ;;  %v4232_v19 = vld [vmem:[#allocation20 + $0xca8] sm:$0xff] }
 0x9fa   :  { %9052 = vmatpush1.bf16.msra.mxu1 %v9051_v43  ;;  %8830 = vmatprep.subr.bf16.mxu0 %v8829_v51  ;;  %v4163_v43 = vld [vmem:[#allocation20 + $0xa80] sm:$0xff]  ;;  %v4202_v0 = vld [vmem:[#allocation20 + $0xbb8] sm:$0xff] }
 0x9fb   :  { %9054 = vmatprep.subr.bf16.mxu1 %v9053_v7  ;;  %v4167_v51 = vld [vmem:[#allocation20 + $0xaa0] sm:$0xff]  ;;  %v4172_v7 = vld [vmem:[#allocation20 + $0xac8] sm:$0xff] }
 0x9fc   :  { %v8847_v15 = vpack.c.bf16 %v4167_v51, %v4163_v43  ;;  %v4197_v43 = vld [vmem:[#allocation20 + $0xb90] sm:$0xff]  ;;  %v9085_v51 = vpack.c.bf16 %v4202_v0, %v4198_v47 }
 0x9fd   :  { %8832 = vmatpush1.bf16.msra.mxu0 %v8831_v46  ;;  %v8849_v46 = vpack.c.bf16 %v4176_v61, %v4172_v7  ;;  %v4206_v7 = vld [vmem:[#allocation20 + $0xbd8] sm:$0xff]  ;;  %v9087_v39 = vpack.c.bf16 %v4201_v60, %v4197_v43  ;;  %v4233_v43 = vld [vmem:[#allocation20 + $0xcb0] sm:$0xff]  ;;  %v4240_v60 = vld [vmem:[#allocation20 + $0xce8] sm:$0xff] }
 0x9fe   :  { %9056 = vmatpush1.bf16.msra.mxu1 %v9055_v48  ;;  %8834 = vmatprep.subr.bf16.mxu0 %v8833_v2  ;;  %v4171_v48 = vld [vmem:[#allocation20 + $0xac0] sm:$0xff]  ;;  %v4210_v61 = vld [vmem:[#allocation20 + $0xbf8] sm:$0xff] }
 0x9ff   :  { %9058 = vmatprep.subr.bf16.mxu1 %v9057_v44  ;;  %v4175_v2 = vld [vmem:[#allocation20 + $0xae0] sm:$0xff]  ;;  %v4180_v44 = vld [vmem:[#allocation20 + $0xb08] sm:$0xff] }
 0xa00   :  { %v8851_v5 = vpack.c.bf16 %v4175_v2, %v4171_v48  ;;  %v4205_v48 = vld [vmem:[#allocation20 + $0xbd0] sm:$0xff]  ;;  %v9089_v2 = vpack.c.bf16 %v4210_v61, %v4206_v7 }
 0xa01   :  { %8836 = vmatpush1.bf16.msra.mxu0 %v8835_v40  ;;  %v8853_v40 = vpack.c.bf16 %v4184_v53, %v4180_v44  ;;  %v4214_v44 = vld [vmem:[#allocation20 + $0xc18] sm:$0xff]  ;;  %v9091_v25 = vpack.c.bf16 %v4209_v49, %v4205_v48  ;;  %v4244_v48 = vld [vmem:[#allocation20 + $0xd08] sm:$0xff] }
 0xa02   :  { %9060 = vmatpush1.bf16.msra.mxu1 %v9059_v37  ;;  %8838 = vmatprep.subr.bf16.mxu0 %v8837_v38  ;;  %v4179_v37 = vld [vmem:[#allocation20 + $0xb00] sm:$0xff]  ;;  %v4218_v53 = vld [vmem:[#allocation20 + $0xc38] sm:$0xff] }
 0xa03   :  { %9062 = vmatprep.subr.bf16.mxu1 %v9061_v21  ;;  %v4183_v38 = vld [vmem:[#allocation20 + $0xb20] sm:$0xff]  ;;  %v4188_v21 = vld [vmem:[#allocation20 + $0xb48] sm:$0xff]  ;;  %v4246_v49 = vld [vmem:[#allocation20 + $0xd18] sm:$0xff] }
 0xa04   :  { %v8855_v34 = vpack.c.bf16 %v4183_v38, %v4179_v37  ;;  %v4213_v37 = vld [vmem:[#allocation20 + $0xc10] sm:$0xff]  ;;  %v9093_v38 = vpack.c.bf16 %v4218_v53, %v4214_v44 }
 0xa05   :  { %8840 = vmatpush1.bf16.msra.mxu0 %v8839_v50  ;;  %v8857_v50 = vpack.c.bf16 %v4192_v9, %v4188_v21  ;;  %v4222_v21 = vld [vmem:[#allocation20 + $0xc58] sm:$0xff]  ;;  %v9095_v6 = vpack.c.bf16 %v4217_v17, %v4213_v37  ;;  %v4252_v37 = vld [vmem:[#allocation20 + $0xd48] sm:$0xff] }
 0xa06   :  { %9064 = vmatpush1.bf16.msra.mxu1 %v9063_v12  ;;  %8842 = vmatprep.subr.bf16.mxu0 %v8841_v52  ;;  %v4187_v12 = vld [vmem:[#allocation20 + $0xb40] sm:$0xff]  ;;  %v4226_v9 = vld [vmem:[#allocation20 + $0xc78] sm:$0xff] }
 0xa07   :  { %9066 = vmatprep.subr.bf16.mxu1 %v9065_v45  ;;  %v4191_v52 = vld [vmem:[#allocation20 + $0xb60] sm:$0xff]  ;;  %v4196_v45 = vld [vmem:[#allocation20 + $0xb88] sm:$0xff]  ;;  %v4254_v17 = vld [vmem:[#allocation20 + $0xd58] sm:$0xff] }
 0xa08   :  { %v8859_v54 = vpack.c.bf16 %v4191_v52, %v4187_v12  ;;  %v4221_v12 = vld [vmem:[#allocation20 + $0xc50] sm:$0xff]  ;;  %v9097_v52 = vpack.c.bf16 %v4226_v9, %v4222_v21 }
 0xa09   :  { %8844 = vmatpush1.bf16.msra.mxu0 %v8843_v4  ;;  %v8861_v4 = vpack.c.bf16 %v4200_v56, %v4196_v45  ;;  %v4230_v45 = vld [vmem:[#allocation20 + $0xc98] sm:$0xff]  ;;  %v9099_v0 = vpack.c.bf16 %v4225_v57, %v4221_v12  ;;  %v4260_v12 = vld [vmem:[#allocation20 + $0xd88] sm:$0xff] }
 0xa0a   :  { %9068 = vmatpush1.bf16.msra.mxu1 %v9067_v59  ;;  %8846 = vmatprep.subr.bf16.mxu0 %v8845_v3  ;;  %v4195_v59 = vld [vmem:[#allocation20 + $0xb80] sm:$0xff]  ;;  %v4234_v56 = vld [vmem:[#allocation20 + $0xcb8] sm:$0xff] }
 0xa0b   :  { %9070 = vmatprep.subr.bf16.mxu1 %v9069_v33  ;;  %v4199_v3 = vld [vmem:[#allocation20 + $0xba0] sm:$0xff]  ;;  %v4204_v33 = vld [vmem:[#allocation20 + $0xbc8] sm:$0xff]  ;;  %v4262_v57 = vld [vmem:[#allocation20 + $0xd98] sm:$0xff] }
 0xa0c   :  { %v8863_v14 = vpack.c.bf16 %v4199_v3, %v4195_v59  ;;  %v4229_v59 = vld [vmem:[#allocation20 + $0xc90] sm:$0xff]  ;;  %v9101_v3 = vpack.c.bf16 %v4234_v56, %v4230_v45 }
 0xa0d   :  { %8848 = vmatpush1.bf16.msra.mxu0 %v8847_v15  ;;  %v8865_v15 = vpack.c.bf16 %v4208_v28, %v4204_v33  ;;  %v4238_v33 = vld [vmem:[#allocation20 + $0xcd8] sm:$0xff]  ;;  %v9103_v7 = vpack.c.bf16 %v4233_v43, %v4229_v59  ;;  %v4265_v59 = vld [vmem:[#allocation20 + $0xdb0] sm:$0xff]  ;;  %v4272_v43 = vld [vmem:[#allocation20 + $0xde8] sm:$0xff] }
 0xa0e   :  { %9072 = vmatpush1.bf16.msra.mxu1 %v9071_v29  ;;  %8850 = vmatprep.subr.bf16.mxu0 %v8849_v46  ;;  %v4203_v29 = vld [vmem:[#allocation20 + $0xbc0] sm:$0xff]  ;;  %v4242_v28 = vld [vmem:[#allocation20 + $0xcf8] sm:$0xff] }
 0xa0f   :  { %9074 = vmatprep.subr.bf16.mxu1 %v9073_v27  ;;  %v4207_v46 = vld [vmem:[#allocation20 + $0xbe0] sm:$0xff]  ;;  %v4212_v27 = vld [vmem:[#allocation20 + $0xc08] sm:$0xff] }
 0xa10   :  { %v8867_v13 = vpack.c.bf16 %v4207_v46, %v4203_v29  ;;  %v9105_v29 = vpack.c.bf16 %v4242_v28, %v4238_v33  ;;  %v4241_v46 = vld [vmem:[#allocation20 + $0xcf0] sm:$0xff]  ;;  %v4270_v33 = vld [vmem:[#allocation20 + $0xdd8] sm:$0xff] }
 0xa11   :  { %8852 = vmatpush1.bf16.msra.mxu0 %v8851_v5  ;;  %v8869_v5 = vpack.c.bf16 %v4216_v1, %v4212_v27  ;;  %v4250_v27 = vld [vmem:[#allocation20 + $0xd38] sm:$0xff] }
 0xa12   :  { %9076 = vmatpush1.bf16.msra.mxu1 %v9075_v30  ;;  %8854 = vmatprep.subr.bf16.mxu0 %v8853_v40  ;;  %v4211_v30 = vld [vmem:[#allocation20 + $0xc00] sm:$0xff]  ;;  %v4274_v28 = vld [vmem:[#allocation20 + $0xdf8] sm:$0xff] }
 0xa13   :  { %9078 = vmatprep.subr.bf16.mxu1 %v9077_v22  ;;  %v4215_v40 = vld [vmem:[#allocation20 + $0xc20] sm:$0xff]  ;;  %v4220_v22 = vld [vmem:[#allocation20 + $0xc48] sm:$0xff] }
 0xa14   :  { %v8871_v20 = vpack.c.bf16 %v4215_v40, %v4211_v30  ;;  %v9109_v30 = vpack.c.bf16 %v4250_v27, %v4246_v49  ;;  %v4249_v40 = vld [vmem:[#allocation20 + $0xd30] sm:$0xff]  ;;  %v9121_v49 = vpack.c.bf16 %v4274_v28, %v4270_v33  ;;  %v4938_v28 = vld [vmem:[#allocation23 + $0xd8] sm:$0xff] }
 0xa15   :  { %8856 = vmatpush1.bf16.msra.mxu0 %v8855_v34  ;;  %v8873_v34 = vpack.c.bf16 %v4224_v35, %v4220_v22  ;;  %v4258_v22 = vld [vmem:[#allocation20 + $0xd78] sm:$0xff]  ;;  %v4273_v27 = vld [vmem:[#allocation20 + $0xdf0] sm:$0xff] }
 0xa16   :  { %9080 = vmatpush1.bf16.msra.mxu1 %v9079_v62  ;;  %8858 = vmatprep.subr.bf16.mxu0 %v8857_v50  ;;  %v4219_v62 = vld [vmem:[#allocation20 + $0xc40] sm:$0xff]  ;;  %v4936_v33 = vld [vmem:[#allocation23 + $0xc8] sm:$0xff] }
 0xa17   :  { %9082 = vmatprep.subr.bf16.mxu1 %v9081_v58  ;;  %v4223_v50 = vld [vmem:[#allocation20 + $0xc60] sm:$0xff]  ;;  %v4228_v58 = vld [vmem:[#allocation20 + $0xc88] sm:$0xff] }
 0xa18   :  { %v8875_v47 = vpack.c.bf16 %v4223_v50, %v4219_v62  ;;  %v9113_v62 = vpack.c.bf16 %v4258_v22, %v4254_v17  ;;  %v4257_v50 = vld [vmem:[#allocation20 + $0xd70] sm:$0xff] }
 0xa19   :  { %8860 = vmatpush1.bf16.msra.mxu0 %v8859_v54  ;;  %v8877_v54 = vpack.c.bf16 %v4232_v19, %v4228_v58  ;;  %v4266_v58 = vld [vmem:[#allocation20 + $0xdb8] sm:$0xff] }
 0xa1a   :  { %9084 = vmatpush1.bf16.msra.mxu1 %v9083_v63  ;;  %8862 = vmatprep.subr.bf16.mxu0 %v8861_v4  ;;  %v4227_v63 = vld [vmem:[#allocation20 + $0xc80] sm:$0xff] }
 0xa1b   :  { %9086 = vmatprep.subr.bf16.mxu1 %v9085_v51  ;;  %v4231_v4 = vld [vmem:[#allocation20 + $0xca0] sm:$0xff]  ;;  %v4236_v51 = vld [vmem:[#allocation20 + $0xcc8] sm:$0xff] }
 0xa1c   :  { %v8881_v61 = vpack.c.bf16 %v4240_v60, %v4236_v51 }
 0xa1d   :  { %8864 = vmatpush1.bf16.msra.mxu0 %v8863_v14  ;;  %v4235_v14 = vld [vmem:[#allocation20 + $0xcc0] sm:$0xff] }
 0xa1e   :  { %9088 = vmatpush1.bf16.msra.mxu1 %v9087_v39  ;;  %8866 = vmatprep.subr.bf16.mxu0 %v8865_v15  ;;  %v4239_v39 = vld [vmem:[#allocation20 + $0xce0] sm:$0xff]  ;;  %v4237_v15 = vld [vmem:[#allocation20 + $0xcd0] sm:$0xff] }
 0xa1f   :  { %9090 = vmatprep.subr.bf16.mxu1 %v9089_v2  ;;  %v4248_v2 = vld [vmem:[#allocation20 + $0xd28] sm:$0xff]  ;;  %v8883_v1 = vpack.c.bf16 %v4239_v39, %v4235_v14  ;;  %v9107_v44 = vpack.c.bf16 %v4241_v46, %v4237_v15  ;;  %v4271_v46 = vld [vmem:[#allocation20 + $0xde0] sm:$0xff] }
 0xa20   :  { %v8885_v53 = vpack.c.bf16 %v4248_v2, %v4244_v48  ;;  %v4269_v48 = vld [vmem:[#allocation20 + $0xdd0] sm:$0xff] }
 0xa21   :  { %8868 = vmatpush1.bf16.msra.mxu0 %v8867_v13  ;;  %v4243_v13 = vld [vmem:[#allocation20 + $0xd00] sm:$0xff] }
 0xa22   :  { %9092 = vmatpush1.bf16.msra.mxu1 %v9091_v25  ;;  %8870 = vmatprep.subr.bf16.mxu0 %v8869_v5  ;;  %v4247_v25 = vld [vmem:[#allocation20 + $0xd20] sm:$0xff]  ;;  %v4245_v5 = vld [vmem:[#allocation20 + $0xd10] sm:$0xff] }
 0xa23   :  { %9094 = vmatprep.subr.bf16.mxu1 %v9093_v38  ;;  %v4256_v38 = vld [vmem:[#allocation20 + $0xd68] sm:$0xff]  ;;  %v8887_v35 = vpack.c.bf16 %v4247_v25, %v4243_v13  ;;  %v9111_v21 = vpack.c.bf16 %v4249_v40, %v4245_v5  ;;  %v9123_v5 = vpack.c.bf16 %v4273_v27, %v4269_v48  ;;  %v4946_v27 = vld [vmem:[#allocation23 + $0x118] sm:$0xff] }
 0xa24   :  { %4546 = vmatmul.mubr.f32.vlgmr.msra.gmra.mrb[120].mxu0 %v12153_v11  ;;  %v8889_v9 = vpack.c.bf16 %v4256_v38, %v4252_v37  ;;  %v4911_v40 = vld [vmem:[#allocation23] sm:$0xff]  ;;  %v4913_v37 = vld [vmem:[#allocation23 + $0x10] sm:$0xff]  ;;  %v4918_v38 = vld [vmem:[#allocation23 + $0x38] sm:$0xff] }
 0xa25   :  { %8872 = vmatpush1.bf16.msra.mxu0 %v8871_v20  ;;  %4830 = vmatmul.mubr.f32.vlgmr.msra.gmra.mrb[104].mxu1 %v12153_v11  ;;  %v8879_v11 = vpack.c.bf16 %v4231_v4, %v4227_v63  ;;  %v4251_v20 = vld [vmem:[#allocation20 + $0xd40] sm:$0xff]  ;;  %v9117_v4 = vpack.c.bf16 %v4266_v58, %v4262_v57  ;;  %v9127_v22 = vpack.c.bf16 %v4913_v37, %v4911_v40 }
 0xa26   :  { %9096 = vmatpush1.bf16.msra.mxu1 %v9095_v6  ;;  %8874 = vmatprep.subr.bf16.mxu0 %v8873_v34  ;;  %v4255_v6 = vld [vmem:[#allocation20 + $0xd60] sm:$0xff]  ;;  %v4253_v34 = vld [vmem:[#allocation20 + $0xd50] sm:$0xff] }
 0xa27   :  { %9098 = vmatprep.subr.bf16.mxu1 %v9097_v52  ;;  %4616 = vmatprep.mubr.f32.mxu0 %v12357_v42  ;;  %v4264_v52 = vld [vmem:[#allocation20 + $0xda8] sm:$0xff]  ;;  %v8891_v19 = vpack.c.bf16 %v4255_v6, %v4251_v20  ;;  %v9115_v45 = vpack.c.bf16 %v4257_v50, %v4253_v34  ;;  %v4922_v20 = vld [vmem:[#allocation23 + $0x58] sm:$0xff]  ;;  %v4921_v50 = vld [vmem:[#allocation23 + $0x50] sm:$0xff] }
 0xa28   :  { %4900 = vmatprep.mubr.f32.mxu1 %v12357_v42  ;;  %v8893_v56 = vpack.c.bf16 %v4264_v52, %v4260_v12  ;;  %v4924_v12 = vld [vmem:[#allocation23 + $0x68] sm:$0xff]  ;;  %v4926_v52 = vld [vmem:[#allocation23 + $0x78] sm:$0xff]  ;;  %v4923_v58 = vld [vmem:[#allocation23 + $0x60] sm:$0xff] }
 0xa29   :  { %8876 = vmatpush1.bf16.msra.mxu0 %v8875_v47  ;;  %v4259_v47 = vld [vmem:[#allocation20 + $0xd80] sm:$0xff]  ;;  %v9137_v57 = vpack.c.bf16 %v4926_v52, %v4924_v12  ;;  %v4957_v12 = vld [vmem:[#allocation23 + $0x170] sm:$0xff]  ;;  %v4960_v52 = vld [vmem:[#allocation23 + $0x188] sm:$0xff] }
 0xa2a   :  { %9100 = vmatpush1.bf16.msra.mxu1 %v9099_v0  ;;  %8878 = vmatprep.subr.bf16.mxu0 %v8877_v54  ;;  %v4263_v0 = vld [vmem:[#allocation20 + $0xda0] sm:$0xff]  ;;  %v4261_v54 = vld [vmem:[#allocation20 + $0xd90] sm:$0xff] }
 0xa2b   :  { %9102 = vmatprep.subr.bf16.mxu1 %v9101_v3  ;;  %v4268_v3 = vld [vmem:[#allocation20 + $0xdc8] sm:$0xff]  ;;  %v9119_v39 = vpack.c.bf16 %v4265_v59, %v4261_v54  ;;  %v4934_v59 = vld [vmem:[#allocation23 + $0xb8] sm:$0xff] }
 0xa2c   :  { %v8897_v15 = vpack.c.bf16 %v4272_v43, %v4268_v3  ;;  %v4927_v54 = vld [vmem:[#allocation23 + $0x80] sm:$0xff] }
 0xa2d   :  { %8880 = vmatpush1.bf16.msra.mxu0 %v8879_v11  ;;  %v4939_v48 = vld [vmem:[#allocation23 + $0xe0] sm:$0xff] }
 0xa2e   :  { %9104 = vmatpush1.bf16.msra.mxu1 %v9103_v7  ;;  %8882 = vmatprep.subr.bf16.mxu0 %v8881_v61  ;;  %v8895_v61 = vpack.c.bf16 %v4263_v0, %v4259_v47 }
 0xa2f   :  { %9106 = vmatprep.subr.bf16.mxu1 %v9105_v29  ;;  %v4267_v29 = vld [vmem:[#allocation20 + $0xdc0] sm:$0xff] }
 0xa30   :  { %v8899_v25 = vpack.c.bf16 %v4271_v46, %v4267_v29 }
 0xa31   :  { %8884 = vmatpush1.bf16.msra.mxu0 %v8883_v1  ;;  %v4912_v1 = vld [vmem:[#allocation23 + $0x8] sm:$0xff] }
 0xa32   :  { %9108 = vmatpush1.bf16.msra.mxu1 %v9107_v44  ;;  %8886 = vmatprep.subr.bf16.mxu0 %v8885_v53  ;;  %v4914_v44 = vld [vmem:[#allocation23 + $0x18] sm:$0xff]  ;;  %v4316_v53 = vcombine.high %v12147_v18, %v12147_v18 }
 0xa33   :  { %9110 = vmatprep.subr.bf16.mxu1 %v9109_v30  ;;  %v9125_v30 = vpack.c.bf16 %v4914_v44, %v4912_v1 }
 0xa34   :  { %v4330_v17 = vrot.slane %v4316_v53, %v12062_v31  ;;  %v4943_v53 = vld [vmem:[#allocation23 + $0x100] sm:$0xff] }
 0xa35   :  { %8888 = vmatpush1.bf16.msra.mxu0 %v8887_v35  ;;  %v4915_v35 = vld [vmem:[#allocation23 + $0x20] sm:$0xff] }
 0xa36   :  { %9112 = vmatpush1.bf16.msra.mxu1 %v9111_v21  ;;  %8890 = vmatprep.subr.bf16.mxu0 %v8889_v9  ;;  %v4917_v21 = vld [vmem:[#allocation23 + $0x30] sm:$0xff]  ;;  %v4920_v9 = vld [vmem:[#allocation23 + $0x48] sm:$0xff] }
 0xa37   :  { %v7636_v63 = vpop.f32.mrb[118].mxu0  ;;  %9114 = vmatprep.subr.bf16.mxu1 %v9113_v62  ;;  %v9131_v6 = vpack.c.bf16 %v4917_v21, %v4915_v35  ;;  %v9133_v34 = vpack.c.bf16 %v4922_v20, %v4920_v9  ;;  %v4919_v62 = vld [vmem:[#allocation23 + $0x40] sm:$0xff]  ;;  %v4953_v9 = vld [vmem:[#allocation23 + $0x150] sm:$0xff]  ;;  %v4956_v20 = vld [vmem:[#allocation23 + $0x168] sm:$0xff] }
 0xa38   :  { %v7671_v51 = vpop.f32.mrb[102].mxu1  ;;  %v7637_v60 = vpop.f32.mrb[119].mxu0  ;;  %v9135_v31 = vpack.c.bf16 %v4921_v50, %v4919_v62  ;;  %v4951_v21 = vld [vmem:[#allocation23 + $0x140] sm:$0xff] }
 0xa39   :  { %v7638_v11 = vadd.f32 %v7637_v60, %v7636_v63  ;;  %v7672_v7 = vpop.f32.mrb[103].mxu1  ;;  %8892 = vmatpush1.bf16.msra.mxu0 %v8891_v19  ;;  %v4925_v19 = vld [vmem:[#allocation23 + $0x70] sm:$0xff]  ;;  %v4955_v50 = vld [vmem:[#allocation23 + $0x160] sm:$0xff] }
 0xa3a   :  { %v7673_v14 = vadd.f32 %v7672_v7, %v7671_v51  ;;  %9116 = vmatpush1.bf16.msra.mxu1 %v9115_v45  ;;  %8894 = vmatprep.subr.bf16.mxu0 %v8893_v56  ;;  %v4928_v45 = vld [vmem:[#allocation23 + $0x88] sm:$0xff]  ;;  %v4930_v56 = vld [vmem:[#allocation23 + $0x98] sm:$0xff]  ;;  %v9139_v47 = vpack.c.bf16 %v4925_v19, %v4923_v58  ;;  %v4929_v63 = vld [vmem:[#allocation23 + $0x90] sm:$0xff]  ;;  %v9149_v7 = vpack.c.bf16 %v4938_v28, %v4936_v33 }
 0xa3b   :  { %v3752_v2 = vadd.f32 %v7638_v11, %v12149_v8  ;;  %9118 = vmatprep.subr.bf16.mxu1 %v9117_v4  ;;  %v4916_v8 = vld [vmem:[#allocation23 + $0x28] sm:$0xff]  ;;  %v9141_v0 = vpack.c.bf16 %v4930_v56, %v4928_v45  ;;  %v9143_v3 = vpack.c.bf16 %v4929_v63, %v4927_v54  ;;  %v4931_v51 = vld [vmem:[#allocation23 + $0xa0] sm:$0xff]  ;;  %v4933_v60 = vld [vmem:[#allocation23 + $0xb0] sm:$0xff] }
 0xa3c   :  { %v9129_v18 = vpack.c.bf16 %v4918_v38, %v4916_v8  ;;  %v4932_v4 = vld [vmem:[#allocation23 + $0xa8] sm:$0xff]  ;;  %v9147_v11 = vpack.c.bf16 %v4933_v60, %v4931_v51  ;;  %v4947_v8 = vld [vmem:[#allocation23 + $0x120] sm:$0xff]  ;;  %v4949_v38 = vld [vmem:[#allocation23 + $0x130] sm:$0xff] }
 0xa3d   :  { %v12166_v13 = vadd.f32 %v7673_v14, %v3752_v2  ;;  %8896 = vmatpush1.bf16.msra.mxu0 %v8895_v61  ;;  %v9145_v43 = vpack.c.bf16 %v4934_v59, %v4932_v4  ;;  %v4935_v61 = vld [vmem:[#allocation23 + $0xc0] sm:$0xff]  ;;  %v4937_v14 = vld [vmem:[#allocation23 + $0xd0] sm:$0xff]  ;;  %v4964_v56 = vld [vmem:[#allocation23 + $0x1a8] sm:$0xff] }
 0xa3e   :  { %9120 = vmatpush1.bf16.msra.mxu1 %v9119_v39  ;;  %8898 = vmatprep.subr.bf16.mxu0 %v8897_v15  ;;  %v4940_v39 = vld [vmem:[#allocation23 + $0xe8] sm:$0xff]  ;;  %v4942_v15 = vld [vmem:[#allocation23 + $0xf8] sm:$0xff]  ;;  %v9151_v29 = vpack.c.bf16 %v4937_v14, %v4935_v61  ;;  %v4941_v2 = vld [vmem:[#allocation23 + $0xf0] sm:$0xff] }
 0xa3f   :  { %9122 = vmatprep.subr.bf16.mxu1 %v9121_v49  ;;  %v9153_v46 = vpack.c.bf16 %v4942_v15, %v4940_v39  ;;  %v4944_v49 = vld [vmem:[#allocation23 + $0x108] sm:$0xff]  ;;  %v9155_v1 = vpack.c.bf16 %v4941_v2, %v4939_v48  ;;  %v4959_v19 = vld [vmem:[#allocation23 + $0x180] sm:$0xff]  ;;  %v4961_v45 = vld [vmem:[#allocation23 + $0x190] sm:$0xff] }
 0xa40   :  { %v9157_v44 = vpack.c.bf16 %v4946_v27, %v4944_v49  ;;  %v4963_v63 = vld [vmem:[#allocation23 + $0x1a0] sm:$0xff]  ;;  %v4965_v4 = vld [vmem:[#allocation23 + $0x1b0] sm:$0xff]  ;;  %v4968_v59 = vld [vmem:[#allocation23 + $0x1c8] sm:$0xff] }
 0xa41   :  { %8900 = vmatpush1.bf16.msra.mxu0 %v8899_v25  ;;  %v4945_v25 = vld [vmem:[#allocation23 + $0x110] sm:$0xff]  ;;  %v4967_v60 = vld [vmem:[#allocation23 + $0x1c0] sm:$0xff] }
 0xa42   :  { %9124 = vmatpush1.bf16.msra.mxu1 %v9123_v5  ;;  %9126 = vmatprep.subr.bf16.mxu0 %v9125_v30  ;;  %v4948_v5 = vld [vmem:[#allocation23 + $0x128] sm:$0xff]  ;;  %v4950_v30 = vld [vmem:[#allocation23 + $0x138] sm:$0xff]  ;;  %v9159_v40 = vpack.c.bf16 %v4945_v25, %v4943_v53  ;;  %v4969_v33 = vld [vmem:[#allocation23 + $0x1d0] sm:$0xff] }
 0xa43   :  { %v9161_v37 = vpack.c.bf16 %v4950_v30, %v4948_v5  ;;  %v9183_v28 = vpack.c.bf16 %v4969_v33, %v4967_v60  ;;  %v4971_v14 = vld [vmem:[#allocation23 + $0x1e0] sm:$0xff]  ;;  %v4973_v39 = vld [vmem:[#allocation23 + $0x1f0] sm:$0xff] }
 0xa44   :  { %4617 = vmatmul.mubr.f32.vlgmr.msra.gmra.mrb[120].mxu0 %v4330_v17  ;;  %v9187_v15 = vpack.c.bf16 %v4973_v39, %v4971_v14  ;;  %v5211_v2 = vld [vmem:[#allocation26 + $0x80] sm:$0xff]  ;;  %v5212_v49 = vld [vmem:[#allocation26 + $0x88] sm:$0xff]  ;;  %v5213_v53 = vld [vmem:[#allocation26 + $0x90] sm:$0xff] }
 0xa45   :  { %4901 = vmatmul.mubr.f32.vlgmr.msra.gmra.mrb[104].mxu1 %v4330_v17  ;;  %9128 = vmatpush1.bf16.msra.mxu0 %v9127_v22  ;;  %v4952_v17 = vld [vmem:[#allocation23 + $0x148] sm:$0xff]  ;;  %v4954_v22 = vld [vmem:[#allocation23 + $0x158] sm:$0xff]  ;;  %v4975_v14 = vld [vmem:[#allocation23 + $0x200] sm:$0xff] }
 0xa46   :  { %9130 = vmatprep.subr.bf16.mxu0 %v9129_v18  ;;  %v9163_v18 = vpack.c.bf16 %v4949_v38, %v4947_v8  ;;  %v9165_v35 = vpack.c.bf16 %v4954_v22, %v4952_v17  ;;  %v5195_v27 = vld [vmem:[#allocation26] sm:$0xff]  ;;  %v5214_v25 = vld [vmem:[#allocation26 + $0x98] sm:$0xff]  ;;  %v5216_v38 = vld [vmem:[#allocation26 + $0xa8] sm:$0xff] }
 0xa47   :  { %v9257_v30 = vpack.c.bf16 %v5214_v25, %v5213_v53  ;;  %v5215_v8 = vld [vmem:[#allocation26 + $0xa0] sm:$0xff]  ;;  %v4977_v39 = vld [vmem:[#allocation23 + $0x210] sm:$0xff] }
 0xa48   :  { %v9261_v22 = vpack.c.bf16 %v5216_v38, %v5215_v8  ;;  %v4979_v53 = vld [vmem:[#allocation23 + $0x220] sm:$0xff]  ;;  %v4981_v25 = vld [vmem:[#allocation23 + $0x230] sm:$0xff] }
 0xa49   :  { %9132 = vmatpush1.bf16.msra.mxu0 %v9131_v6  ;;  %v4958_v6 = vld [vmem:[#allocation23 + $0x178] sm:$0xff]  ;;  %v4983_v38 = vld [vmem:[#allocation23 + $0x240] sm:$0xff] }
 0xa4a   :  { %9134 = vmatprep.subr.bf16.mxu0 %v9133_v34  ;;  %v9167_v34 = vpack.c.bf16 %v4953_v9, %v4951_v21  ;;  %v9169_v62 = vpack.c.bf16 %v4958_v6, %v4956_v20  ;;  %v5217_v21 = vld [vmem:[#allocation26 + $0xb0] sm:$0xff]  ;;  %v5218_v9 = vld [vmem:[#allocation26 + $0xb8] sm:$0xff] }
 0xa4b   :  { %v9265_v6 = vpack.c.bf16 %v5218_v9, %v5217_v21  ;;  %v4987_v9 = vld [vmem:[#allocation23 + $0x260] sm:$0xff] }
 0xa4d   :  { %9136 = vmatpush1.bf16.msra.mxu0 %v9135_v31  ;;  %v4962_v31 = vld [vmem:[#allocation23 + $0x198] sm:$0xff] }
 0xa4e   :  { %9138 = vmatprep.subr.bf16.mxu0 %v9137_v57  ;;  %v9171_v57 = vpack.c.bf16 %v4957_v12, %v4955_v50  ;;  %v9173_v58 = vpack.c.bf16 %v4962_v31, %v4960_v52  ;;  %v5219_v50 = vld [vmem:[#allocation26 + $0xc0] sm:$0xff]  ;;  %v5220_v12 = vld [vmem:[#allocation26 + $0xc8] sm:$0xff] }
 0xa4f   :  { %v9269_v31 = vpack.c.bf16 %v5220_v12, %v5219_v50  ;;  %v4991_v12 = vld [vmem:[#allocation23 + $0x280] sm:$0xff] }
 0xa51   :  { %9140 = vmatpush1.bf16.msra.mxu0 %v9139_v47  ;;  %v4966_v47 = vld [vmem:[#allocation23 + $0x1b8] sm:$0xff] }
 0xa52   :  { %9142 = vmatprep.subr.bf16.mxu0 %v9141_v0  ;;  %v9175_v0 = vpack.c.bf16 %v4961_v45, %v4959_v19  ;;  %v9177_v54 = vpack.c.bf16 %v4966_v47, %v4964_v56  ;;  %v5221_v19 = vld [vmem:[#allocation26 + $0xd0] sm:$0xff]  ;;  %v5222_v45 = vld [vmem:[#allocation26 + $0xd8] sm:$0xff] }
 0xa53   :  { %v9273_v47 = vpack.c.bf16 %v5222_v45, %v5221_v19  ;;  %v4995_v45 = vld [vmem:[#allocation23 + $0x2a0] sm:$0xff] }
 0xa55   :  { %9144 = vmatpush1.bf16.msra.mxu0 %v9143_v3  ;;  %v4970_v3 = vld [vmem:[#allocation23 + $0x1d8] sm:$0xff] }
 0xa56   :  { %9146 = vmatprep.subr.bf16.mxu0 %v9145_v43  ;;  %v9179_v43 = vpack.c.bf16 %v4965_v4, %v4963_v63  ;;  %v9181_v51 = vpack.c.bf16 %v4970_v3, %v4968_v59  ;;  %v5223_v63 = vld [vmem:[#allocation26 + $0xe0] sm:$0xff]  ;;  %v5224_v4 = vld [vmem:[#allocation26 + $0xe8] sm:$0xff] }
 0xa57   :  { %v9277_v3 = vpack.c.bf16 %v5224_v4, %v5223_v63  ;;  %v4999_v4 = vld [vmem:[#allocation23 + $0x2c0] sm:$0xff] }
 0xa59   :  { %9148 = vmatpush1.bf16.msra.mxu0 %v9147_v11  ;;  %v4972_v11 = vld [vmem:[#allocation23 + $0x1e8] sm:$0xff] }
 0xa5a   :  { %9150 = vmatprep.subr.bf16.mxu0 %v9149_v7  ;;  %v4974_v7 = vld [vmem:[#allocation23 + $0x1f8] sm:$0xff] }
 0xa5b   :  { %v9185_v61 = vpack.c.bf16 %v4974_v7, %v4972_v11 }
 0xa5d   :  { %9152 = vmatpush1.bf16.msra.mxu0 %v9151_v29  ;;  %v4976_v29 = vld [vmem:[#allocation23 + $0x208] sm:$0xff] }
 0xa5e   :  { %9154 = vmatprep.subr.bf16.mxu0 %v9153_v46  ;;  %v4978_v46 = vld [vmem:[#allocation23 + $0x218] sm:$0xff] }
 0xa5f   :  { %v9189_v48 = vpack.c.bf16 %v4978_v46, %v4976_v29  ;;  %v4980_v46 = vld [vmem:[#allocation23 + $0x228] sm:$0xff] }
 0xa61   :  { %9156 = vmatpush1.bf16.msra.mxu0 %v9155_v1  ;;  %v9253_v1 = vpack.c.bf16 %v5212_v49, %v5211_v2 }
 0xa62   :  { %9158 = vmatprep.subr.bf16.mxu0 %v9157_v44  ;;  %v5196_v44 = vld [vmem:[#allocation26 + $0x8] sm:$0xff] }
 0xa63   :  { %v9255_v5 = vpack.c.bf16 %v5196_v44, %v5195_v27  ;;  %9254 = vmatprep.subr.bf16.mxu1 %v9253_v1  ;;  %v9191_v27 = vpack.c.bf16 %v4977_v39, %v4975_v14  ;;  %v5010_v14 = vld [vmem:[#allocation23 + $0x318] sm:$0xff] }
 0xa65   :  { %9160 = vmatpush1.bf16.msra.mxu0 %v9159_v40  ;;  %v5197_v40 = vld [vmem:[#allocation26 + $0x10] sm:$0xff]  ;;  %9256 = vmatpush3.bf16.msra.mxu1 %v9255_v5 }
 0xa66   :  { %9162 = vmatprep.subr.bf16.mxu0 %v9161_v37  ;;  %v5198_v37 = vld [vmem:[#allocation26 + $0x18] sm:$0xff]  ;;  %9258 = vmatprep.subr.bf16.mxu1 %v9257_v30  ;;  %v4984_v30 = vld [vmem:[#allocation23 + $0x248] sm:$0xff] }
 0xa67   :  { %v9259_v17 = vpack.c.bf16 %v5198_v37, %v5197_v40  ;;  %v4986_v40 = vld [vmem:[#allocation23 + $0x258] sm:$0xff]  ;;  %v9195_v37 = vpack.c.bf16 %v4981_v25, %v4979_v53  ;;  %v5016_v53 = vld [vmem:[#allocation23 + $0x348] sm:$0xff] }
 0xa68   :  { %v9197_v8 = vpack.c.bf16 %v4986_v40, %v4984_v30  ;;  %v5018_v25 = vld [vmem:[#allocation23 + $0x358] sm:$0xff]  ;;  %v5015_v40 = vld [vmem:[#allocation23 + $0x340] sm:$0xff] }
 0xa69   :  { %9164 = vmatpush1.bf16.msra.mxu0 %v9163_v18  ;;  %v5199_v18 = vld [vmem:[#allocation26 + $0x20] sm:$0xff]  ;;  %9260 = vmatpush3.bf16.msra.mxu1 %v9259_v17  ;;  %v4985_v17 = vld [vmem:[#allocation23 + $0x250] sm:$0xff]  ;;  %v9229_v30 = vpack.c.bf16 %v5018_v25, %v5016_v53 }
 0xa6a   :  { %9166 = vmatprep.subr.bf16.mxu0 %v9165_v35  ;;  %v5200_v35 = vld [vmem:[#allocation26 + $0x28] sm:$0xff]  ;;  %9262 = vmatprep.subr.bf16.mxu1 %v9261_v22  ;;  %v5447_v53 = vld [vmem:[#allocation30 + $0x78] sm:$0xff] }
 0xa6b   :  { %v9263_v20 = vpack.c.bf16 %v5200_v35, %v5199_v18  ;;  %v4988_v22 = vld [vmem:[#allocation23 + $0x268] sm:$0xff]  ;;  %v4990_v18 = vld [vmem:[#allocation23 + $0x278] sm:$0xff]  ;;  %v9199_v35 = vpack.c.bf16 %v4985_v17, %v4983_v38 }
 0xa6c   :  { %v9201_v21 = vpack.c.bf16 %v4990_v18, %v4988_v22  ;;  %v5022_v38 = vld [vmem:[#allocation23 + $0x378] sm:$0xff]  ;;  %v5019_v18 = vld [vmem:[#allocation23 + $0x360] sm:$0xff] }
 0xa6d   :  { %9168 = vmatpush1.bf16.msra.mxu0 %v9167_v34  ;;  %v5201_v34 = vld [vmem:[#allocation26 + $0x30] sm:$0xff]  ;;  %9264 = vmatpush3.bf16.msra.mxu1 %v9263_v20 }
 0xa6e   :  { %9170 = vmatprep.subr.bf16.mxu0 %v9169_v62  ;;  %v5202_v62 = vld [vmem:[#allocation26 + $0x38] sm:$0xff]  ;;  %9266 = vmatprep.subr.bf16.mxu1 %v9265_v6  ;;  %v4989_v20 = vld [vmem:[#allocation23 + $0x270] sm:$0xff]  ;;  %v4992_v6 = vld [vmem:[#allocation23 + $0x288] sm:$0xff] }
 0xa6f   :  { %v9267_v52 = vpack.c.bf16 %v5202_v62, %v5201_v34  ;;  %v4994_v34 = vld [vmem:[#allocation23 + $0x298] sm:$0xff]  ;;  %v9203_v62 = vpack.c.bf16 %v4989_v20, %v4987_v9 }
 0xa70   :  { %v9205_v50 = vpack.c.bf16 %v4994_v34, %v4992_v6  ;;  %v5026_v9 = vld [vmem:[#allocation23 + $0x398] sm:$0xff]  ;;  %v5023_v34 = vld [vmem:[#allocation23 + $0x380] sm:$0xff] }
 0xa71   :  { %9172 = vmatpush1.bf16.msra.mxu0 %v9171_v57  ;;  %v5203_v57 = vld [vmem:[#allocation26 + $0x40] sm:$0xff]  ;;  %9268 = vmatpush3.bf16.msra.mxu1 %v9267_v52  ;;  %v4993_v52 = vld [vmem:[#allocation23 + $0x290] sm:$0xff] }
 0xa72   :  { %9174 = vmatprep.subr.bf16.mxu0 %v9173_v58  ;;  %v5204_v58 = vld [vmem:[#allocation26 + $0x48] sm:$0xff]  ;;  %9270 = vmatprep.subr.bf16.mxu1 %v9269_v31 }
 0xa73   :  { %v9271_v56 = vpack.c.bf16 %v5204_v58, %v5203_v57  ;;  %v4996_v31 = vld [vmem:[#allocation23 + $0x2a8] sm:$0xff]  ;;  %v4998_v57 = vld [vmem:[#allocation23 + $0x2b8] sm:$0xff]  ;;  %v9207_v58 = vpack.c.bf16 %v4993_v52, %v4991_v12 }
 0xa74   :  { %v9209_v19 = vpack.c.bf16 %v4998_v57, %v4996_v31  ;;  %v5030_v12 = vld [vmem:[#allocation23 + $0x3b8] sm:$0xff]  ;;  %v5027_v57 = vld [vmem:[#allocation23 + $0x3a0] sm:$0xff] }
 0xa75   :  { %9176 = vmatpush1.bf16.msra.mxu0 %v9175_v0  ;;  %v5205_v0 = vld [vmem:[#allocation26 + $0x50] sm:$0xff]  ;;  %9272 = vmatpush3.bf16.msra.mxu1 %v9271_v56 }
 0xa76   :  { %9178 = vmatprep.subr.bf16.mxu0 %v9177_v54  ;;  %v5206_v54 = vld [vmem:[#allocation26 + $0x58] sm:$0xff]  ;;  %9274 = vmatprep.subr.bf16.mxu1 %v9273_v47  ;;  %v4997_v56 = vld [vmem:[#allocation23 + $0x2b0] sm:$0xff]  ;;  %v5000_v47 = vld [vmem:[#allocation23 + $0x2c8] sm:$0xff] }
 0xa77   :  { %v9275_v59 = vpack.c.bf16 %v5206_v54, %v5205_v0  ;;  %v5002_v0 = vld [vmem:[#allocation23 + $0x2d8] sm:$0xff]  ;;  %v9211_v54 = vpack.c.bf16 %v4997_v56, %v4995_v45 }
 0xa78   :  { %v9213_v63 = vpack.c.bf16 %v5002_v0, %v5000_v47  ;;  %v5034_v45 = vld [vmem:[#allocation23 + $0x3d8] sm:$0xff]  ;;  %v5031_v0 = vld [vmem:[#allocation23 + $0x3c0] sm:$0xff] }
 0xa79   :  { %9180 = vmatpush1.bf16.msra.mxu0 %v9179_v43  ;;  %9276 = vmatpush3.bf16.msra.mxu1 %v9275_v59  ;;  %v12169_v43 = vld [vmem:[#allocation21] sm:$0xf]  ;;  %v5001_v59 = vld [vmem:[#allocation23 + $0x2d0] sm:$0xff] }
 0xa7a   :  { %9182 = vmatprep.subr.bf16.mxu0 %v9181_v51  ;;  %9278 = vmatprep.subr.bf16.mxu1 %v9277_v3  ;;  %v4280_v51 = vrot.slane %v12169_v43, %v12358_v36  ;;  %v4284_v60 = vrot.slane %v12169_v43, %v12360_v55  ;;  %v4292_v33 = vrot.slane %v12169_v43, %v12098_v23  ;;  %v5004_v3 = vld [vmem:[#allocation23 + $0x2e8] sm:$0xff] }
 0xa7d   :  { %9184 = vmatpush1.bf16.msra.mxu0 %v9183_v28 }
 0xa7e   :  { %9186 = vmatprep.subr.bf16.mxu0 %v9185_v61 }
 0xa81   :  { %9188 = vmatpush1.bf16.msra.mxu0 %v9187_v15 }
 0xa82   :  { %9190 = vmatprep.subr.bf16.mxu0 %v9189_v48  ;;  %v4982_v48 = vld [vmem:[#allocation23 + $0x238] sm:$0xff] }
 0xa83   :  { %v9193_v44 = vpack.c.bf16 %v4982_v48, %v4980_v46  ;;  %v5009_v46 = vld [vmem:[#allocation23 + $0x310] sm:$0xff]  ;;  %v5012_v48 = vld [vmem:[#allocation23 + $0x328] sm:$0xff] }
 0xb17   :  { %v4618_v28 = vpop.f32.mrb[120].mxu0 }
 0xb18   :  { %v10061_v11 = vadd.f32 %v4618_v28, %v4280_v51  ;;  %v12177_v7 = vpop.f32.mrb[104].mxu1  ;;  %v4620_v61 = vpop.f32.mrb[121].mxu0  ;;  %v5006_v51 = vld [vmem:[#allocation23 + $0x2f8] sm:$0xff]  ;;  %v5003_v28 = vld [vmem:[#allocation23 + $0x2e0] sm:$0xff] }
 0xb19   :  { %v10062_v15 = vadd.f32 %v4620_v61, %v4284_v60  ;;  %v4904_v29 = vpop.f32.mrb[105].mxu1  ;;  %v9215_v60 = vpack.c.bf16 %v5001_v59, %v4999_v4  ;;  %v5008_v61 = vld [vmem:[#allocation23 + $0x308] sm:$0xff]  ;;  %v5038_v4 = vld [vmem:[#allocation23 + $0x3f8] sm:$0xff] }
 0xb1a   :  { %v10064_v2 = vadd.f32 %v4904_v29, %v4292_v33  ;;  %v4907_v1 = vmax.f32 %v10061_v11, 0.0  ;;  %v9217_v33 = vpack.c.bf16 %v5006_v51, %v5004_v3  ;;  %v5005_v11 = vld [vmem:[#allocation23 + $0x2f0] sm:$0xff]  ;;  %v5007_v29 = vld [vmem:[#allocation23 + $0x300] sm:$0xff]  ;;  %v4288_v3 = vrot.slane %v12169_v43, %v12359_v41 }
 0xb1b   :  { %v4908_v49 = vmax.f32 %v10062_v15, 0.0  ;;  %v9219_v39 = vpack.c.bf16 %v5005_v11, %v5003_v28  ;;  %v9221_v15 = vpack.c.bf16 %v5010_v14, %v5008_v61  ;;  %v5207_v14 = vld [vmem:[#allocation26 + $0x60] sm:$0xff]  ;;  %v5226_v43 = vld [vmem:[#allocation26 + $0xf8] sm:$0xff] }
 0xb1c   :  { %v4910_v5 = vmax.f32 %v10064_v2, 0.0  ;;  %v5014_v2 = vld [vmem:[#allocation23 + $0x338] sm:$0xff]  ;;  %v10063_v11 = vadd.f32 %v12177_v7, %v4288_v3  ;;  %v5441_v7 = vld [vmem:[#allocation30 + $0x48] sm:$0xff] }
 0xb1d   :  { %5115 = vmatprep.mubr.f32.mxu0 %v4908_v49  ;;  %v9223_v49 = vpack.c.bf16 %v5009_v46, %v5007_v29  ;;  %v5225_v29 = vld [vmem:[#allocation26 + $0xf0] sm:$0xff] }
 0xb1e   :  { %5116 = vmatmul.mubr.f32.vlgmr.msra.gmra.mrb[122].mxu0 %v4907_v1  ;;  %v5011_v1 = vld [vmem:[#allocation23 + $0x320] sm:$0xff]  ;;  %v4909_v61 = vmax.f32 %v10063_v11, 0.0  ;;  %v9281_v46 = vpack.c.bf16 %v5226_v43, %v5225_v29  ;;  %v5526_v3 = vld [vmem:[#allocation30 + $0x2f0] sm:$0xff] }
 0xb1f   :  { %9192 = vmatpush1.bf16.msra.mxu0 %v9191_v27  ;;  %5186 = vmatprep.mubr.f32.mxu0 %v4910_v5  ;;  %v9225_v27 = vpack.c.bf16 %v5014_v2, %v5012_v48  ;;  %v5209_v48 = vld [vmem:[#allocation26 + $0x70] sm:$0xff]  ;;  %v5210_v2 = vld [vmem:[#allocation26 + $0x78] sm:$0xff] }
 0xb20   :  { %9194 = vmatprep.subr.bf16.mxu0 %v9193_v44  ;;  %v5013_v44 = vld [vmem:[#allocation23 + $0x330] sm:$0xff] }
 0xb21   :  { %v9227_v5 = vpack.c.bf16 %v5013_v44, %v5011_v1  ;;  %v5439_v1 = vld [vmem:[#allocation30 + $0x38] sm:$0xff]  ;;  %v5534_v11 = vld [vmem:[#allocation30 + $0x330] sm:$0xff] }
 0xb22   :  { %v9381_v25 = vpack.c.bf16 %v5447_v53, %v5439_v1  ;;  %v5457_v1 = vld [vmem:[#allocation30 + $0xc8] sm:$0xff] }
 0xb23   :  { %9196 = vmatpush1.bf16.msra.mxu0 %v9195_v37  ;;  %v5017_v37 = vld [vmem:[#allocation23 + $0x350] sm:$0xff] }
 0xb24   :  { %9198 = vmatprep.subr.bf16.mxu0 %v9197_v8  ;;  %v5020_v8 = vld [vmem:[#allocation23 + $0x368] sm:$0xff]  ;;  %v9231_v17 = vpack.c.bf16 %v5017_v37, %v5015_v40  ;;  %v5455_v37 = vld [vmem:[#allocation30 + $0xb8] sm:$0xff] }
 0xb25   :  { %v9233_v22 = vpack.c.bf16 %v5022_v38, %v5020_v8  ;;  %v5463_v8 = vld [vmem:[#allocation30 + $0xf8] sm:$0xff] }
 0xb26   :  { %v9385_v38 = vpack.c.bf16 %v5463_v8, %v5455_v37  ;;  %v5465_v37 = vld [vmem:[#allocation30 + $0x108] sm:$0xff] }
 0xb27   :  { %9200 = vmatpush1.bf16.msra.mxu0 %v9199_v35  ;;  %v5021_v35 = vld [vmem:[#allocation23 + $0x370] sm:$0xff] }
 0xb28   :  { %9202 = vmatprep.subr.bf16.mxu0 %v9201_v21  ;;  %v5024_v21 = vld [vmem:[#allocation23 + $0x388] sm:$0xff]  ;;  %v9235_v20 = vpack.c.bf16 %v5021_v35, %v5019_v18  ;;  %v5471_v35 = vld [vmem:[#allocation30 + $0x138] sm:$0xff] }
 0xb29   :  { %v9237_v6 = vpack.c.bf16 %v5026_v9, %v5024_v21  ;;  %v5479_v21 = vld [vmem:[#allocation30 + $0x178] sm:$0xff]  ;;  %v5473_v8 = vld [vmem:[#allocation30 + $0x148] sm:$0xff] }
 0xb2a   :  { %v9389_v9 = vpack.c.bf16 %v5479_v21, %v5471_v35  ;;  %v5481_v35 = vld [vmem:[#allocation30 + $0x188] sm:$0xff] }
 0xb2b   :  { %9204 = vmatpush1.bf16.msra.mxu0 %v9203_v62  ;;  %v5025_v62 = vld [vmem:[#allocation23 + $0x390] sm:$0xff] }
 0xb2c   :  { %9206 = vmatprep.subr.bf16.mxu0 %v9205_v50  ;;  %v5028_v50 = vld [vmem:[#allocation23 + $0x3a8] sm:$0xff]  ;;  %v9239_v52 = vpack.c.bf16 %v5025_v62, %v5023_v34  ;;  %v5487_v62 = vld [vmem:[#allocation30 + $0x1b8] sm:$0xff] }
 0xb2d   :  { %v9241_v31 = vpack.c.bf16 %v5030_v12, %v5028_v50  ;;  %v5495_v50 = vld [vmem:[#allocation30 + $0x1f8] sm:$0xff]  ;;  %v5489_v21 = vld [vmem:[#allocation30 + $0x1c8] sm:$0xff] }
 0xb2e   :  { %v9393_v12 = vpack.c.bf16 %v5495_v50, %v5487_v62  ;;  %v5497_v62 = vld [vmem:[#allocation30 + $0x208] sm:$0xff] }
 0xb2f   :  { %9208 = vmatpush1.bf16.msra.mxu0 %v9207_v58  ;;  %v5029_v58 = vld [vmem:[#allocation23 + $0x3b0] sm:$0xff] }
 0xb30   :  { %9210 = vmatprep.subr.bf16.mxu0 %v9209_v19  ;;  %v5032_v19 = vld [vmem:[#allocation23 + $0x3c8] sm:$0xff]  ;;  %v9243_v56 = vpack.c.bf16 %v5029_v58, %v5027_v57  ;;  %v5503_v58 = vld [vmem:[#allocation30 + $0x238] sm:$0xff] }
 0xb31   :  { %v9245_v47 = vpack.c.bf16 %v5034_v45, %v5032_v19  ;;  %v5511_v19 = vld [vmem:[#allocation30 + $0x278] sm:$0xff]  ;;  %v5505_v50 = vld [vmem:[#allocation30 + $0x248] sm:$0xff] }
 0xb32   :  { %v9397_v45 = vpack.c.bf16 %v5511_v19, %v5503_v58  ;;  %v5513_v58 = vld [vmem:[#allocation30 + $0x288] sm:$0xff] }
 0xb33   :  { %9212 = vmatpush1.bf16.msra.mxu0 %v9211_v54  ;;  %v5033_v54 = vld [vmem:[#allocation23 + $0x3d0] sm:$0xff] }
 0xb34   :  { %9214 = vmatprep.subr.bf16.mxu0 %v9213_v63  ;;  %v5036_v63 = vld [vmem:[#allocation23 + $0x3e8] sm:$0xff]  ;;  %v9247_v59 = vpack.c.bf16 %v5033_v54, %v5031_v0  ;;  %v5519_v54 = vld [vmem:[#allocation30 + $0x2b8] sm:$0xff] }
 0xb35   :  { %v9249_v51 = vpack.c.bf16 %v5038_v4, %v5036_v63  ;;  %v5527_v63 = vld [vmem:[#allocation30 + $0x2f8] sm:$0xff]  ;;  %v5521_v19 = vld [vmem:[#allocation30 + $0x2c8] sm:$0xff] }
 0xb36   :  { %v9401_v4 = vpack.c.bf16 %v5527_v63, %v5519_v54  ;;  %v5529_v54 = vld [vmem:[#allocation30 + $0x308] sm:$0xff] }
 0xb37   :  { %9216 = vmatpush1.bf16.msra.mxu0 %v9215_v60  ;;  %v5035_v60 = vld [vmem:[#allocation23 + $0x3e0] sm:$0xff]  ;;  %v5537_v63 = vld [vmem:[#allocation30 + $0x348] sm:$0xff] }
 0xb38   :  { %9218 = vmatprep.subr.bf16.mxu0 %v9217_v33  ;;  %v5037_v33 = vld [vmem:[#allocation23 + $0x3f0] sm:$0xff] }
 0xb39   :  { %v9251_v28 = vpack.c.bf16 %v5037_v33, %v5035_v60  ;;  %v5535_v60 = vld [vmem:[#allocation30 + $0x338] sm:$0xff] }
 0xb3a   :  { %v5543_v33 = vld [vmem:[#allocation30 + $0x378] sm:$0xff] }
 0xb3b   :  { %9220 = vmatpush1.bf16.msra.mxu0 %v9219_v39  ;;  %v5208_v39 = vld [vmem:[#allocation26 + $0x68] sm:$0xff] }
 0xb3c   :  { %9222 = vmatprep.subr.bf16.mxu0 %v9221_v15  ;;  %v9279_v15 = vpack.c.bf16 %v5208_v39, %v5207_v14  ;;  %v5039_v39 = vld [vmem:[#allocation24] sm:$0x3] }
 0xb3d   :  { %v5048_v29 = vrot.slane %v5039_v39, %v12360_v55 }
 0xb3e   :  { %9280 = vmatpush3.bf16.msra.mxu1 %v9279_v15  ;;  %v5044_v15 = vrot.slane %v5039_v39, %v12358_v36  ;;  %v5544_v39 = vld [vmem:[#allocation30 + $0x380] sm:$0xff] }
 0xb3f   :  { %9224 = vmatpush1.bf16.msra.mxu0 %v9223_v49  ;;  %v9283_v49 = vpack.c.bf16 %v5210_v2, %v5209_v48  ;;  %9282 = vmatprep.subr.bf16.mxu1 %v9281_v46  ;;  %v5432_v2 = vld [vmem:[#allocation30] sm:$0xff] }
 0xb40   :  { %9226 = vmatprep.subr.bf16.mxu0 %v9225_v27  ;;  %v5433_v27 = vld [vmem:[#allocation30 + $0x8] sm:$0xff] }
 0xb41   :  { %v9285_v44 = vpack.c.bf16 %v5441_v7, %v5433_v27  ;;  %v5449_v7 = vld [vmem:[#allocation30 + $0x88] sm:$0xff] }
 0xb42   :  { %9284 = vmatpush3.bf16.msra.mxu1 %v9283_v49  ;;  %v5440_v49 = vld [vmem:[#allocation30 + $0x40] sm:$0xff] }
 0xb43   :  { %9228 = vmatpush1.bf16.msra.mxu0 %v9227_v5  ;;  %v5438_v5 = vld [vmem:[#allocation30 + $0x30] sm:$0xff]  ;;  %9286 = vmatprep.subr.bf16.mxu1 %v9285_v44  ;;  %v9287_v53 = vpack.c.bf16 %v5440_v49, %v5432_v2  ;;  %v5435_v49 = vld [vmem:[#allocation30 + $0x18] sm:$0xff] }
 0xb44   :  { %9230 = vmatprep.subr.bf16.mxu0 %v9229_v30  ;;  %v5446_v30 = vld [vmem:[#allocation30 + $0x70] sm:$0xff] }
 0xb45   :  { %v9383_v40 = vpack.c.bf16 %v5446_v30, %v5438_v5  ;;  %v9289_v5 = vpack.c.bf16 %v5457_v1, %v5449_v7  ;;  %v5448_v30 = vld [vmem:[#allocation30 + $0x80] sm:$0xff]  ;;  %v5311_v7 = vld [vmem:[#allocation29 + $0x38] sm:$0xff] }
 0xb47   :  { %9232 = vmatpush1.bf16.msra.mxu0 %v9231_v17  ;;  %v5454_v17 = vld [vmem:[#allocation30 + $0xb0] sm:$0xff] }
 0xb48   :  { %9234 = vmatprep.subr.bf16.mxu0 %v9233_v22  ;;  %v5462_v22 = vld [vmem:[#allocation30 + $0xf0] sm:$0xff] }
 0xb49   :  { %v9387_v18 = vpack.c.bf16 %v5462_v22, %v5454_v17  ;;  %v9293_v17 = vpack.c.bf16 %v5473_v8, %v5465_v37  ;;  %v5464_v22 = vld [vmem:[#allocation30 + $0x100] sm:$0xff]  ;;  %v5310_v37 = vld [vmem:[#allocation29 + $0x30] sm:$0xff] }
 0xb4a   :  { %v5318_v8 = vld [vmem:[#allocation29 + $0x70] sm:$0xff] }
 0xb4b   :  { %9236 = vmatpush1.bf16.msra.mxu0 %v9235_v20  ;;  %v5470_v20 = vld [vmem:[#allocation30 + $0x130] sm:$0xff] }
 0xb4c   :  { %9238 = vmatprep.subr.bf16.mxu0 %v9237_v6  ;;  %v5478_v6 = vld [vmem:[#allocation30 + $0x170] sm:$0xff] }
 0xb4d   :  { %v9391_v34 = vpack.c.bf16 %v5478_v6, %v5470_v20  ;;  %v9297_v20 = vpack.c.bf16 %v5489_v21, %v5481_v35  ;;  %v5480_v6 = vld [vmem:[#allocation30 + $0x180] sm:$0xff]  ;;  %v5335_v35 = vld [vmem:[#allocation29 + $0xf8] sm:$0xff] }
 0xb4f   :  { %9240 = vmatpush1.bf16.msra.mxu0 %v9239_v52  ;;  %v5486_v52 = vld [vmem:[#allocation30 + $0x1b0] sm:$0xff] }
 0xb50   :  { %9242 = vmatprep.subr.bf16.mxu0 %v9241_v31  ;;  %v5494_v31 = vld [vmem:[#allocation30 + $0x1f0] sm:$0xff] }
 0xb51   :  { %v9395_v57 = vpack.c.bf16 %v5494_v31, %v5486_v52  ;;  %v9301_v52 = vpack.c.bf16 %v5505_v50, %v5497_v62  ;;  %v5496_v31 = vld [vmem:[#allocation30 + $0x200] sm:$0xff] }
 0xb53   :  { %9244 = vmatpush1.bf16.msra.mxu0 %v9243_v56  ;;  %v5502_v56 = vld [vmem:[#allocation30 + $0x230] sm:$0xff] }
 0xb54   :  { %9246 = vmatprep.subr.bf16.mxu0 %v9245_v47  ;;  %v5510_v47 = vld [vmem:[#allocation30 + $0x270] sm:$0xff] }
 0xb55   :  { %v9399_v0 = vpack.c.bf16 %v5510_v47, %v5502_v56  ;;  %v9305_v56 = vpack.c.bf16 %v5521_v19, %v5513_v58  ;;  %v5512_v47 = vld [vmem:[#allocation30 + $0x280] sm:$0xff]  ;;  %v5475_v58 = vld [vmem:[#allocation30 + $0x158] sm:$0xff] }
 0xb56   :  { %v5343_v19 = vld [vmem:[#allocation29 + $0x138] sm:$0xff] }
 0xb57   :  { %9248 = vmatpush1.bf16.msra.mxu0 %v9247_v59  ;;  %v5518_v59 = vld [vmem:[#allocation30 + $0x2b0] sm:$0xff] }
 0xb58   :  { %9250 = vmatprep.subr.bf16.mxu0 %v9249_v51  ;;  %v9403_v51 = vpack.c.bf16 %v5526_v3, %v5518_v59  ;;  %v9309_v59 = vpack.c.bf16 %v5537_v63, %v5529_v54  ;;  %v5528_v3 = vld [vmem:[#allocation30 + $0x300] sm:$0xff]  ;;  %v5474_v54 = vld [vmem:[#allocation30 + $0x150] sm:$0xff] }
 0xb5b   :  { %9252 = vmatpush1.bf16.msra.mxu0 %v9251_v28  ;;  %v9405_v28 = vpack.c.bf16 %v5543_v33, %v5535_v60  ;;  %v5545_v33 = vld [vmem:[#allocation30 + $0x388] sm:$0xff] }
 0xb5c   :  { %9382 = vmatprep.subr.bf16.mxu0 %v9381_v25 }
 0xb5e   :  { %5187 = vmatmul.mubr.f32.vlgmr.msra.gmra.mrb[122].mxu0 %v4909_v61  ;;  %v5542_v61 = vld [vmem:[#allocation30 + $0x370] sm:$0xff] }
 0xb5f   :  { %5837 = vmatprep.mubr.f32.mxu0 %v12357_v42  ;;  %9384 = vmatpush1.bf16.msra.mxu0 %v9383_v40  ;;  %v9407_v14 = vpack.c.bf16 %v5542_v61, %v5534_v11  ;;  %v5456_v40 = vld [vmem:[#allocation30 + $0xc0] sm:$0xff]  ;;  %v5551_v11 = vld [vmem:[#allocation30 + $0x3b8] sm:$0xff] }
 0xb60   :  { %9386 = vmatprep.subr.bf16.mxu0 %v9385_v38  ;;  %v9291_v38 = vpack.c.bf16 %v5456_v40, %v5448_v30  ;;  %v5442_v30 = vld [vmem:[#allocation30 + $0x50] sm:$0xff] }
 0xb63   :  { %9388 = vmatpush1.bf16.msra.mxu0 %v9387_v18  ;;  %v5472_v18 = vld [vmem:[#allocation30 + $0x140] sm:$0xff] }
 0xb64   :  { %9390 = vmatprep.subr.bf16.mxu0 %v9389_v9  ;;  %v9295_v9 = vpack.c.bf16 %v5472_v18, %v5464_v22  ;;  %v5459_v22 = vld [vmem:[#allocation30 + $0xd8] sm:$0xff] }
 0xb65   :  { %v5327_v18 = vld [vmem:[#allocation29 + $0xb8] sm:$0xff] }
 0xb67   :  { %9392 = vmatpush1.bf16.msra.mxu0 %v9391_v34  ;;  %v5488_v34 = vld [vmem:[#allocation30 + $0x1c0] sm:$0xff] }
 0xb68   :  { %9394 = vmatprep.subr.bf16.mxu0 %v9393_v12  ;;  %v9299_v12 = vpack.c.bf16 %v5488_v34, %v5480_v6  ;;  %v5450_v6 = vld [vmem:[#allocation30 + $0x90] sm:$0xff] }
 0xb69   :  { %v5458_v34 = vld [vmem:[#allocation30 + $0xd0] sm:$0xff] }
 0xb6b   :  { %9396 = vmatpush1.bf16.msra.mxu0 %v9395_v57  ;;  %v5504_v57 = vld [vmem:[#allocation30 + $0x240] sm:$0xff] }
 0xb6c   :  { %9398 = vmatprep.subr.bf16.mxu0 %v9397_v45  ;;  %v9303_v45 = vpack.c.bf16 %v5504_v57, %v5496_v31  ;;  %v5334_v31 = vld [vmem:[#allocation29 + $0xf0] sm:$0xff]  ;;  %v5467_v57 = vld [vmem:[#allocation30 + $0x118] sm:$0xff] }
 0xb6d   :  { %v9325_v63 = vpack.c.bf16 %v5475_v58, %v5467_v57 }
 0xb6f   :  { %9400 = vmatpush1.bf16.msra.mxu0 %v9399_v0  ;;  %v5520_v0 = vld [vmem:[#allocation30 + $0x2c0] sm:$0xff] }
 0xb70   :  { %9402 = vmatprep.subr.bf16.mxu0 %v9401_v4  ;;  %v9307_v4 = vpack.c.bf16 %v5520_v0, %v5512_v47  ;;  %v5466_v0 = vld [vmem:[#allocation30 + $0x110] sm:$0xff] }
 0xb73   :  { %9404 = vmatpush1.bf16.msra.mxu0 %v9403_v51  ;;  %v5536_v51 = vld [vmem:[#allocation30 + $0x340] sm:$0xff] }
 0xb74   :  { %9406 = vmatprep.subr.bf16.mxu0 %v9405_v28  ;;  %v9311_v60 = vpack.c.bf16 %v5536_v51, %v5528_v3  ;;  %v5553_v28 = vld [vmem:[#allocation30 + $0x3c8] sm:$0xff]  ;;  %v5350_v3 = vld [vmem:[#allocation29 + $0x170] sm:$0xff]  ;;  %v5483_v51 = vld [vmem:[#allocation30 + $0x198] sm:$0xff] }
 0xb75   :  { %v9313_v61 = vpack.c.bf16 %v5553_v28, %v5545_v33  ;;  %v5359_v33 = vld [vmem:[#allocation29 + $0x1b8] sm:$0xff] }
 0xb76   :  { %v5367_v28 = vld [vmem:[#allocation29 + $0x1f8] sm:$0xff] }
 0xb77   :  { %9408 = vmatpush1.bf16.msra.mxu0 %v9407_v14  ;;  %v5559_v14 = vld [vmem:[#allocation30 + $0x3f8] sm:$0xff] }
 0xc31   :  { %v5188_v43 = vpop.f32.mrb[122].mxu0 }
 0xc32   :  { %v10065_v46 = vadd.f32 %v5188_v43, %v5044_v15  ;;  %v5190_v48 = vpop.f32.mrb[123].mxu0  ;;  %v9409_v15 = vpack.c.bf16 %v5559_v14, %v5551_v11  ;;  %v5550_v43 = vld [vmem:[#allocation30 + $0x3b0] sm:$0xff]  ;;  %v9327_v11 = vpack.c.bf16 %v5474_v54, %v5466_v0 }
 0xc33   :  { %v10066_v27 = vadd.f32 %v5190_v48, %v5048_v29  ;;  %v5552_v29 = vld [vmem:[#allocation30 + $0x3c0] sm:$0xff]  ;;  %v5482_v14 = vld [vmem:[#allocation30 + $0x190] sm:$0xff] }
 0xc34   :  { %v5193_v25 = vmax.f32 %v10065_v46, 0.0  ;;  %v5558_v46 = vld [vmem:[#allocation30 + $0x3f0] sm:$0xff]  ;;  %v9315_v48 = vpack.c.bf16 %v5552_v29, %v5544_v39  ;;  %9410 = vmatprep.subr.bf16.mxu0 %v9409_v15  ;;  %v9521_v29 = vpack.c.bf16 %v5367_v28, %v5359_v33 }
 0xc35   :  { %v5194_v44 = vmax.f32 %v10066_v27, 0.0  ;;  %v9411_v2 = vpack.c.bf16 %v5558_v46, %v5550_v43  ;;  %v5443_v27 = vld [vmem:[#allocation30 + $0x58] sm:$0xff]  ;;  %v5490_v39 = vld [vmem:[#allocation30 + $0x1d0] sm:$0xff] }
 0xc36   :  { %v9317_v1 = vpack.c.bf16 %v5443_v27, %v5435_v49  ;;  %v5358_v43 = vld [vmem:[#allocation29 + $0x1b0] sm:$0xff]  ;;  %v5375_v49 = vld [vmem:[#allocation29 + $0x238] sm:$0xff] }
 0xc37   :  { %5298 = vmatprep.mubr.f32.mxu1 %v5194_v44  ;;  %9412 = vmatpush1.bf16.msra.mxu0 %v9411_v2  ;;  %v5319_v44 = vld [vmem:[#allocation29 + $0x78] sm:$0xff]  ;;  %v5366_v46 = vld [vmem:[#allocation29 + $0x1f0] sm:$0xff] }
 0xc38   :  { %5299 = vmatmul.mubr.f32.vlgmr.msra.gmra.mrb[106].mxu1 %v5193_v25  ;;  %v7356_v25 = vld [vmem:[#allocation27] ss:$0 sm:$0xff]  ;;  %v5406_v0 = vld [vmem:[#allocation29 + $0x330] sm:$0xff] }
 0xc39   :  { %9288 = vmatpush1.bf16.msra.mxu1 %v9287_v53  ;;  %5624 = vmatprep.mubr.f32.mxu1 %v12357_v42  ;;  %v9509_v53 = vpack.c.bf16 %v5319_v44, %v5311_v7  ;;  %v5507_v2 = vld [vmem:[#allocation30 + $0x258] sm:$0xff]  ;;  %v9331_v7 = vpack.c.bf16 %v5490_v39, %v5482_v14  ;;  %v5498_v44 = vld [vmem:[#allocation30 + $0x210] sm:$0xff] }
 0xc3a   :  { %9290 = vmatprep.subr.bf16.mxu1 %v9289_v5  ;;  %v5434_v5 = vld [vmem:[#allocation30 + $0x10] sm:$0xff]  ;;  %v5383_v27 = vld [vmem:[#allocation29 + $0x278] sm:$0xff] }
 0xc3b   :  { %9510 = vmatprep.subr.bf16.mxu0 %v9509_v53  ;;  %v5506_v53 = vld [vmem:[#allocation30 + $0x250] sm:$0xff] }
 0xc3c   :  { %v5414_v54 = vld [vmem:[#allocation29 + $0x370] sm:$0xff] }
 0xc3d   :  { %9292 = vmatpush1.bf16.msra.mxu1 %v9291_v38  ;;  %v5451_v38 = vld [vmem:[#allocation30 + $0x98] sm:$0xff]  ;;  %v5546_v33 = vld [vmem:[#allocation30 + $0x390] sm:$0xff] }
 0xc3e   :  { %9294 = vmatprep.subr.bf16.mxu1 %v9293_v17  ;;  %v9321_v50 = vpack.c.bf16 %v5459_v22, %v5451_v38  ;;  %v5391_v38 = vld [vmem:[#allocation29 + $0x2b8] sm:$0xff]  ;;  %v9335_v22 = vpack.c.bf16 %v5506_v53, %v5498_v44  ;;  %v5422_v14 = vld [vmem:[#allocation29 + $0x3b0] sm:$0xff]  ;;  %v5452_v53 = vld [vmem:[#allocation30 + $0xa0] sm:$0xff] }
 0xc3f   :  { %v5430_v39 = vld [vmem:[#allocation29 + $0x3f0] sm:$0xff] }
 0xc41   :  { %9296 = vmatpush1.bf16.msra.mxu1 %v9295_v9  ;;  %v9319_v9 = vpack.c.bf16 %v5442_v30, %v5434_v5  ;;  %v9525_v5 = vpack.c.bf16 %v5383_v27, %v5375_v49  ;;  %v5374_v30 = vld [vmem:[#allocation29 + $0x230] sm:$0xff]  ;;  %v5444_v49 = vld [vmem:[#allocation30 + $0x60] sm:$0xff]  ;;  %v5453_v27 = vld [vmem:[#allocation30 + $0xa8] sm:$0xff] }
 0xc42   :  { %9298 = vmatprep.subr.bf16.mxu1 %v9297_v20  ;;  %v9511_v20 = vpack.c.bf16 %v5318_v8, %v5310_v37  ;;  %v5515_v37 = vld [vmem:[#allocation30 + $0x298] sm:$0xff] }
 0xc43   :  { %v5523_v8 = vld [vmem:[#allocation30 + $0x2d8] sm:$0xff] }
 0xc45   :  { %9300 = vmatpush1.bf16.msra.mxu1 %v9299_v12  ;;  %v9513_v12 = vpack.c.bf16 %v5335_v35, %v5327_v18  ;;  %v5514_v35 = vld [vmem:[#allocation30 + $0x290] sm:$0xff] }
 0xc46   :  { %9302 = vmatprep.subr.bf16.mxu1 %v9301_v52  ;;  %v5326_v52 = vld [vmem:[#allocation29 + $0xb0] sm:$0xff] }
 0xc47   :  { %v9515_v47 = vpack.c.bf16 %v5334_v31, %v5326_v52  ;;  %v5407_v52 = vld [vmem:[#allocation29 + $0x338] sm:$0xff] }
 0xc48   :  { %v5415_v31 = vld [vmem:[#allocation29 + $0x378] sm:$0xff] }
 0xc49   :  { %9304 = vmatpush1.bf16.msra.mxu1 %v9303_v45  ;;  %v5351_v45 = vld [vmem:[#allocation29 + $0x178] sm:$0xff] }
 0xc4a   :  { %9306 = vmatprep.subr.bf16.mxu1 %v9305_v56  ;;  %v9323_v56 = vpack.c.bf16 %v5458_v34, %v5450_v6  ;;  %v5390_v6 = vld [vmem:[#allocation29 + $0x2b0] sm:$0xff] }
 0xc4b   :  { %v5398_v34 = vld [vmem:[#allocation29 + $0x2f0] sm:$0xff] }
 0xc4c   :  { %v9531_v58 = vpack.c.bf16 %v5398_v34, %v5390_v6  ;;  %v5509_v6 = vld [vmem:[#allocation30 + $0x268] sm:$0xff] }
 0xc4d   :  { %9308 = vmatpush1.bf16.msra.mxu1 %v9307_v4  ;;  %v9517_v4 = vpack.c.bf16 %v5351_v45, %v5343_v19  ;;  %v5530_v19 = vld [vmem:[#allocation30 + $0x310] sm:$0xff] }
 0xc4e   :  { %9310 = vmatprep.subr.bf16.mxu1 %v9309_v59  ;;  %v5342_v59 = vld [vmem:[#allocation29 + $0x130] sm:$0xff] }
 0xc4f   :  { %v5538_v45 = vld [vmem:[#allocation30 + $0x350] sm:$0xff] }
 0xc51   :  { %9312 = vmatpush1.bf16.msra.mxu1 %v9311_v60  ;;  %v5491_v60 = vld [vmem:[#allocation30 + $0x1d8] sm:$0xff] }
 0xc52   :  { %9314 = vmatprep.subr.bf16.mxu1 %v9313_v61  ;;  %v9519_v61 = vpack.c.bf16 %v5350_v3, %v5342_v59  ;;  %v9329_v15 = vpack.c.bf16 %v5491_v60, %v5483_v51  ;;  %v5423_v59 = vld [vmem:[#allocation29 + $0x3b8] sm:$0xff]  ;;  %v9343_v51 = vpack.c.bf16 %v5538_v45, %v5530_v19  ;;  %v9535_v60 = vpack.c.bf16 %v5414_v54, %v5406_v0  ;;  %v5516_v45 = vld [vmem:[#allocation30 + $0x2a0] sm:$0xff]  ;;  %v5541_v0 = vld [vmem:[#allocation30 + $0x368] sm:$0xff] }
 0xc53   :  { %v5431_v3 = vld [vmem:[#allocation29 + $0x3f8] sm:$0xff] }
 0xc55   :  { %9316 = vmatpush1.bf16.msra.mxu1 %v9315_v48  ;;  %v5499_v48 = vld [vmem:[#allocation30 + $0x218] sm:$0xff] }
 0xc56   :  { %9318 = vmatprep.subr.bf16.mxu1 %v9317_v1  ;;  %v9523_v1 = vpack.c.bf16 %v5366_v46, %v5358_v43  ;;  %v9539_v46 = vpack.c.bf16 %v5430_v39, %v5422_v14  ;;  %v5313_v14 = vld [vmem:[#allocation29 + $0x48] sm:$0xff] }
 0xd0b   :  { %v7706_v40 = vpop.f32.mrb[106].mxu1 }
 0xd0c   :  { %v7707_v17 = vpop.f32.mrb[107].mxu1 }
 0xd0d   :  { %v7708_v21 = vadd.f32 %v7707_v17, %v7706_v40  ;;  %v5382_v40 = vld [vmem:[#allocation29 + $0x270] sm:$0xff]  ;;  %v5399_v17 = vld [vmem:[#allocation29 + $0x2f8] sm:$0xff] }
 0xd0e   :  { %v9527_v18 = vpack.c.bf16 %v5382_v40, %v5374_v30  ;;  %v5477_v30 = vld [vmem:[#allocation30 + $0x168] sm:$0xff] }
 0xd0f   :  { %v12186_v62 = vadd.f32 %v7708_v21, %v7356_v25  ;;  %v9333_v25 = vpack.c.bf16 %v5507_v2, %v5499_v48  ;;  %v5522_v21 = vld [vmem:[#allocation30 + $0x2d0] sm:$0xff]  ;;  %v5436_v2 = vld [vmem:[#allocation30 + $0x20] sm:$0xff] }
 0xd10   :  { %v9339_v57 = vpack.c.bf16 %v5522_v21, %v5514_v35  ;;  %v5484_v21 = vld [vmem:[#allocation30 + $0x1a0] sm:$0xff] }
 0xd11   :  { %5625 = vmatmul.mubr.f32.vlgmr.msra.gmra.mrb[108].mxu1 %v12186_v62  ;;  %5838 = vmatmul.mubr.f32.vlgmr.msra.gmra.mrb[124].mxu0 %v12186_v62 }
 0xd12   :  { %9320 = vmatpush1.bf16.msra.mxu1 %v9319_v9  ;;  %9512 = vmatpush1.bf16.msra.mxu0 %v9511_v20  ;;  %v9337_v9 = vpack.c.bf16 %v5523_v8, %v5515_v37  ;;  %v9529_v20 = vpack.c.bf16 %v5399_v17, %v5391_v38  ;;  %v5468_v8 = vld [vmem:[#allocation30 + $0x120] sm:$0xff]  ;;  %v5485_v17 = vld [vmem:[#allocation30 + $0x1a8] sm:$0xff] }
 0xd13   :  { %9322 = vmatprep.subr.bf16.mxu1 %v9321_v50  ;;  %9514 = vmatprep.subr.bf16.mxu0 %v9513_v12  ;;  %v5531_v50 = vld [vmem:[#allocation30 + $0x318] sm:$0xff]  ;;  %v5476_v38 = vld [vmem:[#allocation30 + $0x160] sm:$0xff] }
 0xd14   :  { %5695 = vmatprep.mubr.f32.mxu1 %v12357_v42  ;;  %6121 = vmatprep.mubr.f32.mxu0 %v12357_v42  ;;  %v5539_v12 = vld [vmem:[#allocation30 + $0x358] sm:$0xff] }
 0xd16   :  { %9324 = vmatpush1.bf16.msra.mxu1 %v9323_v56  ;;  %9516 = vmatpush1.bf16.msra.mxu0 %v9515_v47  ;;  %v9341_v56 = vpack.c.bf16 %v5539_v12, %v5531_v50  ;;  %v9533_v47 = vpack.c.bf16 %v5415_v31, %v5407_v52  ;;  %v5500_v12 = vld [vmem:[#allocation30 + $0x220] sm:$0xff]  ;;  %v5517_v31 = vld [vmem:[#allocation30 + $0x2a8] sm:$0xff] }
 0xd17   :  { %9326 = vmatprep.subr.bf16.mxu1 %v9325_v63  ;;  %9518 = vmatprep.subr.bf16.mxu0 %v9517_v4  ;;  %v5547_v63 = vld [vmem:[#allocation30 + $0x398] sm:$0xff]  ;;  %v5508_v52 = vld [vmem:[#allocation30 + $0x260] sm:$0xff] }
 0xd18   :  { %v5555_v4 = vld [vmem:[#allocation30 + $0x3d8] sm:$0xff] }
 0xd19   :  { %v9345_v28 = vpack.c.bf16 %v5555_v4, %v5547_v63  ;;  %v5532_v4 = vld [vmem:[#allocation30 + $0x320] sm:$0xff] }
 0xd1a   :  { %9328 = vmatpush1.bf16.msra.mxu1 %v9327_v11  ;;  %9520 = vmatpush1.bf16.msra.mxu0 %v9519_v61  ;;  %v9537_v11 = vpack.c.bf16 %v5431_v3, %v5423_v59  ;;  %v5554_v61 = vld [vmem:[#allocation30 + $0x3d0] sm:$0xff]  ;;  %v5540_v59 = vld [vmem:[#allocation30 + $0x360] sm:$0xff]  ;;  %v5549_v3 = vld [vmem:[#allocation30 + $0x3a8] sm:$0xff] }
 0xd1b   :  { %9330 = vmatprep.subr.bf16.mxu1 %v9329_v15  ;;  %9522 = vmatprep.subr.bf16.mxu0 %v9521_v29  ;;  %v5437_v15 = vld [vmem:[#allocation30 + $0x28] sm:$0xff]  ;;  %v9347_v43 = vpack.c.bf16 %v5554_v61, %v5546_v33 }
 0xd1c   :  { %v5445_v29 = vld [vmem:[#allocation30 + $0x68] sm:$0xff] }
 0xd1d   :  { %v9349_v48 = vpack.c.bf16 %v5445_v29, %v5437_v15  ;;  %v5305_v61 = vld [vmem:[#allocation29 + $0x8] sm:$0xff]  ;;  %v5304_v29 = vld [vmem:[#allocation29] sm:$0xff] }
 0xd1e   :  { %9332 = vmatpush1.bf16.msra.mxu1 %v9331_v7  ;;  %9524 = vmatpush1.bf16.msra.mxu0 %v9523_v1  ;;  %v5461_v7 = vld [vmem:[#allocation30 + $0xe8] sm:$0xff]  ;;  %v9351_v1 = vpack.c.bf16 %v5444_v49, %v5436_v2  ;;  %v9413_v15 = vpack.c.bf16 %v5313_v14, %v5305_v61  ;;  %v5314_v61 = vld [vmem:[#allocation29 + $0x50] sm:$0xff]  ;;  %v5323_v14 = vld [vmem:[#allocation29 + $0x98] sm:$0xff] }
 0xd1f   :  { %9334 = vmatprep.subr.bf16.mxu1 %v9333_v25  ;;  %9526 = vmatprep.subr.bf16.mxu0 %v9525_v5  ;;  %v9353_v44 = vpack.c.bf16 %v5461_v7, %v5453_v27  ;;  %v5460_v25 = vld [vmem:[#allocation30 + $0xe0] sm:$0xff]  ;;  %v5469_v5 = vld [vmem:[#allocation30 + $0x128] sm:$0xff] }
 0xd20   :  { %v9355_v40 = vpack.c.bf16 %v5460_v25, %v5452_v53  ;;  %v9357_v37 = vpack.c.bf16 %v5477_v30, %v5469_v5  ;;  %v5320_v27 = vld [vmem:[#allocation29 + $0x80] sm:$0xff] }
 0xd21   :  { %v5328_v7 = vld [vmem:[#allocation29 + $0xc0] sm:$0xff] }
 0xd22   :  { %9336 = vmatpush1.bf16.msra.mxu1 %v9335_v22  ;;  %9528 = vmatpush1.bf16.msra.mxu0 %v9527_v18  ;;  %v5493_v22 = vld [vmem:[#allocation30 + $0x1e8] sm:$0xff]  ;;  %v9359_v18 = vpack.c.bf16 %v5476_v38, %v5468_v8  ;;  %v9419_v53 = vpack.c.bf16 %v5328_v7, %v5320_v27  ;;  %v5336_v5 = vld [vmem:[#allocation29 + $0x100] sm:$0xff]  ;;  %v5338_v7 = vld [vmem:[#allocation29 + $0x110] sm:$0xff] }
 0xd23   :  { %9338 = vmatprep.subr.bf16.mxu1 %v9337_v9  ;;  %9530 = vmatprep.subr.bf16.mxu0 %v9529_v20  ;;  %v9361_v35 = vpack.c.bf16 %v5493_v22, %v5485_v17  ;;  %v5492_v9 = vld [vmem:[#allocation30 + $0x1e0] sm:$0xff]  ;;  %v5501_v20 = vld [vmem:[#allocation30 + $0x228] sm:$0xff] }
 0xd24   :  { %v9363_v34 = vpack.c.bf16 %v5492_v9, %v5484_v21  ;;  %v9365_v50 = vpack.c.bf16 %v5509_v6, %v5501_v20  ;;  %v5344_v30 = vld [vmem:[#allocation29 + $0x140] sm:$0xff]  ;;  %v5385_v6 = vld [vmem:[#allocation29 + $0x288] sm:$0xff] }
 0xd25   :  { %v9423_v8 = vpack.c.bf16 %v5344_v30, %v5336_v5  ;;  %v5352_v17 = vld [vmem:[#allocation29 + $0x180] sm:$0xff]  ;;  %v5354_v30 = vld [vmem:[#allocation29 + $0x190] sm:$0xff] }
 0xd26   :  { %9340 = vmatpush1.bf16.msra.mxu1 %v9339_v57  ;;  %9532 = vmatpush1.bf16.msra.mxu0 %v9531_v58  ;;  %v5525_v57 = vld [vmem:[#allocation30 + $0x2e8] sm:$0xff]  ;;  %v9367_v58 = vpack.c.bf16 %v5508_v52, %v5500_v12  ;;  %v5360_v22 = vld [vmem:[#allocation29 + $0x1c0] sm:$0xff] }
 0xd27   :  { %9342 = vmatprep.subr.bf16.mxu1 %v9341_v56  ;;  %9534 = vmatprep.subr.bf16.mxu0 %v9533_v47  ;;  %v9369_v19 = vpack.c.bf16 %v5525_v57, %v5517_v31  ;;  %v5524_v56 = vld [vmem:[#allocation30 + $0x2e0] sm:$0xff]  ;;  %v5533_v47 = vld [vmem:[#allocation30 + $0x328] sm:$0xff] }
 0xd28   :  { %v9371_v54 = vpack.c.bf16 %v5524_v56, %v5516_v45  ;;  %v9373_v63 = vpack.c.bf16 %v5541_v0, %v5533_v47  ;;  %v5368_v9 = vld [vmem:[#allocation29 + $0x200] sm:$0xff]  ;;  %v5401_v57 = vld [vmem:[#allocation29 + $0x308] sm:$0xff] }
 0xd29   :  { %v5376_v20 = vld [vmem:[#allocation29 + $0x240] sm:$0xff]  ;;  %v5417_v0 = vld [vmem:[#allocation29 + $0x388] sm:$0xff] }
 0xd2a   :  { %9344 = vmatpush1.bf16.msra.mxu1 %v9343_v51  ;;  %9536 = vmatpush1.bf16.msra.mxu0 %v9535_v60  ;;  %v5557_v51 = vld [vmem:[#allocation30 + $0x3e8] sm:$0xff]  ;;  %v9375_v60 = vpack.c.bf16 %v5540_v59, %v5532_v4  ;;  %v5384_v52 = vld [vmem:[#allocation29 + $0x280] sm:$0xff] }
 0xd2b   :  { %9346 = vmatprep.subr.bf16.mxu1 %v9345_v28  ;;  %9538 = vmatprep.subr.bf16.mxu0 %v9537_v11  ;;  %v9377_v33 = vpack.c.bf16 %v5557_v51, %v5549_v3  ;;  %v5548_v28 = vld [vmem:[#allocation30 + $0x3a0] sm:$0xff]  ;;  %v5307_v51 = vld [vmem:[#allocation29 + $0x18] sm:$0xff] }
 0xd2c   :  { %v5556_v11 = vld [vmem:[#allocation30 + $0x3e0] sm:$0xff] }
 0xd2d   :  { %v9379_v39 = vpack.c.bf16 %v5556_v11, %v5548_v28  ;;  %v5392_v31 = vld [vmem:[#allocation29 + $0x2c0] sm:$0xff]  ;;  %v5306_v11 = vld [vmem:[#allocation29 + $0x10] sm:$0xff] }
 0xd2e   :  { %9348 = vmatpush1.bf16.msra.mxu1 %v9347_v43  ;;  %9540 = vmatpush1.bf16.msra.mxu0 %v9539_v46  ;;  %v5312_v43 = vld [vmem:[#allocation29 + $0x40] sm:$0xff]  ;;  %v5321_v46 = vld [vmem:[#allocation29 + $0x88] sm:$0xff] }
 0xd2f   :  { %9350 = vmatprep.subr.bf16.mxu1 %v9349_v48  ;;  %v5329_v48 = vld [vmem:[#allocation29 + $0xc8] sm:$0xff]  ;;  %v9415_v2 = vpack.c.bf16 %v5312_v43, %v5304_v29  ;;  %v5400_v56 = vld [vmem:[#allocation29 + $0x300] sm:$0xff]  ;;  %v5322_v43 = vld [vmem:[#allocation29 + $0x90] sm:$0xff] }
 0xd30   :  { %v9417_v49 = vpack.c.bf16 %v5329_v48, %v5321_v46  ;;  %v5408_v47 = vld [vmem:[#allocation29 + $0x340] sm:$0xff]  ;;  %v5330_v46 = vld [vmem:[#allocation29 + $0xd0] sm:$0xff]  ;;  %v5339_v48 = vld [vmem:[#allocation29 + $0x118] sm:$0xff] }
 0xd31   :  { %5696 = vmatmul.mubr.f32.vlgmr.msra.gmra.mrb[110].mxu1 %v12186_v62  ;;  %6122 = vmatmul.mubr.f32.vlgmr.msra.gmra.mrb[124].mxu0 %v12166_v13  ;;  %v5416_v59 = vld [vmem:[#allocation29 + $0x380] sm:$0xff] }
 0xd32   :  { %9352 = vmatpush1.bf16.msra.mxu1 %v9351_v1  ;;  %5766 = vmatprep.mubr.f32.mxu1 %v12357_v42  ;;  %v5337_v1 = vld [vmem:[#allocation29 + $0x108] sm:$0xff]  ;;  %v5424_v3 = vld [vmem:[#allocation29 + $0x3c0] sm:$0xff] }
 0xd33   :  { %9354 = vmatprep.subr.bf16.mxu1 %v9353_v44  ;;  %v5345_v44 = vld [vmem:[#allocation29 + $0x148] sm:$0xff] }
 0xd34   :  { %v9421_v25 = vpack.c.bf16 %v5345_v44, %v5337_v1  ;;  %v5346_v1 = vld [vmem:[#allocation29 + $0x150] sm:$0xff]  ;;  %v5355_v44 = vld [vmem:[#allocation29 + $0x198] sm:$0xff] }
 0xd36   :  { %9356 = vmatpush1.bf16.msra.mxu1 %v9355_v40  ;;  %v5353_v40 = vld [vmem:[#allocation29 + $0x188] sm:$0xff] }
 0xd37   :  { %9358 = vmatprep.subr.bf16.mxu1 %v9357_v37  ;;  %v5361_v37 = vld [vmem:[#allocation29 + $0x1c8] sm:$0xff] }
 0xd38   :  { %v9425_v38 = vpack.c.bf16 %v5361_v37, %v5353_v40  ;;  %v5362_v40 = vld [vmem:[#allocation29 + $0x1d0] sm:$0xff]  ;;  %v5371_v37 = vld [vmem:[#allocation29 + $0x218] sm:$0xff] }
 0xd3a   :  { %9360 = vmatpush1.bf16.msra.mxu1 %v9359_v18  ;;  %v5369_v18 = vld [vmem:[#allocation29 + $0x208] sm:$0xff] }
 0xd3b   :  { %9362 = vmatprep.subr.bf16.mxu1 %v9361_v35  ;;  %v5377_v35 = vld [vmem:[#allocation29 + $0x248] sm:$0xff] }
 0xd3c   :  { %v9429_v21 = vpack.c.bf16 %v5377_v35, %v5369_v18  ;;  %v5378_v18 = vld [vmem:[#allocation29 + $0x250] sm:$0xff]  ;;  %v5387_v35 = vld [vmem:[#allocation29 + $0x298] sm:$0xff] }
 0xd3e   :  { %9364 = vmatpush1.bf16.msra.mxu1 %v9363_v34  ;;  %v5393_v34 = vld [vmem:[#allocation29 + $0x2c8] sm:$0xff] }
 0xd3f   :  { %9366 = vmatprep.subr.bf16.mxu1 %v9365_v50  ;;  %v9431_v50 = vpack.c.bf16 %v5376_v20, %v5368_v9  ;;  %v9433_v12 = vpack.c.bf16 %v5393_v34, %v5385_v6  ;;  %v5386_v20 = vld [vmem:[#allocation29 + $0x290] sm:$0xff]  ;;  %v5403_v34 = vld [vmem:[#allocation29 + $0x318] sm:$0xff] }
 0xd40   :  { %v5394_v6 = vld [vmem:[#allocation29 + $0x2d0] sm:$0xff] }
 0xd42   :  { %9368 = vmatpush1.bf16.msra.mxu1 %v9367_v58  ;;  %v5409_v58 = vld [vmem:[#allocation29 + $0x348] sm:$0xff] }
 0xd43   :  { %9370 = vmatprep.subr.bf16.mxu1 %v9369_v19  ;;  %v9435_v19 = vpack.c.bf16 %v5392_v31, %v5384_v52  ;;  %v9437_v45 = vpack.c.bf16 %v5409_v58, %v5401_v57  ;;  %v5402_v31 = vld [vmem:[#allocation29 + $0x310] sm:$0xff]  ;;  %v5419_v58 = vld [vmem:[#allocation29 + $0x398] sm:$0xff] }
 0xd44   :  { %v5410_v57 = vld [vmem:[#allocation29 + $0x350] sm:$0xff] }
 0xd46   :  { %9372 = vmatpush1.bf16.msra.mxu1 %v9371_v54  ;;  %v5425_v54 = vld [vmem:[#allocation29 + $0x3c8] sm:$0xff] }
 0xd47   :  { %9374 = vmatprep.subr.bf16.mxu1 %v9373_v63  ;;  %v9439_v63 = vpack.c.bf16 %v5408_v47, %v5400_v56  ;;  %v9441_v4 = vpack.c.bf16 %v5425_v54, %v5417_v0  ;;  %v5418_v56 = vld [vmem:[#allocation29 + $0x390] sm:$0xff]  ;;  %v5309_v54 = vld [vmem:[#allocation29 + $0x28] sm:$0xff] }
 0xd48   :  { %v5426_v47 = vld [vmem:[#allocation29 + $0x3d0] sm:$0xff] }
 0xd4a   :  { %9376 = vmatpush1.bf16.msra.mxu1 %v9375_v60  ;;  %v5315_v60 = vld [vmem:[#allocation29 + $0x58] sm:$0xff] }
 0xd4b   :  { %9378 = vmatprep.subr.bf16.mxu1 %v9377_v33  ;;  %v9443_v33 = vpack.c.bf16 %v5424_v3, %v5416_v59  ;;  %v9445_v28 = vpack.c.bf16 %v5315_v60, %v5307_v51  ;;  %v5317_v59 = vld [vmem:[#allocation29 + $0x68] sm:$0xff] }
 0xd4c   :  { %v6186_v51 = vld [vmem:[#allocation33] sm:$0xff] }
 0xd4d   :  { %v6190_v60 = vld [vmem:[#allocation33 + $0x20] sm:$0xff] }
 0xd4e   :  { %9380 = vmatpush1.bf16.msra.mxu1 %v9379_v39  ;;  %v5331_v39 = vld [vmem:[#allocation29 + $0xd8] sm:$0xff] }
 0xd4f   :  { %9414 = vmatprep.subr.bf16.mxu1 %v9413_v15  ;;  %v9447_v15 = vpack.c.bf16 %v5314_v61, %v5306_v11  ;;  %v9449_v29 = vpack.c.bf16 %v5331_v39, %v5323_v14  ;;  %v9475_v11 = vpack.c.bf16 %v5426_v47, %v5418_v56  ;;  %v5308_v61 = vld [vmem:[#allocation29 + $0x20] sm:$0xff]  ;;  %v6199_v39 = vld [vmem:[#allocation33 + $0x68] sm:$0xff] }
 0xd50   :  { %v5316_v14 = vld [vmem:[#allocation29 + $0x60] sm:$0xff]  ;;  %v6231_v56 = vld [vmem:[#allocation33 + $0x168] sm:$0xff] }
 0xd51   :  { %5767 = vmatmul.mubr.f32.vlgmr.msra.gmra.mrb[112].mxu1 %v12186_v62  ;;  %v9427_v62 = vpack.c.bf16 %v5360_v22, %v5352_v17  ;;  %v5370_v22 = vld [vmem:[#allocation29 + $0x210] sm:$0xff] }
 0xd52   :  { %9416 = vmatpush1.bf16.msra.mxu1 %v9415_v2  ;;  %5908 = vmatprep.mubr.f32.mxu1 %v12357_v42  ;;  %v5347_v2 = vld [vmem:[#allocation29 + $0x158] sm:$0xff] }
 0xd53   :  { %9418 = vmatprep.subr.bf16.mxu1 %v9417_v49  ;;  %v9451_v49 = vpack.c.bf16 %v5330_v46, %v5322_v43  ;;  %v9453_v27 = vpack.c.bf16 %v5347_v2, %v5339_v48  ;;  %v6194_v46 = vld [vmem:[#allocation33 + $0x40] sm:$0xff] }
 0xd54   :  { %v6198_v48 = vld [vmem:[#allocation33 + $0x60] sm:$0xff] }
 0xd55   :  { %v5333_v2 = vld [vmem:[#allocation29 + $0xe8] sm:$0xff] }
 0xd56   :  { %9420 = vmatpush1.bf16.msra.mxu1 %v9419_v53  ;;  %v5363_v53 = vld [vmem:[#allocation29 + $0x1d8] sm:$0xff] }
 0xd57   :  { %9422 = vmatprep.subr.bf16.mxu1 %v9421_v25  ;;  %v9455_v25 = vpack.c.bf16 %v5346_v1, %v5338_v7  ;;  %v9457_v5 = vpack.c.bf16 %v5363_v53, %v5355_v44  ;;  %v6207_v7 = vld [vmem:[#allocation33 + $0xa8] sm:$0xff]  ;;  %v6202_v44 = vld [vmem:[#allocation33 + $0x80] sm:$0xff]  ;;  %v9479_v53 = vpack.c.bf16 %v5316_v14, %v5308_v61  ;;  %v5372_v14 = vld [vmem:[#allocation29 + $0x220] sm:$0xff] }
 0xd5a   :  { %9424 = vmatpush1.bf16.msra.mxu1 %v9423_v8  ;;  %v5379_v8 = vld [vmem:[#allocation29 + $0x258] sm:$0xff] }
 0xd5b   :  { %9426 = vmatprep.subr.bf16.mxu1 %v9425_v38  ;;  %v9459_v38 = vpack.c.bf16 %v5362_v40, %v5354_v30  ;;  %v9461_v17 = vpack.c.bf16 %v5379_v8, %v5371_v37  ;;  %v6206_v30 = vld [vmem:[#allocation33 + $0xa0] sm:$0xff] }
 0xd5c   :  { %v5341_v37 = vld [vmem:[#allocation29 + $0x128] sm:$0xff]  ;;  %v9551_v8 = vpack.c.bf16 %v6206_v30, %v6202_v44  ;;  %v5388_v44 = vld [vmem:[#allocation29 + $0x2a0] sm:$0xff] }
 0xd5d   :  { %v5413_v30 = vld [vmem:[#allocation29 + $0x368] sm:$0xff] }
 0xd5e   :  { %9428 = vmatpush1.bf16.msra.mxu1 %v9427_v62  ;;  %v5395_v62 = vld [vmem:[#allocation29 + $0x2d8] sm:$0xff] }
 0xd5f   :  { %9430 = vmatprep.subr.bf16.mxu1 %v9429_v21  ;;  %v9463_v21 = vpack.c.bf16 %v5378_v18, %v5370_v22  ;;  %v9465_v9 = vpack.c.bf16 %v5395_v62, %v5387_v35  ;;  %v5349_v22 = vld [vmem:[#allocation29 + $0x168] sm:$0xff] }
 0xd60   :  { %v6210_v35 = vld [vmem:[#allocation33 + $0xc0] sm:$0xff] }
 0xd61   :  { %v6214_v62 = vld [vmem:[#allocation33 + $0xe0] sm:$0xff] }
 0xd62   :  { %9432 = vmatpush1.bf16.msra.mxu1 %v9431_v50  ;;  %v5411_v50 = vld [vmem:[#allocation29 + $0x358] sm:$0xff] }
 0xd63   :  { %9434 = vmatprep.subr.bf16.mxu1 %v9433_v12  ;;  %v9467_v12 = vpack.c.bf16 %v5394_v6, %v5386_v20  ;;  %v9469_v52 = vpack.c.bf16 %v5411_v50, %v5403_v34  ;;  %v6223_v20 = vld [vmem:[#allocation33 + $0x128] sm:$0xff]  ;;  %v9485_v6 = vpack.c.bf16 %v5349_v22, %v5341_v37  ;;  %v5340_v34 = vld [vmem:[#allocation29 + $0x120] sm:$0xff]  ;;  %v6242_v37 = vld [vmem:[#allocation33 + $0x1c0] sm:$0xff] }
 0xd64   :  { %v5348_v50 = vld [vmem:[#allocation29 + $0x160] sm:$0xff] }
 0xd65   :  { %v9487_v47 = vpack.c.bf16 %v5348_v50, %v5340_v34  ;;  %v6250_v34 = vld [vmem:[#allocation33 + $0x200] sm:$0xff] }
 0xd66   :  { %9436 = vmatpush1.bf16.msra.mxu1 %v9435_v19  ;;  %v5427_v19 = vld [vmem:[#allocation29 + $0x3d8] sm:$0xff]  ;;  %v6254_v50 = vld [vmem:[#allocation33 + $0x220] sm:$0xff] }
 0xd67   :  { %9438 = vmatprep.subr.bf16.mxu1 %v9437_v45  ;;  %v9471_v45 = vpack.c.bf16 %v5410_v57, %v5402_v31  ;;  %v9473_v0 = vpack.c.bf16 %v5427_v19, %v5419_v58  ;;  %v5365_v31 = vld [vmem:[#allocation29 + $0x1e8] sm:$0xff] }
 0xd68   :  { %v6218_v58 = vld [vmem:[#allocation33 + $0x100] sm:$0xff] }
 0xd69   :  { %v6222_v19 = vld [vmem:[#allocation33 + $0x120] sm:$0xff] }
 0xd6a   :  { %9440 = vmatpush1.bf16.msra.mxu1 %v9439_v63  ;;  %v6187_v63 = vld [vmem:[#allocation33 + $0x8] sm:$0xff] }
 0xd6b   :  { %9442 = vmatprep.subr.bf16.mxu1 %v9441_v4  ;;  %v6191_v4 = vld [vmem:[#allocation33 + $0x28] sm:$0xff] }
 0xd6c   :  { %v9541_v3 = vpack.c.bf16 %v6191_v4, %v6187_v63  ;;  %v5373_v63 = vld [vmem:[#allocation29 + $0x228] sm:$0xff]  ;;  %v9559_v4 = vpack.c.bf16 %v6222_v19, %v6218_v58  ;;  %v5420_v58 = vld [vmem:[#allocation29 + $0x3a0] sm:$0xff] }
 0xd6d   :  { %v5428_v19 = vld [vmem:[#allocation29 + $0x3e0] sm:$0xff] }
 0xd6e   :  { %9444 = vmatpush1.bf16.msra.mxu1 %v9443_v33  ;;  %v9543_v33 = vpack.c.bf16 %v6190_v60, %v6186_v51  ;;  %9542 = vmatprep.subr.bf16.mxu0 %v9541_v3  ;;  %v6226_v51 = vld [vmem:[#allocation33 + $0x140] sm:$0xff] }
 0xd6f   :  { %9446 = vmatprep.subr.bf16.mxu1 %v9445_v28  ;;  %v6195_v28 = vld [vmem:[#allocation33 + $0x48] sm:$0xff]  ;;  %v6230_v60 = vld [vmem:[#allocation33 + $0x160] sm:$0xff] }
 0xd70   :  { %9544 = vmatpush1.bf16.msra.mxu0 %v9543_v33  ;;  %v9545_v43 = vpack.c.bf16 %v6199_v39, %v6195_v28  ;;  %v6235_v33 = vld [vmem:[#allocation33 + $0x188] sm:$0xff]  ;;  %v5380_v39 = vld [vmem:[#allocation29 + $0x260] sm:$0xff] }
 0xd71   :  { %5909 = vmatmul.mubr.f32.vlgmr.msra.gmra.mrb[108].mxu1 %v12166_v13  ;;  %v6239_v28 = vld [vmem:[#allocation33 + $0x1a8] sm:$0xff] }
 0xd72   :  { %9448 = vmatpush1.bf16.msra.mxu1 %v9447_v15  ;;  %5979 = vmatprep.mubr.f32.mxu1 %v12357_v42  ;;  %v9477_v15 = vpack.c.bf16 %v5317_v59, %v5309_v54  ;;  %v5364_v54 = vld [vmem:[#allocation29 + $0x1e0] sm:$0xff]  ;;  %v5381_v59 = vld [vmem:[#allocation29 + $0x268] sm:$0xff] }
 0xd73   :  { %9450 = vmatprep.subr.bf16.mxu1 %v9449_v29  ;;  %v5325_v29 = vld [vmem:[#allocation29 + $0xa8] sm:$0xff]  ;;  %9546 = vmatprep.subr.bf16.mxu0 %v9545_v43  ;;  %v9493_v61 = vpack.c.bf16 %v5381_v59, %v5373_v63  ;;  %v6267_v63 = vld [vmem:[#allocation33 + $0x288] sm:$0xff]  ;;  %v9507_v59 = vpack.c.bf16 %v5428_v19, %v5420_v58 }
 0xd74   :  { %v9481_v40 = vpack.c.bf16 %v5333_v2, %v5325_v29  ;;  %v9563_v29 = vpack.c.bf16 %v6230_v60, %v6226_v51  ;;  %v5397_v43 = vld [vmem:[#allocation29 + $0x2e8] sm:$0xff]  ;;  %v6188_v51 = vld [vmem:[#allocation33 + $0x10] sm:$0xff]  ;;  %v6299_v19 = vld [vmem:[#allocation33 + $0x388] sm:$0xff] }
 0xd75   :  { %v6238_v2 = vld [vmem:[#allocation33 + $0x1a0] sm:$0xff]  ;;  %v6192_v60 = vld [vmem:[#allocation33 + $0x30] sm:$0xff] }
 0xd76   :  { %9452 = vmatpush1.bf16.msra.mxu1 %v9451_v49  ;;  %v9547_v49 = vpack.c.bf16 %v6198_v48, %v6194_v46  ;;  %v9565_v46 = vpack.c.bf16 %v6239_v28, %v6235_v33  ;;  %v6234_v48 = vld [vmem:[#allocation33 + $0x180] sm:$0xff]  ;;  %v6197_v33 = vld [vmem:[#allocation33 + $0x58] sm:$0xff] }
 0xd77   :  { %9454 = vmatprep.subr.bf16.mxu1 %v9453_v27  ;;  %v6203_v27 = vld [vmem:[#allocation33 + $0x88] sm:$0xff]  ;;  %v6294_v58 = vld [vmem:[#allocation33 + $0x360] sm:$0xff] }
 0xd78   :  { %v9549_v1 = vpack.c.bf16 %v6207_v7, %v6203_v27  ;;  %9548 = vmatpush1.bf16.msra.mxu0 %v9547_v49  ;;  %v6243_v49 = vld [vmem:[#allocation33 + $0x1c8] sm:$0xff]  ;;  %v9495_v7 = vpack.c.bf16 %v5380_v39, %v5372_v14  ;;  %v6266_v14 = vld [vmem:[#allocation33 + $0x280] sm:$0xff] }
 0xd79   :  { %v6247_v27 = vld [vmem:[#allocation33 + $0x1e8] sm:$0xff]  ;;  %v6270_v39 = vld [vmem:[#allocation33 + $0x2a0] sm:$0xff] }
 0xd7a   :  { %9456 = vmatpush1.bf16.msra.mxu1 %v9455_v25  ;;  %v5324_v25 = vld [vmem:[#allocation29 + $0xa0] sm:$0xff]  ;;  %9550 = vmatprep.subr.bf16.mxu0 %v9549_v1 }
 0xd7b   :  { %9458 = vmatprep.subr.bf16.mxu1 %v9457_v5  ;;  %v5332_v5 = vld [vmem:[#allocation29 + $0xe0] sm:$0xff] }
 0xd7c   :  { %9552 = vmatpush1.bf16.msra.mxu0 %v9551_v8  ;;  %v6246_v8 = vld [vmem:[#allocation33 + $0x1e0] sm:$0xff] }
 0xd7e   :  { %9460 = vmatpush1.bf16.msra.mxu1 %v9459_v38  ;;  %v6211_v38 = vld [vmem:[#allocation33 + $0xc8] sm:$0xff] }
 0xd7f   :  { %9462 = vmatprep.subr.bf16.mxu1 %v9461_v17  ;;  %v6215_v17 = vld [vmem:[#allocation33 + $0xe8] sm:$0xff] }
 0xd80   :  { %v9553_v18 = vpack.c.bf16 %v6215_v17, %v6211_v38  ;;  %v6251_v38 = vld [vmem:[#allocation33 + $0x208] sm:$0xff] }
 0xd81   :  { %v6255_v17 = vld [vmem:[#allocation33 + $0x228] sm:$0xff] }
 0xd82   :  { %9464 = vmatpush1.bf16.msra.mxu1 %v9463_v21  ;;  %v6219_v21 = vld [vmem:[#allocation33 + $0x108] sm:$0xff]  ;;  %9554 = vmatprep.subr.bf16.mxu0 %v9553_v18 }
 0xd83   :  { %9466 = vmatprep.subr.bf16.mxu1 %v9465_v9  ;;  %v9483_v9 = vpack.c.bf16 %v5332_v5, %v5324_v25  ;;  %v9557_v57 = vpack.c.bf16 %v6223_v20, %v6219_v21  ;;  %v5405_v25 = vld [vmem:[#allocation29 + $0x328] sm:$0xff]  ;;  %v9567_v5 = vpack.c.bf16 %v6238_v2, %v6234_v48  ;;  %v6196_v48 = vld [vmem:[#allocation33 + $0x50] sm:$0xff] }
 0xd84   :  { %v9501_v18 = vpack.c.bf16 %v5413_v30, %v5405_v25  ;;  %v5421_v21 = vld [vmem:[#allocation29 + $0x3a8] sm:$0xff]  ;;  %v6200_v2 = vld [vmem:[#allocation33 + $0x70] sm:$0xff]  ;;  %v6283_v25 = vld [vmem:[#allocation33 + $0x308] sm:$0xff] }
 0xd85   :  { %v5429_v20 = vld [vmem:[#allocation29 + $0x3e8] sm:$0xff]  ;;  %v9803_v30 = vpack.c.bf16 %v6200_v2, %v6196_v48  ;;  %v6245_v48 = vld [vmem:[#allocation33 + $0x1d8] sm:$0xff]  ;;  %v6307_v2 = vld [vmem:[#allocation33 + $0x3c8] sm:$0xff] }
 0xd86   :  { %9468 = vmatpush1.bf16.msra.mxu1 %v9467_v12  ;;  %v5357_v12 = vld [vmem:[#allocation29 + $0x1a8] sm:$0xff] }
 0xd87   :  { %9470 = vmatprep.subr.bf16.mxu1 %v9469_v52  ;;  %v9555_v52 = vpack.c.bf16 %v6214_v62, %v6210_v35  ;;  %v5404_v35 = vld [vmem:[#allocation29 + $0x320] sm:$0xff] }
 0xd88   :  { %v5412_v62 = vld [vmem:[#allocation29 + $0x360] sm:$0xff] }
 0xd89   :  { %9556 = vmatpush1.bf16.msra.mxu0 %v9555_v52  ;;  %v6263_v52 = vld [vmem:[#allocation33 + $0x268] sm:$0xff] }
 0xd8a   :  { %9472 = vmatpush1.bf16.msra.mxu1 %v9471_v45  ;;  %v6227_v45 = vld [vmem:[#allocation33 + $0x148] sm:$0xff]  ;;  %9558 = vmatprep.subr.bf16.mxu0 %v9557_v57  ;;  %v9505_v57 = vpack.c.bf16 %v5429_v20, %v5421_v21 }
 0xd8b   :  { %9474 = vmatprep.subr.bf16.mxu1 %v9473_v0  ;;  %v9489_v0 = vpack.c.bf16 %v5365_v31, %v5357_v12  ;;  %v9561_v3 = vpack.c.bf16 %v6231_v56, %v6227_v45  ;;  %v6259_v12 = vld [vmem:[#allocation33 + $0x248] sm:$0xff]  ;;  %v9503_v31 = vpack.c.bf16 %v5412_v62, %v5404_v35  ;;  %v6189_v45 = vld [vmem:[#allocation33 + $0x18] sm:$0xff]  ;;  %v9575_v56 = vpack.c.bf16 %v6254_v50, %v6250_v34  ;;  %v6282_v35 = vld [vmem:[#allocation33 + $0x300] sm:$0xff] }
 0xd8c   :  { %v6286_v62 = vld [vmem:[#allocation33 + $0x320] sm:$0xff]  ;;  %v6291_v21 = vld [vmem:[#allocation33 + $0x348] sm:$0xff]  ;;  %v6216_v34 = vld [vmem:[#allocation33 + $0xf0] sm:$0xff] }
 0xd8d   :  { %9560 = vmatpush1.bf16.msra.mxu0 %v9559_v4  ;;  %v6271_v4 = vld [vmem:[#allocation33 + $0x2a8] sm:$0xff]  ;;  %v6221_v50 = vld [vmem:[#allocation33 + $0x118] sm:$0xff] }
 0xd8e   :  { %9476 = vmatpush1.bf16.msra.mxu1 %v9475_v11  ;;  %9562 = vmatprep.subr.bf16.mxu0 %v9561_v3 }
 0xd8f   :  { %9478 = vmatprep.subr.bf16.mxu1 %v9477_v15  ;;  %v5389_v15 = vld [vmem:[#allocation29 + $0x2a8] sm:$0xff] }
 0xd90   :  { %v9497_v1 = vpack.c.bf16 %v5397_v43, %v5389_v15  ;;  %v6275_v15 = vld [vmem:[#allocation33 + $0x2c8] sm:$0xff]  ;;  %v9799_v43 = vpack.c.bf16 %v6192_v60, %v6188_v51  ;;  %v6302_v51 = vld [vmem:[#allocation33 + $0x3a0] sm:$0xff] }
 0xd91   :  { %5980 = vmatmul.mubr.f32.vlgmr.msra.gmra.mrb[110].mxu1 %v12166_v13  ;;  %9564 = vmatpush1.bf16.msra.mxu0 %v9563_v29  ;;  %v6279_v29 = vld [vmem:[#allocation33 + $0x2e8] sm:$0xff] }
 0xd92   :  { %9480 = vmatpush1.bf16.msra.mxu1 %v9479_v53  ;;  %6050 = vmatprep.mubr.f32.mxu1 %v12357_v42  ;;  %v5356_v42 = vld [vmem:[#allocation29 + $0x1a0] sm:$0xff] }
 0xd93   :  { %9482 = vmatprep.subr.bf16.mxu1 %v9481_v40  ;;  %v9491_v11 = vpack.c.bf16 %v5364_v54, %v5356_v42  ;;  %v5396_v53 = vld [vmem:[#allocation29 + $0x2e0] sm:$0xff]  ;;  %9566 = vmatprep.subr.bf16.mxu0 %v9565_v46  ;;  %v9569_v40 = vpack.c.bf16 %v6247_v27, %v6243_v49  ;;  %v6258_v42 = vld [vmem:[#allocation33 + $0x240] sm:$0xff]  ;;  %v9583_v27 = vpack.c.bf16 %v6270_v39, %v6266_v14 }
 0xd94   :  { %v9499_v22 = vpack.c.bf16 %v5396_v53, %v5388_v44  ;;  %v6262_v54 = vld [vmem:[#allocation33 + $0x260] sm:$0xff]  ;;  %v6205_v49 = vld [vmem:[#allocation33 + $0x98] sm:$0xff] }
 0xd95   :  { %9568 = vmatpush1.bf16.msra.mxu0 %v9567_v5  ;;  %v9579_v28 = vpack.c.bf16 %v6262_v54, %v6258_v42  ;;  %v6274_v44 = vld [vmem:[#allocation33 + $0x2c0] sm:$0xff]  ;;  %v6287_v5 = vld [vmem:[#allocation33 + $0x328] sm:$0xff]  ;;  %v6224_v42 = vld [vmem:[#allocation33 + $0x130] sm:$0xff] }
 0xd96   :  { %9484 = vmatpush1.bf16.msra.mxu1 %v9483_v9  ;;  %v9571_v9 = vpack.c.bf16 %v6246_v8, %v6242_v37  ;;  %9570 = vmatprep.subr.bf16.mxu0 %v9569_v40  ;;  %v6278_v53 = vld [vmem:[#allocation33 + $0x2e0] sm:$0xff]  ;;  %v6204_v37 = vld [vmem:[#allocation33 + $0x90] sm:$0xff]  ;;  %v6229_v54 = vld [vmem:[#allocation33 + $0x158] sm:$0xff] }
 0xd97   :  { %9486 = vmatprep.subr.bf16.mxu1 %v9485_v6  ;;  %v9573_v6 = vpack.c.bf16 %v6255_v17, %v6251_v38  ;;  %v6208_v8 = vld [vmem:[#allocation33 + $0xb0] sm:$0xff]  ;;  %v6213_v38 = vld [vmem:[#allocation33 + $0xd8] sm:$0xff]  ;;  %v9587_v17 = vpack.c.bf16 %v6278_v53, %v6274_v44  ;;  %v6310_v44 = vld [vmem:[#allocation33 + $0x3e0] sm:$0xff] }
 0xd98   :  { %v6237_v14 = vld [vmem:[#allocation33 + $0x198] sm:$0xff] }
 0xd99   :  { %9572 = vmatpush1.bf16.msra.mxu0 %v9571_v9  ;;  %v6295_v9 = vld [vmem:[#allocation33 + $0x368] sm:$0xff]  ;;  %v6241_v39 = vld [vmem:[#allocation33 + $0x1b8] sm:$0xff] }
 0xd9a   :  { %9488 = vmatpush1.bf16.msra.mxu1 %v9487_v47  ;;  %v6193_v47 = vld [vmem:[#allocation33 + $0x38] sm:$0xff]  ;;  %9574 = vmatprep.subr.bf16.mxu0 %v9573_v6  ;;  %v6212_v6 = vld [vmem:[#allocation33 + $0xd0] sm:$0xff] }
 0xd9b   :  { %9490 = vmatprep.subr.bf16.mxu1 %v9489_v0  ;;  %v9577_v0 = vpack.c.bf16 %v6263_v52, %v6259_v12  ;;  %v9797_v3 = vpack.c.bf16 %v6193_v47, %v6189_v45  ;;  %v9591_v12 = vpack.c.bf16 %v6286_v62, %v6282_v35  ;;  %v6225_v52 = vld [vmem:[#allocation33 + $0x138] sm:$0xff]  ;;  %v6303_v45 = vld [vmem:[#allocation33 + $0x3a8] sm:$0xff]  ;;  %v6252_v62 = vld [vmem:[#allocation33 + $0x210] sm:$0xff] }
 0xd9c   :  { %v9813_v47 = vpack.c.bf16 %v6225_v52, %v6221_v50  ;;  %v6264_v50 = vld [vmem:[#allocation33 + $0x270] sm:$0xff]  ;;  %v6273_v52 = vld [vmem:[#allocation33 + $0x2b8] sm:$0xff] }
 0xd9d   :  { %9576 = vmatpush1.bf16.msra.mxu0 %v9575_v56  ;;  %v9811_v56 = vpack.c.bf16 %v6216_v34, %v6212_v6  ;;  %v6260_v34 = vld [vmem:[#allocation33 + $0x250] sm:$0xff] }
 0xd9e   :  { %9492 = vmatpush1.bf16.msra.mxu1 %v9491_v11  ;;  %v6201_v11 = vld [vmem:[#allocation33 + $0x78] sm:$0xff]  ;;  %9578 = vmatprep.subr.bf16.mxu0 %v9577_v0  ;;  %v6220_v0 = vld [vmem:[#allocation33 + $0x110] sm:$0xff] }
 0xd9f   :  { %9494 = vmatprep.subr.bf16.mxu1 %v9493_v61  ;;  %v9581_v61 = vpack.c.bf16 %v6271_v4, %v6267_v63  ;;  %v9801_v46 = vpack.c.bf16 %v6201_v11, %v6197_v33  ;;  %v6233_v4 = vld [vmem:[#allocation33 + $0x178] sm:$0xff]  ;;  %v9815_v60 = vpack.c.bf16 %v6224_v42, %v6220_v0  ;;  %v6232_v11 = vld [vmem:[#allocation33 + $0x170] sm:$0xff] }
 0xda0   :  { %v9817_v33 = vpack.c.bf16 %v6233_v4, %v6229_v54  ;;  %v6276_v42 = vld [vmem:[#allocation33 + $0x2d0] sm:$0xff]  ;;  %v6289_v4 = vld [vmem:[#allocation33 + $0x338] sm:$0xff] }
 0xda1   :  { %9580 = vmatpush1.bf16.msra.mxu0 %v9579_v28  ;;  %v6228_v28 = vld [vmem:[#allocation33 + $0x150] sm:$0xff] }
 0xda2   :  { %9496 = vmatpush1.bf16.msra.mxu1 %v9495_v7  ;;  %v6209_v7 = vld [vmem:[#allocation33 + $0xb8] sm:$0xff]  ;;  %9582 = vmatprep.subr.bf16.mxu0 %v9581_v61  ;;  %v6280_v54 = vld [vmem:[#allocation33 + $0x2f0] sm:$0xff] }
 0xda3   :  { %9498 = vmatprep.subr.bf16.mxu1 %v9497_v1  ;;  %v9585_v1 = vpack.c.bf16 %v6279_v29, %v6275_v15  ;;  %v9805_v40 = vpack.c.bf16 %v6209_v7, %v6205_v49  ;;  %v9819_v15 = vpack.c.bf16 %v6232_v11, %v6228_v28  ;;  %v6236_v29 = vld [vmem:[#allocation33 + $0x190] sm:$0xff]  ;;  %v6311_v49 = vld [vmem:[#allocation33 + $0x3e8] sm:$0xff]  ;;  %v6297_v28 = vld [vmem:[#allocation33 + $0x378] sm:$0xff] }
 0xda4   :  { %v9601_v7 = vpack.c.bf16 %v6311_v49, %v6307_v2  ;;  %v6304_v2 = vld [vmem:[#allocation33 + $0x3b0] sm:$0xff]  ;;  %v6309_v49 = vld [vmem:[#allocation33 + $0x3d8] sm:$0xff] }
 0xda5   :  { %9584 = vmatpush1.bf16.msra.mxu0 %v9583_v27  ;;  %v6249_v27 = vld [vmem:[#allocation33 + $0x1f8] sm:$0xff] }
 0xda6   :  { %9500 = vmatpush1.bf16.msra.mxu1 %v9499_v22  ;;  %v6217_v22 = vld [vmem:[#allocation33 + $0xf8] sm:$0xff]  ;;  %9586 = vmatprep.subr.bf16.mxu0 %v9585_v1  ;;  %v6306_v1 = vld [vmem:[#allocation33 + $0x3c0] sm:$0xff] }
 0xda7   :  { %9502 = vmatprep.subr.bf16.mxu1 %v9501_v18  ;;  %v9589_v18 = vpack.c.bf16 %v6287_v5, %v6283_v25  ;;  %v9809_v20 = vpack.c.bf16 %v6217_v22, %v6213_v38  ;;  %v9603_v53 = vpack.c.bf16 %v6310_v44, %v6306_v1  ;;  %v6244_v5 = vld [vmem:[#allocation33 + $0x1d0] sm:$0xff]  ;;  %v6253_v38 = vld [vmem:[#allocation33 + $0x218] sm:$0xff] }
 0xda8   :  { %v6308_v44 = vld [vmem:[#allocation33 + $0x3d0] sm:$0xff] }
 0xda9   :  { %9588 = vmatpush1.bf16.msra.mxu0 %v9587_v17  ;;  %v6257_v17 = vld [vmem:[#allocation33 + $0x238] sm:$0xff] }
 0xdaa   :  { %9504 = vmatpush1.bf16.msra.mxu1 %v9503_v31  ;;  %9590 = vmatprep.subr.bf16.mxu0 %v9589_v18  ;;  %v9593_v31 = vpack.c.bf16 %v6295_v9, %v6291_v21  ;;  %v9829_v35 = vpack.c.bf16 %v6257_v17, %v6253_v38  ;;  %v6256_v21 = vld [vmem:[#allocation33 + $0x230] sm:$0xff]  ;;  %v6261_v9 = vld [vmem:[#allocation33 + $0x258] sm:$0xff] }
 0xdab   :  { %9506 = vmatprep.subr.bf16.mxu1 %v9505_v57  ;;  %v6290_v57 = vld [vmem:[#allocation33 + $0x340] sm:$0xff]  ;;  %v12206_v38 = vld [vmem:[#allocation32] sm:$0xff] }
 0xdac   :  { %v9595_v63 = vpack.c.bf16 %v6294_v58, %v6290_v57  ;;  %v6268_v58 = vld [vmem:[#allocation33 + $0x290] sm:$0xff]  ;;  %v6133_v17 = vrot.slane %v12206_v38, %v12358_v36 }
 0xdad   :  { %9592 = vmatpush1.bf16.msra.mxu0 %v9591_v12  ;;  %v6269_v12 = vld [vmem:[#allocation33 + $0x298] sm:$0xff] }
 0xdae   :  { %9508 = vmatpush1.bf16.msra.mxu1 %v9507_v59  ;;  %9594 = vmatprep.subr.bf16.mxu0 %v9593_v31  ;;  %v9597_v59 = vpack.c.bf16 %v6303_v45, %v6299_v19  ;;  %v9835_v31 = vpack.c.bf16 %v6264_v50, %v6260_v34  ;;  %v9837_v57 = vpack.c.bf16 %v6273_v52, %v6269_v12  ;;  %v6272_v19 = vld [vmem:[#allocation33 + $0x2b0] sm:$0xff]  ;;  %v6277_v45 = vld [vmem:[#allocation33 + $0x2d8] sm:$0xff]  ;;  %v6327_v50 = vld [vmem:[#allocation33 + $0x468] sm:$0xff] }
 0xdaf   :  { %9798 = vmatprep.subr.bf16.mxu1 %v9797_v3  ;;  %v6298_v3 = vld [vmem:[#allocation33 + $0x380] sm:$0xff]  ;;  %v6325_v12 = vld [vmem:[#allocation33 + $0x458] sm:$0xff] }
 0xdb0   :  { %v9599_v61 = vpack.c.bf16 %v6302_v51, %v6298_v3  ;;  %v6284_v51 = vld [vmem:[#allocation33 + $0x310] sm:$0xff]  ;;  %v6329_v52 = vld [vmem:[#allocation33 + $0x478] sm:$0xff] }
 0xdb1   :  { %6051 = vmatmul.mubr.f32.vlgmr.msra.gmra.mrb[112].mxu1 %v12166_v13  ;;  %v9807_v13 = vpack.c.bf16 %v6208_v8, %v6204_v37  ;;  %9596 = vmatpush1.bf16.msra.mxu0 %v9595_v63  ;;  %v6315_v37 = vld [vmem:[#allocation33 + $0x408] sm:$0xff]  ;;  %v6285_v63 = vld [vmem:[#allocation33 + $0x318] sm:$0xff] }
 0xdb2   :  { %9800 = vmatpush1.bf16.msra.mxu1 %v9799_v43  ;;  %9598 = vmatprep.subr.bf16.mxu0 %v9597_v59  ;;  %v6240_v43 = vld [vmem:[#allocation33 + $0x1b0] sm:$0xff]  ;;  %v6319_v8 = vld [vmem:[#allocation33 + $0x428] sm:$0xff]  ;;  %v9843_v59 = vpack.c.bf16 %v6280_v54, %v6276_v42  ;;  %v9845_v3 = vpack.c.bf16 %v6289_v4, %v6285_v63 }
 0xdb3   :  { %9802 = vmatprep.subr.bf16.mxu1 %v9801_v46  ;;  %v9821_v46 = vpack.c.bf16 %v6241_v39, %v6237_v14  ;;  %v9823_v25 = vpack.c.bf16 %v6240_v43, %v6236_v29  ;;  %v9605_v22 = vpack.c.bf16 %v6319_v8, %v6315_v37  ;;  %v6292_v14 = vld [vmem:[#allocation33 + $0x350] sm:$0xff]  ;;  %v6305_v29 = vld [vmem:[#allocation33 + $0x3b8] sm:$0xff]  ;;  %v6331_v63 = vld [vmem:[#allocation33 + $0x488] sm:$0xff] }
 0xdb4   :  { %v6296_v39 = vld [vmem:[#allocation33 + $0x370] sm:$0xff]  ;;  %v6335_v4 = vld [vmem:[#allocation33 + $0x4a8] sm:$0xff] }
 0xdb5   :  { %9600 = vmatpush1.bf16.msra.mxu0 %v9599_v61  ;;  %v9851_v43 = vpack.c.bf16 %v6296_v39, %v6292_v14  ;;  %v6324_v42 = vld [vmem:[#allocation33 + $0x450] sm:$0xff] }
 0xdb6   :  { %9804 = vmatpush1.bf16.msra.mxu1 %v9803_v30  ;;  %9602 = vmatprep.subr.bf16.mxu0 %v9601_v7  ;;  %v9825_v30 = vpack.c.bf16 %v6249_v27, %v6245_v48  ;;  %v6300_v48 = vld [vmem:[#allocation33 + $0x390] sm:$0xff]  ;;  %v6313_v27 = vld [vmem:[#allocation33 + $0x3f8] sm:$0xff] }
 0xdb7   :  { %9806 = vmatprep.subr.bf16.mxu1 %v9805_v40  ;;  %v6248_v40 = vld [vmem:[#allocation33 + $0x1f0] sm:$0xff]  ;;  %v9855_v7 = vpack.c.bf16 %v6304_v2, %v6300_v48  ;;  %v9857_v1 = vpack.c.bf16 %v6313_v27, %v6309_v49  ;;  %v6338_v49 = vld [vmem:[#allocation33 + $0x4c0] sm:$0xff] }
 0xdb8   :  { %v9827_v18 = vpack.c.bf16 %v6248_v40, %v6244_v5  ;;  %v6321_v5 = vld [vmem:[#allocation33 + $0x438] sm:$0xff]  ;;  %v6328_v54 = vld [vmem:[#allocation33 + $0x470] sm:$0xff]  ;;  %v6342_v27 = vld [vmem:[#allocation33 + $0x4e0] sm:$0xff] }
 0xdb9   :  { %9604 = vmatpush1.bf16.msra.mxu0 %v9603_v53  ;;  %v6312_v53 = vld [vmem:[#allocation33 + $0x3f0] sm:$0xff] }
 0xdba   :  { %9808 = vmatpush1.bf16.msra.mxu1 %v9807_v13  ;;  %9606 = vmatprep.subr.bf16.mxu0 %v9605_v22  ;;  %v6265_v13 = vld [vmem:[#allocation33 + $0x278] sm:$0xff]  ;;  %v6137_v22 = vrot.slane %v12206_v38, %v12360_v55  ;;  %v6332_v14 = vld [vmem:[#allocation33 + $0x490] sm:$0xff] }
 0xdbb   :  { %9810 = vmatprep.subr.bf16.mxu1 %v9809_v20  ;;  %v9831_v20 = vpack.c.bf16 %v6256_v21, %v6252_v62  ;;  %v9833_v6 = vpack.c.bf16 %v6265_v13, %v6261_v9  ;;  %v6318_v62 = vld [vmem:[#allocation33 + $0x420] sm:$0xff]  ;;  %v6316_v13 = vld [vmem:[#allocation33 + $0x410] sm:$0xff] }
 0xdbc   :  { %v6336_v39 = vld [vmem:[#allocation33 + $0x4b0] sm:$0xff] }
 0xdbd   :  { %v9871_v2 = vpack.c.bf16 %v6336_v39, %v6332_v14  ;;  %v6373_v14 = vld [vmem:[#allocation33 + $0x5d8] sm:$0xff] }
 0xdbe   :  { %9812 = vmatpush1.bf16.msra.mxu1 %v9811_v56  ;;  %v6281_v56 = vld [vmem:[#allocation33 + $0x2f8] sm:$0xff] }
 0xdbf   :  { %9814 = vmatprep.subr.bf16.mxu1 %v9813_v47  ;;  %v9839_v47 = vpack.c.bf16 %v6272_v19, %v6268_v58  ;;  %v9841_v0 = vpack.c.bf16 %v6281_v56, %v6277_v45  ;;  %v6322_v19 = vld [vmem:[#allocation33 + $0x440] sm:$0xff]  ;;  %v6377_v39 = vld [vmem:[#allocation33 + $0x5f8] sm:$0xff] }
 0xdc0   :  { %v6326_v45 = vld [vmem:[#allocation33 + $0x460] sm:$0xff] }
 0xdc2   :  { %9816 = vmatpush1.bf16.msra.mxu1 %v9815_v60  ;;  %v6288_v60 = vld [vmem:[#allocation33 + $0x330] sm:$0xff] }
 0xdc3   :  { %9818 = vmatprep.subr.bf16.mxu1 %v9817_v33  ;;  %v6293_v33 = vld [vmem:[#allocation33 + $0x358] sm:$0xff]  ;;  %v9847_v11 = vpack.c.bf16 %v6288_v60, %v6284_v51  ;;  %v9611_v51 = vpack.c.bf16 %v6326_v45, %v6322_v19  ;;  %v9867_v60 = vpack.c.bf16 %v6328_v54, %v6324_v42  ;;  %v6356_v45 = vld [vmem:[#allocation33 + $0x550] sm:$0xff] }
 0xdc4   :  { %v9849_v61 = vpack.c.bf16 %v6297_v28, %v6293_v33  ;;  %v6330_v33 = vld [vmem:[#allocation33 + $0x480] sm:$0xff]  ;;  %v6365_v42 = vld [vmem:[#allocation33 + $0x598] sm:$0xff] }
 0xdc5   :  { %v6334_v28 = vld [vmem:[#allocation33 + $0x4a0] sm:$0xff]  ;;  %v6369_v54 = vld [vmem:[#allocation33 + $0x5b8] sm:$0xff] }
 0xdc6   :  { %9820 = vmatpush1.bf16.msra.mxu1 %v9819_v15  ;;  %v6301_v15 = vld [vmem:[#allocation33 + $0x398] sm:$0xff]  ;;  %v9615_v48 = vpack.c.bf16 %v6334_v28, %v6330_v33  ;;  %v6364_v33 = vld [vmem:[#allocation33 + $0x590] sm:$0xff] }
 0xdc7   :  { %9822 = vmatprep.subr.bf16.mxu1 %v9821_v46  ;;  %v9853_v46 = vpack.c.bf16 %v6305_v29, %v6301_v15  ;;  %v6339_v15 = vld [vmem:[#allocation33 + $0x4c8] sm:$0xff]  ;;  %v6368_v28 = vld [vmem:[#allocation33 + $0x5b0] sm:$0xff] }
 0xdc8   :  { %v6343_v29 = vld [vmem:[#allocation33 + $0x4e8] sm:$0xff] }
 0xdca   :  { %9824 = vmatpush1.bf16.msra.mxu1 %v9823_v25  ;;  %v6317_v25 = vld [vmem:[#allocation33 + $0x418] sm:$0xff] }
 0xdcb   :  { %9826 = vmatprep.subr.bf16.mxu1 %v9825_v30  ;;  %v9859_v30 = vpack.c.bf16 %v6312_v53, %v6308_v44  ;;  %v9861_v40 = vpack.c.bf16 %v6321_v5, %v6317_v25  ;;  %v6340_v44 = vld [vmem:[#allocation33 + $0x4d0] sm:$0xff]  ;;  %v6347_v25 = vld [vmem:[#allocation33 + $0x508] sm:$0xff] }
 0xdcc   :  { %v6344_v53 = vld [vmem:[#allocation33 + $0x4f0] sm:$0xff]  ;;  %v6351_v5 = vld [vmem:[#allocation33 + $0x528] sm:$0xff] }
 0xdce   :  { %9828 = vmatpush1.bf16.msra.mxu1 %v9827_v18 }
 0xdcf   :  { %9830 = vmatprep.subr.bf16.mxu1 %v9829_v35  ;;  %v6314_v35 = vld [vmem:[#allocation33 + $0x400] sm:$0xff] }
 0xdd2   :  { %9832 = vmatpush1.bf16.msra.mxu1 %v9831_v20  ;;  %v6320_v20 = vld [vmem:[#allocation33 + $0x430] sm:$0xff] }
 0xdd3   :  { %9834 = vmatprep.subr.bf16.mxu1 %v9833_v6  ;;  %v6323_v6 = vld [vmem:[#allocation33 + $0x448] sm:$0xff]  ;;  %v9863_v58 = vpack.c.bf16 %v6320_v20, %v6316_v13  ;;  %v6352_v13 = vld [vmem:[#allocation33 + $0x530] sm:$0xff] }
 0xdd4   :  { %v6355_v20 = vld [vmem:[#allocation33 + $0x548] sm:$0xff] }
 0xdd6   :  { %9836 = vmatpush1.bf16.msra.mxu1 %v9835_v31 }
 0xdd7   :  { %9838 = vmatprep.subr.bf16.mxu1 %v9837_v57  ;;  %v9607_v57 = vpack.c.bf16 %v6318_v62, %v6314_v35  ;;  %v6350_v35 = vld [vmem:[#allocation33 + $0x520] sm:$0xff]  ;;  %v9621_v62 = vpack.c.bf16 %v6351_v5, %v6347_v25  ;;  %v6385_v25 = vld [vmem:[#allocation33 + $0x638] sm:$0xff] }
 0xdda   :  { %9840 = vmatpush1.bf16.msra.mxu1 %v9839_v47  ;;  %v9609_v47 = vpack.c.bf16 %v6327_v50, %v6323_v6  ;;  %v6359_v6 = vld [vmem:[#allocation33 + $0x568] sm:$0xff]  ;;  %v6361_v50 = vld [vmem:[#allocation33 + $0x578] sm:$0xff] }
 0xddb   :  { %9842 = vmatprep.subr.bf16.mxu1 %v9841_v0  ;;  %v9865_v0 = vpack.c.bf16 %v6329_v52, %v6325_v12 }
 0xdde   :  { %9844 = vmatpush1.bf16.msra.mxu1 %v9843_v59  ;;  %v6333_v59 = vld [vmem:[#allocation33 + $0x498] sm:$0xff] }
 0xddf   :  { %9846 = vmatprep.subr.bf16.mxu1 %v9845_v3  ;;  %v6337_v3 = vld [vmem:[#allocation33 + $0x4b8] sm:$0xff] }
 0xde2   :  { %9848 = vmatpush1.bf16.msra.mxu1 %v9847_v11  ;;  %v9613_v11 = vpack.c.bf16 %v6335_v4, %v6331_v63 }
 0xde3   :  { %9850 = vmatprep.subr.bf16.mxu1 %v9849_v61  ;;  %v9869_v61 = vpack.c.bf16 %v6337_v3, %v6333_v59  ;;  %v6362_v59 = vld [vmem:[#allocation33 + $0x580] sm:$0xff] }
 0xde4   :  { %v6366_v3 = vld [vmem:[#allocation33 + $0x5a0] sm:$0xff] }
 0xde6   :  { %9852 = vmatpush1.bf16.msra.mxu1 %v9851_v43  ;;  %v6341_v43 = vld [vmem:[#allocation33 + $0x4d8] sm:$0xff] }
 0xde7   :  { %9854 = vmatprep.subr.bf16.mxu1 %v9853_v46  ;;  %v6345_v46 = vld [vmem:[#allocation33 + $0x4f8] sm:$0xff] }
 0xdea   :  { %9856 = vmatpush1.bf16.msra.mxu1 %v9855_v7  ;;  %v9617_v7 = vpack.c.bf16 %v6343_v29, %v6339_v15  ;;  %v9631_v15 = vpack.c.bf16 %v6366_v3, %v6362_v59  ;;  %v9887_v29 = vpack.c.bf16 %v6368_v28, %v6364_v33  ;;  %v6394_v3 = vld [vmem:[#allocation33 + $0x680] sm:$0xff]  ;;  %v6396_v28 = vld [vmem:[#allocation33 + $0x690] sm:$0xff] }
 0xdeb   :  { %9858 = vmatprep.subr.bf16.mxu1 %v9857_v1  ;;  %v9873_v1 = vpack.c.bf16 %v6345_v46, %v6341_v43  ;;  %v6370_v43 = vld [vmem:[#allocation33 + $0x5c0] sm:$0xff] }
 0xdec   :  { %v6374_v46 = vld [vmem:[#allocation33 + $0x5e0] sm:$0xff] }
 0xdee   :  { %9860 = vmatpush1.bf16.msra.mxu1 %v9859_v30  ;;  %v6349_v30 = vld [vmem:[#allocation33 + $0x518] sm:$0xff] }
 0xdef   :  { %9862 = vmatprep.subr.bf16.mxu1 %v9861_v40  ;;  %v6353_v40 = vld [vmem:[#allocation33 + $0x538] sm:$0xff] }
 0xe04   :  { %v12202_v37 = vpop.f32.mrb[124].mxu0 }
 0xe05   :  { %v12204_v8 = vpop.f32.mrb[125].mxu0 }
 0xe44   :  { %v5910_v18 = vpop.f32.mrb[108].mxu1 }
 0xe45   :  { %v6170_v21 = vadd.f32 %v6133_v17, %v5910_v18  ;;  %v5912_v9 = vpop.f32.mrb[109].mxu1  ;;  %v9619_v17 = vpack.c.bf16 %v6342_v27, %v6338_v49  ;;  %v6346_v18 = vld [vmem:[#allocation33 + $0x500] sm:$0xff]  ;;  %v6372_v49 = vld [vmem:[#allocation33 + $0x5d0] sm:$0xff] }
 0xe46   :  { %v6171_v34 = vadd.f32 %v6137_v22, %v5912_v9  ;;  %v9875_v22 = vpack.c.bf16 %v6344_v53, %v6340_v44  ;;  %v6348_v9 = vld [vmem:[#allocation33 + $0x510] sm:$0xff]  ;;  %v9623_v12 = vpack.c.bf16 %v6350_v35, %v6346_v18  ;;  %v6383_v44 = vld [vmem:[#allocation33 + $0x628] sm:$0xff]  ;;  %v6381_v53 = vld [vmem:[#allocation33 + $0x618] sm:$0xff] }
 0xe47   :  { %v6178_v56 = vmax.f32 %v6170_v21, 0.0  ;;  %v9877_v21 = vpack.c.bf16 %v6353_v40, %v6349_v30  ;;  %v9879_v52 = vpack.c.bf16 %v6352_v13, %v6348_v9  ;;  %v6376_v27 = vld [vmem:[#allocation33 + $0x5f0] sm:$0xff]  ;;  %v9635_v30 = vpack.c.bf16 %v6374_v46, %v6370_v43  ;;  %v6387_v13 = vld [vmem:[#allocation33 + $0x648] sm:$0xff]  ;;  %v6402_v46 = vld [vmem:[#allocation33 + $0x6c0] sm:$0xff] }
 0xe48   :  { %v6179_v31 = vmax.f32 %v6171_v34, 0.0  ;;  %v6357_v34 = vld [vmem:[#allocation33 + $0x558] sm:$0xff]  ;;  %v9891_v40 = vpack.c.bf16 %v6376_v27, %v6372_v49  ;;  %v6384_v9 = vld [vmem:[#allocation33 + $0x630] sm:$0xff] }
 0xe49   :  { %v9881_v19 = vpack.c.bf16 %v6361_v50, %v6357_v34  ;;  %v6389_v34 = vld [vmem:[#allocation33 + $0x658] sm:$0xff]  ;;  %v6404_v27 = vld [vmem:[#allocation33 + $0x6d0] sm:$0xff] }
 0xe4a   :  { %6784 = vmatprep.mubr.f32.mxu0 %v6179_v31  ;;  %7068 = vmatprep.mubr.f32.mxu1 %v6179_v31  ;;  %v6354_v31 = vld [vmem:[#allocation33 + $0x540] sm:$0xff]  ;;  %v6393_v50 = vld [vmem:[#allocation33 + $0x678] sm:$0xff] }
 0xe4b   :  { %6785 = vmatmul.mubr.f32.vlgmr.msra.gmra.mrb[126].mxu0 %v6178_v56  ;;  %7069 = vmatmul.mubr.f32.vlgmr.msra.gmra.mrb[114].mxu1 %v6178_v56  ;;  %v6360_v56 = vld [vmem:[#allocation33 + $0x570] sm:$0xff] }
 0xe4c   :  { %9608 = vmatpush1.bf16.msra.mxu0 %v9607_v57  ;;  %9864 = vmatpush1.bf16.msra.mxu1 %v9863_v58  ;;  %v6358_v57 = vld [vmem:[#allocation33 + $0x560] sm:$0xff]  ;;  %v9625_v58 = vpack.c.bf16 %v6359_v6, %v6355_v20  ;;  %v9883_v4 = vpack.c.bf16 %v6360_v56, %v6356_v45  ;;  %v6391_v6 = vld [vmem:[#allocation33 + $0x668] sm:$0xff]  ;;  %v9897_v45 = vpack.c.bf16 %v6393_v50, %v6389_v34  ;;  %v6388_v56 = vld [vmem:[#allocation33 + $0x650] sm:$0xff] }
 0xe4d   :  { %9610 = vmatprep.subr.bf16.mxu0 %v9609_v47  ;;  %9866 = vmatprep.subr.bf16.mxu1 %v9865_v0  ;;  %v6363_v47 = vld [vmem:[#allocation33 + $0x588] sm:$0xff]  ;;  %v9627_v63 = vpack.c.bf16 %v6358_v57, %v6354_v31  ;;  %v6386_v57 = vld [vmem:[#allocation33 + $0x640] sm:$0xff] }
 0xe4e   :  { %v6367_v0 = vld [vmem:[#allocation33 + $0x5a8] sm:$0xff] }
 0xe50   :  { %9612 = vmatpush1.bf16.msra.mxu0 %v9611_v51  ;;  %9868 = vmatpush1.bf16.msra.mxu1 %v9867_v60  ;;  %v9629_v51 = vpack.c.bf16 %v6367_v0, %v6363_v47  ;;  %v9885_v60 = vpack.c.bf16 %v6369_v54, %v6365_v42  ;;  %v6392_v47 = vld [vmem:[#allocation33 + $0x670] sm:$0xff]  ;;  %v6395_v0 = vld [vmem:[#allocation33 + $0x688] sm:$0xff]  ;;  %v6397_v54 = vld [vmem:[#allocation33 + $0x698] sm:$0xff] }
 0xe51   :  { %9614 = vmatprep.subr.bf16.mxu0 %v9613_v11  ;;  %9870 = vmatprep.subr.bf16.mxu1 %v9869_v61  ;;  %v6371_v11 = vld [vmem:[#allocation33 + $0x5c8] sm:$0xff]  ;;  %v9899_v59 = vpack.c.bf16 %v6392_v47, %v6388_v56  ;;  %v6429_v47 = vld [vmem:[#allocation33 + $0x798] sm:$0xff] }
 0xe52   :  { %v6375_v61 = vld [vmem:[#allocation33 + $0x5e8] sm:$0xff] }
 0xe53   :  { %v6399_v42 = vld [vmem:[#allocation33 + $0x6a8] sm:$0xff] }
 0xe54   :  { %9616 = vmatpush1.bf16.msra.mxu0 %v9615_v48  ;;  %9872 = vmatpush1.bf16.msra.mxu1 %v9871_v2  ;;  %v9633_v48 = vpack.c.bf16 %v6375_v61, %v6371_v11  ;;  %v9889_v2 = vpack.c.bf16 %v6377_v39, %v6373_v14  ;;  %v6400_v11 = vld [vmem:[#allocation33 + $0x6b0] sm:$0xff]  ;;  %v6403_v61 = vld [vmem:[#allocation33 + $0x6c8] sm:$0xff]  ;;  %v6405_v39 = vld [vmem:[#allocation33 + $0x6d8] sm:$0xff] }
 0xe55   :  { %9618 = vmatprep.subr.bf16.mxu0 %v9617_v7  ;;  %9874 = vmatprep.subr.bf16.mxu1 %v9873_v1  ;;  %v6379_v7 = vld [vmem:[#allocation33 + $0x608] sm:$0xff]  ;;  %v6145_v1 = vrot.slane %v12206_v38, %v12098_v23  ;;  %v9903_v43 = vpack.c.bf16 %v6400_v11, %v6396_v28  ;;  %v6437_v11 = vld [vmem:[#allocation33 + $0x7d8] sm:$0xff] }
 0xe56   :  { %v9637_v35 = vpack.c.bf16 %v6383_v44, %v6379_v7  ;;  %v6407_v14 = vld [vmem:[#allocation33 + $0x6e8] sm:$0xff]  ;;  %v6408_v7 = vld [vmem:[#allocation33 + $0x6f0] sm:$0xff] }
 0xe57   :  { %v6415_v44 = vld [vmem:[#allocation33 + $0x728] sm:$0xff] }
 0xe58   :  { %9620 = vmatpush1.bf16.msra.mxu0 %v9619_v17  ;;  %9876 = vmatpush1.bf16.msra.mxu1 %v9875_v22  ;;  %v6378_v17 = vld [vmem:[#allocation33 + $0x600] sm:$0xff]  ;;  %v6431_v56 = vld [vmem:[#allocation33 + $0x7a8] sm:$0xff] }
 0xe59   :  { %9622 = vmatprep.subr.bf16.mxu0 %v9621_v62  ;;  %9878 = vmatprep.subr.bf16.mxu1 %v9877_v21  ;;  %v6382_v22 = vld [vmem:[#allocation33 + $0x620] sm:$0xff]  ;;  %v9893_v62 = vpack.c.bf16 %v6385_v25, %v6381_v53  ;;  %v6380_v21 = vld [vmem:[#allocation33 + $0x610] sm:$0xff]  ;;  %v6413_v53 = vld [vmem:[#allocation33 + $0x718] sm:$0xff] }
 0xe5a   :  { %v9895_v31 = vpack.c.bf16 %v6384_v9, %v6380_v21  ;;  %v6417_v25 = vld [vmem:[#allocation33 + $0x738] sm:$0xff]  ;;  %v6416_v21 = vld [vmem:[#allocation33 + $0x730] sm:$0xff]  ;;  %v6419_v9 = vld [vmem:[#allocation33 + $0x748] sm:$0xff] }
 0xe5b   :  { %v6439_v28 = vld [vmem:[#allocation33 + $0x7e8] sm:$0xff] }
 0xe5c   :  { %9624 = vmatpush1.bf16.msra.mxu0 %v9623_v12  ;;  %9880 = vmatpush1.bf16.msra.mxu1 %v9879_v52  ;;  %v9639_v52 = vpack.c.bf16 %v6382_v22, %v6378_v17  ;;  %v6410_v17 = vld [vmem:[#allocation33 + $0x700] sm:$0xff] }
 0xe5d   :  { %9626 = vmatprep.subr.bf16.mxu0 %v9625_v58  ;;  %9882 = vmatprep.subr.bf16.mxu1 %v9881_v19  ;;  %v6390_v58 = vld [vmem:[#allocation33 + $0x660] sm:$0xff]  ;;  %v9641_v19 = vpack.c.bf16 %v6391_v6, %v6387_v13  ;;  %v6423_v13 = vld [vmem:[#allocation33 + $0x768] sm:$0xff]  ;;  %v6425_v6 = vld [vmem:[#allocation33 + $0x778] sm:$0xff] }
 0xe5e   :  { %v6414_v22 = vld [vmem:[#allocation33 + $0x720] sm:$0xff] }
 0xe5f   :  { %v9655_v34 = vpack.c.bf16 %v6414_v22, %v6410_v17 }
 0xe60   :  { %9628 = vmatpush1.bf16.msra.mxu0 %v9627_v63  ;;  %9884 = vmatpush1.bf16.msra.mxu1 %v9883_v4  ;;  %v6401_v63 = vld [vmem:[#allocation33 + $0x6b8] sm:$0xff]  ;;  %v9643_v4 = vpack.c.bf16 %v6390_v58, %v6386_v57  ;;  %v6420_v58 = vld [vmem:[#allocation33 + $0x750] sm:$0xff] }
 0xe61   :  { %9630 = vmatprep.subr.bf16.mxu0 %v9629_v51  ;;  %9886 = vmatprep.subr.bf16.mxu1 %v9885_v60  ;;  %v6398_v51 = vld [vmem:[#allocation33 + $0x6a0] sm:$0xff]  ;;  %v9645_v60 = vpack.c.bf16 %v6399_v42, %v6395_v0  ;;  %v9901_v33 = vpack.c.bf16 %v6401_v63, %v6397_v54  ;;  %v6433_v0 = vld [vmem:[#allocation33 + $0x7b8] sm:$0xff] }
 0xe62   :  { %v6426_v63 = vld [vmem:[#allocation33 + $0x780] sm:$0xff] }
 0xe64   :  { %9632 = vmatpush1.bf16.msra.mxu0 %v9631_v15  ;;  %9888 = vmatpush1.bf16.msra.mxu1 %v9887_v29  ;;  %v12214_v5 = vpop.f32.mrb[110].mxu1  ;;  %v6409_v15 = vld [vmem:[#allocation33 + $0x6f8] sm:$0xff]  ;;  %v9647_v29 = vpack.c.bf16 %v6398_v51, %v6394_v3  ;;  %v9917_v3 = vpack.c.bf16 %v6433_v0, %v6429_v47  ;;  %v6428_v51 = vld [vmem:[#allocation33 + $0x790] sm:$0xff]  ;;  %v6459_v47 = vld [vmem:[#allocation33 + $0x888] sm:$0xff] }
 0xe65   :  { %v5983_v18 = vpop.f32.mrb[111].mxu1  ;;  %9634 = vmatprep.subr.bf16.mxu0 %v9633_v48  ;;  %9890 = vmatprep.subr.bf16.mxu1 %v9889_v2  ;;  %v6406_v48 = vld [vmem:[#allocation33 + $0x6e0] sm:$0xff]  ;;  %v9649_v2 = vpack.c.bf16 %v6407_v14, %v6403_v61  ;;  %v9905_v49 = vpack.c.bf16 %v6409_v15, %v6405_v39  ;;  %v6441_v61 = vld [vmem:[#allocation33 + $0x7f8] sm:$0xff]  ;;  %v6463_v0 = vld [vmem:[#allocation33 + $0x8a8] sm:$0xff] }
 0xe66   :  { %v6173_v20 = vadd.f32 %v6145_v1, %v5983_v18  ;;  %v6411_v1 = vld [vmem:[#allocation33 + $0x708] sm:$0xff]  ;;  %v6434_v15 = vld [vmem:[#allocation33 + $0x7c0] sm:$0xff] }
 0xe67   :  { %v9653_v18 = vpack.c.bf16 %v6415_v44, %v6411_v1  ;;  %v6447_v1 = vld [vmem:[#allocation33 + $0x828] sm:$0xff]  ;;  %v6445_v44 = vld [vmem:[#allocation33 + $0x818] sm:$0xff] }
 0xe68   :  { %v6181_v12 = vmax.f32 %v6173_v20, 0.0  ;;  %9636 = vmatpush1.bf16.msra.mxu0 %v9635_v30  ;;  %9892 = vmatpush1.bf16.msra.mxu1 %v9891_v40  ;;  %v9651_v30 = vpack.c.bf16 %v6406_v48, %v6402_v46  ;;  %v9907_v40 = vpack.c.bf16 %v6408_v7, %v6404_v27  ;;  %v6421_v20 = vld [vmem:[#allocation33 + $0x758] sm:$0xff]  ;;  %v9921_v48 = vpack.c.bf16 %v6441_v61, %v6437_v11  ;;  %v6443_v27 = vld [vmem:[#allocation33 + $0x808] sm:$0xff] }
 0xe69   :  { %9638 = vmatprep.subr.bf16.mxu0 %v9637_v35  ;;  %9894 = vmatprep.subr.bf16.mxu1 %v9893_v62  ;;  %v9909_v35 = vpack.c.bf16 %v6417_v25, %v6413_v53  ;;  %v6412_v62 = vld [vmem:[#allocation33 + $0x710] sm:$0xff]  ;;  %v9913_v57 = vpack.c.bf16 %v6425_v6, %v6421_v20  ;;  %v6153_v7 = vrot.slane %v12206_v38, %v2796_v16  ;;  %v6449_v53 = vld [vmem:[#allocation33 + $0x838] sm:$0xff]  ;;  %v6455_v20 = vld [vmem:[#allocation33 + $0x868] sm:$0xff] }
 0xe6a   :  { %6855 = vmatprep.mubr.f32.mxu0 %v6181_v12  ;;  %7139 = vmatprep.mubr.f32.mxu1 %v6181_v12  ;;  %v9911_v50 = vpack.c.bf16 %v6416_v21, %v6412_v62  ;;  %v6418_v12 = vld [vmem:[#allocation33 + $0x740] sm:$0xff]  ;;  %v6444_v16 = vld [vmem:[#allocation33 + $0x810] sm:$0xff]  ;;  %v6453_v6 = vld [vmem:[#allocation33 + $0x858] sm:$0xff] }
 0xe6b   :  { %v6442_v62 = vld [vmem:[#allocation33 + $0x800] sm:$0xff]  ;;  %v6467_v11 = vld [vmem:[#allocation33 + $0x8c8] sm:$0xff] }
 0xe6c   :  { %9640 = vmatpush1.bf16.msra.mxu0 %v9639_v52  ;;  %9896 = vmatpush1.bf16.msra.mxu1 %v9895_v31  ;;  %v6422_v52 = vld [vmem:[#allocation33 + $0x760] sm:$0xff]  ;;  %v9657_v31 = vpack.c.bf16 %v6423_v13, %v6419_v9  ;;  %v6451_v13 = vld [vmem:[#allocation33 + $0x848] sm:$0xff] }
 0xe6d   :  { %9642 = vmatprep.subr.bf16.mxu0 %v9641_v19  ;;  %9898 = vmatprep.subr.bf16.mxu1 %v9897_v45  ;;  %v6424_v19 = vld [vmem:[#allocation33 + $0x770] sm:$0xff]  ;;  %v6427_v45 = vld [vmem:[#allocation33 + $0x788] sm:$0xff]  ;;  %v9659_v42 = vpack.c.bf16 %v6422_v52, %v6418_v12  ;;  %v6446_v21 = vld [vmem:[#allocation33 + $0x820] sm:$0xff] }
 0xe6e   :  { %v9915_v54 = vpack.c.bf16 %v6424_v19, %v6420_v58  ;;  %v9671_v12 = vpack.c.bf16 %v6446_v21, %v6442_v62  ;;  %v6452_v58 = vld [vmem:[#allocation33 + $0x850] sm:$0xff]  ;;  %v9673_v19 = vpack.c.bf16 %v6455_v20, %v6451_v13  ;;  %v6471_v61 = vld [vmem:[#allocation33 + $0x8e8] sm:$0xff]  ;;  %v6489_v13 = vld [vmem:[#allocation33 + $0x978] sm:$0xff] }
 0xe6f   :  { %v6480_v21 = vld [vmem:[#allocation33 + $0x930] sm:$0xff] }
 0xe70   :  { %9644 = vmatpush1.bf16.msra.mxu0 %v9643_v4  ;;  %9900 = vmatpush1.bf16.msra.mxu1 %v9899_v59  ;;  %v6430_v4 = vld [vmem:[#allocation33 + $0x7a0] sm:$0xff]  ;;  %v9661_v59 = vpack.c.bf16 %v6431_v56, %v6427_v45  ;;  %v6456_v56 = vld [vmem:[#allocation33 + $0x870] sm:$0xff] }
 0xe71   :  { %9646 = vmatprep.subr.bf16.mxu0 %v9645_v60  ;;  %9902 = vmatprep.subr.bf16.mxu1 %v9901_v33  ;;  %v6432_v60 = vld [vmem:[#allocation33 + $0x7b0] sm:$0xff]  ;;  %v6435_v33 = vld [vmem:[#allocation33 + $0x7c8] sm:$0xff]  ;;  %v9663_v14 = vpack.c.bf16 %v6430_v4, %v6426_v63  ;;  %v9931_v4 = vpack.c.bf16 %v6456_v56, %v6452_v58 }
 0xe72   :  { %v9919_v39 = vpack.c.bf16 %v6432_v60, %v6428_v51  ;;  %v9665_v46 = vpack.c.bf16 %v6439_v28, %v6435_v33  ;;  %v6462_v51 = vld [vmem:[#allocation33 + $0x8a0] sm:$0xff]  ;;  %v6460_v60 = vld [vmem:[#allocation33 + $0x890] sm:$0xff]  ;;  %v6495_v58 = vld [vmem:[#allocation33 + $0x9a8] sm:$0xff] }
 0xe73   :  { %v6464_v28 = vld [vmem:[#allocation33 + $0x8b0] sm:$0xff] }
 0xe74   :  { %9648 = vmatpush1.bf16.msra.mxu0 %v9647_v29  ;;  %9904 = vmatpush1.bf16.msra.mxu1 %v9903_v43  ;;  %v6438_v29 = vld [vmem:[#allocation33 + $0x7e0] sm:$0xff]  ;;  %v6141_v43 = vrot.slane %v12206_v38, %v12359_v41  ;;  %v6448_v38 = vld [vmem:[#allocation33 + $0x830] sm:$0xff] }
 0xe75   :  { %9650 = vmatprep.subr.bf16.mxu0 %v9649_v2  ;;  %9906 = vmatprep.subr.bf16.mxu1 %v9905_v49  ;;  %v6436_v2 = vld [vmem:[#allocation33 + $0x7d0] sm:$0xff] }
 0xe76   :  { %v6440_v49 = vld [vmem:[#allocation33 + $0x7f0] sm:$0xff]  ;;  %v6172_v17 = vadd.f32 %v6141_v43, %v12214_v5  ;;  %v9927_v5 = vpack.c.bf16 %v6448_v38, %v6444_v16  ;;  %v9681_v43 = vpack.c.bf16 %v6471_v61, %v6467_v11  ;;  %v6487_v16 = vld [vmem:[#allocation33 + $0x968] sm:$0xff]  ;;  %v6485_v38 = vld [vmem:[#allocation33 + $0x958] sm:$0xff] }
 0xe78   :  { %9652 = vmatpush1.bf16.msra.mxu0 %v9651_v30  ;;  %9908 = vmatpush1.bf16.msra.mxu1 %v9907_v40  ;;  %v9667_v30 = vpack.c.bf16 %v6438_v29, %v6434_v15  ;;  %v9923_v40 = vpack.c.bf16 %v6440_v49, %v6436_v2  ;;  %v6180_v52 = vmax.f32 %v6172_v17, 0.0  ;;  %v9935_v29 = vpack.c.bf16 %v6464_v28, %v6460_v60  ;;  %v6468_v2 = vld [vmem:[#allocation33 + $0x8d0] sm:$0xff]  ;;  %v6501_v60 = vld [vmem:[#allocation33 + $0x9d8] sm:$0xff] }
 0xe79   :  { %9654 = vmatprep.subr.bf16.mxu0 %v9653_v18  ;;  %9910 = vmatprep.subr.bf16.mxu1 %v9909_v35  ;;  %v9669_v18 = vpack.c.bf16 %v6447_v1, %v6443_v27  ;;  %v9925_v35 = vpack.c.bf16 %v6449_v53, %v6445_v44  ;;  %v6472_v27 = vld [vmem:[#allocation33 + $0x8f0] sm:$0xff]  ;;  %v6479_v1 = vld [vmem:[#allocation33 + $0x928] sm:$0xff]  ;;  %v6477_v44 = vld [vmem:[#allocation33 + $0x918] sm:$0xff] }
 0xe7a   :  { %v6481_v53 = vld [vmem:[#allocation33 + $0x938] sm:$0xff] }
 0xe7b   :  { %v9941_v62 = vpack.c.bf16 %v6481_v53, %v6477_v44  ;;  %v6506_v44 = vld [vmem:[#allocation33 + $0xa00] sm:$0xff] }
 0xe7c   :  { %9656 = vmatpush1.bf16.msra.mxu0 %v9655_v34  ;;  %9912 = vmatpush1.bf16.msra.mxu1 %v9911_v50  ;;  %v6457_v34 = vld [vmem:[#allocation33 + $0x878] sm:$0xff]  ;;  %v6510_v53 = vld [vmem:[#allocation33 + $0xa20] sm:$0xff] }
 0xe7d   :  { %9658 = vmatprep.subr.bf16.mxu0 %v9657_v31  ;;  %9914 = vmatprep.subr.bf16.mxu1 %v9913_v57  ;;  %v6450_v31 = vld [vmem:[#allocation33 + $0x840] sm:$0xff]  ;;  %v9929_v45 = vpack.c.bf16 %v6457_v34, %v6453_v6 }
 0xe7e   :  { %v6454_v57 = vld [vmem:[#allocation33 + $0x860] sm:$0xff] }
 0xe7f   :  { %v9675_v63 = vpack.c.bf16 %v6454_v57, %v6450_v31  ;;  %v6488_v31 = vld [vmem:[#allocation33 + $0x970] sm:$0xff]  ;;  %v6491_v57 = vld [vmem:[#allocation33 + $0x988] sm:$0xff] }
 0xe80   :  { %9660 = vmatpush1.bf16.msra.mxu0 %v9659_v42  ;;  %9916 = vmatpush1.bf16.msra.mxu1 %v9915_v54  ;;  %v6461_v42 = vld [vmem:[#allocation33 + $0x898] sm:$0xff] }
 0xe81   :  { %9662 = vmatprep.subr.bf16.mxu0 %v9661_v59  ;;  %9918 = vmatprep.subr.bf16.mxu1 %v9917_v3  ;;  %v6465_v54 = vld [vmem:[#allocation33 + $0x8b8] sm:$0xff]  ;;  %v9677_v59 = vpack.c.bf16 %v6463_v0, %v6459_v47  ;;  %v6458_v3 = vld [vmem:[#allocation33 + $0x880] sm:$0xff]  ;;  %v9693_v0 = vpack.c.bf16 %v6495_v58, %v6491_v57 }
 0xe82   :  { %v9933_v33 = vpack.c.bf16 %v6465_v54, %v6461_v42  ;;  %v9679_v15 = vpack.c.bf16 %v6462_v51, %v6458_v3  ;;  %v6490_v42 = vld [vmem:[#allocation33 + $0x980] sm:$0xff]  ;;  %v6499_v3 = vld [vmem:[#allocation33 + $0x9c8] sm:$0xff] }
 0xe83   :  { %v6494_v54 = vld [vmem:[#allocation33 + $0x9a0] sm:$0xff]  ;;  %v6503_v51 = vld [vmem:[#allocation33 + $0x9e8] sm:$0xff] }
 0xe84   :  { %9664 = vmatpush1.bf16.msra.mxu0 %v9663_v14  ;;  %9920 = vmatpush1.bf16.msra.mxu1 %v9919_v39  ;;  %v12221_v25 = vpop.f32.mrb[112].mxu1  ;;  %v6469_v14 = vld [vmem:[#allocation33 + $0x8d8] sm:$0xff]  ;;  %v9695_v28 = vpack.c.bf16 %v6494_v54, %v6490_v42  ;;  %v9697_v61 = vpack.c.bf16 %v6503_v51, %v6499_v3  ;;  %v6531_v42 = vld [vmem:[#allocation33 + $0xac8] sm:$0xff] }
 0xe85   :  { %v6054_v22 = vpop.f32.mrb[113].mxu1  ;;  %9666 = vmatprep.subr.bf16.mxu0 %v9665_v46  ;;  %9922 = vmatprep.subr.bf16.mxu1 %v9921_v48  ;;  %v6473_v39 = vld [vmem:[#allocation33 + $0x8f8] sm:$0xff]  ;;  %v6466_v46 = vld [vmem:[#allocation33 + $0x8c0] sm:$0xff]  ;;  %v6535_v54 = vld [vmem:[#allocation33 + $0xae8] sm:$0xff] }
 0xe86   :  { %v6175_v9 = vadd.f32 %v6153_v7, %v6054_v22  ;;  %v6470_v48 = vld [vmem:[#allocation33 + $0x8e0] sm:$0xff]  ;;  %v9937_v49 = vpack.c.bf16 %v6473_v39, %v6469_v14  ;;  %v6475_v7 = vld [vmem:[#allocation33 + $0x908] sm:$0xff]  ;;  %v9713_v51 = vpack.c.bf16 %v6535_v54, %v6531_v42  ;;  %v12224_v42 = vld [vmem:[#allocation32] sm:$0xff] }
 0xe87   :  { %v9685_v17 = vpack.c.bf16 %v6479_v1, %v6475_v7  ;;  %v6474_v22 = vld [vmem:[#allocation33 + $0x900] sm:$0xff]  ;;  %v6149_v54 = vrot.slane %v12224_v42, %v2792_v32 }
 0xe88   :  { %v6183_v50 = vmax.f32 %v6175_v9, 0.0  ;;  %9668 = vmatpush1.bf16.msra.mxu0 %v9667_v30  ;;  %9924 = vmatpush1.bf16.msra.mxu1 %v9923_v40  ;;  %v9683_v30 = vpack.c.bf16 %v6470_v48, %v6466_v46  ;;  %v9939_v40 = vpack.c.bf16 %v6472_v27, %v6468_v2  ;;  %v6483_v9 = vld [vmem:[#allocation33 + $0x948] sm:$0xff]  ;;  %v6498_v14 = vld [vmem:[#allocation33 + $0x9c0] sm:$0xff]  ;;  %v6509_v2 = vld [vmem:[#allocation33 + $0xa18] sm:$0xff] }
 0xe89   :  { %9670 = vmatprep.subr.bf16.mxu0 %v9669_v18  ;;  %9926 = vmatprep.subr.bf16.mxu1 %v9925_v35  ;;  %v6478_v18 = vld [vmem:[#allocation33 + $0x920] sm:$0xff]  ;;  %v6476_v35 = vld [vmem:[#allocation33 + $0x910] sm:$0xff]  ;;  %v9689_v34 = vpack.c.bf16 %v6487_v16, %v6483_v9  ;;  %v6507_v46 = vld [vmem:[#allocation33 + $0xa08] sm:$0xff] }
 0xe8a   :  { %v9687_v20 = vpack.c.bf16 %v6478_v18, %v6474_v22  ;;  %v9943_v6 = vpack.c.bf16 %v6480_v21, %v6476_v35  ;;  %v6502_v39 = vld [vmem:[#allocation33 + $0x9e0] sm:$0xff]  ;;  %v6511_v48 = vld [vmem:[#allocation33 + $0xa28] sm:$0xff]  ;;  %v6517_v35 = vld [vmem:[#allocation33 + $0xa58] sm:$0xff]  ;;  %v9703_v21 = vpack.c.bf16 %v6510_v53, %v6506_v44 }
 0xe8b   :  { %6856 = vmatmul.mubr.f32.vlgmr.msra.gmra.mrb[126].mxu0 %v6180_v52  ;;  %7140 = vmatmul.mubr.f32.vlgmr.msra.gmra.mrb[114].mxu1 %v6180_v52  ;;  %v6484_v52 = vld [vmem:[#allocation33 + $0x950] sm:$0xff]  ;;  %v9699_v27 = vpack.c.bf16 %v6502_v39, %v6498_v14  ;;  %v9701_v1 = vpack.c.bf16 %v6511_v48, %v6507_v46  ;;  %v6515_v22 = vld [vmem:[#allocation33 + $0xa48] sm:$0xff] }
 0xe8c   :  { %9672 = vmatpush1.bf16.msra.mxu0 %v9671_v12  ;;  %6926 = vmatprep.mubr.f32.mxu0 %v6183_v50  ;;  %v6486_v12 = vld [vmem:[#allocation33 + $0x960] sm:$0xff]  ;;  %v9947_v47 = vpack.c.bf16 %v6488_v31, %v6484_v52  ;;  %v6519_v18 = vld [vmem:[#allocation33 + $0xa68] sm:$0xff]  ;;  %v6525_v52 = vld [vmem:[#allocation33 + $0xa98] sm:$0xff] }
 0xe8d   :  { %9928 = vmatpush1.bf16.msra.mxu1 %v9927_v5  ;;  %7210 = vmatprep.mubr.f32.mxu1 %v6183_v50  ;;  %v6482_v50 = vld [vmem:[#allocation33 + $0x940] sm:$0xff]  ;;  %v9945_v5 = vpack.c.bf16 %v6489_v13, %v6485_v38  ;;  %v9705_v16 = vpack.c.bf16 %v6519_v18, %v6515_v22  ;;  %v6539_v14 = vld [vmem:[#allocation33 + $0xb08] sm:$0xff] }
 0xe8e   :  { %9674 = vmatprep.subr.bf16.mxu0 %v9673_v19  ;;  %9930 = vmatprep.subr.bf16.mxu1 %v9929_v45  ;;  %v6493_v19 = vld [vmem:[#allocation33 + $0x998] sm:$0xff]  ;;  %v9691_v56 = vpack.c.bf16 %v6486_v12, %v6482_v50  ;;  %v6514_v38 = vld [vmem:[#allocation33 + $0xa40] sm:$0xff]  ;;  %v6523_v50 = vld [vmem:[#allocation33 + $0xa88] sm:$0xff] }
 0xe8f   :  { %v6497_v45 = vld [vmem:[#allocation33 + $0x9b8] sm:$0xff]  ;;  %v6518_v13 = vld [vmem:[#allocation33 + $0xa60] sm:$0xff]  ;;  %v6527_v12 = vld [vmem:[#allocation33 + $0xaa8] sm:$0xff] }
 0xe90   :  { %9676 = vmatpush1.bf16.msra.mxu0 %v9675_v63  ;;  %v6492_v63 = vld [vmem:[#allocation33 + $0x990] sm:$0xff]  ;;  %v9707_v31 = vpack.c.bf16 %v6518_v13, %v6514_v38  ;;  %v9709_v58 = vpack.c.bf16 %v6527_v12, %v6523_v50  ;;  %v6543_v39 = vld [vmem:[#allocation33 + $0xb28] sm:$0xff] }
 0xe91   :  { %9932 = vmatpush1.bf16.msra.mxu1 %v9931_v4  ;;  %9678 = vmatprep.subr.bf16.mxu0 %v9677_v59  ;;  %v9949_v4 = vpack.c.bf16 %v6497_v45, %v6493_v19  ;;  %v6496_v59 = vld [vmem:[#allocation33 + $0x9b0] sm:$0xff]  ;;  %v6522_v19 = vld [vmem:[#allocation33 + $0xa80] sm:$0xff]  ;;  %v9717_v48 = vpack.c.bf16 %v6543_v39, %v6539_v14  ;;  %v6547_v44 = vld [vmem:[#allocation33 + $0xb48] sm:$0xff] }
 0xe92   :  { %9934 = vmatprep.subr.bf16.mxu1 %v9933_v33  ;;  %v6505_v33 = vld [vmem:[#allocation33 + $0x9f8] sm:$0xff]  ;;  %v9951_v11 = vpack.c.bf16 %v6496_v59, %v6492_v63  ;;  %v6526_v45 = vld [vmem:[#allocation33 + $0xaa0] sm:$0xff]  ;;  %v6551_v53 = vld [vmem:[#allocation33 + $0xb68] sm:$0xff] }
 0xe93   :  { %v6533_v63 = vld [vmem:[#allocation33 + $0xad8] sm:$0xff]  ;;  %v9711_v59 = vpack.c.bf16 %v6526_v45, %v6522_v19  ;;  %v9721_v18 = vpack.c.bf16 %v6551_v53, %v6547_v44  ;;  %v6555_v38 = vld [vmem:[#allocation33 + $0xb88] sm:$0xff] }
 0xe94   :  { %9680 = vmatpush1.bf16.msra.mxu0 %v9679_v15  ;;  %v6500_v15 = vld [vmem:[#allocation33 + $0x9d0] sm:$0xff]  ;;  %v6559_v13 = vld [vmem:[#allocation33 + $0xba8] sm:$0xff]  ;;  %v6573_v14 = vld [vmem:[#allocation33 + $0xc18] sm:$0xff] }
 0xe95   :  { %9936 = vmatpush1.bf16.msra.mxu1 %v9935_v29  ;;  %9682 = vmatprep.subr.bf16.mxu0 %v9681_v43  ;;  %v9953_v29 = vpack.c.bf16 %v6505_v33, %v6501_v60  ;;  %v6504_v43 = vld [vmem:[#allocation33 + $0x9f0] sm:$0xff]  ;;  %v6530_v60 = vld [vmem:[#allocation33 + $0xac0] sm:$0xff]  ;;  %v9725_v12 = vpack.c.bf16 %v6559_v13, %v6555_v38  ;;  %v6563_v19 = vld [vmem:[#allocation33 + $0xbc8] sm:$0xff] }
 0xe96   :  { %9938 = vmatprep.subr.bf16.mxu1 %v9937_v49  ;;  %v6513_v49 = vld [vmem:[#allocation33 + $0xa38] sm:$0xff]  ;;  %v9955_v7 = vpack.c.bf16 %v6504_v43, %v6500_v15  ;;  %v6534_v33 = vld [vmem:[#allocation33 + $0xae0] sm:$0xff]  ;;  %v6567_v45 = vld [vmem:[#allocation33 + $0xbe8] sm:$0xff] }
 0xe97   :  { %v6541_v15 = vld [vmem:[#allocation33 + $0xb18] sm:$0xff]  ;;  %v9715_v43 = vpack.c.bf16 %v6534_v33, %v6530_v60  ;;  %v6568_v33 = vld [vmem:[#allocation33 + $0xbf0] sm:$0xff] }
 0xe98   :  { %9684 = vmatpush1.bf16.msra.mxu0 %v9683_v30  ;;  %v6508_v30 = vld [vmem:[#allocation33 + $0xa10] sm:$0xff]  ;;  %v6577_v39 = vld [vmem:[#allocation33 + $0xc38] sm:$0xff] }
 0xe99   :  { %9940 = vmatpush1.bf16.msra.mxu1 %v9939_v40  ;;  %9686 = vmatprep.subr.bf16.mxu0 %v9685_v17  ;;  %v9957_v40 = vpack.c.bf16 %v6513_v49, %v6509_v2  ;;  %v6512_v17 = vld [vmem:[#allocation33 + $0xa30] sm:$0xff]  ;;  %v6538_v2 = vld [vmem:[#allocation33 + $0xb00] sm:$0xff]  ;;  %v6581_v53 = vld [vmem:[#allocation33 + $0xc58] sm:$0xff] }
 0xe9a   :  { %9942 = vmatprep.subr.bf16.mxu1 %v9941_v62  ;;  %v6521_v62 = vld [vmem:[#allocation33 + $0xa78] sm:$0xff]  ;;  %v9959_v9 = vpack.c.bf16 %v6512_v17, %v6508_v30  ;;  %v6542_v49 = vld [vmem:[#allocation33 + $0xb20] sm:$0xff] }
 0xe9b   :  { %v6549_v30 = vld [vmem:[#allocation33 + $0xb58] sm:$0xff]  ;;  %v9719_v17 = vpack.c.bf16 %v6542_v49, %v6538_v2  ;;  %v9989_v2 = vpack.c.bf16 %v6577_v39, %v6573_v14  ;;  %v6572_v49 = vld [vmem:[#allocation33 + $0xc10] sm:$0xff]  ;;  %v6602_v39 = vld [vmem:[#allocation33 + $0xd00] sm:$0xff] }
 0xe9c   :  { %9688 = vmatpush1.bf16.msra.mxu0 %v9687_v20  ;;  %v6516_v20 = vld [vmem:[#allocation33 + $0xa50] sm:$0xff]  ;;  %v6589_v38 = vld [vmem:[#allocation33 + $0xc98] sm:$0xff] }
 0xe9d   :  { %9944 = vmatpush1.bf16.msra.mxu1 %v9943_v6  ;;  %9690 = vmatprep.subr.bf16.mxu0 %v9689_v34  ;;  %v9961_v6 = vpack.c.bf16 %v6521_v62, %v6517_v35  ;;  %v6520_v34 = vld [vmem:[#allocation33 + $0xa70] sm:$0xff]  ;;  %v6546_v35 = vld [vmem:[#allocation33 + $0xb40] sm:$0xff]  ;;  %v6593_v13 = vld [vmem:[#allocation33 + $0xcb8] sm:$0xff] }
 0xe9e   :  { %9946 = vmatprep.subr.bf16.mxu1 %v9945_v5  ;;  %v6529_v5 = vld [vmem:[#allocation33 + $0xab8] sm:$0xff]  ;;  %v9963_v57 = vpack.c.bf16 %v6520_v34, %v6516_v20  ;;  %v6550_v62 = vld [vmem:[#allocation33 + $0xb60] sm:$0xff] }
 0xe9f   :  { %v6557_v20 = vld [vmem:[#allocation33 + $0xb98] sm:$0xff]  ;;  %v9723_v34 = vpack.c.bf16 %v6550_v62, %v6546_v35  ;;  %v6584_v62 = vld [vmem:[#allocation33 + $0xc70] sm:$0xff] }
 0xea0   :  { %9692 = vmatpush1.bf16.msra.mxu0 %v9691_v56  ;;  %v6524_v56 = vld [vmem:[#allocation33 + $0xa90] sm:$0xff] }
 0xea1   :  { %9948 = vmatpush1.bf16.msra.mxu1 %v9947_v47  ;;  %9694 = vmatprep.subr.bf16.mxu0 %v9693_v0  ;;  %v9965_v47 = vpack.c.bf16 %v6529_v5, %v6525_v52  ;;  %v6528_v0 = vld [vmem:[#allocation33 + $0xab0] sm:$0xff]  ;;  %v6554_v52 = vld [vmem:[#allocation33 + $0xb80] sm:$0xff] }
 0xea2   :  { %9950 = vmatprep.subr.bf16.mxu1 %v9949_v4  ;;  %v6537_v4 = vld [vmem:[#allocation33 + $0xaf8] sm:$0xff]  ;;  %v9967_v3 = vpack.c.bf16 %v6528_v0, %v6524_v56  ;;  %v6558_v5 = vld [vmem:[#allocation33 + $0xba0] sm:$0xff] }
 0xea3   :  { %v6565_v56 = vld [vmem:[#allocation33 + $0xbd8] sm:$0xff]  ;;  %v9727_v0 = vpack.c.bf16 %v6558_v5, %v6554_v52  ;;  %v6588_v52 = vld [vmem:[#allocation33 + $0xc90] sm:$0xff]  ;;  %v9997_v5 = vpack.c.bf16 %v6593_v13, %v6589_v38 }
 0xea4   :  { %9696 = vmatpush1.bf16.msra.mxu0 %v9695_v28  ;;  %v6532_v28 = vld [vmem:[#allocation33 + $0xad0] sm:$0xff] }
 0xea5   :  { %9952 = vmatpush1.bf16.msra.mxu1 %v9951_v11  ;;  %9698 = vmatprep.subr.bf16.mxu0 %v9697_v61  ;;  %v9969_v11 = vpack.c.bf16 %v6537_v4, %v6533_v63  ;;  %v6536_v61 = vld [vmem:[#allocation33 + $0xaf0] sm:$0xff]  ;;  %v9729_v4 = vpack.c.bf16 %v6567_v45, %v6563_v19  ;;  %v6597_v19 = vld [vmem:[#allocation33 + $0xcd8] sm:$0xff] }
 0xea6   :  { %9954 = vmatprep.subr.bf16.mxu1 %v9953_v29  ;;  %v6545_v29 = vld [vmem:[#allocation33 + $0xb38] sm:$0xff]  ;;  %v9971_v46 = vpack.c.bf16 %v6536_v61, %v6532_v28  ;;  %v6571_v28 = vld [vmem:[#allocation33 + $0xc08] sm:$0xff]  ;;  %v6161_v61 = vrot.slane %v12224_v42, %v2804_v24  ;;  %v6624_v13 = vld [vmem:[#allocation33 + $0xdb0] sm:$0xff] }
 0xea7   :  { %v6583_v24 = vld [vmem:[#allocation33 + $0xc68] sm:$0xff]  ;;  %v6601_v45 = vld [vmem:[#allocation33 + $0xcf8] sm:$0xff] }
 0xea8   :  { %9700 = vmatpush1.bf16.msra.mxu0 %v9699_v27  ;;  %v6540_v27 = vld [vmem:[#allocation33 + $0xb10] sm:$0xff] }
 0xea9   :  { %9956 = vmatpush1.bf16.msra.mxu1 %v9955_v7  ;;  %9702 = vmatprep.subr.bf16.mxu0 %v9701_v1  ;;  %v9973_v7 = vpack.c.bf16 %v6545_v29, %v6541_v15  ;;  %v6544_v1 = vld [vmem:[#allocation33 + $0xb30] sm:$0xff]  ;;  %v6174_v15 = vadd.f32 %v6149_v54, %v12221_v25  ;;  %v6594_v54 = vld [vmem:[#allocation33 + $0xcc0] sm:$0xff] }
 0xeaa   :  { %9958 = vmatprep.subr.bf16.mxu1 %v9957_v40  ;;  %v6553_v40 = vld [vmem:[#allocation33 + $0xb78] sm:$0xff]  ;;  %v9975_v22 = vpack.c.bf16 %v6544_v1, %v6540_v27  ;;  %v6576_v27 = vld [vmem:[#allocation33 + $0xc30] sm:$0xff]  ;;  %v6579_v1 = vld [vmem:[#allocation33 + $0xc48] sm:$0xff] }
 0xeab   :  { %v9991_v25 = vpack.c.bf16 %v6576_v27, %v6572_v49  ;;  %v9737_v35 = vpack.c.bf16 %v6583_v24, %v6579_v1  ;;  %v6617_v49 = vld [vmem:[#allocation33 + $0xd78] sm:$0xff]  ;;  %v6610_v24 = vld [vmem:[#allocation33 + $0xd40] sm:$0xff] }
 0xeac   :  { %9704 = vmatpush1.bf16.msra.mxu0 %v9703_v21  ;;  %v6548_v21 = vld [vmem:[#allocation33 + $0xb50] sm:$0xff] }
 0xead   :  { %9960 = vmatpush1.bf16.msra.mxu1 %v9959_v9  ;;  %9706 = vmatprep.subr.bf16.mxu0 %v9705_v16  ;;  %v9977_v9 = vpack.c.bf16 %v6553_v40, %v6549_v30  ;;  %v6552_v16 = vld [vmem:[#allocation33 + $0xb70] sm:$0xff]  ;;  %v6585_v30 = vld [vmem:[#allocation33 + $0xc78] sm:$0xff]  ;;  %v6182_v40 = vmax.f32 %v6174_v15, 0.0 }
 0xeae   :  { %9962 = vmatprep.subr.bf16.mxu1 %v9961_v6  ;;  %v6561_v6 = vld [vmem:[#allocation33 + $0xbb8] sm:$0xff]  ;;  %v9979_v50 = vpack.c.bf16 %v6552_v16, %v6548_v21  ;;  %v6587_v21 = vld [vmem:[#allocation33 + $0xc88] sm:$0xff]  ;;  %v6604_v15 = vld [vmem:[#allocation33 + $0xd10] sm:$0xff] }
 0xeb0   :  { %9708 = vmatpush1.bf16.msra.mxu0 %v9707_v31  ;;  %v6556_v31 = vld [vmem:[#allocation33 + $0xb90] sm:$0xff] }
 0xeb1   :  { %9964 = vmatpush1.bf16.msra.mxu1 %v9963_v57  ;;  %9710 = vmatprep.subr.bf16.mxu0 %v9709_v58  ;;  %v9981_v57 = vpack.c.bf16 %v6561_v6, %v6557_v20  ;;  %v6560_v58 = vld [vmem:[#allocation33 + $0xbb0] sm:$0xff] }
 0xeb2   :  { %9966 = vmatprep.subr.bf16.mxu1 %v9965_v47  ;;  %v6569_v47 = vld [vmem:[#allocation33 + $0xbf8] sm:$0xff]  ;;  %v9983_v63 = vpack.c.bf16 %v6560_v58, %v6556_v31  ;;  %v6592_v31 = vld [vmem:[#allocation33 + $0xcb0] sm:$0xff]  ;;  %v6599_v58 = vld [vmem:[#allocation33 + $0xce8] sm:$0xff] }
 0xeb3   :  { %v9985_v60 = vpack.c.bf16 %v6569_v47, %v6565_v56  ;;  %v9999_v47 = vpack.c.bf16 %v6592_v31, %v6588_v52  ;;  %v6626_v31 = vld [vmem:[#allocation33 + $0xdc0] sm:$0xff] }
 0xeb4   :  { %9712 = vmatpush1.bf16.msra.mxu0 %v9711_v59  ;;  %v6562_v59 = vld [vmem:[#allocation33 + $0xbc0] sm:$0xff] }
 0xeb5   :  { %9968 = vmatpush1.bf16.msra.mxu1 %v9967_v3  ;;  %9714 = vmatprep.subr.bf16.mxu0 %v9713_v51  ;;  %v6566_v3 = vld [vmem:[#allocation33 + $0xbe0] sm:$0xff]  ;;  %v6564_v51 = vld [vmem:[#allocation33 + $0xbd0] sm:$0xff] }
 0xeb6   :  { %9970 = vmatprep.subr.bf16.mxu1 %v9969_v11  ;;  %v6575_v11 = vld [vmem:[#allocation33 + $0xc28] sm:$0xff]  ;;  %v9731_v32 = vpack.c.bf16 %v6566_v3, %v6562_v59  ;;  %v9987_v29 = vpack.c.bf16 %v6568_v33, %v6564_v51  ;;  %v10001_v59 = vpack.c.bf16 %v6601_v45, %v6597_v19  ;;  %v6600_v3 = vld [vmem:[#allocation33 + $0xcf0] sm:$0xff]  ;;  %v6605_v33 = vld [vmem:[#allocation33 + $0xd18] sm:$0xff] }
 0xeb7   :  { %v6603_v51 = vld [vmem:[#allocation33 + $0xd08] sm:$0xff]  ;;  %v6632_v45 = vld [vmem:[#allocation33 + $0xdf0] sm:$0xff] }
 0xeb8   :  { %9716 = vmatpush1.bf16.msra.mxu0 %v9715_v43  ;;  %v9733_v43 = vpack.c.bf16 %v6575_v11, %v6571_v28  ;;  %v6609_v28 = vld [vmem:[#allocation33 + $0xd38] sm:$0xff] }
 0xeb9   :  { %9972 = vmatpush1.bf16.msra.mxu1 %v9971_v46  ;;  %9718 = vmatprep.subr.bf16.mxu0 %v9717_v48  ;;  %v6570_v46 = vld [vmem:[#allocation33 + $0xc00] sm:$0xff] }
 0xeba   :  { %9974 = vmatprep.subr.bf16.mxu1 %v9973_v7  ;;  %v6574_v48 = vld [vmem:[#allocation33 + $0xc20] sm:$0xff]  ;;  %v6177_v7 = vadd.f32 %v6161_v61, %v12204_v8  ;;  %v9993_v8 = vpack.c.bf16 %v6585_v30, %v6581_v53  ;;  %v6612_v53 = vld [vmem:[#allocation33 + $0xd50] sm:$0xff] }
 0xebb   :  { %v9735_v44 = vpack.c.bf16 %v6574_v48, %v6570_v46  ;;  %v6611_v46 = vld [vmem:[#allocation33 + $0xd48] sm:$0xff] }
 0xebc   :  { %9720 = vmatpush1.bf16.msra.mxu0 %v9719_v17  ;;  %v6578_v17 = vld [vmem:[#allocation33 + $0xc40] sm:$0xff]  ;;  %v6185_v16 = vmax.f32 %v6177_v7, 0.0  ;;  %v6615_v48 = vld [vmem:[#allocation33 + $0xd68] sm:$0xff] }
 0xebd   :  { %9976 = vmatpush1.bf16.msra.mxu1 %v9975_v22  ;;  %9722 = vmatprep.subr.bf16.mxu0 %v9721_v18  ;;  %v6582_v22 = vld [vmem:[#allocation33 + $0xc60] sm:$0xff]  ;;  %v6580_v18 = vld [vmem:[#allocation33 + $0xc50] sm:$0xff]  ;;  %v9753_v1 = vpack.c.bf16 %v6615_v48, %v6611_v46 }
 0xebe   :  { %9978 = vmatprep.subr.bf16.mxu1 %v9977_v9  ;;  %v6591_v9 = vld [vmem:[#allocation33 + $0xca8] sm:$0xff]  ;;  %v9739_v20 = vpack.c.bf16 %v6582_v22, %v6578_v17  ;;  %v9995_v6 = vpack.c.bf16 %v6584_v62, %v6580_v18  ;;  %v6621_v22 = vld [vmem:[#allocation33 + $0xd98] sm:$0xff]  ;;  %v6646_v46 = vld [vmem:[#allocation33 + $0xe60] sm:$0xff] }
 0xebf   :  { %v6623_v17 = vld [vmem:[#allocation33 + $0xda8] sm:$0xff]  ;;  %v6625_v18 = vld [vmem:[#allocation33 + $0xdb8] sm:$0xff]  ;;  %v6644_v48 = vld [vmem:[#allocation33 + $0xe50] sm:$0xff] }
 0xec0   :  { %9724 = vmatpush1.bf16.msra.mxu0 %v9723_v34  ;;  %v9741_v34 = vpack.c.bf16 %v6591_v9, %v6587_v21  ;;  %v6618_v9 = vld [vmem:[#allocation33 + $0xd80] sm:$0xff]  ;;  %v10013_v38 = vpack.c.bf16 %v6625_v18, %v6621_v22  ;;  %v6656_v18 = vld [vmem:[#allocation33 + $0xeb0] sm:$0xff] }
 0xec1   :  { %9980 = vmatpush1.bf16.msra.mxu1 %v9979_v50  ;;  %9726 = vmatprep.subr.bf16.mxu0 %v9725_v12  ;;  %v6586_v50 = vld [vmem:[#allocation33 + $0xc80] sm:$0xff] }
 0xec2   :  { %9982 = vmatprep.subr.bf16.mxu1 %v9981_v57  ;;  %v6590_v12 = vld [vmem:[#allocation33 + $0xca0] sm:$0xff]  ;;  %v6595_v57 = vld [vmem:[#allocation33 + $0xcc8] sm:$0xff] }
 0xec3   :  { %v9743_v56 = vpack.c.bf16 %v6590_v12, %v6586_v50  ;;  %v6633_v50 = vld [vmem:[#allocation33 + $0xdf8] sm:$0xff] }
 0xec4   :  { %9728 = vmatpush1.bf16.msra.mxu0 %v9727_v0  ;;  %v9745_v0 = vpack.c.bf16 %v6599_v58, %v6595_v57  ;;  %v6630_v57 = vld [vmem:[#allocation33 + $0xde0] sm:$0xff]  ;;  %v6628_v58 = vld [vmem:[#allocation33 + $0xdd0] sm:$0xff] }
 0xec5   :  { %9984 = vmatpush1.bf16.msra.mxu1 %v9983_v63  ;;  %9730 = vmatprep.subr.bf16.mxu0 %v9729_v4  ;;  %v6598_v63 = vld [vmem:[#allocation33 + $0xce0] sm:$0xff]  ;;  %v6596_v4 = vld [vmem:[#allocation33 + $0xcd0] sm:$0xff] }
 0xec6   :  { %9986 = vmatprep.subr.bf16.mxu1 %v9985_v60  ;;  %v6607_v60 = vld [vmem:[#allocation33 + $0xd28] sm:$0xff]  ;;  %v9747_v11 = vpack.c.bf16 %v6598_v63, %v6594_v54  ;;  %v10003_v61 = vpack.c.bf16 %v6600_v3, %v6596_v4  ;;  %v6641_v54 = vld [vmem:[#allocation33 + $0xe38] sm:$0xff]  ;;  %v9763_v63 = vpack.c.bf16 %v6630_v57, %v6626_v31  ;;  %v10019_v4 = vpack.c.bf16 %v6632_v45, %v6628_v58  ;;  %v6634_v3 = vld [vmem:[#allocation33 + $0xe00] sm:$0xff] }
 0xec7   :  { %v9749_v14 = vpack.c.bf16 %v6607_v60, %v6603_v51  ;;  %v6638_v51 = vld [vmem:[#allocation33 + $0xe20] sm:$0xff]  ;;  %v6636_v60 = vld [vmem:[#allocation33 + $0xe10] sm:$0xff]  ;;  %v6673_v31 = vld [vmem:[#allocation33 + $0xf38] sm:$0xff] }
 0xec8   :  { %9732 = vmatpush1.bf16.msra.mxu0 %v9731_v32  ;;  %v6606_v32 = vld [vmem:[#allocation33 + $0xd20] sm:$0xff] }
 0xec9   :  { %9988 = vmatpush1.bf16.msra.mxu1 %v9987_v29  ;;  %9734 = vmatprep.subr.bf16.mxu0 %v9733_v43  ;;  %v10005_v29 = vpack.c.bf16 %v6609_v28, %v6605_v33  ;;  %v6608_v43 = vld [vmem:[#allocation33 + $0xd30] sm:$0xff]  ;;  %v9751_v27 = vpack.c.bf16 %v6606_v32, %v6602_v39  ;;  %v6649_v39 = vld [vmem:[#allocation33 + $0xe78] sm:$0xff]  ;;  %v9767_v32 = vpack.c.bf16 %v6638_v51, %v6634_v3  ;;  %v6666_v45 = vld [vmem:[#allocation33 + $0xf00] sm:$0xff] }
 0xeca   :  { %9990 = vmatprep.subr.bf16.mxu1 %v9989_v2  ;;  %v6613_v2 = vld [vmem:[#allocation33 + $0xd58] sm:$0xff]  ;;  %v10007_v7 = vpack.c.bf16 %v6608_v43, %v6604_v15  ;;  %v6640_v28 = vld [vmem:[#allocation33 + $0xe30] sm:$0xff]  ;;  %v6642_v43 = vld [vmem:[#allocation33 + $0xe40] sm:$0xff] }
 0xecb   :  { %6927 = vmatmul.mubr.f32.vlgmr.msra.gmra.mrb[126].mxu0 %v6182_v40  ;;  %v10009_v30 = vpack.c.bf16 %v6617_v49, %v6613_v2  ;;  %v10023_v15 = vpack.c.bf16 %v6640_v28, %v6636_v60  ;;  %v6648_v49 = vld [vmem:[#allocation33 + $0xe70] sm:$0xff]  ;;  %v6681_v3 = vld [vmem:[#allocation33 + $0xf78] sm:$0xff]  ;;  %v6674_v28 = vld [vmem:[#allocation33 + $0xf40] sm:$0xff] }
 0xecc   :  { %7211 = vmatmul.mubr.f32.vlgmr.msra.gmra.mrb[114].mxu1 %v6182_v40  ;;  %9736 = vmatpush1.bf16.msra.mxu0 %v9735_v44  ;;  %v6614_v44 = vld [vmem:[#allocation33 + $0xd60] sm:$0xff]  ;;  %v6616_v40 = vld [vmem:[#allocation33 + $0xd70] sm:$0xff] }
 0xecd   :  { %6997 = vmatprep.mubr.f32.mxu0 %v6185_v16  ;;  %9992 = vmatpush1.bf16.msra.mxu1 %v9991_v25  ;;  %v6619_v25 = vld [vmem:[#allocation33 + $0xd88] sm:$0xff]  ;;  %v10011_v62 = vpack.c.bf16 %v6616_v40, %v6612_v53  ;;  %v10027_v53 = vpack.c.bf16 %v6648_v49, %v6644_v48  ;;  %v6650_v40 = vld [vmem:[#allocation33 + $0xe80] sm:$0xff] }
 0xece   :  { %7281 = vmatprep.mubr.f32.mxu1 %v6185_v16  ;;  %9738 = vmatprep.subr.bf16.mxu0 %v9737_v35  ;;  %v9755_v35 = vpack.c.bf16 %v6614_v44, %v6610_v24  ;;  %v9757_v21 = vpack.c.bf16 %v6623_v17, %v6619_v25  ;;  %v6622_v16 = vld [vmem:[#allocation33 + $0xda0] sm:$0xff]  ;;  %v6657_v24 = vld [vmem:[#allocation33 + $0xeb8] sm:$0xff]  ;;  %v9771_v44 = vpack.c.bf16 %v6646_v46, %v6642_v43  ;;  %v6652_v17 = vld [vmem:[#allocation33 + $0xe90] sm:$0xff] }
 0xecf   :  { %9994 = vmatprep.subr.bf16.mxu1 %v9993_v8  ;;  %v6620_v8 = vld [vmem:[#allocation33 + $0xd90] sm:$0xff]  ;;  %v9759_v12 = vpack.c.bf16 %v6622_v16, %v6618_v9  ;;  %v6654_v25 = vld [vmem:[#allocation33 + $0xea0] sm:$0xff]  ;;  %v6665_v9 = vld [vmem:[#allocation33 + $0xef8] sm:$0xff] }
 0xed0   :  { %9740 = vmatpush1.bf16.msra.mxu0 %v9739_v20  ;;  %v6627_v20 = vld [vmem:[#allocation33 + $0xdc8] sm:$0xff]  ;;  %v10015_v52 = vpack.c.bf16 %v6624_v13, %v6620_v8  ;;  %v9775_v16 = vpack.c.bf16 %v6654_v25, %v6650_v40  ;;  %v10031_v8 = vpack.c.bf16 %v6656_v18, %v6652_v17  ;;  %v6658_v13 = vld [vmem:[#allocation33 + $0xec0] sm:$0xff]  ;;  %v6689_v43 = vld [vmem:[#allocation33 + $0xfb8] sm:$0xff]  ;;  %v6157_v17 = vrot.slane %v12224_v42, %v2800_v10 }
 0xed1   :  { %9996 = vmatpush1.bf16.msra.mxu1 %v9995_v6  ;;  %9742 = vmatprep.subr.bf16.mxu0 %v9741_v34  ;;  %v6631_v6 = vld [vmem:[#allocation33 + $0xde8] sm:$0xff]  ;;  %v6629_v34 = vld [vmem:[#allocation33 + $0xdd8] sm:$0xff]  ;;  %v6682_v49 = vld [vmem:[#allocation33 + $0xf80] sm:$0xff] }
 0xed2   :  { %9998 = vmatprep.subr.bf16.mxu1 %v9997_v5  ;;  %v9761_v5 = vpack.c.bf16 %v6631_v6, %v6627_v20  ;;  %v10017_v19 = vpack.c.bf16 %v6633_v50, %v6629_v34  ;;  %v6662_v20 = vld [vmem:[#allocation33 + $0xee0] sm:$0xff]  ;;  %v6660_v6 = vld [vmem:[#allocation33 + $0xed0] sm:$0xff]  ;;  %v6697_v40 = vld [vmem:[#allocation33 + $0xff8] sm:$0xff] }
 0xed3   :  { %v6664_v50 = vld [vmem:[#allocation33 + $0xef0] sm:$0xff]  ;;  %v9779_v57 = vpack.c.bf16 %v6662_v20, %v6658_v13  ;;  %v6698_v10 = vld [vmem:[#allocation35] sm:$0xf]  ;;  %v7292_v20 = vld [vmem:[#allocation36] sm:$0xf] }
 0xed4   :  { %9744 = vmatpush1.bf16.msra.mxu0 %v9743_v56  ;;  %v6635_v56 = vld [vmem:[#allocation33 + $0xe08] sm:$0xff]  ;;  %v10035_v58 = vpack.c.bf16 %v6664_v50, %v6660_v6  ;;  %v6703_v42 = vrot.slane %v6698_v10, %v12358_v36  ;;  %v6711_v6 = vrot.slane %v6698_v10, %v12359_v41  ;;  %v6715_v50 = vrot.slane %v6698_v10, %v12098_v23 }
 0xed5   :  { %10000 = vmatpush1.bf16.msra.mxu1 %v9999_v47  ;;  %9746 = vmatprep.subr.bf16.mxu0 %v9745_v0  ;;  %v6639_v47 = vld [vmem:[#allocation33 + $0xe28] sm:$0xff]  ;;  %v6637_v0 = vld [vmem:[#allocation33 + $0xe18] sm:$0xff] }
 0xed6   :  { %10002 = vmatprep.subr.bf16.mxu1 %v10001_v59  ;;  %v9765_v59 = vpack.c.bf16 %v6639_v47, %v6635_v56  ;;  %v10021_v33 = vpack.c.bf16 %v6641_v54, %v6637_v0  ;;  %v6670_v56 = vld [vmem:[#allocation33 + $0xf20] sm:$0xff]  ;;  %v6668_v47 = vld [vmem:[#allocation33 + $0xf10] sm:$0xff] }
 0xed7   :  { %v6672_v54 = vld [vmem:[#allocation33 + $0xf30] sm:$0xff]  ;;  %v9783_v51 = vpack.c.bf16 %v6670_v56, %v6666_v45  ;;  %v7301_v45 = vrot.slane %v7292_v20, %v12360_v55 }
 0xed8   :  { %9748 = vmatpush1.bf16.msra.mxu0 %v9747_v11  ;;  %v6643_v11 = vld [vmem:[#allocation33 + $0xe48] sm:$0xff]  ;;  %v10039_v60 = vpack.c.bf16 %v6672_v54, %v6668_v47 }
 0xed9   :  { %10004 = vmatpush1.bf16.msra.mxu1 %v10003_v61  ;;  %9750 = vmatprep.subr.bf16.mxu0 %v9749_v14  ;;  %v6647_v61 = vld [vmem:[#allocation33 + $0xe68] sm:$0xff]  ;;  %v6645_v14 = vld [vmem:[#allocation33 + $0xe58] sm:$0xff] }
 0xeda   :  { %10006 = vmatprep.subr.bf16.mxu1 %v10005_v29  ;;  %v9769_v29 = vpack.c.bf16 %v6647_v61, %v6643_v11  ;;  %v10025_v2 = vpack.c.bf16 %v6649_v39, %v6645_v14  ;;  %v6678_v11 = vld [vmem:[#allocation33 + $0xf60] sm:$0xff]  ;;  %v6676_v61 = vld [vmem:[#allocation33 + $0xf50] sm:$0xff] }
 0xedb   :  { %v6680_v39 = vld [vmem:[#allocation33 + $0xf70] sm:$0xff]  ;;  %v9787_v46 = vpack.c.bf16 %v6678_v11, %v6674_v28 }
 0xedc   :  { %9752 = vmatpush1.bf16.msra.mxu0 %v9751_v27  ;;  %v6651_v27 = vld [vmem:[#allocation33 + $0xe88] sm:$0xff]  ;;  %v10043_v48 = vpack.c.bf16 %v6680_v39, %v6676_v61  ;;  %v7357_v39 = vld [vmem:[#allocation3] ss:$0 sm:$0xff] }
 0xedd   :  { %10008 = vmatpush1.bf16.msra.mxu1 %v10007_v7  ;;  %9754 = vmatprep.subr.bf16.mxu0 %v9753_v1  ;;  %v6655_v7 = vld [vmem:[#allocation33 + $0xea8] sm:$0xff]  ;;  %v6653_v1 = vld [vmem:[#allocation33 + $0xe98] sm:$0xff] }
 0xede   :  { %10010 = vmatprep.subr.bf16.mxu1 %v10009_v30  ;;  %v9773_v30 = vpack.c.bf16 %v6655_v7, %v6651_v27  ;;  %v10029_v22 = vpack.c.bf16 %v6657_v24, %v6653_v1  ;;  %v6686_v27 = vld [vmem:[#allocation33 + $0xfa0] sm:$0xff]  ;;  %v6684_v7 = vld [vmem:[#allocation33 + $0xf90] sm:$0xff] }
 0xedf   :  { %v6688_v24 = vld [vmem:[#allocation33 + $0xfb0] sm:$0xff]  ;;  %v9791_v25 = vpack.c.bf16 %v6686_v27, %v6682_v49 }
 0xee0   :  { %9756 = vmatpush1.bf16.msra.mxu0 %v9755_v35  ;;  %v6659_v35 = vld [vmem:[#allocation33 + $0xec8] sm:$0xff] }
 0xee1   :  { %10012 = vmatpush1.bf16.msra.mxu1 %v10011_v62  ;;  %9758 = vmatprep.subr.bf16.mxu0 %v9757_v21  ;;  %v6663_v62 = vld [vmem:[#allocation33 + $0xee8] sm:$0xff]  ;;  %v6661_v21 = vld [vmem:[#allocation33 + $0xed8] sm:$0xff] }
 0xee2   :  { %10014 = vmatprep.subr.bf16.mxu1 %v10013_v38  ;;  %v9777_v38 = vpack.c.bf16 %v6663_v62, %v6659_v35  ;;  %v10033_v34 = vpack.c.bf16 %v6665_v9, %v6661_v21  ;;  %v6690_v35 = vld [vmem:[#allocation33 + $0xfc0] sm:$0xff]  ;;  %v6692_v9 = vld [vmem:[#allocation33 + $0xfd0] sm:$0xff] }
 0xee3   :  { %v6694_v62 = vld [vmem:[#allocation33 + $0xfe0] sm:$0xff] }
 0xee4   :  { %9760 = vmatpush1.bf16.msra.mxu0 %v9759_v12  ;;  %v6667_v12 = vld [vmem:[#allocation33 + $0xf08] sm:$0xff] }
 0xee5   :  { %10016 = vmatpush1.bf16.msra.mxu1 %v10015_v52  ;;  %9762 = vmatprep.subr.bf16.mxu0 %v9761_v5  ;;  %v6671_v52 = vld [vmem:[#allocation33 + $0xf28] sm:$0xff]  ;;  %v6669_v5 = vld [vmem:[#allocation33 + $0xf18] sm:$0xff] }
 0xee6   :  { %10018 = vmatprep.subr.bf16.mxu1 %v10017_v19  ;;  %v9781_v19 = vpack.c.bf16 %v6671_v52, %v6667_v12  ;;  %v10037_v0 = vpack.c.bf16 %v6673_v31, %v6669_v5  ;;  %v7297_v52 = vrot.slane %v7292_v20, %v12358_v36 }
 0xee8   :  { %9764 = vmatpush1.bf16.msra.mxu0 %v9763_v63  ;;  %v6675_v63 = vld [vmem:[#allocation33 + $0xf48] sm:$0xff] }
 0xee9   :  { %10020 = vmatpush1.bf16.msra.mxu1 %v10019_v4  ;;  %9766 = vmatprep.subr.bf16.mxu0 %v9765_v59  ;;  %v6679_v4 = vld [vmem:[#allocation33 + $0xf68] sm:$0xff]  ;;  %v6677_v59 = vld [vmem:[#allocation33 + $0xf58] sm:$0xff] }
 0xeea   :  { %10022 = vmatprep.subr.bf16.mxu1 %v10021_v33  ;;  %v9785_v33 = vpack.c.bf16 %v6679_v4, %v6675_v63  ;;  %v10041_v14 = vpack.c.bf16 %v6681_v3, %v6677_v59  ;;  %v7309_v4 = vrot.slane %v7292_v20, %v12098_v23 }
 0xeec   :  { %9768 = vmatpush1.bf16.msra.mxu0 %v9767_v32  ;;  %v6683_v32 = vld [vmem:[#allocation33 + $0xf88] sm:$0xff] }
 0xeed   :  { %10024 = vmatpush1.bf16.msra.mxu1 %v10023_v15  ;;  %9770 = vmatprep.subr.bf16.mxu0 %v9769_v29  ;;  %v6687_v15 = vld [vmem:[#allocation33 + $0xfa8] sm:$0xff]  ;;  %v6685_v29 = vld [vmem:[#allocation33 + $0xf98] sm:$0xff] }
 0xeee   :  { %10026 = vmatprep.subr.bf16.mxu1 %v10025_v2  ;;  %v9789_v2 = vpack.c.bf16 %v6687_v15, %v6683_v32  ;;  %v10045_v1 = vpack.c.bf16 %v6689_v43, %v6685_v29 }
 0xef0   :  { %9772 = vmatpush1.bf16.msra.mxu0 %v9771_v44  ;;  %v6691_v44 = vld [vmem:[#allocation33 + $0xfc8] sm:$0xff] }
 0xef1   :  { %10028 = vmatpush1.bf16.msra.mxu1 %v10027_v53  ;;  %9774 = vmatprep.subr.bf16.mxu0 %v9773_v30  ;;  %v6695_v53 = vld [vmem:[#allocation33 + $0xfe8] sm:$0xff]  ;;  %v6693_v30 = vld [vmem:[#allocation33 + $0xfd8] sm:$0xff] }
 0xef2   :  { %10030 = vmatprep.subr.bf16.mxu1 %v10029_v22  ;;  %v10047_v22 = vpack.c.bf16 %v6688_v24, %v6684_v7  ;;  %v9793_v18 = vpack.c.bf16 %v6695_v53, %v6691_v44  ;;  %v10049_v21 = vpack.c.bf16 %v6697_v40, %v6693_v30 }
 0xef4   :  { %9776 = vmatpush1.bf16.msra.mxu0 %v9775_v16  ;;  %v6696_v16 = vld [vmem:[#allocation33 + $0xff0] sm:$0xff] }
 0xef5   :  { %10032 = vmatpush1.bf16.msra.mxu1 %v10031_v8  ;;  %9778 = vmatprep.subr.bf16.mxu0 %v9777_v38  ;;  %v9795_v8 = vpack.c.bf16 %v6694_v62, %v6690_v35  ;;  %v6176_v38 = vadd.f32 %v6157_v17, %v12202_v37  ;;  %v10051_v13 = vpack.c.bf16 %v6696_v16, %v6692_v9 }
 0xef6   :  { %10034 = vmatprep.subr.bf16.mxu1 %v10033_v34  ;;  %v6707_v34 = vrot.slane %v6698_v10, %v12360_v55 }
 0xef7   :  { %v6184_v26 = vmax.f32 %v6176_v38, 0.0 }
 0xef8   :  { %9780 = vmatpush1.bf16.msra.mxu0 %v9779_v57 }
 0xef9   :  { %10036 = vmatpush1.bf16.msra.mxu1 %v10035_v58  ;;  %9782 = vmatprep.subr.bf16.mxu0 %v9781_v19  ;;  %v7305_v58 = vrot.slane %v7292_v20, %v12359_v41 }
 0xefa   :  { %10038 = vmatprep.subr.bf16.mxu1 %v10037_v0 }
 0xefc   :  { %9784 = vmatpush1.bf16.msra.mxu0 %v9783_v51 }
 0xefd   :  { %10040 = vmatpush1.bf16.msra.mxu1 %v10039_v60  ;;  %9786 = vmatprep.subr.bf16.mxu0 %v9785_v33 }
 0xefe   :  { %10042 = vmatprep.subr.bf16.mxu1 %v10041_v14 }
 0xf00   :  { %9788 = vmatpush1.bf16.msra.mxu0 %v9787_v46 }
 0xf01   :  { %10044 = vmatpush1.bf16.msra.mxu1 %v10043_v48  ;;  %9790 = vmatprep.subr.bf16.mxu0 %v9789_v2 }
 0xf02   :  { %10046 = vmatprep.subr.bf16.mxu1 %v10045_v1 }
 0xf04   :  { %9792 = vmatpush1.bf16.msra.mxu0 %v9791_v25 }
 0xf05   :  { %10048 = vmatpush1.bf16.msra.mxu1 %v10047_v22  ;;  %9794 = vmatprep.subr.bf16.mxu0 %v9793_v18 }
 0xf06   :  { %10050 = vmatprep.subr.bf16.mxu1 %v10049_v21 }
 0xf08   :  { %9796 = vmatpush1.bf16.msra.mxu0 %v9795_v8 }
 0xf09   :  { %10052 = vmatpush1.bf16.msra.mxu1 %v10051_v13 }
 0xf0b   :  { %6998 = vmatmul.mubr.f32.vlgmr.msra.gmra.mrb[126].mxu0 %v6184_v26 }
 0xf0c   :  { %7282 = vmatmul.mubr.f32.vlgmr.msra.gmra.mrb[114].mxu1 %v6184_v26 }
 0xfde   :  { %v6999_v37 = vpop.f32.mrb[126].mxu0 }
 0xfdf   :  { %v10067_v12 = vadd.f32 %v6999_v37, %v6703_v42  ;;  %v7283_v5 = vpop.f32.mrb[114].mxu1  ;;  %v7001_v31 = vpop.f32.mrb[127].mxu0 }
 0xfe0   :  { %v10069_v57 = vadd.f32 %v7283_v5, %v6711_v6  ;;  %v10068_v19 = vadd.f32 %v7001_v31, %v6707_v34  ;;  %v7285_v56 = vpop.f32.mrb[115].mxu1 }
 0xfe1   :  { %v7288_v47 = vmax.f32 %v10067_v12, 0.0  ;;  %v10070_v0 = vadd.f32 %v7285_v56, %v6715_v50 }
 0xfe2   :  { %v7290_v54 = vmax.f32 %v10069_v57, 0.0  ;;  %v7289_v63 = vmax.f32 %v10068_v19, 0.0 }
 0xfe3   :  { %v7314_v59 = vmul.f32 %v7297_v52, %v7288_v47  ;;  %v7291_v3 = vmax.f32 %v10070_v0, 0.0 }
 0xfe4   :  { %v7316_v51 = vmul.f32 %v7305_v58, %v7290_v54  ;;  %v7315_v36 = vmul.f32 %v7301_v45, %v7289_v63 }
 0xfe5   :  { %v7319_v60 = vsel %vm7318_vm2, %v7314_v59, 0.0  ;;  %v7317_v28 = vmul.f32 %v7309_v4, %v7291_v3 }
 0xfe6   :  { %v7320_v33 = vsel %vm7318_vm2, %v7315_v36, 0.0  ;;  %v7322_v41 = vsel %vm7318_vm2, %v7316_v51, 0.0 }
 0xfe7   :  { %v7321_v11 = vadd.f32 %v7320_v33, %v7319_v60  ;;  %v7324_v14 = vsel %vm7318_vm2, %v7317_v28, 0.0 }
 0xfe9   :  { %v7323_v61 = vadd.f32 %v7322_v41, %v7321_v11 }
 0xfeb   :  { %v7325_v55 = vadd.f32 %v7324_v14, %v7323_v61 }
 0xfed   :  { %7326 = vadd.xlane.f32.xlu0 %v7325_v55 }
0x107a   :  { %v7327_v32 = vpop.xlane.xlu0 %7326 }
0x107b   :  { %v7335_v15 = vadd.f32 %v7357_v39, %v7327_v32 }
0x107d   :  { %7337 = vst.msk [vmem:[%s12276_s27] sm:$0x3] %vm7336_vm1, %v7335_v15 }
0x107e   :  { %7342 = vsyncpa [#allocation5], 1 }
0x107f   :  { %7343 = vsyncpa [#allocation7], 1 }
0x1080   :  { %7344 = vsyncpa [#allocation10], 1 }
0x1081   :  { %7345 = vsyncpa [#allocation13], 1 }
0x1082   :  { %7346 = vsyncpa [#allocation16], 1 }
0x1083   :  { %7347 = vsyncpa [#allocation19], 1 }
0x1084   :  { %7348 = vsyncpa [#allocation22], 1 }
0x1085   :  { %7349 = vsyncpa [#allocation25], 1 }
0x1086   :  { %7350 = vsyncpa [#allocation28], 1 }
0x1087   :  { %7351 = vsyncpa [#allocation31], 1 }
0x1088   :  { %7352 = vsyncpa [#allocation34], 1 }
0x1089   :  { %7353 = vsyncpa [#allocation37], 1 }

</bundles_post_ra>
